<compile_context>
chip_gen: v7x
topology: tpu7x:2x2x1
jax: 0.10.0
libtpu: 0.0.40
codegen_flags: <defaults>
</compile_context>

<pallas_src>
import functools

import jax
import jax.numpy as jnp
from jax.experimental import pallas as pl
from jax.experimental.pallas import tpu as pltpu


# --------------------------------- fused level kernel ---------------------------------
def _unet_level_kernel(x_ref, skip_ref, up_w_ref,
                       c0_wx_ref, c0_ws_ref, c0_b_ref,
                       c1_w_ref, c1_b_ref, o_ref):
    """One UNet decoder level for a single batch element (grid axis 0 = batch)."""
    _, H, W, Cu = x_ref.shape
    Sh, Sw = 2 * H, 2 * W                      # spatial size after ConvTranspose2d
    Cc = c0_b_ref.shape[-1]
    Ho0, Wo0 = Sh - 2, Sw - 2                  # after conv0 (3x3 VALID)
    Ho1, Wo1 = Ho0 - 2, Wo0 - 2                # after conv1 (3x3 VALID)

    # --- ConvTranspose2d(Cu, Cu, kernel=2, stride=2): ONE fused MXU matmul ------------
    # up[2i+ki, 2j+kj, :] = x[i, j, :] @ W[ki, kj]  (bias folded into conv0's bias)
    xf = x_ref[0].reshape(H * W, Cu)                                        # bf16
    y = jnp.dot(xf, up_w_ref[...], preferred_element_type=jnp.float32)      # (H*W, 4*Cu)
    y = y.astype(jnp.bfloat16)                                              # bf16 interleave
    ys = [[y[:, (2 * ki + kj) * Cu:(2 * ki + kj + 1) * Cu].reshape(H, W, Cu)
           for kj in range(2)] for ki in range(2)]
    rows = [jnp.stack([ys[ki][0], ys[ki][1]], axis=2).reshape(H, Sw, Cu)
            for ki in range(2)]
    up = jnp.stack(rows, axis=1).reshape(Sh, Sw, Cu)                        # (2H, 2W, Cu) bf16
    # TODO(synk): replace the stack interleave with strided stores into a bf16 VMEM
    #             scratch (pl.ds(..., stride=2)) once confirmed to lower cleanly.

    skip = skip_ref[0]                          # already center-cropped to (Sh, Sw, Cc), bf16

    # --- conv0: 3x3 VALID over concat([up, skip], channel) + ReLU ---------------------
    # concat never materialized: two accumulating matmuls per (kh, kw) tap.
    acc0 = jnp.zeros((Ho0 * Wo0, Cc), jnp.float32)
    for kh in range(3):
        for kw in range(3):
            a = up[kh:kh + Ho0, kw:kw + Wo0, :].reshape(Ho0 * Wo0, Cu)
            s = skip[kh:kh + Ho0, kw:kw + Wo0, :].reshape(Ho0 * Wo0, Cc)
            acc0 = acc0 + jnp.dot(a, c0_wx_ref[kh, kw],
                                  preferred_element_type=jnp.float32)
            acc0 = acc0 + jnp.dot(s, c0_ws_ref[kh, kw],
                                  preferred_element_type=jnp.float32)
    h0 = jnp.maximum(acc0 + c0_b_ref[...], 0.0)          # c0_b already includes folded up_b
    h0 = h0.astype(jnp.bfloat16).reshape(Ho0, Wo0, Cc)

    # --- conv1: 3x3 VALID, Cc -> Cc, + ReLU -------------------------------------------
    acc1 = jnp.zeros((Ho1 * Wo1, Cc), jnp.float32)
    for kh in range(3):
        for kw in range(3):
            a = h0[kh:kh + Ho1, kw:kw + Wo1, :].reshape(Ho1 * Wo1, Cc)
            acc1 = acc1 + jnp.dot(a, c1_w_ref[kh, kw],
                                  preferred_element_type=jnp.float32)
    out = jnp.maximum(acc1 + c1_b_ref[...], 0.0)
    o_ref[0] = out.reshape(Ho1, Wo1, Cc).astype(o_ref.dtype)                # bf16 store


# ----------------------------------- level wrapper ------------------------------------
@functools.lru_cache(maxsize=None)
def _vmem_limit_bytes():
    """~75% of physical VMEM: ~48 MiB on v7x (64 MiB/TC), ~96 MiB on v5e/v6e (128 MiB)."""
    try:
        cap = int(pltpu.get_tpu_info().vmem_capacity_bytes)
    except Exception:
        cap = 128 * 1024 * 1024
    return int(max(min(cap * 3 // 4, 100 * 1024 * 1024), 32 * 1024 * 1024))


def _prep_level_params(p):
    """PyTorch-layout weights -> MXU-friendly bf16 layouts (biases stay f32)."""
    cu = p['up_w'].shape[0]
    cc = p['c1_w'].shape[0]
    # ConvTranspose weight (Cin, Cout, 2, 2) -> fused (Cu, 4*Cu); column block t = 2*ki + kj
    up_w = jnp.transpose(p['up_w'], (2, 3, 0, 1)).reshape(4, cu, cu)
    up_w = jnp.transpose(up_w, (1, 0, 2)).reshape(cu, 4 * cu)
    # conv0 weight split into x-half / skip-half (torch.cat([x_up, skip], dim=1) order)
    c0_wx = jnp.transpose(p['c0_w'][:, :cu], (2, 3, 1, 0))      # (3,3,Cu,Cc)
    c0_ws = jnp.transpose(p['c0_w'][:, cu:], (2, 3, 1, 0))      # (3,3,Cc,Cc)
    # fold ConvTranspose bias into conv0 bias: every VALID conv0 pixel sees all 9 taps
    c0_b_eff = p['c0_b'] + jnp.einsum('c,hwcd->d', p['up_b'], c0_wx)
    c1_w = jnp.transpose(p['c1_w'], (2, 3, 1, 0))               # (3,3,Cc,Cc)
    return dict(
        up_w=up_w.astype(jnp.bfloat16),
        c0_wx=c0_wx.astype(jnp.bfloat16),
        c0_ws=c0_ws.astype(jnp.bfloat16),
        c0_b=c0_b_eff.reshape(1, cc).astype(jnp.float32),
        c1_w=c1_w.astype(jnp.bfloat16),
        c1_b=p['c1_b'].reshape(1, cc).astype(jnp.float32),
    )


def _unet_level(x_nhwc, skip_nhwc, p):
    """x_nhwc: (N,H,W,Cu) bf16; skip_nhwc: (N,2H,2W,Cc) bf16, already center-cropped."""
    N, H, W, Cu = x_nhwc.shape
    _, Sh, Sw, Cc = skip_nhwc.shape
    assert (Sh, Sw) == (2 * H, 2 * W)
    Ho1, Wo1 = Sh - 4, Sw - 4

    pp = _prep_level_params(p)

    flops = 2 * N * (H * W * Cu * 4 * Cu
                     + (Sh - 2) * (Sw - 2) * 9 * (Cu + Cc) * Cc
                     + Ho1 * Wo1 * 9 * Cc * Cc)
    bytes_accessed = int(
        2 * (x_nhwc.size + skip_nhwc.size + N * Ho1 * Wo1 * Cc)            # bf16 activations
        + 2 * (pp['up_w'].size + pp['c0_wx'].size + pp['c0_ws'].size + pp['c1_w'].size)
        + 4 * (pp['c0_b'].size + pp['c1_b'].size))

    def _full(a):
        nd = a.ndim
        # Weight resident across the grid (constant index_map -> fetched once).
        # TODO(synk): pipeline_mode=pl.Buffered(1) (or one-shot DMA into scratch) to avoid
        #             double-buffering weights at production channel counts (v7x VMEM).
        return pl.BlockSpec(a.shape, lambda b: (0,) * nd)

    out = pl.pallas_call(
        _unet_level_kernel,
        out_shape=jax.ShapeDtypeStruct((N, Ho1, Wo1, Cc), jnp.bfloat16),
        grid_spec=pltpu.PrefetchScalarGridSpec(
            num_scalar_prefetch=0,
            grid=(N,),
            in_specs=[
                pl.BlockSpec((1, H, W, Cu), lambda b: (b, 0, 0, 0)),
                pl.BlockSpec((1, Sh, Sw, Cc), lambda b: (b, 0, 0, 0)),
                _full(pp['up_w']),
                _full(pp['c0_wx']), _full(pp['c0_ws']), _full(pp['c0_b']),
                _full(pp['c1_w']), _full(pp['c1_b']),
            ],
            out_specs=pl.BlockSpec((1, Ho1, Wo1, Cc), lambda b: (b, 0, 0, 0)),
        ),
        compiler_params=pltpu.CompilerParams(
            # batch tiles shard across v7x's 2 TensorCores; harmless on v5e/v6e
            dimension_semantics=("parallel",),
            vmem_limit_bytes=_vmem_limit_bytes(),
        ),
        cost_estimate=pl.CostEstimate(flops=flops, transcendentals=0,
                                      bytes_accessed=bytes_accessed),
    )(x_nhwc, skip_nhwc, pp['up_w'], pp['c0_wx'], pp['c0_ws'], pp['c0_b'],
      pp['c1_w'], pp['c1_b'])
    return out


# ------------------------------------ unet_upsample ------------------------------------
def init_params(key, chnlist):
    rev = list(reversed(chnlist))
    params = []
    scale = 0.05
    for idx in range(len(rev) - 1):
        cu = rev[idx]            # ConvTranspose2d(cu, cu, 2, 2)
        cc = rev[idx + 1]        # unet_convlayers(cu + cc, cc)
        key, k0, k1, k2, k3, k4, k5 = jax.random.split(key, 7)
        params.append(dict(
            up_w=jax.random.normal(k0, (cu, cu, 2, 2), jnp.float32) * scale,
            up_b=jax.random.normal(k1, (cu,), jnp.float32) * scale,
            c0_w=jax.random.normal(k2, (cc, cu + cc, 3, 3), jnp.float32) * scale,
            c0_b=jax.random.normal(k3, (cc,), jnp.float32) * scale,
            c1_w=jax.random.normal(k4, (cc, cc, 3, 3), jnp.float32) * scale,
            c1_b=jax.random.normal(k5, (cc,), jnp.float32) * scale,
        ))
    return params


def unet_upsample_forward(params, x_nchw, contracting_path_nchw):
    """Mirrors unet_upsample.forward; inputs/outputs are NCHW like PyTorch (f32 out)."""
    skips = list(contracting_path_nchw)
    # bf16 cast BEFORE the boundary transpose -> half the transpose bytes
    x = jnp.transpose(x_nchw.astype(jnp.bfloat16), (0, 2, 3, 1))          # NHWC bf16
    for p in params:
        _, H, W, _ = x.shape
        Sh, Sw = 2 * H, 2 * W
        skip = skips.pop()                                                # deepest-first
        Hs, Ws = skip.shape[2], skip.shape[3]
        assert Hs >= Sh and Ws >= Sw, "center_crop with padding not supported"
        # torchvision center_crop offsets (exact rounding), fused with cast + transpose
        top = int(round((Hs - Sh) / 2.0))
        left = int(round((Ws - Sw) / 2.0))
        skip = skip[:, :, top:top + Sh, left:left + Sw].astype(jnp.bfloat16)
        skip = jnp.transpose(skip, (0, 2, 3, 1))                          # (N,Sh,Sw,Cc) bf16
        x = _unet_level(x, skip, p)        # upsample + crop/concat + conv0 + conv1 (bf16)
    return jnp.transpose(x, (0, 3, 1, 2)).astype(jnp.float32)


if __name__ == "__main__":
    # Small configuration consistent with the module (chnlist scaled down).
    chnlist = [8, 16, 32]                  # reversed: [32, 16, 8]
    key = jax.random.PRNGKey(0)
    kp, kx, k8, k16 = jax.random.split(key, 4)

    params = init_params(kp, chnlist)

    # bottleneck input (deepest feature): NCHW
    x = jax.random.normal(kx, (2, 32, 4, 4), jnp.float32)
    # contracting path features (shallow first, popped deepest-first), NCHW
    contracting_path = [
        jax.random.normal(k8, (2, 8, 12, 12), jnp.float32),    # 8-channel level
        jax.random.normal(k16, (2, 16, 12, 12), jnp.float32),  # 16-channel level
    ]

    fwd = jax.jit(unet_upsample_forward)
    out = jax.block_until_ready(fwd(params, x, contracting_path))
    assert out.shape == (2, 8, 4, 4), out.shape
    print("KERNEL_OK")
</pallas_src>

<mosaic_0001>
module attributes {stable_mosaic.version = 11 : i64} {
  func.func @_unet_level_kernel(%arg0: i32, %arg1: memref<1x4x4x32xbf16, #tpu.memory_space<vmem>>, %arg2: memref<1x8x8x16xbf16, #tpu.memory_space<vmem>>, %arg3: memref<32x128xbf16, #tpu.memory_space<vmem>>, %arg4: memref<3x3x32x16xbf16, #tpu.memory_space<vmem>>, %arg5: memref<3x3x16x16xbf16, #tpu.memory_space<vmem>>, %arg6: memref<1x16xf32, #tpu.memory_space<vmem>>, %arg7: memref<3x3x16x16xbf16, #tpu.memory_space<vmem>>, %arg8: memref<1x16xf32, #tpu.memory_space<vmem>>, %arg9: memref<1x4x4x16xbf16, #tpu.memory_space<vmem>>) attributes {dimension_semantics = [#tpu.dimension_semantics<parallel>], iteration_bounds = array<i64: 2>, scalar_prefetch = 0 : i64, scratch_operands = 0 : i64, tpu.core_type = #tpu.core_type<tc>, window_params = [{transform_indices = @transform_0, window_bounds = array<i64: 1, 4, 4, 32>}, {transform_indices = @transform_1, window_bounds = array<i64: 1, 8, 8, 16>}, {pipeline_mode = #tpu.pipeline_mode<synchronous>, transform_indices = @transform_2, window_bounds = array<i64: 32, 128>}, {pipeline_mode = #tpu.pipeline_mode<synchronous>, transform_indices = @transform_3, window_bounds = array<i64: 3, 3, 32, 16>}, {pipeline_mode = #tpu.pipeline_mode<synchronous>, transform_indices = @transform_4, window_bounds = array<i64: 3, 3, 16, 16>}, {pipeline_mode = #tpu.pipeline_mode<synchronous>, transform_indices = @transform_5, window_bounds = array<i64: 1, 16>}, {pipeline_mode = #tpu.pipeline_mode<synchronous>, transform_indices = @transform_6, window_bounds = array<i64: 3, 3, 16, 16>}, {pipeline_mode = #tpu.pipeline_mode<synchronous>, transform_indices = @transform_7, window_bounds = array<i64: 1, 16>}, {transform_indices = @transform_8, window_bounds = array<i64: 1, 4, 4, 16>}]} {
    %c0 = arith.constant 0 : index
    %c0_0 = arith.constant 0 : index
    %c0_1 = arith.constant 0 : index
    %c0_2 = arith.constant 0 : index
    %0 = vector.load %arg1[%c0, %c0_0, %c0_1, %c0_2] : memref<1x4x4x32xbf16, #tpu.memory_space<vmem>>, vector<1x4x4x32xbf16>
    %1 = vector.shape_cast %0 : vector<1x4x4x32xbf16> to vector<4x4x32xbf16>
    %2 = vector.shape_cast %1 : vector<4x4x32xbf16> to vector<16x32xbf16>
    %c0_3 = arith.constant 0 : index
    %c0_4 = arith.constant 0 : index
    %3 = vector.load %arg3[%c0_3, %c0_4] : memref<32x128xbf16, #tpu.memory_space<vmem>>, vector<32x128xbf16>
    %cst = arith.constant dense<0.000000e+00> : vector<16x128xf32>
    %4 = tpu.matmul %2, %3, %cst {dimension_numbers = #tpu.dot_dimension_numbers<[1], [0], [0], [1], [0, 0, 1, 1], [], []>} : vector<16x32xbf16>, vector<32x128xbf16>, vector<16x128xf32> -> vector<16x128xf32>
    %5 = arith.truncf %4 : vector<16x128xf32> to vector<16x128xbf16>
    %6 = vector.extract_strided_slice %5 {offsets = [0, 0], sizes = [16, 32], strides = [1, 1]} : vector<16x128xbf16> to vector<16x32xbf16>
    %7 = vector.shape_cast %6 : vector<16x32xbf16> to vector<4x4x32xbf16>
    %8 = vector.extract_strided_slice %5 {offsets = [0, 32], sizes = [16, 32], strides = [1, 1]} : vector<16x128xbf16> to vector<16x32xbf16>
    %9 = vector.shape_cast %8 : vector<16x32xbf16> to vector<4x4x32xbf16>
    %10 = vector.extract_strided_slice %5 {offsets = [0, 64], sizes = [16, 32], strides = [1, 1]} : vector<16x128xbf16> to vector<16x32xbf16>
    %11 = vector.shape_cast %10 : vector<16x32xbf16> to vector<4x4x32xbf16>
    %12 = vector.extract_strided_slice %5 {offsets = [0, 96], sizes = [16, 32], strides = [1, 1]} : vector<16x128xbf16> to vector<16x32xbf16>
    %13 = vector.shape_cast %12 : vector<16x32xbf16> to vector<4x4x32xbf16>
    %14 = vector.shape_cast %7 : vector<4x4x32xbf16> to vector<4x4x1x32xbf16>
    %15 = vector.shape_cast %9 : vector<4x4x32xbf16> to vector<4x4x1x32xbf16>
    %16 = tpu.concatenate %14, %15 in 2 : vector<4x4x1x32xbf16>, vector<4x4x1x32xbf16> -> vector<4x4x2x32xbf16>
    %17 = vector.shape_cast %16 : vector<4x4x2x32xbf16> to vector<4x8x32xbf16>
    %18 = vector.shape_cast %11 : vector<4x4x32xbf16> to vector<4x4x1x32xbf16>
    %19 = vector.shape_cast %13 : vector<4x4x32xbf16> to vector<4x4x1x32xbf16>
    %20 = tpu.concatenate %18, %19 in 2 : vector<4x4x1x32xbf16>, vector<4x4x1x32xbf16> -> vector<4x4x2x32xbf16>
    %21 = vector.shape_cast %20 : vector<4x4x2x32xbf16> to vector<4x8x32xbf16>
    %22 = vector.shape_cast %17 : vector<4x8x32xbf16> to vector<4x1x8x32xbf16>
    %23 = vector.shape_cast %21 : vector<4x8x32xbf16> to vector<4x1x8x32xbf16>
    %24 = tpu.concatenate %22, %23 in 1 : vector<4x1x8x32xbf16>, vector<4x1x8x32xbf16> -> vector<4x2x8x32xbf16>
    %25 = vector.shape_cast %24 : vector<4x2x8x32xbf16> to vector<8x8x32xbf16>
    %c0_5 = arith.constant 0 : index
    %c0_6 = arith.constant 0 : index
    %c0_7 = arith.constant 0 : index
    %c0_8 = arith.constant 0 : index
    %26 = vector.load %arg2[%c0_5, %c0_6, %c0_7, %c0_8] : memref<1x8x8x16xbf16, #tpu.memory_space<vmem>>, vector<1x8x8x16xbf16>
    %27 = vector.shape_cast %26 : vector<1x8x8x16xbf16> to vector<8x8x16xbf16>
    %cst_9 = arith.constant 0.000000e+00 : f32
    %28 = vector.broadcast %cst_9 : f32 to vector<36x16xf32>
    %29 = vector.extract_strided_slice %25 {offsets = [0, 0, 0], sizes = [6, 6, 32], strides = [1, 1, 1]} : vector<8x8x32xbf16> to vector<6x6x32xbf16>
    %30 = vector.shape_cast %29 : vector<6x6x32xbf16> to vector<36x32xbf16>
    %31 = vector.extract_strided_slice %27 {offsets = [0, 0, 0], sizes = [6, 6, 16], strides = [1, 1, 1]} : vector<8x8x16xbf16> to vector<6x6x16xbf16>
    %32 = vector.shape_cast %31 : vector<6x6x16xbf16> to vector<36x16xbf16>
    %c0_10 = arith.constant 0 : index
    %c0_11 = arith.constant 0 : index
    %c0_12 = arith.constant 0 : index
    %c0_13 = arith.constant 0 : index
    %33 = vector.load %arg4[%c0_10, %c0_11, %c0_12, %c0_13] : memref<3x3x32x16xbf16, #tpu.memory_space<vmem>>, vector<1x1x32x16xbf16>
    %34 = vector.shape_cast %33 : vector<1x1x32x16xbf16> to vector<32x16xbf16>
    %cst_14 = arith.constant dense<0.000000e+00> : vector<36x16xf32>
    %35 = tpu.matmul %30, %34, %cst_14 {dimension_numbers = #tpu.dot_dimension_numbers<[1], [0], [0], [1], [0, 0, 1, 1], [], []>} : vector<36x32xbf16>, vector<32x16xbf16>, vector<36x16xf32> -> vector<36x16xf32>
    %36 = arith.addf %28, %35 : vector<36x16xf32>
    %c0_15 = arith.constant 0 : index
    %c0_16 = arith.constant 0 : index
    %c0_17 = arith.constant 0 : index
    %c0_18 = arith.constant 0 : index
    %37 = vector.load %arg5[%c0_15, %c0_16, %c0_17, %c0_18] : memref<3x3x16x16xbf16, #tpu.memory_space<vmem>>, vector<1x1x16x16xbf16>
    %38 = vector.shape_cast %37 : vector<1x1x16x16xbf16> to vector<16x16xbf16>
    %cst_19 = arith.constant dense<0.000000e+00> : vector<36x16xf32>
    %39 = tpu.matmul %32, %38, %cst_19 {dimension_numbers = #tpu.dot_dimension_numbers<[1], [0], [0], [1], [0, 0, 1, 1], [], []>} : vector<36x16xbf16>, vector<16x16xbf16>, vector<36x16xf32> -> vector<36x16xf32>
    %40 = arith.addf %36, %39 : vector<36x16xf32>
    %41 = vector.extract_strided_slice %25 {offsets = [0, 1, 0], sizes = [6, 6, 32], strides = [1, 1, 1]} : vector<8x8x32xbf16> to vector<6x6x32xbf16>
    %42 = vector.shape_cast %41 : vector<6x6x32xbf16> to vector<36x32xbf16>
    %43 = vector.extract_strided_slice %27 {offsets = [0, 1, 0], sizes = [6, 6, 16], strides = [1, 1, 1]} : vector<8x8x16xbf16> to vector<6x6x16xbf16>
    %44 = vector.shape_cast %43 : vector<6x6x16xbf16> to vector<36x16xbf16>
    %c0_20 = arith.constant 0 : index
    %c1 = arith.constant 1 : index
    %c0_21 = arith.constant 0 : index
    %c0_22 = arith.constant 0 : index
    %45 = vector.load %arg4[%c0_20, %c1, %c0_21, %c0_22] : memref<3x3x32x16xbf16, #tpu.memory_space<vmem>>, vector<1x1x32x16xbf16>
    %46 = vector.shape_cast %45 : vector<1x1x32x16xbf16> to vector<32x16xbf16>
    %cst_23 = arith.constant dense<0.000000e+00> : vector<36x16xf32>
    %47 = tpu.matmul %42, %46, %cst_23 {dimension_numbers = #tpu.dot_dimension_numbers<[1], [0], [0], [1], [0, 0, 1, 1], [], []>} : vector<36x32xbf16>, vector<32x16xbf16>, vector<36x16xf32> -> vector<36x16xf32>
    %48 = arith.addf %40, %47 : vector<36x16xf32>
    %c0_24 = arith.constant 0 : index
    %c1_25 = arith.constant 1 : index
    %c0_26 = arith.constant 0 : index
    %c0_27 = arith.constant 0 : index
    %49 = vector.load %arg5[%c0_24, %c1_25, %c0_26, %c0_27] : memref<3x3x16x16xbf16, #tpu.memory_space<vmem>>, vector<1x1x16x16xbf16>
    %50 = vector.shape_cast %49 : vector<1x1x16x16xbf16> to vector<16x16xbf16>
    %cst_28 = arith.constant dense<0.000000e+00> : vector<36x16xf32>
    %51 = tpu.matmul %44, %50, %cst_28 {dimension_numbers = #tpu.dot_dimension_numbers<[1], [0], [0], [1], [0, 0, 1, 1], [], []>} : vector<36x16xbf16>, vector<16x16xbf16>, vector<36x16xf32> -> vector<36x16xf32>
    %52 = arith.addf %48, %51 : vector<36x16xf32>
    %53 = vector.extract_strided_slice %25 {offsets = [0, 2, 0], sizes = [6, 6, 32], strides = [1, 1, 1]} : vector<8x8x32xbf16> to vector<6x6x32xbf16>
    %54 = vector.shape_cast %53 : vector<6x6x32xbf16> to vector<36x32xbf16>
    %55 = vector.extract_strided_slice %27 {offsets = [0, 2, 0], sizes = [6, 6, 16], strides = [1, 1, 1]} : vector<8x8x16xbf16> to vector<6x6x16xbf16>
    %56 = vector.shape_cast %55 : vector<6x6x16xbf16> to vector<36x16xbf16>
    %c0_29 = arith.constant 0 : index
    %c2 = arith.constant 2 : index
    %c0_30 = arith.constant 0 : index
    %c0_31 = arith.constant 0 : index
    %57 = vector.load %arg4[%c0_29, %c2, %c0_30, %c0_31] : memref<3x3x32x16xbf16, #tpu.memory_space<vmem>>, vector<1x1x32x16xbf16>
    %58 = vector.shape_cast %57 : vector<1x1x32x16xbf16> to vector<32x16xbf16>
    %cst_32 = arith.constant dense<0.000000e+00> : vector<36x16xf32>
    %59 = tpu.matmul %54, %58, %cst_32 {dimension_numbers = #tpu.dot_dimension_numbers<[1], [0], [0], [1], [0, 0, 1, 1], [], []>} : vector<36x32xbf16>, vector<32x16xbf16>, vector<36x16xf32> -> vector<36x16xf32>
    %60 = arith.addf %52, %59 : vector<36x16xf32>
    %c0_33 = arith.constant 0 : index
    %c2_34 = arith.constant 2 : index
    %c0_35 = arith.constant 0 : index
    %c0_36 = arith.constant 0 : index
    %61 = vector.load %arg5[%c0_33, %c2_34, %c0_35, %c0_36] : memref<3x3x16x16xbf16, #tpu.memory_space<vmem>>, vector<1x1x16x16xbf16>
    %62 = vector.shape_cast %61 : vector<1x1x16x16xbf16> to vector<16x16xbf16>
    %cst_37 = arith.constant dense<0.000000e+00> : vector<36x16xf32>
    %63 = tpu.matmul %56, %62, %cst_37 {dimension_numbers = #tpu.dot_dimension_numbers<[1], [0], [0], [1], [0, 0, 1, 1], [], []>} : vector<36x16xbf16>, vector<16x16xbf16>, vector<36x16xf32> -> vector<36x16xf32>
    %64 = arith.addf %60, %63 : vector<36x16xf32>
    %65 = vector.extract_strided_slice %25 {offsets = [1, 0, 0], sizes = [6, 6, 32], strides = [1, 1, 1]} : vector<8x8x32xbf16> to vector<6x6x32xbf16>
    %66 = vector.shape_cast %65 : vector<6x6x32xbf16> to vector<36x32xbf16>
    %67 = vector.extract_strided_slice %27 {offsets = [1, 0, 0], sizes = [6, 6, 16], strides = [1, 1, 1]} : vector<8x8x16xbf16> to vector<6x6x16xbf16>
    %68 = vector.shape_cast %67 : vector<6x6x16xbf16> to vector<36x16xbf16>
    %c1_38 = arith.constant 1 : index
    %c0_39 = arith.constant 0 : index
    %c0_40 = arith.constant 0 : index
    %c0_41 = arith.constant 0 : index
    %69 = vector.load %arg4[%c1_38, %c0_39, %c0_40, %c0_41] : memref<3x3x32x16xbf16, #tpu.memory_space<vmem>>, vector<1x1x32x16xbf16>
    %70 = vector.shape_cast %69 : vector<1x1x32x16xbf16> to vector<32x16xbf16>
    %cst_42 = arith.constant dense<0.000000e+00> : vector<36x16xf32>
    %71 = tpu.matmul %66, %70, %cst_42 {dimension_numbers = #tpu.dot_dimension_numbers<[1], [0], [0], [1], [0, 0, 1, 1], [], []>} : vector<36x32xbf16>, vector<32x16xbf16>, vector<36x16xf32> -> vector<36x16xf32>
    %72 = arith.addf %64, %71 : vector<36x16xf32>
    %c1_43 = arith.constant 1 : index
    %c0_44 = arith.constant 0 : index
    %c0_45 = arith.constant 0 : index
    %c0_46 = arith.constant 0 : index
    %73 = vector.load %arg5[%c1_43, %c0_44, %c0_45, %c0_46] : memref<3x3x16x16xbf16, #tpu.memory_space<vmem>>, vector<1x1x16x16xbf16>
    %74 = vector.shape_cast %73 : vector<1x1x16x16xbf16> to vector<16x16xbf16>
    %cst_47 = arith.constant dense<0.000000e+00> : vector<36x16xf32>
    %75 = tpu.matmul %68, %74, %cst_47 {dimension_numbers = #tpu.dot_dimension_numbers<[1], [0], [0], [1], [0, 0, 1, 1], [], []>} : vector<36x16xbf16>, vector<16x16xbf16>, vector<36x16xf32> -> vector<36x16xf32>
    %76 = arith.addf %72, %75 : vector<36x16xf32>
    %77 = vector.extract_strided_slice %25 {offsets = [1, 1, 0], sizes = [6, 6, 32], strides = [1, 1, 1]} : vector<8x8x32xbf16> to vector<6x6x32xbf16>
    %78 = vector.shape_cast %77 : vector<6x6x32xbf16> to vector<36x32xbf16>
    %79 = vector.extract_strided_slice %27 {offsets = [1, 1, 0], sizes = [6, 6, 16], strides = [1, 1, 1]} : vector<8x8x16xbf16> to vector<6x6x16xbf16>
    %80 = vector.shape_cast %79 : vector<6x6x16xbf16> to vector<36x16xbf16>
    %c1_48 = arith.constant 1 : index
    %c1_49 = arith.constant 1 : index
    %c0_50 = arith.constant 0 : index
    %c0_51 = arith.constant 0 : index
    %81 = vector.load %arg4[%c1_48, %c1_49, %c0_50, %c0_51] : memref<3x3x32x16xbf16, #tpu.memory_space<vmem>>, vector<1x1x32x16xbf16>
    %82 = vector.shape_cast %81 : vector<1x1x32x16xbf16> to vector<32x16xbf16>
    %cst_52 = arith.constant dense<0.000000e+00> : vector<36x16xf32>
    %83 = tpu.matmul %78, %82, %cst_52 {dimension_numbers = #tpu.dot_dimension_numbers<[1], [0], [0], [1], [0, 0, 1, 1], [], []>} : vector<36x32xbf16>, vector<32x16xbf16>, vector<36x16xf32> -> vector<36x16xf32>
    %84 = arith.addf %76, %83 : vector<36x16xf32>
    %c1_53 = arith.constant 1 : index
    %c1_54 = arith.constant 1 : index
    %c0_55 = arith.constant 0 : index
    %c0_56 = arith.constant 0 : index
    %85 = vector.load %arg5[%c1_53, %c1_54, %c0_55, %c0_56] : memref<3x3x16x16xbf16, #tpu.memory_space<vmem>>, vector<1x1x16x16xbf16>
    %86 = vector.shape_cast %85 : vector<1x1x16x16xbf16> to vector<16x16xbf16>
    %cst_57 = arith.constant dense<0.000000e+00> : vector<36x16xf32>
    %87 = tpu.matmul %80, %86, %cst_57 {dimension_numbers = #tpu.dot_dimension_numbers<[1], [0], [0], [1], [0, 0, 1, 1], [], []>} : vector<36x16xbf16>, vector<16x16xbf16>, vector<36x16xf32> -> vector<36x16xf32>
    %88 = arith.addf %84, %87 : vector<36x16xf32>
    %89 = vector.extract_strided_slice %25 {offsets = [1, 2, 0], sizes = [6, 6, 32], strides = [1, 1, 1]} : vector<8x8x32xbf16> to vector<6x6x32xbf16>
    %90 = vector.shape_cast %89 : vector<6x6x32xbf16> to vector<36x32xbf16>
    %91 = vector.extract_strided_slice %27 {offsets = [1, 2, 0], sizes = [6, 6, 16], strides = [1, 1, 1]} : vector<8x8x16xbf16> to vector<6x6x16xbf16>
    %92 = vector.shape_cast %91 : vector<6x6x16xbf16> to vector<36x16xbf16>
    %c1_58 = arith.constant 1 : index
    %c2_59 = arith.constant 2 : index
    %c0_60 = arith.constant 0 : index
    %c0_61 = arith.constant 0 : index
    %93 = vector.load %arg4[%c1_58, %c2_59, %c0_60, %c0_61] : memref<3x3x32x16xbf16, #tpu.memory_space<vmem>>, vector<1x1x32x16xbf16>
    %94 = vector.shape_cast %93 : vector<1x1x32x16xbf16> to vector<32x16xbf16>
    %cst_62 = arith.constant dense<0.000000e+00> : vector<36x16xf32>
    %95 = tpu.matmul %90, %94, %cst_62 {dimension_numbers = #tpu.dot_dimension_numbers<[1], [0], [0], [1], [0, 0, 1, 1], [], []>} : vector<36x32xbf16>, vector<32x16xbf16>, vector<36x16xf32> -> vector<36x16xf32>
    %96 = arith.addf %88, %95 : vector<36x16xf32>
    %c1_63 = arith.constant 1 : index
    %c2_64 = arith.constant 2 : index
    %c0_65 = arith.constant 0 : index
    %c0_66 = arith.constant 0 : index
    %97 = vector.load %arg5[%c1_63, %c2_64, %c0_65, %c0_66] : memref<3x3x16x16xbf16, #tpu.memory_space<vmem>>, vector<1x1x16x16xbf16>
    %98 = vector.shape_cast %97 : vector<1x1x16x16xbf16> to vector<16x16xbf16>
    %cst_67 = arith.constant dense<0.000000e+00> : vector<36x16xf32>
    %99 = tpu.matmul %92, %98, %cst_67 {dimension_numbers = #tpu.dot_dimension_numbers<[1], [0], [0], [1], [0, 0, 1, 1], [], []>} : vector<36x16xbf16>, vector<16x16xbf16>, vector<36x16xf32> -> vector<36x16xf32>
    %100 = arith.addf %96, %99 : vector<36x16xf32>
    %101 = vector.extract_strided_slice %25 {offsets = [2, 0, 0], sizes = [6, 6, 32], strides = [1, 1, 1]} : vector<8x8x32xbf16> to vector<6x6x32xbf16>
    %102 = vector.shape_cast %101 : vector<6x6x32xbf16> to vector<36x32xbf16>
    %103 = vector.extract_strided_slice %27 {offsets = [2, 0, 0], sizes = [6, 6, 16], strides = [1, 1, 1]} : vector<8x8x16xbf16> to vector<6x6x16xbf16>
    %104 = vector.shape_cast %103 : vector<6x6x16xbf16> to vector<36x16xbf16>
    %c2_68 = arith.constant 2 : index
    %c0_69 = arith.constant 0 : index
    %c0_70 = arith.constant 0 : index
    %c0_71 = arith.constant 0 : index
    %105 = vector.load %arg4[%c2_68, %c0_69, %c0_70, %c0_71] : memref<3x3x32x16xbf16, #tpu.memory_space<vmem>>, vector<1x1x32x16xbf16>
    %106 = vector.shape_cast %105 : vector<1x1x32x16xbf16> to vector<32x16xbf16>
    %cst_72 = arith.constant dense<0.000000e+00> : vector<36x16xf32>
    %107 = tpu.matmul %102, %106, %cst_72 {dimension_numbers = #tpu.dot_dimension_numbers<[1], [0], [0], [1], [0, 0, 1, 1], [], []>} : vector<36x32xbf16>, vector<32x16xbf16>, vector<36x16xf32> -> vector<36x16xf32>
    %108 = arith.addf %100, %107 : vector<36x16xf32>
    %c2_73 = arith.constant 2 : index
    %c0_74 = arith.constant 0 : index
    %c0_75 = arith.constant 0 : index
    %c0_76 = arith.constant 0 : index
    %109 = vector.load %arg5[%c2_73, %c0_74, %c0_75, %c0_76] : memref<3x3x16x16xbf16, #tpu.memory_space<vmem>>, vector<1x1x16x16xbf16>
    %110 = vector.shape_cast %109 : vector<1x1x16x16xbf16> to vector<16x16xbf16>
    %cst_77 = arith.constant dense<0.000000e+00> : vector<36x16xf32>
    %111 = tpu.matmul %104, %110, %cst_77 {dimension_numbers = #tpu.dot_dimension_numbers<[1], [0], [0], [1], [0, 0, 1, 1], [], []>} : vector<36x16xbf16>, vector<16x16xbf16>, vector<36x16xf32> -> vector<36x16xf32>
    %112 = arith.addf %108, %111 : vector<36x16xf32>
    %113 = vector.extract_strided_slice %25 {offsets = [2, 1, 0], sizes = [6, 6, 32], strides = [1, 1, 1]} : vector<8x8x32xbf16> to vector<6x6x32xbf16>
    %114 = vector.shape_cast %113 : vector<6x6x32xbf16> to vector<36x32xbf16>
    %115 = vector.extract_strided_slice %27 {offsets = [2, 1, 0], sizes = [6, 6, 16], strides = [1, 1, 1]} : vector<8x8x16xbf16> to vector<6x6x16xbf16>
    %116 = vector.shape_cast %115 : vector<6x6x16xbf16> to vector<36x16xbf16>
    %c2_78 = arith.constant 2 : index
    %c1_79 = arith.constant 1 : index
    %c0_80 = arith.constant 0 : index
    %c0_81 = arith.constant 0 : index
    %117 = vector.load %arg4[%c2_78, %c1_79, %c0_80, %c0_81] : memref<3x3x32x16xbf16, #tpu.memory_space<vmem>>, vector<1x1x32x16xbf16>
    %118 = vector.shape_cast %117 : vector<1x1x32x16xbf16> to vector<32x16xbf16>
    %cst_82 = arith.constant dense<0.000000e+00> : vector<36x16xf32>
    %119 = tpu.matmul %114, %118, %cst_82 {dimension_numbers = #tpu.dot_dimension_numbers<[1], [0], [0], [1], [0, 0, 1, 1], [], []>} : vector<36x32xbf16>, vector<32x16xbf16>, vector<36x16xf32> -> vector<36x16xf32>
    %120 = arith.addf %112, %119 : vector<36x16xf32>
    %c2_83 = arith.constant 2 : index
    %c1_84 = arith.constant 1 : index
    %c0_85 = arith.constant 0 : index
    %c0_86 = arith.constant 0 : index
    %121 = vector.load %arg5[%c2_83, %c1_84, %c0_85, %c0_86] : memref<3x3x16x16xbf16, #tpu.memory_space<vmem>>, vector<1x1x16x16xbf16>
    %122 = vector.shape_cast %121 : vector<1x1x16x16xbf16> to vector<16x16xbf16>
    %cst_87 = arith.constant dense<0.000000e+00> : vector<36x16xf32>
    %123 = tpu.matmul %116, %122, %cst_87 {dimension_numbers = #tpu.dot_dimension_numbers<[1], [0], [0], [1], [0, 0, 1, 1], [], []>} : vector<36x16xbf16>, vector<16x16xbf16>, vector<36x16xf32> -> vector<36x16xf32>
    %124 = arith.addf %120, %123 : vector<36x16xf32>
    %125 = vector.extract_strided_slice %25 {offsets = [2, 2, 0], sizes = [6, 6, 32], strides = [1, 1, 1]} : vector<8x8x32xbf16> to vector<6x6x32xbf16>
    %126 = vector.shape_cast %125 : vector<6x6x32xbf16> to vector<36x32xbf16>
    %127 = vector.extract_strided_slice %27 {offsets = [2, 2, 0], sizes = [6, 6, 16], strides = [1, 1, 1]} : vector<8x8x16xbf16> to vector<6x6x16xbf16>
    %128 = vector.shape_cast %127 : vector<6x6x16xbf16> to vector<36x16xbf16>
    %c2_88 = arith.constant 2 : index
    %c2_89 = arith.constant 2 : index
    %c0_90 = arith.constant 0 : index
    %c0_91 = arith.constant 0 : index
    %129 = vector.load %arg4[%c2_88, %c2_89, %c0_90, %c0_91] : memref<3x3x32x16xbf16, #tpu.memory_space<vmem>>, vector<1x1x32x16xbf16>
    %130 = vector.shape_cast %129 : vector<1x1x32x16xbf16> to vector<32x16xbf16>
    %cst_92 = arith.constant dense<0.000000e+00> : vector<36x16xf32>
    %131 = tpu.matmul %126, %130, %cst_92 {dimension_numbers = #tpu.dot_dimension_numbers<[1], [0], [0], [1], [0, 0, 1, 1], [], []>} : vector<36x32xbf16>, vector<32x16xbf16>, vector<36x16xf32> -> vector<36x16xf32>
    %132 = arith.addf %124, %131 : vector<36x16xf32>
    %c2_93 = arith.constant 2 : index
    %c2_94 = arith.constant 2 : index
    %c0_95 = arith.constant 0 : index
    %c0_96 = arith.constant 0 : index
    %133 = vector.load %arg5[%c2_93, %c2_94, %c0_95, %c0_96] : memref<3x3x16x16xbf16, #tpu.memory_space<vmem>>, vector<1x1x16x16xbf16>
    %134 = vector.shape_cast %133 : vector<1x1x16x16xbf16> to vector<16x16xbf16>
    %cst_97 = arith.constant dense<0.000000e+00> : vector<36x16xf32>
    %135 = tpu.matmul %128, %134, %cst_97 {dimension_numbers = #tpu.dot_dimension_numbers<[1], [0], [0], [1], [0, 0, 1, 1], [], []>} : vector<36x16xbf16>, vector<16x16xbf16>, vector<36x16xf32> -> vector<36x16xf32>
    %136 = arith.addf %132, %135 : vector<36x16xf32>
    %c0_98 = arith.constant 0 : index
    %c0_99 = arith.constant 0 : index
    %137 = vector.load %arg6[%c0_98, %c0_99] : memref<1x16xf32, #tpu.memory_space<vmem>>, vector<1x16xf32>
    %138 = vector.broadcast %137 : vector<1x16xf32> to vector<36x16xf32>
    %139 = arith.addf %136, %138 : vector<36x16xf32>
    %cst_100 = arith.constant 0.000000e+00 : f32
    %140 = vector.broadcast %cst_100 : f32 to vector<36x16xf32>
    %141 = arith.maximumf %139, %140 : vector<36x16xf32>
    %142 = arith.truncf %141 : vector<36x16xf32> to vector<36x16xbf16>
    %143 = vector.shape_cast %142 : vector<36x16xbf16> to vector<6x6x16xbf16>
    %cst_101 = arith.constant 0.000000e+00 : f32
    %144 = vector.broadcast %cst_101 : f32 to vector<16x16xf32>
    %145 = vector.extract_strided_slice %143 {offsets = [0, 0, 0], sizes = [4, 4, 16], strides = [1, 1, 1]} : vector<6x6x16xbf16> to vector<4x4x16xbf16>
    %146 = vector.shape_cast %145 : vector<4x4x16xbf16> to vector<16x16xbf16>
    %c0_102 = arith.constant 0 : index
    %c0_103 = arith.constant 0 : index
    %c0_104 = arith.constant 0 : index
    %c0_105 = arith.constant 0 : index
    %147 = vector.load %arg7[%c0_102, %c0_103, %c0_104, %c0_105] : memref<3x3x16x16xbf16, #tpu.memory_space<vmem>>, vector<1x1x16x16xbf16>
    %148 = vector.shape_cast %147 : vector<1x1x16x16xbf16> to vector<16x16xbf16>
    %cst_106 = arith.constant dense<0.000000e+00> : vector<16x16xf32>
    %149 = tpu.matmul %146, %148, %cst_106 {dimension_numbers = #tpu.dot_dimension_numbers<[1], [0], [0], [1], [0, 0, 1, 1], [], []>} : vector<16x16xbf16>, vector<16x16xbf16>, vector<16x16xf32> -> vector<16x16xf32>
    %150 = arith.addf %144, %149 : vector<16x16xf32>
    %151 = vector.extract_strided_slice %143 {offsets = [0, 1, 0], sizes = [4, 4, 16], strides = [1, 1, 1]} : vector<6x6x16xbf16> to vector<4x4x16xbf16>
    %152 = vector.shape_cast %151 : vector<4x4x16xbf16> to vector<16x16xbf16>
    %c0_107 = arith.constant 0 : index
    %c1_108 = arith.constant 1 : index
    %c0_109 = arith.constant 0 : index
    %c0_110 = arith.constant 0 : index
    %153 = vector.load %arg7[%c0_107, %c1_108, %c0_109, %c0_110] : memref<3x3x16x16xbf16, #tpu.memory_space<vmem>>, vector<1x1x16x16xbf16>
    %154 = vector.shape_cast %153 : vector<1x1x16x16xbf16> to vector<16x16xbf16>
    %cst_111 = arith.constant dense<0.000000e+00> : vector<16x16xf32>
    %155 = tpu.matmul %152, %154, %cst_111 {dimension_numbers = #tpu.dot_dimension_numbers<[1], [0], [0], [1], [0, 0, 1, 1], [], []>} : vector<16x16xbf16>, vector<16x16xbf16>, vector<16x16xf32> -> vector<16x16xf32>
    %156 = arith.addf %150, %155 : vector<16x16xf32>
    %157 = vector.extract_strided_slice %143 {offsets = [0, 2, 0], sizes = [4, 4, 16], strides = [1, 1, 1]} : vector<6x6x16xbf16> to vector<4x4x16xbf16>
    %158 = vector.shape_cast %157 : vector<4x4x16xbf16> to vector<16x16xbf16>
    %c0_112 = arith.constant 0 : index
    %c2_113 = arith.constant 2 : index
    %c0_114 = arith.constant 0 : index
    %c0_115 = arith.constant 0 : index
    %159 = vector.load %arg7[%c0_112, %c2_113, %c0_114, %c0_115] : memref<3x3x16x16xbf16, #tpu.memory_space<vmem>>, vector<1x1x16x16xbf16>
    %160 = vector.shape_cast %159 : vector<1x1x16x16xbf16> to vector<16x16xbf16>
    %cst_116 = arith.constant dense<0.000000e+00> : vector<16x16xf32>
    %161 = tpu.matmul %158, %160, %cst_116 {dimension_numbers = #tpu.dot_dimension_numbers<[1], [0], [0], [1], [0, 0, 1, 1], [], []>} : vector<16x16xbf16>, vector<16x16xbf16>, vector<16x16xf32> -> vector<16x16xf32>
    %162 = arith.addf %156, %161 : vector<16x16xf32>
    %163 = vector.extract_strided_slice %143 {offsets = [1, 0, 0], sizes = [4, 4, 16], strides = [1, 1, 1]} : vector<6x6x16xbf16> to vector<4x4x16xbf16>
    %164 = vector.shape_cast %163 : vector<4x4x16xbf16> to vector<16x16xbf16>
    %c1_117 = arith.constant 1 : index
    %c0_118 = arith.constant 0 : index
    %c0_119 = arith.constant 0 : index
    %c0_120 = arith.constant 0 : index
    %165 = vector.load %arg7[%c1_117, %c0_118, %c0_119, %c0_120] : memref<3x3x16x16xbf16, #tpu.memory_space<vmem>>, vector<1x1x16x16xbf16>
    %166 = vector.shape_cast %165 : vector<1x1x16x16xbf16> to vector<16x16xbf16>
    %cst_121 = arith.constant dense<0.000000e+00> : vector<16x16xf32>
    %167 = tpu.matmul %164, %166, %cst_121 {dimension_numbers = #tpu.dot_dimension_numbers<[1], [0], [0], [1], [0, 0, 1, 1], [], []>} : vector<16x16xbf16>, vector<16x16xbf16>, vector<16x16xf32> -> vector<16x16xf32>
    %168 = arith.addf %162, %167 : vector<16x16xf32>
    %169 = vector.extract_strided_slice %143 {offsets = [1, 1, 0], sizes = [4, 4, 16], strides = [1, 1, 1]} : vector<6x6x16xbf16> to vector<4x4x16xbf16>
    %170 = vector.shape_cast %169 : vector<4x4x16xbf16> to vector<16x16xbf16>
    %c1_122 = arith.constant 1 : index
    %c1_123 = arith.constant 1 : index
    %c0_124 = arith.constant 0 : index
    %c0_125 = arith.constant 0 : index
    %171 = vector.load %arg7[%c1_122, %c1_123, %c0_124, %c0_125] : memref<3x3x16x16xbf16, #tpu.memory_space<vmem>>, vector<1x1x16x16xbf16>
    %172 = vector.shape_cast %171 : vector<1x1x16x16xbf16> to vector<16x16xbf16>
    %cst_126 = arith.constant dense<0.000000e+00> : vector<16x16xf32>
    %173 = tpu.matmul %170, %172, %cst_126 {dimension_numbers = #tpu.dot_dimension_numbers<[1], [0], [0], [1], [0, 0, 1, 1], [], []>} : vector<16x16xbf16>, vector<16x16xbf16>, vector<16x16xf32> -> vector<16x16xf32>
    %174 = arith.addf %168, %173 : vector<16x16xf32>
    %175 = vector.extract_strided_slice %143 {offsets = [1, 2, 0], sizes = [4, 4, 16], strides = [1, 1, 1]} : vector<6x6x16xbf16> to vector<4x4x16xbf16>
    %176 = vector.shape_cast %175 : vector<4x4x16xbf16> to vector<16x16xbf16>
    %c1_127 = arith.constant 1 : index
    %c2_128 = arith.constant 2 : index
    %c0_129 = arith.constant 0 : index
    %c0_130 = arith.constant 0 : index
    %177 = vector.load %arg7[%c1_127, %c2_128, %c0_129, %c0_130] : memref<3x3x16x16xbf16, #tpu.memory_space<vmem>>, vector<1x1x16x16xbf16>
    %178 = vector.shape_cast %177 : vector<1x1x16x16xbf16> to vector<16x16xbf16>
    %cst_131 = arith.constant dense<0.000000e+00> : vector<16x16xf32>
    %179 = tpu.matmul %176, %178, %cst_131 {dimension_numbers = #tpu.dot_dimension_numbers<[1], [0], [0], [1], [0, 0, 1, 1], [], []>} : vector<16x16xbf16>, vector<16x16xbf16>, vector<16x16xf32> -> vector<16x16xf32>
    %180 = arith.addf %174, %179 : vector<16x16xf32>
    %181 = vector.extract_strided_slice %143 {offsets = [2, 0, 0], sizes = [4, 4, 16], strides = [1, 1, 1]} : vector<6x6x16xbf16> to vector<4x4x16xbf16>
    %182 = vector.shape_cast %181 : vector<4x4x16xbf16> to vector<16x16xbf16>
    %c2_132 = arith.constant 2 : index
    %c0_133 = arith.constant 0 : index
    %c0_134 = arith.constant 0 : index
    %c0_135 = arith.constant 0 : index
    %183 = vector.load %arg7[%c2_132, %c0_133, %c0_134, %c0_135] : memref<3x3x16x16xbf16, #tpu.memory_space<vmem>>, vector<1x1x16x16xbf16>
    %184 = vector.shape_cast %183 : vector<1x1x16x16xbf16> to vector<16x16xbf16>
    %cst_136 = arith.constant dense<0.000000e+00> : vector<16x16xf32>
    %185 = tpu.matmul %182, %184, %cst_136 {dimension_numbers = #tpu.dot_dimension_numbers<[1], [0], [0], [1], [0, 0, 1, 1], [], []>} : vector<16x16xbf16>, vector<16x16xbf16>, vector<16x16xf32> -> vector<16x16xf32>
    %186 = arith.addf %180, %185 : vector<16x16xf32>
    %187 = vector.extract_strided_slice %143 {offsets = [2, 1, 0], sizes = [4, 4, 16], strides = [1, 1, 1]} : vector<6x6x16xbf16> to vector<4x4x16xbf16>
    %188 = vector.shape_cast %187 : vector<4x4x16xbf16> to vector<16x16xbf16>
    %c2_137 = arith.constant 2 : index
    %c1_138 = arith.constant 1 : index
    %c0_139 = arith.constant 0 : index
    %c0_140 = arith.constant 0 : index
    %189 = vector.load %arg7[%c2_137, %c1_138, %c0_139, %c0_140] : memref<3x3x16x16xbf16, #tpu.memory_space<vmem>>, vector<1x1x16x16xbf16>
    %190 = vector.shape_cast %189 : vector<1x1x16x16xbf16> to vector<16x16xbf16>
    %cst_141 = arith.constant dense<0.000000e+00> : vector<16x16xf32>
    %191 = tpu.matmul %188, %190, %cst_141 {dimension_numbers = #tpu.dot_dimension_numbers<[1], [0], [0], [1], [0, 0, 1, 1], [], []>} : vector<16x16xbf16>, vector<16x16xbf16>, vector<16x16xf32> -> vector<16x16xf32>
    %192 = arith.addf %186, %191 : vector<16x16xf32>
    %193 = vector.extract_strided_slice %143 {offsets = [2, 2, 0], sizes = [4, 4, 16], strides = [1, 1, 1]} : vector<6x6x16xbf16> to vector<4x4x16xbf16>
    %194 = vector.shape_cast %193 : vector<4x4x16xbf16> to vector<16x16xbf16>
    %c2_142 = arith.constant 2 : index
    %c2_143 = arith.constant 2 : index
    %c0_144 = arith.constant 0 : index
    %c0_145 = arith.constant 0 : index
    %195 = vector.load %arg7[%c2_142, %c2_143, %c0_144, %c0_145] : memref<3x3x16x16xbf16, #tpu.memory_space<vmem>>, vector<1x1x16x16xbf16>
    %196 = vector.shape_cast %195 : vector<1x1x16x16xbf16> to vector<16x16xbf16>
    %cst_146 = arith.constant dense<0.000000e+00> : vector<16x16xf32>
    %197 = tpu.matmul %194, %196, %cst_146 {dimension_numbers = #tpu.dot_dimension_numbers<[1], [0], [0], [1], [0, 0, 1, 1], [], []>} : vector<16x16xbf16>, vector<16x16xbf16>, vector<16x16xf32> -> vector<16x16xf32>
    %198 = arith.addf %192, %197 : vector<16x16xf32>
    %c0_147 = arith.constant 0 : index
    %c0_148 = arith.constant 0 : index
    %199 = vector.load %arg8[%c0_147, %c0_148] : memref<1x16xf32, #tpu.memory_space<vmem>>, vector<1x16xf32>
    %200 = vector.broadcast %199 : vector<1x16xf32> to vector<16x16xf32>
    %201 = arith.addf %198, %200 : vector<16x16xf32>
    %cst_149 = arith.constant 0.000000e+00 : f32
    %202 = vector.broadcast %cst_149 : f32 to vector<16x16xf32>
    %203 = arith.maximumf %201, %202 : vector<16x16xf32>
    %204 = vector.shape_cast %203 : vector<16x16xf32> to vector<4x4x16xf32>
    %205 = arith.truncf %204 : vector<4x4x16xf32> to vector<4x4x16xbf16>
    %c0_150 = arith.constant 0 : index
    %c0_151 = arith.constant 0 : index
    %c0_152 = arith.constant 0 : index
    %c0_153 = arith.constant 0 : index
    %206 = vector.load %arg9[%c0_150, %c0_151, %c0_152, %c0_153] : memref<1x4x4x16xbf16, #tpu.memory_space<vmem>>, vector<1x4x4x16xbf16>
    %207 = vector.shape_cast %206 : vector<1x4x4x16xbf16> to vector<4x4x16xbf16>
    %208 = vector.shape_cast %205 : vector<4x4x16xbf16> to vector<1x4x4x16xbf16>
    tpu.vector_store %arg9[%c0_150, %c0_151, %c0_152, %c0_153], %208 {strides = array<i32>} : memref<1x4x4x16xbf16, #tpu.memory_space<vmem>>, vector<1x4x4x16xbf16>,
    return
  }
  func.func @transform_0(%arg0: i32) -> (i32, i32, i32, i32) {
    %c0_i32 = arith.constant 0 : i32
    %c0_i32_0 = arith.constant 0 : i32
    %c0_i32_1 = arith.constant 0 : i32
    %c0_i32_2 = arith.constant 0 : i32
    return %arg0, %c0_i32, %c0_i32_0, %c0_i32_1 : i32, i32, i32, i32
  }
  func.func @transform_1(%arg0: i32) -> (i32, i32, i32, i32) {
    %c0_i32 = arith.constant 0 : i32
    %c0_i32_0 = arith.constant 0 : i32
    %c0_i32_1 = arith.constant 0 : i32
    %c0_i32_2 = arith.constant 0 : i32
    return %arg0, %c0_i32, %c0_i32_0, %c0_i32_1 : i32, i32, i32, i32
  }
  func.func @transform_2(%arg0: i32) -> (i32, i32) {
    %c0_i32 = arith.constant 0 : i32
    %c0_i32_0 = arith.constant 0 : i32
    %c0_i32_1 = arith.constant 0 : i32
    return %c0_i32, %c0_i32_0 : i32, i32
  }
  func.func @transform_3(%arg0: i32) -> (i32, i32, i32, i32) {
    %c0_i32 = arith.constant 0 : i32
    %c0_i32_0 = arith.constant 0 : i32
    %c0_i32_1 = arith.constant 0 : i32
    %c0_i32_2 = arith.constant 0 : i32
    %c0_i32_3 = arith.constant 0 : i32
    return %c0_i32, %c0_i32_0, %c0_i32_1, %c0_i32_2 : i32, i32, i32, i32
  }
  func.func @transform_4(%arg0: i32) -> (i32, i32, i32, i32) {
    %c0_i32 = arith.constant 0 : i32
    %c0_i32_0 = arith.constant 0 : i32
    %c0_i32_1 = arith.constant 0 : i32
    %c0_i32_2 = arith.constant 0 : i32
    %c0_i32_3 = arith.constant 0 : i32
    return %c0_i32, %c0_i32_0, %c0_i32_1, %c0_i32_2 : i32, i32, i32, i32
  }
  func.func @transform_5(%arg0: i32) -> (i32, i32) {
    %c0_i32 = arith.constant 0 : i32
    %c0_i32_0 = arith.constant 0 : i32
    %c0_i32_1 = arith.constant 0 : i32
    return %c0_i32, %c0_i32_0 : i32, i32
  }
  func.func @transform_6(%arg0: i32) -> (i32, i32, i32, i32) {
    %c0_i32 = arith.constant 0 : i32
    %c0_i32_0 = arith.constant 0 : i32
    %c0_i32_1 = arith.constant 0 : i32
    %c0_i32_2 = arith.constant 0 : i32
    %c0_i32_3 = arith.constant 0 : i32
    return %c0_i32, %c0_i32_0, %c0_i32_1, %c0_i32_2 : i32, i32, i32, i32
  }
  func.func @transform_7(%arg0: i32) -> (i32, i32) {
    %c0_i32 = arith.constant 0 : i32
    %c0_i32_0 = arith.constant 0 : i32
    %c0_i32_1 = arith.constant 0 : i32
    return %c0_i32, %c0_i32_0 : i32, i32
  }
  func.func @transform_8(%arg0: i32) -> (i32, i32, i32, i32) {
    %c0_i32 = arith.constant 0 : i32
    %c0_i32_0 = arith.constant 0 : i32
    %c0_i32_1 = arith.constant 0 : i32
    %c0_i32_2 = arith.constant 0 : i32
    return %arg0, %c0_i32, %c0_i32_0, %c0_i32_1 : i32, i32, i32, i32
  }
}

module attributes {stable_mosaic.version = 11 : i64} {
  func.func @_unet_level_kernel(%arg0: i32, %arg1: memref<1x4x4x16xbf16, #tpu.memory_space<vmem>>, %arg2: memref<1x8x8x8xbf16, #tpu.memory_space<vmem>>, %arg3: memref<16x64xbf16, #tpu.memory_space<vmem>>, %arg4: memref<3x3x16x8xbf16, #tpu.memory_space<vmem>>, %arg5: memref<3x3x8x8xbf16, #tpu.memory_space<vmem>>, %arg6: memref<1x8xf32, #tpu.memory_space<vmem>>, %arg7: memref<3x3x8x8xbf16, #tpu.memory_space<vmem>>, %arg8: memref<1x8xf32, #tpu.memory_space<vmem>>, %arg9: memref<1x4x4x8xbf16, #tpu.memory_space<vmem>>) attributes {dimension_semantics = [#tpu.dimension_semantics<parallel>], iteration_bounds = array<i64: 2>, scalar_prefetch = 0 : i64, scratch_operands = 0 : i64, tpu.core_type = #tpu.core_type<tc>, window_params = [{transform_indices = @transform_0, window_bounds = array<i64: 1, 4, 4, 16>}, {transform_indices = @transform_1, window_bounds = array<i64: 1, 8, 8, 8>}, {pipeline_mode = #tpu.pipeline_mode<synchronous>, transform_indices = @transform_2, window_bounds = array<i64: 16, 64>}, {pipeline_mode = #tpu.pipeline_mode<synchronous>, transform_indices = @transform_3, window_bounds = array<i64: 3, 3, 16, 8>}, {pipeline_mode = #tpu.pipeline_mode<synchronous>, transform_indices = @transform_4, window_bounds = array<i64: 3, 3, 8, 8>}, {pipeline_mode = #tpu.pipeline_mode<synchronous>, transform_indices = @transform_5, window_bounds = array<i64: 1, 8>}, {pipeline_mode = #tpu.pipeline_mode<synchronous>, transform_indices = @transform_6, window_bounds = array<i64: 3, 3, 8, 8>}, {pipeline_mode = #tpu.pipeline_mode<synchronous>, transform_indices = @transform_7, window_bounds = array<i64: 1, 8>}, {transform_indices = @transform_8, window_bounds = array<i64: 1, 4, 4, 8>}]} {
    %c0 = arith.constant 0 : index
    %c0_0 = arith.constant 0 : index
    %c0_1 = arith.constant 0 : index
    %c0_2 = arith.constant 0 : index
    %0 = vector.load %arg1[%c0, %c0_0, %c0_1, %c0_2] : memref<1x4x4x16xbf16, #tpu.memory_space<vmem>>, vector<1x4x4x16xbf16>
    %1 = vector.shape_cast %0 : vector<1x4x4x16xbf16> to vector<4x4x16xbf16>
    %2 = vector.shape_cast %1 : vector<4x4x16xbf16> to vector<16x16xbf16>
    %c0_3 = arith.constant 0 : index
    %c0_4 = arith.constant 0 : index
    %3 = vector.load %arg3[%c0_3, %c0_4] : memref<16x64xbf16, #tpu.memory_space<vmem>>, vector<16x64xbf16>
    %cst = arith.constant dense<0.000000e+00> : vector<16x64xf32>
    %4 = tpu.matmul %2, %3, %cst {dimension_numbers = #tpu.dot_dimension_numbers<[1], [0], [0], [1], [0, 0, 1, 1], [], []>} : vector<16x16xbf16>, vector<16x64xbf16>, vector<16x64xf32> -> vector<16x64xf32>
    %5 = arith.truncf %4 : vector<16x64xf32> to vector<16x64xbf16>
    %6 = vector.extract_strided_slice %5 {offsets = [0, 0], sizes = [16, 16], strides = [1, 1]} : vector<16x64xbf16> to vector<16x16xbf16>
    %7 = vector.shape_cast %6 : vector<16x16xbf16> to vector<4x4x16xbf16>
    %8 = vector.extract_strided_slice %5 {offsets = [0, 16], sizes = [16, 16], strides = [1, 1]} : vector<16x64xbf16> to vector<16x16xbf16>
    %9 = vector.shape_cast %8 : vector<16x16xbf16> to vector<4x4x16xbf16>
    %10 = vector.extract_strided_slice %5 {offsets = [0, 32], sizes = [16, 16], strides = [1, 1]} : vector<16x64xbf16> to vector<16x16xbf16>
    %11 = vector.shape_cast %10 : vector<16x16xbf16> to vector<4x4x16xbf16>
    %12 = vector.extract_strided_slice %5 {offsets = [0, 48], sizes = [16, 16], strides = [1, 1]} : vector<16x64xbf16> to vector<16x16xbf16>
    %13 = vector.shape_cast %12 : vector<16x16xbf16> to vector<4x4x16xbf16>
    %14 = vector.shape_cast %7 : vector<4x4x16xbf16> to vector<4x4x1x16xbf16>
    %15 = vector.shape_cast %9 : vector<4x4x16xbf16> to vector<4x4x1x16xbf16>
    %16 = tpu.concatenate %14, %15 in 2 : vector<4x4x1x16xbf16>, vector<4x4x1x16xbf16> -> vector<4x4x2x16xbf16>
    %17 = vector.shape_cast %16 : vector<4x4x2x16xbf16> to vector<4x8x16xbf16>
    %18 = vector.shape_cast %11 : vector<4x4x16xbf16> to vector<4x4x1x16xbf16>
    %19 = vector.shape_cast %13 : vector<4x4x16xbf16> to vector<4x4x1x16xbf16>
    %20 = tpu.concatenate %18, %19 in 2 : vector<4x4x1x16xbf16>, vector<4x4x1x16xbf16> -> vector<4x4x2x16xbf16>
    %21 = vector.shape_cast %20 : vector<4x4x2x16xbf16> to vector<4x8x16xbf16>
    %22 = vector.shape_cast %17 : vector<4x8x16xbf16> to vector<4x1x8x16xbf16>
    %23 = vector.shape_cast %21 : vector<4x8x16xbf16> to vector<4x1x8x16xbf16>
    %24 = tpu.concatenate %22, %23 in 1 : vector<4x1x8x16xbf16>, vector<4x1x8x16xbf16> -> vector<4x2x8x16xbf16>
    %25 = vector.shape_cast %24 : vector<4x2x8x16xbf16> to vector<8x8x16xbf16>
    %c0_5 = arith.constant 0 : index
    %c0_6 = arith.constant 0 : index
    %c0_7 = arith.constant 0 : index
    %c0_8 = arith.constant 0 : index
    %26 = vector.load %arg2[%c0_5, %c0_6, %c0_7, %c0_8] : memref<1x8x8x8xbf16, #tpu.memory_space<vmem>>, vector<1x8x8x8xbf16>
    %27 = vector.shape_cast %26 : vector<1x8x8x8xbf16> to vector<8x8x8xbf16>
    %cst_9 = arith.constant 0.000000e+00 : f32
    %28 = vector.broadcast %cst_9 : f32 to vector<36x8xf32>
    %29 = vector.extract_strided_slice %25 {offsets = [0, 0, 0], sizes = [6, 6, 16], strides = [1, 1, 1]} : vector<8x8x16xbf16> to vector<6x6x16xbf16>
    %30 = vector.shape_cast %29 : vector<6x6x16xbf16> to vector<36x16xbf16>
    %31 = vector.extract_strided_slice %27 {offsets = [0, 0, 0], sizes = [6, 6, 8], strides = [1, 1, 1]} : vector<8x8x8xbf16> to vector<6x6x8xbf16>
    %32 = vector.shape_cast %31 : vector<6x6x8xbf16> to vector<36x8xbf16>
    %c0_10 = arith.constant 0 : index
    %c0_11 = arith.constant 0 : index
    %c0_12 = arith.constant 0 : index
    %c0_13 = arith.constant 0 : index
    %33 = vector.load %arg4[%c0_10, %c0_11, %c0_12, %c0_13] : memref<3x3x16x8xbf16, #tpu.memory_space<vmem>>, vector<1x1x16x8xbf16>
    %34 = vector.shape_cast %33 : vector<1x1x16x8xbf16> to vector<16x8xbf16>
    %cst_14 = arith.constant dense<0.000000e+00> : vector<36x8xf32>
    %35 = tpu.matmul %30, %34, %cst_14 {dimension_numbers = #tpu.dot_dimension_numbers<[1], [0], [0], [1], [0, 0, 1, 1], [], []>} : vector<36x16xbf16>, vector<16x8xbf16>, vector<36x8xf32> -> vector<36x8xf32>
    %36 = arith.addf %28, %35 : vector<36x8xf32>
    %c0_15 = arith.constant 0 : index
    %c0_16 = arith.constant 0 : index
    %c0_17 = arith.constant 0 : index
    %c0_18 = arith.constant 0 : index
    %37 = vector.load %arg5[%c0_15, %c0_16, %c0_17, %c0_18] : memref<3x3x8x8xbf16, #tpu.memory_space<vmem>>, vector<1x1x8x8xbf16>
    %38 = vector.shape_cast %37 : vector<1x1x8x8xbf16> to vector<8x8xbf16>
    %cst_19 = arith.constant dense<0.000000e+00> : vector<36x8xf32>
    %39 = tpu.matmul %32, %38, %cst_19 {dimension_numbers = #tpu.dot_dimension_numbers<[1], [0], [0], [1], [0, 0, 1, 1], [], []>} : vector<36x8xbf16>, vector<8x8xbf16>, vector<36x8xf32> -> vector<36x8xf32>
    %40 = arith.addf %36, %39 : vector<36x8xf32>
    %41 = vector.extract_strided_slice %25 {offsets = [0, 1, 0], sizes = [6, 6, 16], strides = [1, 1, 1]} : vector<8x8x16xbf16> to vector<6x6x16xbf16>
    %42 = vector.shape_cast %41 : vector<6x6x16xbf16> to vector<36x16xbf16>
    %43 = vector.extract_strided_slice %27 {offsets = [0, 1, 0], sizes = [6, 6, 8], strides = [1, 1, 1]} : vector<8x8x8xbf16> to vector<6x6x8xbf16>
    %44 = vector.shape_cast %43 : vector<6x6x8xbf16> to vector<36x8xbf16>
    %c0_20 = arith.constant 0 : index
    %c1 = arith.constant 1 : index
    %c0_21 = arith.constant 0 : index
    %c0_22 = arith.constant 0 : index
    %45 = vector.load %arg4[%c0_20, %c1, %c0_21, %c0_22] : memref<3x3x16x8xbf16, #tpu.memory_space<vmem>>, vector<1x1x16x8xbf16>
    %46 = vector.shape_cast %45 : vector<1x1x16x8xbf16> to vector<16x8xbf16>
    %cst_23 = arith.constant dense<0.000000e+00> : vector<36x8xf32>
    %47 = tpu.matmul %42, %46, %cst_23 {dimension_numbers = #tpu.dot_dimension_numbers<[1], [0], [0], [1], [0, 0, 1, 1], [], []>} : vector<36x16xbf16>, vector<16x8xbf16>, vector<36x8xf32> -> vector<36x8xf32>
    %48 = arith.addf %40, %47 : vector<36x8xf32>
    %c0_24 = arith.constant 0 : index
    %c1_25 = arith.constant 1 : index
    %c0_26 = arith.constant 0 : index
    %c0_27 = arith.constant 0 : index
    %49 = vector.load %arg5[%c0_24, %c1_25, %c0_26, %c0_27] : memref<3x3x8x8xbf16, #tpu.memory_space<vmem>>, vector<1x1x8x8xbf16>
    %50 = vector.shape_cast %49 : vector<1x1x8x8xbf16> to vector<8x8xbf16>
    %cst_28 = arith.constant dense<0.000000e+00> : vector<36x8xf32>
    %51 = tpu.matmul %44, %50, %cst_28 {dimension_numbers = #tpu.dot_dimension_numbers<[1], [0], [0], [1], [0, 0, 1, 1], [], []>} : vector<36x8xbf16>, vector<8x8xbf16>, vector<36x8xf32> -> vector<36x8xf32>
    %52 = arith.addf %48, %51 : vector<36x8xf32>
    %53 = vector.extract_strided_slice %25 {offsets = [0, 2, 0], sizes = [6, 6, 16], strides = [1, 1, 1]} : vector<8x8x16xbf16> to vector<6x6x16xbf16>
    %54 = vector.shape_cast %53 : vector<6x6x16xbf16> to vector<36x16xbf16>
    %55 = vector.extract_strided_slice %27 {offsets = [0, 2, 0], sizes = [6, 6, 8], strides = [1, 1, 1]} : vector<8x8x8xbf16> to vector<6x6x8xbf16>
    %56 = vector.shape_cast %55 : vector<6x6x8xbf16> to vector<36x8xbf16>
    %c0_29 = arith.constant 0 : index
    %c2 = arith.constant 2 : index
    %c0_30 = arith.constant 0 : index
    %c0_31 = arith.constant 0 : index
    %57 = vector.load %arg4[%c0_29, %c2, %c0_30, %c0_31] : memref<3x3x16x8xbf16, #tpu.memory_space<vmem>>, vector<1x1x16x8xbf16>
    %58 = vector.shape_cast %57 : vector<1x1x16x8xbf16> to vector<16x8xbf16>
    %cst_32 = arith.constant dense<0.000000e+00> : vector<36x8xf32>
    %59 = tpu.matmul %54, %58, %cst_32 {dimension_numbers = #tpu.dot_dimension_numbers<[1], [0], [0], [1], [0, 0, 1, 1], [], []>} : vector<36x16xbf16>, vector<16x8xbf16>, vector<36x8xf32> -> vector<36x8xf32>
    %60 = arith.addf %52, %59 : vector<36x8xf32>
    %c0_33 = arith.constant 0 : index
    %c2_34 = arith.constant 2 : index
    %c0_35 = arith.constant 0 : index
    %c0_36 = arith.constant 0 : index
    %61 = vector.load %arg5[%c0_33, %c2_34, %c0_35, %c0_36] : memref<3x3x8x8xbf16, #tpu.memory_space<vmem>>, vector<1x1x8x8xbf16>
    %62 = vector.shape_cast %61 : vector<1x1x8x8xbf16> to vector<8x8xbf16>
    %cst_37 = arith.constant dense<0.000000e+00> : vector<36x8xf32>
    %63 = tpu.matmul %56, %62, %cst_37 {dimension_numbers = #tpu.dot_dimension_numbers<[1], [0], [0], [1], [0, 0, 1, 1], [], []>} : vector<36x8xbf16>, vector<8x8xbf16>, vector<36x8xf32> -> vector<36x8xf32>
    %64 = arith.addf %60, %63 : vector<36x8xf32>
    %65 = vector.extract_strided_slice %25 {offsets = [1, 0, 0], sizes = [6, 6, 16], strides = [1, 1, 1]} : vector<8x8x16xbf16> to vector<6x6x16xbf16>
    %66 = vector.shape_cast %65 : vector<6x6x16xbf16> to vector<36x16xbf16>
    %67 = vector.extract_strided_slice %27 {offsets = [1, 0, 0], sizes = [6, 6, 8], strides = [1, 1, 1]} : vector<8x8x8xbf16> to vector<6x6x8xbf16>
    %68 = vector.shape_cast %67 : vector<6x6x8xbf16> to vector<36x8xbf16>
    %c1_38 = arith.constant 1 : index
    %c0_39 = arith.constant 0 : index
    %c0_40 = arith.constant 0 : index
    %c0_41 = arith.constant 0 : index
    %69 = vector.load %arg4[%c1_38, %c0_39, %c0_40, %c0_41] : memref<3x3x16x8xbf16, #tpu.memory_space<vmem>>, vector<1x1x16x8xbf16>
    %70 = vector.shape_cast %69 : vector<1x1x16x8xbf16> to vector<16x8xbf16>
    %cst_42 = arith.constant dense<0.000000e+00> : vector<36x8xf32>
    %71 = tpu.matmul %66, %70, %cst_42 {dimension_numbers = #tpu.dot_dimension_numbers<[1], [0], [0], [1], [0, 0, 1, 1], [], []>} : vector<36x16xbf16>, vector<16x8xbf16>, vector<36x8xf32> -> vector<36x8xf32>
    %72 = arith.addf %64, %71 : vector<36x8xf32>
    %c1_43 = arith.constant 1 : index
    %c0_44 = arith.constant 0 : index
    %c0_45 = arith.constant 0 : index
    %c0_46 = arith.constant 0 : index
    %73 = vector.load %arg5[%c1_43, %c0_44, %c0_45, %c0_46] : memref<3x3x8x8xbf16, #tpu.memory_space<vmem>>, vector<1x1x8x8xbf16>
    %74 = vector.shape_cast %73 : vector<1x1x8x8xbf16> to vector<8x8xbf16>
    %cst_47 = arith.constant dense<0.000000e+00> : vector<36x8xf32>
    %75 = tpu.matmul %68, %74, %cst_47 {dimension_numbers = #tpu.dot_dimension_numbers<[1], [0], [0], [1], [0, 0, 1, 1], [], []>} : vector<36x8xbf16>, vector<8x8xbf16>, vector<36x8xf32> -> vector<36x8xf32>
    %76 = arith.addf %72, %75 : vector<36x8xf32>
    %77 = vector.extract_strided_slice %25 {offsets = [1, 1, 0], sizes = [6, 6, 16], strides = [1, 1, 1]} : vector<8x8x16xbf16> to vector<6x6x16xbf16>
    %78 = vector.shape_cast %77 : vector<6x6x16xbf16> to vector<36x16xbf16>
    %79 = vector.extract_strided_slice %27 {offsets = [1, 1, 0], sizes = [6, 6, 8], strides = [1, 1, 1]} : vector<8x8x8xbf16> to vector<6x6x8xbf16>
    %80 = vector.shape_cast %79 : vector<6x6x8xbf16> to vector<36x8xbf16>
    %c1_48 = arith.constant 1 : index
    %c1_49 = arith.constant 1 : index
    %c0_50 = arith.constant 0 : index
    %c0_51 = arith.constant 0 : index
    %81 = vector.load %arg4[%c1_48, %c1_49, %c0_50, %c0_51] : memref<3x3x16x8xbf16, #tpu.memory_space<vmem>>, vector<1x1x16x8xbf16>
    %82 = vector.shape_cast %81 : vector<1x1x16x8xbf16> to vector<16x8xbf16>
    %cst_52 = arith.constant dense<0.000000e+00> : vector<36x8xf32>
    %83 = tpu.matmul %78, %82, %cst_52 {dimension_numbers = #tpu.dot_dimension_numbers<[1], [0], [0], [1], [0, 0, 1, 1], [], []>} : vector<36x16xbf16>, vector<16x8xbf16>, vector<36x8xf32> -> vector<36x8xf32>
    %84 = arith.addf %76, %83 : vector<36x8xf32>
    %c1_53 = arith.constant 1 : index
    %c1_54 = arith.constant 1 : index
    %c0_55 = arith.constant 0 : index
    %c0_56 = arith.constant 0 : index
    %85 = vector.load %arg5[%c1_53, %c1_54, %c0_55, %c0_56] : memref<3x3x8x8xbf16, #tpu.memory_space<vmem>>, vector<1x1x8x8xbf16>
    %86 = vector.shape_cast %85 : vector<1x1x8x8xbf16> to vector<8x8xbf16>
    %cst_57 = arith.constant dense<0.000000e+00> : vector<36x8xf32>
    %87 = tpu.matmul %80, %86, %cst_57 {dimension_numbers = #tpu.dot_dimension_numbers<[1], [0], [0], [1], [0, 0, 1, 1], [], []>} : vector<36x8xbf16>, vector<8x8xbf16>, vector<36x8xf32> -> vector<36x8xf32>
    %88 = arith.addf %84, %87 : vector<36x8xf32>
    %89 = vector.extract_strided_slice %25 {offsets = [1, 2, 0], sizes = [6, 6, 16], strides = [1, 1, 1]} : vector<8x8x16xbf16> to vector<6x6x16xbf16>
    %90 = vector.shape_cast %89 : vector<6x6x16xbf16> to vector<36x16xbf16>
    %91 = vector.extract_strided_slice %27 {offsets = [1, 2, 0], sizes = [6, 6, 8], strides = [1, 1, 1]} : vector<8x8x8xbf16> to vector<6x6x8xbf16>
    %92 = vector.shape_cast %91 : vector<6x6x8xbf16> to vector<36x8xbf16>
    %c1_58 = arith.constant 1 : index
    %c2_59 = arith.constant 2 : index
    %c0_60 = arith.constant 0 : index
    %c0_61 = arith.constant 0 : index
    %93 = vector.load %arg4[%c1_58, %c2_59, %c0_60, %c0_61] : memref<3x3x16x8xbf16, #tpu.memory_space<vmem>>, vector<1x1x16x8xbf16>
    %94 = vector.shape_cast %93 : vector<1x1x16x8xbf16> to vector<16x8xbf16>
    %cst_62 = arith.constant dense<0.000000e+00> : vector<36x8xf32>
    %95 = tpu.matmul %90, %94, %cst_62 {dimension_numbers = #tpu.dot_dimension_numbers<[1], [0], [0], [1], [0, 0, 1, 1], [], []>} : vector<36x16xbf16>, vector<16x8xbf16>, vector<36x8xf32> -> vector<36x8xf32>
    %96 = arith.addf %88, %95 : vector<36x8xf32>
    %c1_63 = arith.constant 1 : index
    %c2_64 = arith.constant 2 : index
    %c0_65 = arith.constant 0 : index
    %c0_66 = arith.constant 0 : index
    %97 = vector.load %arg5[%c1_63, %c2_64, %c0_65, %c0_66] : memref<3x3x8x8xbf16, #tpu.memory_space<vmem>>, vector<1x1x8x8xbf16>
    %98 = vector.shape_cast %97 : vector<1x1x8x8xbf16> to vector<8x8xbf16>
    %cst_67 = arith.constant dense<0.000000e+00> : vector<36x8xf32>
    %99 = tpu.matmul %92, %98, %cst_67 {dimension_numbers = #tpu.dot_dimension_numbers<[1], [0], [0], [1], [0, 0, 1, 1], [], []>} : vector<36x8xbf16>, vector<8x8xbf16>, vector<36x8xf32> -> vector<36x8xf32>
    %100 = arith.addf %96, %99 : vector<36x8xf32>
    %101 = vector.extract_strided_slice %25 {offsets = [2, 0, 0], sizes = [6, 6, 16], strides = [1, 1, 1]} : vector<8x8x16xbf16> to vector<6x6x16xbf16>
    %102 = vector.shape_cast %101 : vector<6x6x16xbf16> to vector<36x16xbf16>
    %103 = vector.extract_strided_slice %27 {offsets = [2, 0, 0], sizes = [6, 6, 8], strides = [1, 1, 1]} : vector<8x8x8xbf16> to vector<6x6x8xbf16>
    %104 = vector.shape_cast %103 : vector<6x6x8xbf16> to vector<36x8xbf16>
    %c2_68 = arith.constant 2 : index
    %c0_69 = arith.constant 0 : index
    %c0_70 = arith.constant 0 : index
    %c0_71 = arith.constant 0 : index
    %105 = vector.load %arg4[%c2_68, %c0_69, %c0_70, %c0_71] : memref<3x3x16x8xbf16, #tpu.memory_space<vmem>>, vector<1x1x16x8xbf16>
    %106 = vector.shape_cast %105 : vector<1x1x16x8xbf16> to vector<16x8xbf16>
    %cst_72 = arith.constant dense<0.000000e+00> : vector<36x8xf32>
    %107 = tpu.matmul %102, %106, %cst_72 {dimension_numbers = #tpu.dot_dimension_numbers<[1], [0], [0], [1], [0, 0, 1, 1], [], []>} : vector<36x16xbf16>, vector<16x8xbf16>, vector<36x8xf32> -> vector<36x8xf32>
    %108 = arith.addf %100, %107 : vector<36x8xf32>
    %c2_73 = arith.constant 2 : index
    %c0_74 = arith.constant 0 : index
    %c0_75 = arith.constant 0 : index
    %c0_76 = arith.constant 0 : index
    %109 = vector.load %arg5[%c2_73, %c0_74, %c0_75, %c0_76] : memref<3x3x8x8xbf16, #tpu.memory_space<vmem>>, vector<1x1x8x8xbf16>
    %110 = vector.shape_cast %109 : vector<1x1x8x8xbf16> to vector<8x8xbf16>
    %cst_77 = arith.constant dense<0.000000e+00> : vector<36x8xf32>
    %111 = tpu.matmul %104, %110, %cst_77 {dimension_numbers = #tpu.dot_dimension_numbers<[1], [0], [0], [1], [0, 0, 1, 1], [], []>} : vector<36x8xbf16>, vector<8x8xbf16>, vector<36x8xf32> -> vector<36x8xf32>
    %112 = arith.addf %108, %111 : vector<36x8xf32>
    %113 = vector.extract_strided_slice %25 {offsets = [2, 1, 0], sizes = [6, 6, 16], strides = [1, 1, 1]} : vector<8x8x16xbf16> to vector<6x6x16xbf16>
    %114 = vector.shape_cast %113 : vector<6x6x16xbf16> to vector<36x16xbf16>
    %115 = vector.extract_strided_slice %27 {offsets = [2, 1, 0], sizes = [6, 6, 8], strides = [1, 1, 1]} : vector<8x8x8xbf16> to vector<6x6x8xbf16>
    %116 = vector.shape_cast %115 : vector<6x6x8xbf16> to vector<36x8xbf16>
    %c2_78 = arith.constant 2 : index
    %c1_79 = arith.constant 1 : index
    %c0_80 = arith.constant 0 : index
    %c0_81 = arith.constant 0 : index
    %117 = vector.load %arg4[%c2_78, %c1_79, %c0_80, %c0_81] : memref<3x3x16x8xbf16, #tpu.memory_space<vmem>>, vector<1x1x16x8xbf16>
    %118 = vector.shape_cast %117 : vector<1x1x16x8xbf16> to vector<16x8xbf16>
    %cst_82 = arith.constant dense<0.000000e+00> : vector<36x8xf32>
    %119 = tpu.matmul %114, %118, %cst_82 {dimension_numbers = #tpu.dot_dimension_numbers<[1], [0], [0], [1], [0, 0, 1, 1], [], []>} : vector<36x16xbf16>, vector<16x8xbf16>, vector<36x8xf32> -> vector<36x8xf32>
    %120 = arith.addf %112, %119 : vector<36x8xf32>
    %c2_83 = arith.constant 2 : index
    %c1_84 = arith.constant 1 : index
    %c0_85 = arith.constant 0 : index
    %c0_86 = arith.constant 0 : index
    %121 = vector.load %arg5[%c2_83, %c1_84, %c0_85, %c0_86] : memref<3x3x8x8xbf16, #tpu.memory_space<vmem>>, vector<1x1x8x8xbf16>
    %122 = vector.shape_cast %121 : vector<1x1x8x8xbf16> to vector<8x8xbf16>
    %cst_87 = arith.constant dense<0.000000e+00> : vector<36x8xf32>
    %123 = tpu.matmul %116, %122, %cst_87 {dimension_numbers = #tpu.dot_dimension_numbers<[1], [0], [0], [1], [0, 0, 1, 1], [], []>} : vector<36x8xbf16>, vector<8x8xbf16>, vector<36x8xf32> -> vector<36x8xf32>
    %124 = arith.addf %120, %123 : vector<36x8xf32>
    %125 = vector.extract_strided_slice %25 {offsets = [2, 2, 0], sizes = [6, 6, 16], strides = [1, 1, 1]} : vector<8x8x16xbf16> to vector<6x6x16xbf16>
    %126 = vector.shape_cast %125 : vector<6x6x16xbf16> to vector<36x16xbf16>
    %127 = vector.extract_strided_slice %27 {offsets = [2, 2, 0], sizes = [6, 6, 8], strides = [1, 1, 1]} : vector<8x8x8xbf16> to vector<6x6x8xbf16>
    %128 = vector.shape_cast %127 : vector<6x6x8xbf16> to vector<36x8xbf16>
    %c2_88 = arith.constant 2 : index
    %c2_89 = arith.constant 2 : index
    %c0_90 = arith.constant 0 : index
    %c0_91 = arith.constant 0 : index
    %129 = vector.load %arg4[%c2_88, %c2_89, %c0_90, %c0_91] : memref<3x3x16x8xbf16, #tpu.memory_space<vmem>>, vector<1x1x16x8xbf16>
    %130 = vector.shape_cast %129 : vector<1x1x16x8xbf16> to vector<16x8xbf16>
    %cst_92 = arith.constant dense<0.000000e+00> : vector<36x8xf32>
    %131 = tpu.matmul %126, %130, %cst_92 {dimension_numbers = #tpu.dot_dimension_numbers<[1], [0], [0], [1], [0, 0, 1, 1], [], []>} : vector<36x16xbf16>, vector<16x8xbf16>, vector<36x8xf32> -> vector<36x8xf32>
    %132 = arith.addf %124, %131 : vector<36x8xf32>
    %c2_93 = arith.constant 2 : index
    %c2_94 = arith.constant 2 : index
    %c0_95 = arith.constant 0 : index
    %c0_96 = arith.constant 0 : index
    %133 = vector.load %arg5[%c2_93, %c2_94, %c0_95, %c0_96] : memref<3x3x8x8xbf16, #tpu.memory_space<vmem>>, vector<1x1x8x8xbf16>
    %134 = vector.shape_cast %133 : vector<1x1x8x8xbf16> to vector<8x8xbf16>
    %cst_97 = arith.constant dense<0.000000e+00> : vector<36x8xf32>
    %135 = tpu.matmul %128, %134, %cst_97 {dimension_numbers = #tpu.dot_dimension_numbers<[1], [0], [0], [1], [0, 0, 1, 1], [], []>} : vector<36x8xbf16>, vector<8x8xbf16>, vector<36x8xf32> -> vector<36x8xf32>
    %136 = arith.addf %132, %135 : vector<36x8xf32>
    %c0_98 = arith.constant 0 : index
    %c0_99 = arith.constant 0 : index
    %137 = vector.load %arg6[%c0_98, %c0_99] : memref<1x8xf32, #tpu.memory_space<vmem>>, vector<1x8xf32>
    %138 = vector.broadcast %137 : vector<1x8xf32> to vector<36x8xf32>
    %139 = arith.addf %136, %138 : vector<36x8xf32>
    %cst_100 = arith.constant 0.000000e+00 : f32
    %140 = vector.broadcast %cst_100 : f32 to vector<36x8xf32>
    %141 = arith.maximumf %139, %140 : vector<36x8xf32>
    %142 = arith.truncf %141 : vector<36x8xf32> to vector<36x8xbf16>
    %143 = vector.shape_cast %142 : vector<36x8xbf16> to vector<6x6x8xbf16>
    %cst_101 = arith.constant 0.000000e+00 : f32
    %144 = vector.broadcast %cst_101 : f32 to vector<16x8xf32>
    %145 = vector.extract_strided_slice %143 {offsets = [0, 0, 0], sizes = [4, 4, 8], strides = [1, 1, 1]} : vector<6x6x8xbf16> to vector<4x4x8xbf16>
    %146 = vector.shape_cast %145 : vector<4x4x8xbf16> to vector<16x8xbf16>
    %c0_102 = arith.constant 0 : index
    %c0_103 = arith.constant 0 : index
    %c0_104 = arith.constant 0 : index
    %c0_105 = arith.constant 0 : index
    %147 = vector.load %arg7[%c0_102, %c0_103, %c0_104, %c0_105] : memref<3x3x8x8xbf16, #tpu.memory_space<vmem>>, vector<1x1x8x8xbf16>
    %148 = vector.shape_cast %147 : vector<1x1x8x8xbf16> to vector<8x8xbf16>
    %cst_106 = arith.constant dense<0.000000e+00> : vector<16x8xf32>
    %149 = tpu.matmul %146, %148, %cst_106 {dimension_numbers = #tpu.dot_dimension_numbers<[1], [0], [0], [1], [0, 0, 1, 1], [], []>} : vector<16x8xbf16>, vector<8x8xbf16>, vector<16x8xf32> -> vector<16x8xf32>
    %150 = arith.addf %144, %149 : vector<16x8xf32>
    %151 = vector.extract_strided_slice %143 {offsets = [0, 1, 0], sizes = [4, 4, 8], strides = [1, 1, 1]} : vector<6x6x8xbf16> to vector<4x4x8xbf16>
    %152 = vector.shape_cast %151 : vector<4x4x8xbf16> to vector<16x8xbf16>
    %c0_107 = arith.constant 0 : index
    %c1_108 = arith.constant 1 : index
    %c0_109 = arith.constant 0 : index
    %c0_110 = arith.constant 0 : index
    %153 = vector.load %arg7[%c0_107, %c1_108, %c0_109, %c0_110] : memref<3x3x8x8xbf16, #tpu.memory_space<vmem>>, vector<1x1x8x8xbf16>
    %154 = vector.shape_cast %153 : vector<1x1x8x8xbf16> to vector<8x8xbf16>
    %cst_111 = arith.constant dense<0.000000e+00> : vector<16x8xf32>
    %155 = tpu.matmul %152, %154, %cst_111 {dimension_numbers = #tpu.dot_dimension_numbers<[1], [0], [0], [1], [0, 0, 1, 1], [], []>} : vector<16x8xbf16>, vector<8x8xbf16>, vector<16x8xf32> -> vector<16x8xf32>
    %156 = arith.addf %150, %155 : vector<16x8xf32>
    %157 = vector.extract_strided_slice %143 {offsets = [0, 2, 0], sizes = [4, 4, 8], strides = [1, 1, 1]} : vector<6x6x8xbf16> to vector<4x4x8xbf16>
    %158 = vector.shape_cast %157 : vector<4x4x8xbf16> to vector<16x8xbf16>
    %c0_112 = arith.constant 0 : index
    %c2_113 = arith.constant 2 : index
    %c0_114 = arith.constant 0 : index
    %c0_115 = arith.constant 0 : index
    %159 = vector.load %arg7[%c0_112, %c2_113, %c0_114, %c0_115] : memref<3x3x8x8xbf16, #tpu.memory_space<vmem>>, vector<1x1x8x8xbf16>
    %160 = vector.shape_cast %159 : vector<1x1x8x8xbf16> to vector<8x8xbf16>
    %cst_116 = arith.constant dense<0.000000e+00> : vector<16x8xf32>
    %161 = tpu.matmul %158, %160, %cst_116 {dimension_numbers = #tpu.dot_dimension_numbers<[1], [0], [0], [1], [0, 0, 1, 1], [], []>} : vector<16x8xbf16>, vector<8x8xbf16>, vector<16x8xf32> -> vector<16x8xf32>
    %162 = arith.addf %156, %161 : vector<16x8xf32>
    %163 = vector.extract_strided_slice %143 {offsets = [1, 0, 0], sizes = [4, 4, 8], strides = [1, 1, 1]} : vector<6x6x8xbf16> to vector<4x4x8xbf16>
    %164 = vector.shape_cast %163 : vector<4x4x8xbf16> to vector<16x8xbf16>
    %c1_117 = arith.constant 1 : index
    %c0_118 = arith.constant 0 : index
    %c0_119 = arith.constant 0 : index
    %c0_120 = arith.constant 0 : index
    %165 = vector.load %arg7[%c1_117, %c0_118, %c0_119, %c0_120] : memref<3x3x8x8xbf16, #tpu.memory_space<vmem>>, vector<1x1x8x8xbf16>
    %166 = vector.shape_cast %165 : vector<1x1x8x8xbf16> to vector<8x8xbf16>
    %cst_121 = arith.constant dense<0.000000e+00> : vector<16x8xf32>
    %167 = tpu.matmul %164, %166, %cst_121 {dimension_numbers = #tpu.dot_dimension_numbers<[1], [0], [0], [1], [0, 0, 1, 1], [], []>} : vector<16x8xbf16>, vector<8x8xbf16>, vector<16x8xf32> -> vector<16x8xf32>
    %168 = arith.addf %162, %167 : vector<16x8xf32>
    %169 = vector.extract_strided_slice %143 {offsets = [1, 1, 0], sizes = [4, 4, 8], strides = [1, 1, 1]} : vector<6x6x8xbf16> to vector<4x4x8xbf16>
    %170 = vector.shape_cast %169 : vector<4x4x8xbf16> to vector<16x8xbf16>
    %c1_122 = arith.constant 1 : index
    %c1_123 = arith.constant 1 : index
    %c0_124 = arith.constant 0 : index
    %c0_125 = arith.constant 0 : index
    %171 = vector.load %arg7[%c1_122, %c1_123, %c0_124, %c0_125] : memref<3x3x8x8xbf16, #tpu.memory_space<vmem>>, vector<1x1x8x8xbf16>
    %172 = vector.shape_cast %171 : vector<1x1x8x8xbf16> to vector<8x8xbf16>
    %cst_126 = arith.constant dense<0.000000e+00> : vector<16x8xf32>
    %173 = tpu.matmul %170, %172, %cst_126 {dimension_numbers = #tpu.dot_dimension_numbers<[1], [0], [0], [1], [0, 0, 1, 1], [], []>} : vector<16x8xbf16>, vector<8x8xbf16>, vector<16x8xf32> -> vector<16x8xf32>
    %174 = arith.addf %168, %173 : vector<16x8xf32>
    %175 = vector.extract_strided_slice %143 {offsets = [1, 2, 0], sizes = [4, 4, 8], strides = [1, 1, 1]} : vector<6x6x8xbf16> to vector<4x4x8xbf16>
    %176 = vector.shape_cast %175 : vector<4x4x8xbf16> to vector<16x8xbf16>
    %c1_127 = arith.constant 1 : index
    %c2_128 = arith.constant 2 : index
    %c0_129 = arith.constant 0 : index
    %c0_130 = arith.constant 0 : index
    %177 = vector.load %arg7[%c1_127, %c2_128, %c0_129, %c0_130] : memref<3x3x8x8xbf16, #tpu.memory_space<vmem>>, vector<1x1x8x8xbf16>
    %178 = vector.shape_cast %177 : vector<1x1x8x8xbf16> to vector<8x8xbf16>
    %cst_131 = arith.constant dense<0.000000e+00> : vector<16x8xf32>
    %179 = tpu.matmul %176, %178, %cst_131 {dimension_numbers = #tpu.dot_dimension_numbers<[1], [0], [0], [1], [0, 0, 1, 1], [], []>} : vector<16x8xbf16>, vector<8x8xbf16>, vector<16x8xf32> -> vector<16x8xf32>
    %180 = arith.addf %174, %179 : vector<16x8xf32>
    %181 = vector.extract_strided_slice %143 {offsets = [2, 0, 0], sizes = [4, 4, 8], strides = [1, 1, 1]} : vector<6x6x8xbf16> to vector<4x4x8xbf16>
    %182 = vector.shape_cast %181 : vector<4x4x8xbf16> to vector<16x8xbf16>
    %c2_132 = arith.constant 2 : index
    %c0_133 = arith.constant 0 : index
    %c0_134 = arith.constant 0 : index
    %c0_135 = arith.constant 0 : index
    %183 = vector.load %arg7[%c2_132, %c0_133, %c0_134, %c0_135] : memref<3x3x8x8xbf16, #tpu.memory_space<vmem>>, vector<1x1x8x8xbf16>
    %184 = vector.shape_cast %183 : vector<1x1x8x8xbf16> to vector<8x8xbf16>
    %cst_136 = arith.constant dense<0.000000e+00> : vector<16x8xf32>
    %185 = tpu.matmul %182, %184, %cst_136 {dimension_numbers = #tpu.dot_dimension_numbers<[1], [0], [0], [1], [0, 0, 1, 1], [], []>} : vector<16x8xbf16>, vector<8x8xbf16>, vector<16x8xf32> -> vector<16x8xf32>
    %186 = arith.addf %180, %185 : vector<16x8xf32>
    %187 = vector.extract_strided_slice %143 {offsets = [2, 1, 0], sizes = [4, 4, 8], strides = [1, 1, 1]} : vector<6x6x8xbf16> to vector<4x4x8xbf16>
    %188 = vector.shape_cast %187 : vector<4x4x8xbf16> to vector<16x8xbf16>
    %c2_137 = arith.constant 2 : index
    %c1_138 = arith.constant 1 : index
    %c0_139 = arith.constant 0 : index
    %c0_140 = arith.constant 0 : index
    %189 = vector.load %arg7[%c2_137, %c1_138, %c0_139, %c0_140] : memref<3x3x8x8xbf16, #tpu.memory_space<vmem>>, vector<1x1x8x8xbf16>
    %190 = vector.shape_cast %189 : vector<1x1x8x8xbf16> to vector<8x8xbf16>
    %cst_141 = arith.constant dense<0.000000e+00> : vector<16x8xf32>
    %191 = tpu.matmul %188, %190, %cst_141 {dimension_numbers = #tpu.dot_dimension_numbers<[1], [0], [0], [1], [0, 0, 1, 1], [], []>} : vector<16x8xbf16>, vector<8x8xbf16>, vector<16x8xf32> -> vector<16x8xf32>
    %192 = arith.addf %186, %191 : vector<16x8xf32>
    %193 = vector.extract_strided_slice %143 {offsets = [2, 2, 0], sizes = [4, 4, 8], strides = [1, 1, 1]} : vector<6x6x8xbf16> to vector<4x4x8xbf16>
    %194 = vector.shape_cast %193 : vector<4x4x8xbf16> to vector<16x8xbf16>
    %c2_142 = arith.constant 2 : index
    %c2_143 = arith.constant 2 : index
    %c0_144 = arith.constant 0 : index
    %c0_145 = arith.constant 0 : index
    %195 = vector.load %arg7[%c2_142, %c2_143, %c0_144, %c0_145] : memref<3x3x8x8xbf16, #tpu.memory_space<vmem>>, vector<1x1x8x8xbf16>
    %196 = vector.shape_cast %195 : vector<1x1x8x8xbf16> to vector<8x8xbf16>
    %cst_146 = arith.constant dense<0.000000e+00> : vector<16x8xf32>
    %197 = tpu.matmul %194, %196, %cst_146 {dimension_numbers = #tpu.dot_dimension_numbers<[1], [0], [0], [1], [0, 0, 1, 1], [], []>} : vector<16x8xbf16>, vector<8x8xbf16>, vector<16x8xf32> -> vector<16x8xf32>
    %198 = arith.addf %192, %197 : vector<16x8xf32>
    %c0_147 = arith.constant 0 : index
    %c0_148 = arith.constant 0 : index
    %199 = vector.load %arg8[%c0_147, %c0_148] : memref<1x8xf32, #tpu.memory_space<vmem>>, vector<1x8xf32>
    %200 = vector.broadcast %199 : vector<1x8xf32> to vector<16x8xf32>
    %201 = arith.addf %198, %200 : vector<16x8xf32>
    %cst_149 = arith.constant 0.000000e+00 : f32
    %202 = vector.broadcast %cst_149 : f32 to vector<16x8xf32>
    %203 = arith.maximumf %201, %202 : vector<16x8xf32>
    %204 = vector.shape_cast %203 : vector<16x8xf32> to vector<4x4x8xf32>
    %205 = arith.truncf %204 : vector<4x4x8xf32> to vector<4x4x8xbf16>
    %c0_150 = arith.constant 0 : index
    %c0_151 = arith.constant 0 : index
    %c0_152 = arith.constant 0 : index
    %c0_153 = arith.constant 0 : index
    %206 = vector.load %arg9[%c0_150, %c0_151, %c0_152, %c0_153] : memref<1x4x4x8xbf16, #tpu.memory_space<vmem>>, vector<1x4x4x8xbf16>
    %207 = vector.shape_cast %206 : vector<1x4x4x8xbf16> to vector<4x4x8xbf16>
    %208 = vector.shape_cast %205 : vector<4x4x8xbf16> to vector<1x4x4x8xbf16>
    tpu.vector_store %arg9[%c0_150, %c0_151, %c0_152, %c0_153], %208 {strides = array<i32>} : memref<1x4x4x8xbf16, #tpu.memory_space<vmem>>, vector<1x4x4x8xbf16>,
    return
  }
  func.func @transform_0(%arg0: i32) -> (i32, i32, i32, i32) {
    %c0_i32 = arith.constant 0 : i32
    %c0_i32_0 = arith.constant 0 : i32
    %c0_i32_1 = arith.constant 0 : i32
    %c0_i32_2 = arith.constant 0 : i32
    return %arg0, %c0_i32, %c0_i32_0, %c0_i32_1 : i32, i32, i32, i32
  }
  func.func @transform_1(%arg0: i32) -> (i32, i32, i32, i32) {
    %c0_i32 = arith.constant 0 : i32
    %c0_i32_0 = arith.constant 0 : i32
    %c0_i32_1 = arith.constant 0 : i32
    %c0_i32_2 = arith.constant 0 : i32
    return %arg0, %c0_i32, %c0_i32_0, %c0_i32_1 : i32, i32, i32, i32
  }
  func.func @transform_2(%arg0: i32) -> (i32, i32) {
    %c0_i32 = arith.constant 0 : i32
    %c0_i32_0 = arith.constant 0 : i32
    %c0_i32_1 = arith.constant 0 : i32
    return %c0_i32, %c0_i32_0 : i32, i32
  }
  func.func @transform_3(%arg0: i32) -> (i32, i32, i32, i32) {
    %c0_i32 = arith.constant 0 : i32
    %c0_i32_0 = arith.constant 0 : i32
    %c0_i32_1 = arith.constant 0 : i32
    %c0_i32_2 = arith.constant 0 : i32
    %c0_i32_3 = arith.constant 0 : i32
    return %c0_i32, %c0_i32_0, %c0_i32_1, %c0_i32_2 : i32, i32, i32, i32
  }
  func.func @transform_4(%arg0: i32) -> (i32, i32, i32, i32) {
    %c0_i32 = arith.constant 0 : i32
    %c0_i32_0 = arith.constant 0 : i32
    %c0_i32_1 = arith.constant 0 : i32
    %c0_i32_2 = arith.constant 0 : i32
    %c0_i32_3 = arith.constant 0 : i32
    return %c0_i32, %c0_i32_0, %c0_i32_1, %c0_i32_2 : i32, i32, i32, i32
  }
  func.func @transform_5(%arg0: i32) -> (i32, i32) {
    %c0_i32 = arith.constant 0 : i32
    %c0_i32_0 = arith.constant 0 : i32
    %c0_i32_1 = arith.constant 0 : i32
    return %c0_i32, %c0_i32_0 : i32, i32
  }
  func.func @transform_6(%arg0: i32) -> (i32, i32, i32, i32) {
    %c0_i32 = arith.constant 0 : i32
    %c0_i32_0 = arith.constant 0 : i32
    %c0_i32_1 = arith.constant 0 : i32
    %c0_i32_2 = arith.constant 0 : i32
    %c0_i32_3 = arith.constant 0 : i32
    return %c0_i32, %c0_i32_0, %c0_i32_1, %c0_i32_2 : i32, i32, i32, i32
  }
  func.func @transform_7(%arg0: i32) -> (i32, i32) {
    %c0_i32 = arith.constant 0 : i32
    %c0_i32_0 = arith.constant 0 : i32
    %c0_i32_1 = arith.constant 0 : i32
    return %c0_i32, %c0_i32_0 : i32, i32
  }
  func.func @transform_8(%arg0: i32) -> (i32, i32, i32, i32) {
    %c0_i32 = arith.constant 0 : i32
    %c0_i32_0 = arith.constant 0 : i32
    %c0_i32_1 = arith.constant 0 : i32
    %c0_i32_2 = arith.constant 0 : i32
    return %arg0, %c0_i32, %c0_i32_0, %c0_i32_1 : i32, i32, i32, i32
  }
}

</mosaic_0001>

<bundles_post_ra>
// kernel: unet_upsample_forward.2
= control target key start
LH: loop header
LB: loop body
LE: loop exit
PB: predicated region body
PF: predicated region fallthrough
CT: control target
= control target key end

     0   :  { %s9187_s0 = inlined_call_operand.hbm [shape: bf16[2,4,4,32], index: 0, kind: input, shape index: {}]   ;;  %s9188_s1 = inlined_call_operand.hbm [shape: bf16[2,8,8,16], index: 1, kind: input, shape index: {}]   ;;  %s9189_s2 = inlined_call_operand.hbm [shape: bf16[32,128], index: 2, kind: input, shape index: {}]   ;;  %s9190_s3 = inlined_call_operand.hbm [shape: bf16[3,3,32,16], index: 3, kind: input, shape index: {}]   ;;  %s9191_s4 = inlined_call_operand.hbm [shape: bf16[3,3,16,16], index: 4, kind: input, shape index: {}]   ;;  %s9192_s5 = inlined_call_operand.hbm [shape: f32[1,16], index: 5, kind: input, shape index: {}]   ;;  %s9193_s6 = inlined_call_operand.hbm [shape: bf16[3,3,16,16], index: 6, kind: input, shape index: {}]   ;;  %s9194_s7 = inlined_call_operand.hbm [shape: f32[1,16], index: 7, kind: input, shape index: {}]   ;;  %s9195_s8 = inlined_call_operand.hbm [shape: bf16[2,4,4,16], index: 8, kind: output, shape index: {}]  }
   0x1   :  { %9274 = sst [smem:[#allocation82_spill]] %s9187_s0 }
   0x2   :  { %9275 = sst [smem:[#allocation83_spill]] %s9189_s2 }
   0x3   :  { %9276 = sst [smem:[#allocation84_spill]] %s9190_s3 }
   0x4   :  { %9277 = sst [smem:[#allocation85_spill]] %s9191_s4 }
   0x5   :  { %9278 = sst [smem:[#allocation86_spill]] %s9192_s5 }
   0x6   :  { %9279 = sst [smem:[#allocation87_spill]] %s9193_s6 }
   0x7   :  { %9280 = sst [smem:[#allocation88_spill]] %s9194_s7 }
   0x8   :  { %13 = vsyncpa [#allocation3], 0 }
   0x9   :  { %15 = vsyncpa [#allocation3 + $0x1], 0 }
   0xa   :  { %16 = vsyncpa [#allocation6], 0 }
   0xb   :  { %18 = vsyncpa [#allocation6 + $0x1], 0 }
   0xc   :  { %19 = vsyncpa [#allocation9], 0 }
   0xd   :  { %20 = vsyncpa [#allocation12], 0 }
   0xe   :  { %21 = vsyncpa [#allocation15], 0 }
   0xf   :  { %22 = vsyncpa [#allocation4], 0 }
  0x10   :  { %24 = vsyncpa [#allocation4 + $0x1], 0  ;;  %s6971_s27 = smov 0   ;;  %s6973_s28 = smov 0  }
  0x11   :  { %s6975_s29 = smov 0   ;;  %s6977_s30 = smov 0  }
  0x12 LB: > { %s6905_s9 = smov [#allocation7]   ;;  %s6992_s11 = sadd.s32 4294967295, %s6903_s30   ;;  %s6903_s30 = sphi %s6977_s30, %s9477_s30   ;;  %s6899_s29 = sphi %s6975_s29, %s9476_s29   ;;  %s6895_s28 = sphi %s6973_s28, %s9475_s28   ;;  %s6891_s27 = sphi %s6971_s27, %s9474_s27  }
  0x13   : > { %s251_s10 = sshll.u32 %s6905_s9, 4  ;;  %p5769_p0 = scmp.ge.s32.totalorder %s6903_s30, 1  ;;  %s6997_s10 = int_to_ptr.vmem [resolvable:$true] %s251_s10 }
  0x14   : > { %p9198_p1 = scmp.eq.s32.totalorder %s6992_s11, 0  ;;  %p239_p2 = scmp.lt.s32.totalorder %s6903_s30, 3 }
  0x15   : > { %s6906_s13 = smov [#allocation8]   ;;  %s6907_s16 = smov [#allocation11]  }
  0x16   : > { %p6999_p3 = pnand %p5769_p0, %p239_p2  ;;  %s264_s14 = sshll.u32 %s6906_s13, 4  ;;  %s7012_s14 = int_to_ptr.vmem [resolvable:$true] %s264_s14 }
  0x17   : > { %s291_s17 = sshll.u32 %s6907_s16, 4  ;;  %s9283_s2 = sld [smem:[#allocation83_spill]]  ;;  %s7014_s17 = int_to_ptr.vmem [resolvable:$true] %s291_s17 }
  0x18   : > { %s9281_s12 = scalar_select %p6999_p3, 1, 0 }
  0x19   : > { %p6457_p5 = pneg %p6999_p3 }
  0x1b   : > { %p7008_p6 = pnand %p6457_p5, %p9198_p1 }
  0x1d   : > { %s6589_s20 = scalar_lea.hbm %s9283_s2, 256  ;;  %p7024_p8 = pneg %p7008_p6 }
  0x1e   : > { %p6590_p7 = scmp.ne.s32.totalorder %s9283_s2, %s6589_s20  ;;  %p6596_p11 = scmp.lt.u32.totalorder %s6589_s20, %s9283_s2 }
  0x20   : > { %p6592_p9 = pnand %p7024_p8, %p6590_p7 }
  0x22   : > { %p6593_p10 = pneg %p6592_p9 }
  0x24   : > { %p6598_p12 = pnand %p6596_p11, %p6593_p10 }
  0x26   : > { %6601 = shalt.err (!%p6598_p12)
}
  0x27   : > { %s6602_s26 = scalar_lea.vmem %s6997_s10, 256  ;;  %p6610_p5 = scmp.lt.s32.totalorder %s6997_s10, %s6997_s10 }
  0x28   : > { %p6603_p13 = scmp.ne.s32.totalorder %s6997_s10, %s6602_s26  ;;  %p6611_p4 = scmp.lt.s32.totalorder %s6602_s26, %s6602_s26 }
  0x2a   : > { %p6605_p0 = pnand %p6603_p13, %p7024_p8  ;;  %p6612_p7 = por %p6611_p4, %p6610_p5 }
  0x2c   : > { %p6606_p2 = pneg %p6605_p0 }
  0x2e   : > { %p6613_p9 = pnand %p6612_p7, %p6606_p2 }
  0x30   : > { %6616 = shalt.err (!%p6613_p9)
}
  0x31   : > { %s9196_s9 = smov 64   ;;  %s9200_s13 = smov 4  }
  0x32   : > { %6460 = dma.hbm_to_vmem [thread:$0]  (!%p7008_p6), %s9283_s2, 256, %s6997_s10, [#allocation6], %s9196_s9, %s9196_s9, %s9200_s13  }
  0x33   : > { %s9285_s3 = sld [smem:[#allocation84_spill]] }
  0x39   : > { %s6617_s21 = scalar_lea.hbm %s9285_s3, 2304 }
  0x3a   : > { %p6618_p4 = scmp.ne.s32.totalorder %s9285_s3, %s6617_s21  ;;  %p6624_p12 = scmp.lt.u32.totalorder %s6617_s21, %s9285_s3 }
  0x3c   : > { %p6620_p10 = pnand %p6618_p4, %p7024_p8 }
  0x3e   : > { %p6621_p11 = pneg %p6620_p10 }
  0x40   : > { %p6626_p13 = pnand %p6624_p12, %p6621_p11 }
  0x42   : > { %6629 = shalt.err (!%p6626_p13)
}
  0x43   : > { %s6630_s10 = scalar_lea.vmem %s7012_s14, 2304  ;;  %p6638_p7 = scmp.lt.s32.totalorder %s7012_s14, %s7012_s14 }
  0x44   : > { %p6631_p0 = scmp.ne.s32.totalorder %s7012_s14, %s6630_s10  ;;  %p6639_p9 = scmp.lt.s32.totalorder %s6630_s10, %s6630_s10 }
  0x46   : > { %p6633_p2 = pnand %p6631_p0, %p7024_p8  ;;  %p6640_p4 = por %p6639_p9, %p6638_p7 }
  0x48   : > { %p6634_p5 = pneg %p6633_p2 }
  0x4a   : > { %p6641_p10 = pnand %p6640_p4, %p6634_p5 }
  0x4c   : > { %6644 = shalt.err (!%p6641_p10)
}
  0x4d   : > { %6463 = dma.hbm_to_vmem [thread:$0]  (!%p7008_p6), %s9285_s3, 2304, %s7012_s14, [#allocation9], %s9196_s9, %s9196_s9, %s9200_s13  }
  0x4e   : > { %s9286_s5 = sld [smem:[#allocation86_spill]] }
  0x54   : > { %s6645_s21 = scalar_lea.hbm %s9286_s5, 16 }
  0x55   : > { %p6646_p11 = scmp.ne.s32.totalorder %s9286_s5, %s6645_s21  ;;  %p6652_p0 = scmp.lt.u32.totalorder %s6645_s21, %s9286_s5 }
  0x57   : > { %p6648_p12 = pnand %p6646_p11, %p7024_p8 }
  0x59   : > { %p6649_p13 = pneg %p6648_p12 }
  0x5b   : > { %p6654_p2 = pnand %p6652_p0, %p6649_p13 }
  0x5d   : > { %6657 = shalt.err (!%p6654_p2)
}
  0x5e   : > { %s6658_s14 = scalar_lea.vmem %s7014_s17, 16  ;;  %s6665_s10 = scalar_lea.vmem %s7014_s17, 32 }
  0x5f   : > { %p6659_p5 = scmp.ne.s32.totalorder %s7014_s17, %s6658_s14  ;;  %p6666_p4 = scmp.lt.s32.totalorder %s7014_s17, %s7014_s17 }
  0x60   : > { %p6667_p10 = scmp.lt.s32.totalorder %s6665_s10, %s6658_s14 }
  0x61   : > { %p6661_p7 = pnand %p6659_p5, %p7024_p8 }
  0x62   : > { %p6668_p11 = por %p6667_p10, %p6666_p4 }
  0x63   : > { %p6662_p9 = pneg %p6661_p7 }
  0x65   : > { %p6669_p12 = pnand %p6668_p11, %p6662_p9 }
  0x67   : > { %6672 = shalt.err (!%p6669_p12)
}
  0x68   : > { %6469 = dma.hbm_to_vmem [thread:$0]  (!%p7008_p6), %s9286_s5, 16, %s7014_s17, [#allocation12]  }
  0x69   : > { %s6910_s19 = smov [#allocation10]   ;;  %s6911_s21 = smov [#allocation13]  }
  0x6a   : > { %s277_s20 = sshll.u32 %s6910_s19, 4  ;;  %s301_s22 = sshll.u32 %s6911_s21, 4  ;;  %s278_s20 = int_to_ptr.vmem [resolvable:$true] %s277_s20  ;;  %s302_s22 = int_to_ptr.vmem [resolvable:$true] %s301_s22 }
  0x6b   : > { %s9287_s4 = sld [smem:[#allocation85_spill]] }
  0x71   : > { %s6673_s26 = scalar_lea.hbm %s9287_s4, 1152 }
  0x72   : > { %p6674_p13 = scmp.ne.s32.totalorder %s9287_s4, %s6673_s26  ;;  %p6680_p5 = scmp.lt.u32.totalorder %s6673_s26, %s9287_s4 }
  0x74   : > { %p6676_p0 = pnand %p6674_p13, %p7024_p8 }
  0x76   : > { %p6677_p2 = pneg %p6676_p0 }
  0x78   : > { %p6682_p7 = pnand %p6680_p5, %p6677_p2 }
  0x7a   : > { %6685 = shalt.err (!%p6682_p7)
}
  0x7b   : > { %s6686_s17 = scalar_lea.vmem %s278_s20, 1152  ;;  %p6694_p11 = scmp.lt.s32.totalorder %s278_s20, %s278_s20 }
  0x7c   : > { %p6687_p9 = scmp.ne.s32.totalorder %s278_s20, %s6686_s17  ;;  %p6695_p12 = scmp.lt.s32.totalorder %s6686_s17, %s6686_s17 }
  0x7e   : > { %p6689_p4 = pnand %p6687_p9, %p7024_p8  ;;  %p6696_p1 = por %p6695_p12, %p6694_p11 }
  0x80   : > { %p6690_p10 = pneg %p6689_p4 }
  0x82   : > { %p6697_p3 = pnand %p6696_p1, %p6690_p10 }
  0x84   : > { %6700 = shalt.err (!%p6697_p3)
}
  0x85   : > { %s9288_s18 = smov 64   ;;  %s9289_s6 = sld [smem:[#allocation87_spill]] }
  0x86   : > { %6466 = dma.hbm_to_vmem [thread:$0]  (!%p7008_p6), %s9287_s4, 1152, %s278_s20, [#allocation9], %s9288_s18, %s9288_s18, %s9200_s13  }
  0x8b   : > { %s6701_s25 = scalar_lea.hbm %s9289_s6, 1152 }
  0x8c   : > { %p6702_p1 = scmp.ne.s32.totalorder %s9289_s6, %s6701_s25  ;;  %p6708_p0 = scmp.lt.u32.totalorder %s6701_s25, %s9289_s6 }
  0x8e   : > { %p6704_p3 = pnand %p6702_p1, %p7024_p8 }
  0x90   : > { %p6705_p13 = pneg %p6704_p3 }
  0x92   : > { %p6710_p2 = pnand %p6708_p0, %p6705_p13 }
  0x94   : > { %6713 = shalt.err (!%p6710_p2)
}
  0x95   : > { %s6714_s17 = scalar_lea.vmem %s302_s22, 1152  ;;  %p6722_p4 = scmp.lt.s32.totalorder %s302_s22, %s302_s22 }
  0x96   : > { %p6715_p5 = scmp.ne.s32.totalorder %s302_s22, %s6714_s17  ;;  %p6723_p10 = scmp.lt.s32.totalorder %s6714_s17, %s6714_s17 }
  0x98   : > { %p6717_p7 = pnand %p6715_p5, %p7024_p8  ;;  %p6724_p11 = por %p6723_p10, %p6722_p4 }
  0x9a   : > { %p6718_p9 = pneg %p6717_p7 }
  0x9c   : > { %p6725_p12 = pnand %p6724_p11, %p6718_p9 }
  0x9e   : > { %6728 = shalt.err (!%p6725_p12)
}
  0x9f   : > { %6472 = dma.hbm_to_vmem [thread:$0]  (!%p7008_p6), %s9289_s6, 1152, %s302_s22, [#allocation12], %s9288_s18, %s9288_s18, %s9200_s13  }
  0xa0   : > { %s6912_s19 = smov [#allocation14]   ;;  %s9290_s7 = sld [smem:[#allocation88_spill]] }
  0xa1   : > { %s315_s21 = sshll.u32 %s6912_s19, 4  ;;  %s316_s21 = int_to_ptr.vmem [resolvable:$true] %s315_s21 }
  0xa6   : > { %s6729_s26 = scalar_lea.hbm %s9290_s7, 16 }
  0xa7   : > { %p6730_p1 = scmp.ne.s32.totalorder %s9290_s7, %s6729_s26  ;;  %p6736_p0 = scmp.lt.u32.totalorder %s6729_s26, %s9290_s7 }
  0xa9   : > { %p6732_p3 = pnand %p6730_p1, %p7024_p8 }
  0xab   : > { %p6733_p13 = pneg %p6732_p3 }
  0xad   : > { %p6738_p2 = pnand %p6736_p0, %p6733_p13 }
  0xaf   : > { %6741 = shalt.err (!%p6738_p2)
}
  0xb0   : > { %s6742_s22 = scalar_lea.vmem %s316_s21, 16  ;;  %s6749_s20 = scalar_lea.vmem %s316_s21, 32 }
  0xb1   : > { %p6743_p5 = scmp.ne.s32.totalorder %s316_s21, %s6742_s22  ;;  %p6750_p4 = scmp.lt.s32.totalorder %s316_s21, %s316_s21 }
  0xb2   : > { %p6751_p10 = scmp.lt.s32.totalorder %s6749_s20, %s6742_s22 }
  0xb3   : > { %p6745_p7 = pnand %p6743_p5, %p7024_p8 }
  0xb4   : > { %p6752_p11 = por %p6751_p10, %p6750_p4 }
  0xb5   : > { %p6746_p9 = pneg %p6745_p7 }
  0xb7   : > { %p6753_p12 = pnand %p6752_p11, %p6746_p9 }
  0xb9   : > { %6756 = shalt.err (!%p6753_p12)
}
  0xba   : > { %6475 = dma.hbm_to_vmem [thread:$0]  (!%p7008_p6), %s9290_s7, 16, %s316_s21, [#allocation15]  }
  0xbb   : > { %s5768_s23 = sadd.s32 4294967294, %s6903_s30   ;;  %s7160_s15 = sadd.s32 1, %s6903_s30  }
  0xbc   : > { %s34_s24 = ssub.s32 %s6903_s30, %s7160_s15  ;;  %s37_s25 = sadd.s32 1, %s6899_s29 }
  0xbd   : > { %p35_p8 = scmp.eq.s32.totalorder %s34_s24, 0  ;;  %p44_p1 = scmp.ne.s32.totalorder %s6899_s29, %s6895_s28 }
  0xbe   : > { %p45_p3 = scmp.eq.s32.totalorder %s6903_s30, 0  ;;  %p50_p13 = scmp.ne.s32.totalorder %s6895_s28, %s6891_s27 }
  0xbf   : > { %s7171_s26 = scalar_select %p35_p8, %s6899_s29, %s37_s25  }
  0xc0   : > { %p7173_p0 = por %p45_p3, %p44_p1  ;;  %p9292_p2 = scmp.eq.s32.totalorder %s6992_s11, 0 }
  0xc1   : > { %p226_p5 = scmp.eq.s32.totalorder %s6992_s11, 1  ;;  %p232_p7 = scmp.eq.s32.totalorder %s5768_s23, 1 }
  0xc2   : > { %p7179_p6 = por %p9292_p2, %p50_p13  ;;  %p6493_p9 = scmp.lt.s32.totalorder %s6903_s30, 2 }
  0xc3   : > { %s7186_s10 = sand.u32 1, %s6899_s29   ;;  %p7188_p4 = por %p226_p5, %p44_p1 }
  0xc4   : > { %p7192_p10 = por %p232_p7, %p50_p13  ;;  %s5777_s22 = sshll.u32 %s7186_s10, 3 }
  0xc5   : > { %s9294_s16 = scalar_select %p7188_p4, 1, 0 }
  0xc6   : > { %s9295_s17 = scalar_select %p7192_p10, 1, 0 }
  0xc7   : > { %s5990_s20 = sshll.u32 %s6903_s30, 7  ;;  %s9296_s0 = sld [smem:[#allocation82_spill]] }
  0xc8   : > { %s330_s23 = scalar_lea.vmem [#allocation2], %s5777_s22  ;;  %p7207_p11 = pnand %p6493_p9, %p7173_p0 }
  0xc9   : > { %s337_s25 = sshll.u32 %s330_s23, 4  ;;  %s327_s3 = scalar_lea.sflag [#allocation3], %s7186_s10  ;;  %s7203_s25 = int_to_ptr.vmem [resolvable:$true] %s337_s25 }
  0xca   : > { %p6759_p8 = pneg %p7207_p11 }
  0xcd   : > { %s7201_s24 = scalar_lea.hbm %s9296_s0, %s5990_s20  ;;  %s6762_s14 = scalar_lea.hbm %s9296_s0, 256 }
  0xce   : > { %s6757_s9 = scalar_lea.hbm %s7201_s24, 128  ;;  %p6763_p13 = scmp.lt.u32.totalorder %s7201_s24, %s9296_s0 }
  0xcf   : > { %p6758_p12 = scmp.ne.s32.totalorder %s7201_s24, %s6757_s9  ;;  %p6764_p0 = scmp.lt.u32.totalorder %s6762_s14, %s6757_s9 }
  0xd0   : > { %p6766_p5 = scmp.lt.u32.totalorder %s6757_s9, %s7201_s24 }
  0xd1   : > { %p6760_p1 = pnand %p6759_p8, %p6758_p12  ;;  %p6765_p2 = por %p6764_p0, %p6763_p13 }
  0xd3   : > { %p6761_p3 = pneg %p6760_p1  ;;  %p6767_p7 = por %p6766_p5, %p6765_p2 }
  0xd5   : > { %p6768_p9 = pnand %p6767_p7, %p6761_p3 }
  0xd7   : > { %6771 = shalt.err (!%p6768_p9)
}
  0xd8   : > { %s6772_s2 = scalar_lea.vmem %s7203_s25, 128  ;;  %s6913_s22 = smov [#allocation2]  }
  0xd9   : > { %p6773_p12 = scmp.ne.s32.totalorder %s7203_s25, %s6772_s2  ;;  %s6777_s20 = sshll.u32 %s6913_s22, 4  ;;  %s6778_s20 = int_to_ptr.vmem [resolvable:$false] %s6777_s20 }
  0xda   : > { %s6779_s19 = scalar_lea.vmem %s6778_s20, 256  ;;  %p6780_p4 = scmp.lt.s32.totalorder %s7203_s25, %s6778_s20 }
  0xdb   : > { %p6775_p1 = pnand %p6773_p12, %p6759_p8  ;;  %p6781_p13 = scmp.lt.s32.totalorder %s6779_s19, %s6772_s2 }
  0xdd   : > { %p6776_p10 = pneg %p6775_p1  ;;  %p6782_p0 = por %p6781_p13, %p6780_p4 }
  0xdf   : > { %p6783_p2 = pnand %p6782_p0, %p6776_p10 }
  0xe1   : > { %6786 = shalt.err (!%p6783_p2)
}
  0xe2   : > { %s6914_s9 = smov 32   ;;  %s6915_s14 = smov 2  }
  0xe3   : > { %6479 = dma.hbm_to_vmem [thread:$0]  (!%p7207_p11), %s7201_s24, 128, %s7203_s25, %s327_s3, %s6914_s9, %s6914_s9, %s6915_s14  }
  0xe4   : > { %s5780_s23 = sshll.u32 %s7186_s10, 5  ;;  %s5991_s22 = sshll.u32 %s6903_s30, 9 }
  0xe5   : > { %s7245_s19 = scalar_lea.hbm %s9188_s1, %s5991_s22  ;;  %s351_s0 = scalar_lea.vmem [#allocation5], %s5780_s23 }
  0xe6   : > { %s358_s4 = sshll.u32 %s351_s0, 4  ;;  %s9298_s5 = sand.u32 1, %s6903_s30   ;;  %s7247_s4 = int_to_ptr.vmem [resolvable:$true] %s358_s4 }
  0xe7   : > { %s7251_s6 = scalar_lea.sflag [#allocation6], %s9298_s5  ;;  %s6787_s7 = scalar_lea.hbm %s7245_s19, 512 }
  0xe8   : > { %p6788_p4 = scmp.ne.s32.totalorder %s7245_s19, %s6787_s7  ;;  %s6792_s24 = scalar_lea.hbm %s9188_s1, 1024 }
  0xe9   : > { %p6793_p5 = scmp.lt.u32.totalorder %s7245_s19, %s9188_s1  ;;  %p6794_p7 = scmp.lt.u32.totalorder %s6792_s24, %s6787_s7 }
  0xea   : > { %p6790_p10 = pnand %p6788_p4, %p6759_p8  ;;  %p6796_p12 = scmp.lt.u32.totalorder %s6787_s7, %s7245_s19 }
  0xeb   : > { %p6795_p9 = por %p6794_p7, %p6793_p5 }
  0xec   : > { %p6791_p3 = pneg %p6790_p10 }
  0xed   : > { %p6797_p1 = por %p6796_p12, %p6795_p9 }
  0xef   : > { %p6798_p13 = pnand %p6797_p1, %p6791_p3 }
  0xf1   : > { %6801 = shalt.err (!%p6798_p13)
}
  0xf2   : > { %s6802_s0 = scalar_lea.vmem %s7247_s4, 512  ;;  %s6916_s5 = smov [#allocation5]  }
  0xf3   : > { %p6803_p0 = scmp.ne.s32.totalorder %s7247_s4, %s6802_s0  ;;  %s6807_s14 = sshll.u32 %s6916_s5, 4  ;;  %s6808_s14 = int_to_ptr.vmem [resolvable:$false] %s6807_s14 }
  0xf4   : > { %s6809_s23 = scalar_lea.vmem %s6808_s14, 1024  ;;  %p6810_p10 = scmp.lt.s32.totalorder %s7247_s4, %s6808_s14 }
  0xf5   : > { %p6805_p2 = pnand %p6803_p0, %p6759_p8  ;;  %p6811_p5 = scmp.lt.s32.totalorder %s6809_s23, %s6802_s0 }
  0xf7   : > { %p6806_p4 = pneg %p6805_p2  ;;  %p6812_p7 = por %p6811_p5, %p6810_p10 }
  0xf9   : > { %p6813_p9 = pnand %p6812_p7, %p6806_p4 }
  0xfb   : > { %6816 = shalt.err (!%p6813_p9)
}
  0xfc   : > { %s9299_s7 = smov 4   ;;  %p9300_p8 = scmp.ne.s32.totalorder %s9281_s12, 0 }
  0xfd   : > { %6482 = dma.hbm_to_vmem [thread:$0]  (!%p7207_p11), %s7245_s19, 512, %s7247_s4, %s7251_s6, %s9288_s18, %s9288_s18, %s9299_s7  }
  0xfe   : > { %370 = sbr.rel (%p9300_p8) target bundleno = 1494 (0x5d6), region = 52 }
 0x105   : > { %s7283_s22 = sand.u32 1, %s6895_s28  }
 0x106   : > { %s5784_s20 = sshll.u32 %s7283_s22, 3  ;;  %s373_s2 = scalar_lea.sflag [#allocation3], %s7283_s22 }
 0x107   : > { %s7289_s13 = scalar_lea.vmem [#allocation2], %s5784_s20 }
 0x108   : > { %6862 = dma.done.wait (%p7179_p6), %s373_s2, 128  }
 0x109   : > { %6864 = vsyncadd (%p7179_p6), %s373_s2, 4294967168  ;;  %s381_s4 = sand.u32 1, %s6992_s11   ;;  %s5785_s6 = sshll.u32 %s7283_s22, 5 }
 0x10a   : > { %s382_s12 = scalar_lea.sflag [#allocation6], %s381_s4  ;;  %s7297_s18 = scalar_lea.vmem [#allocation5], %s5785_s6 }
 0x10b   : > { %6866 = dma.done.wait (%p7179_p6), %s382_s12, 512  }
 0x10c   : > { %6868 = vsyncadd (%p7179_p6), %s382_s12, 4294966784  ;;  %p9301_p11 = scmp.eq.s32.totalorder %s6992_s11, 0 }
 0x10e   : > { %6870 = dma.done.wait (%p9301_p11), [#allocation6], 256   ;;  %p9302_p3 = pmov %p9301_p11 }
 0x110   : > { %6872 = vsyncadd (%p9302_p3), [#allocation6], 4294967040  ;;  %p9303_p12 = pmov %p9302_p3 }
 0x111   : > { %p9304_p1 = pmov %p9302_p3 }
 0x112   : > { %6874 = dma.done.wait (%p9303_p12), [#allocation9], 3456  }
 0x113   : > { %6876 = vsyncadd (%p9304_p1), [#allocation9], 4294963840  ;;  %p9305_p13 = pmov %p9304_p1 }
 0x114   : > { %p9306_p0 = pmov %p9304_p1 }
 0x115   : > { %6878 = dma.done.wait (%p9305_p13), [#allocation12], 1168  }
 0x116   : > { %6880 = vsyncadd (%p9306_p0), [#allocation12], 4294966128  ;;  %p9307_p6 = pmov %p9306_p0 }
 0x117   : > { %p9308_p2 = pmov %p9306_p0 }
 0x118   : > { %6882 = dma.done.wait (%p9307_p6), [#allocation15], 16  }
 0x119   : > { %6884 = vsyncadd (%p9308_p2), [#allocation15], 4294967280  ;;  %v465_v0 = vlaneseq  ;;  %v9202_v1 = vmov 0.0   ;;  %vm6918_vm0 = vmmov 0   ;;  %v6919_v2 = vmov 1983009808  }
 0x11a   : > { %6095 = vmatprep.subr.bf16.mxu0 %v9202_v1  ;;  %6099 = vmatprep.mubr.msk.bf16.mxu0 %vm6918_vm0, %v9202_v1  ;;  %v463_v3 = vunpack.c.l.s4 %v6919_v2  ;;  %v6551_v6 = vld [vmem:[#allocation7] sm:$0xff]   ;;  %v6552_v7 = vld [vmem:[#allocation7 + $0x8] sm:$0xff]   ;;  %vm489_vm1 = vcmask 261120   ;;  %v448_v9 = vld [vmem:[%s7289_s13] sm:$0x3]  ;;  %s6921_s21 = smov 96  }
 0x11b   : > { %6103 = vmatprep.subr.bf16.mxu1 %v9202_v1  ;;  %6105 = vmatprep.mubr.msk.bf16.mxu1 %vm6918_vm0, %v9202_v1  ;;  %v466_v5 = vshrl.u32 %v465_v0, 7  ;;  %v449_v10 = vld [vmem:[%s7289_s13 + $0x2] sm:$0x3]  ;;  %v450_v11 = vld [vmem:[%s7289_s13 + $0x4] sm:$0x3]  ;;  %vm745_vm10 = vcmask 1040384  }
 0x11c   : > { %v464_v4 = vunpack.c.0.s8 %v463_v3  ;;  %6096 = vmatpush3.bf16.msra.mxu0 %v6551_v6  ;;  %v451_v12 = vld [vmem:[%s7289_s13 + $0x6] sm:$0x3]  ;;  %v460_v13 = vcombine.low %v448_v9, %v449_v10  ;;  %v6920_v18 = vmov 1966171168   ;;  %vm746_vm2 = vsmask.f32 256 }
 0x11d   : > { %6097 = vmatprep.subr.bf16.mxu0 %v9202_v1  ;;  %v461_v14 = vcombine.low %v450_v11, %v451_v12  ;;  %v538_v19 = vunpack.c.l.s4 %v6920_v18  ;;  %v619_v30 = vsub.s32 0, %v466_v5  ;;  %vm1345_vm3 = vsmask.f32 1284  ;;  %vm7471_vm13 = vmand %vm745_vm10, %vm746_vm2  ;;  %s6922_s19 = smov 64   ;;  %s5992_s3 = sshll.u32 %s6992_s11, 7 }
 0x11e   : > { %v467_v8 = vsub.s32 %v464_v4, %v466_v5  ;;  %v5805_v18 = vld.sshfl [vmem:[%s7297_s18] sm:$0x33 pattern:$0x75316420]  ;;  %vm1346_vm4 = vmor %vm746_vm2, %vm1345_vm3  ;;  %vm1347_vm5 = vsmask.f32 2312  ;;  %s9138_s0 = scalar_lea.hbm %s9195_s8, %s5992_s3 }
 0x11f   : > { %v539_v20 = vunpack.c.0.s8 %v538_v19  ;;  %v5806_v19 = vld.sshfl [vmem:[%s7297_s18 + $0x4] sm:$0x33 pattern:$0x75316420]  ;;  %vm1348_vm6 = vmor %vm1346_vm4, %vm1347_vm5  ;;  %vm1349_vm7 = vsmask.f32 3340 }
 0x120   : > { %v468_v15 = vrot.slane %v460_v13, %v467_v8  ;;  %6098 = vmatpush3.bf16.msra.mxu0 %v6552_v7  ;;  %v475_v16 = vrot.slane %v461_v14, %v467_v8  ;;  %vm1350_vm8 = vmor %vm1348_vm6, %vm1349_vm7  ;;  %vm1351_vm9 = vsmask.f32 4368  ;;  %vm1353_vm12 = vsmask.f32 5396  ;;  %s446_s10 = scalar_lea.vmem [#allocation16], %s5784_s20  ;;  %s5602_s11 = scalar_lea.sflag [#allocation4], %s7283_s22 }
 0x121   : > { %6117 = vmatprep.subr.bf16.mxu0 %v9202_v1  ;;  %v7334_v22 = vsub.s32 %v539_v20, %v466_v5  ;;  %v833_v20 = vcombine.high %v5805_v18, %v5805_v18  ;;  %vm7449_vm11 = vmor %vm1350_vm8, %vm1351_vm9  ;;  %vm1355_vm15 = vsmask.f32 6424  ;;  %vm1089_vm2 = vcmask 130048   ;;  %s5615_s24 = sshll.u32 %s446_s10, 4  ;;  %p9471_p10 = scmp.ne.s32.totalorder %s9294_s16, 0  ;;  %s9140_s24 = int_to_ptr.vmem [resolvable:$true] %s5615_s24 }
 0x122   : > { %v476_v17 = vcombine.low %v468_v15, %v475_v16  ;;  %vm1354_vm14 = vmor %vm7449_vm11, %vm1353_vm12  ;;  %vm1357_vm4 = vsmask.f32 7452  ;;  %s6817_s5 = scalar_lea.vmem %s9140_s24, 128  ;;  %s6923_s14 = smov [#allocation16]  }
 0x123   : > { %vm7512_vm3 = vmor %vm1354_vm14, %vm1355_vm15  ;;  %p6818_p4 = scmp.ne.s32.totalorder %s9140_s24, %s6817_s5  ;;  %s6821_s23 = sshll.u32 %s6923_s14, 4  ;;  %s6822_s23 = int_to_ptr.vmem [resolvable:$false] %s6821_s23 }
 0x124   : > { %6100 = vmatmul.mubr.msk.bf16.vlgmr.msra.gmra.mrb[0].mxu0 %vm489_vm1, %v476_v17  ;;  %vm7544_vm5 = vmor %vm7512_vm3, %vm1357_vm4  ;;  %s6823_s7 = scalar_lea.vmem %s6822_s23, 256  ;;  %p6824_p9 = scmp.lt.s32.totalorder %s9140_s24, %s6822_s23 }
 0x125   : > { %6121 = vmatprep.mubr.msk.bf16.mxu0 %vm6918_vm0, %v9202_v1  ;;  %p6819_p5 = pnand %p6818_p4, %p9471_p10  ;;  %p6825_p8 = scmp.lt.s32.totalorder %s6823_s7, %s6817_s5 }
 0x127   : > { %p6820_p7 = pneg %p6819_p5  ;;  %p6826_p11 = por %p6825_p8, %p6824_p9 }
 0x129   : > { %p6827_p3 = pnand %p6826_p11, %p6820_p7 }
 0x1f7   : > { %v527_v21 = vpop.f32.mrb[0].mxu0 }
 0x1f8   : > { %v6101_v23 = vpop.f32.mrb[1].mxu0 }
 0x1f9   : > { %v530_v24 = vpop.f32.mrb[2].mxu0  ;;  %v5807_v23 = vld.sshfl [vmem:[%s7297_s18 + $0x8] sm:$0x33 pattern:$0x75316420] }
 0x1fa   : > { %v534_v25 = vpack.c.bf16 %v530_v24, %v527_v21  ;;  %v5796_v26 = vpack.c.bf16 %v530_v24, %v530_v24  ;;  %v6102_v27 = vpop.f32.mrb[3].mxu0  ;;  %v7402_v21 = vrot.slane %v5805_v18, %v7334_v22  ;;  %v856_v24 = vcombine.high %v5806_v19, %v5806_v19 }
 0x1fc   : > { %v543_v28 = vrot.slane %v534_v25, %v7334_v22  ;;  %v550_v29 = vrot.slane %v5796_v26, %v7334_v22  ;;  %v7406_v25 = vrot.slane %v5806_v19, %v7334_v22  ;;  %v7409_v26 = vrot.slane %v833_v20, %v7334_v22 }
 0x1fd   : > { %v7413_v27 = vcombine.high %v7402_v21, %v7402_v21 }
 0x1fe   : > { %v551_v31 = vcombine.high %v543_v28, %v543_v28  ;;  %v552_v32 = vcombine.high %v550_v29, %v550_v29  ;;  %v559_v33 = vrot.slane %v543_v28, %v7334_v22  ;;  %v566_v34 = vrot.slane %v550_v29, %v7334_v22  ;;  %9309 = vst [vmem:[#allocation24_spill] sm:$0xff] %v7406_v25 }
 0x1ff   : > { %9310 = vst [vmem:[#allocation25_spill] sm:$0xff] %v7409_v26  ;;  %9311 = vst [vmem:[#allocation26_spill] sm:$0xff] %v7413_v27  ;;  %v879_v28 = vcombine.high %v5807_v23, %v5807_v23  ;;  %v7416_v29 = vrot.slane %v5807_v23, %v7334_v22 }
 0x200   : > { %v573_v35 = vrot.slane %v551_v31, %v7334_v22  ;;  %v580_v36 = vrot.slane %v552_v32, %v7334_v22  ;;  %v5797_v37 = vpack.i.b16 %v559_v33, %v559_v33  ;;  %v586_v38 = vunpack.i.h.s16 %v559_v33 }
 0x201   : > { %v581_v39 = vcombine.high %v559_v33, %v559_v33  ;;  %v5801_v40 = vpack.i.b16 %v566_v34, %v566_v34  ;;  %v594_v41 = vunpack.i.h.s16 %v566_v34  ;;  %v582_v42 = vcombine.high %v566_v34, %v566_v34  ;;  %9312 = vst [vmem:[#allocation27_spill] sm:$0xff] %v7416_v29 }
 0x202   : > { %v7342_v43 = vrot.slane %v5797_v37, %v619_v30  ;;  %v5798_v44 = vpack.i.b16 %v573_v35, %v573_v35  ;;  %v602_v45 = vpack.i.b16 %v586_v38, %v586_v38  ;;  %v583_v46 = vcombine.high %v573_v35, %v573_v35 }
 0x203   : > { %v5799_v47 = vpack.i.b16 %v581_v39, %v581_v39  ;;  %v590_v48 = vunpack.i.h.s16 %v581_v39  ;;  %v7344_v49 = vrot.slane %v5801_v40, %v619_v30  ;;  %v588_v50 = vunpack.i.h.s16 %v573_v35  ;;  %v5808_v40 = vld.sshfl [vmem:[%s7297_s18 + $0xc] sm:$0x33 pattern:$0x75316420] }
 0x204   : > { %697 = vrot.lane.b32.xlu0 %v7342_v43, %s6921_s21  ;;  %v7348_v51 = vrot.slane %v5798_v44, %v619_v30  ;;  %v7350_v52 = vrot.slane %v602_v45, %v619_v30  ;;  %v5800_v53 = vpack.i.b16 %v583_v46, %v583_v46  ;;  %v610_v54 = vpack.i.b16 %v594_v41, %v594_v41  ;;  %v6553_v41 = vld [vmem:[#allocation10] sm:$0xff]   ;;  %v5809_v45 = vld.sshfl [vmem:[%s7297_s18 + $0x10] sm:$0x33 pattern:$0x75316420] }
 0x205   : > { %v7352_v55 = vrot.slane %v5799_v47, %v619_v30  ;;  %v606_v56 = vpack.i.b16 %v590_v48, %v590_v48  ;;  %v604_v57 = vpack.i.b16 %v588_v50, %v588_v50  ;;  %v5802_v58 = vpack.i.b16 %v580_v36, %v580_v36  ;;  %v7454_v50 = vld.sshfl [vmem:[%s7297_s18 + $0x14] sm:$0x33 pattern:$0x75316420]  ;;  %6104 = vmatpush3.bf16.msra.mxu1 %v6553_v41 }
 0x206   : > { %701 = vrot.lane.b32.xlu1 %v7348_v51, %s6921_s21  ;;  %v7356_v59 = vrot.slane %v5800_v53, %v619_v30  ;;  %v7358_v60 = vrot.slane %v610_v54, %v619_v30  ;;  %v592_v61 = vunpack.i.h.s16 %v583_v46  ;;  %v596_v62 = vunpack.i.h.s16 %v580_v36  ;;  %6133 = vmatprep.subr.bf16.mxu1 %v9202_v1 }
 0x207   : > { %v7360_v63 = vrot.slane %v606_v56, %v619_v30  ;;  %v7362_v0 = vrot.slane %v604_v57, %v619_v30  ;;  %v7364_v2 = vrot.slane %v5802_v58, %v619_v30  ;;  %v5803_v3 = vpack.i.b16 %v582_v42, %v582_v42 }
 0x208   : > { %699 = vrot.lane.b32.xlu0 %v7350_v52, %s6921_s21  ;;  %v608_v4 = vpack.i.b16 %v592_v61, %v592_v61  ;;  %v612_v5 = vpack.i.b16 %v596_v62, %v596_v62  ;;  %v598_v6 = vunpack.i.h.s16 %v582_v42  ;;  %v584_v7 = vcombine.high %v580_v36, %v580_v36 }
 0x209   : > { %v7368_v8 = vrot.slane %v5803_v3, %v619_v30  ;;  %v7423_v31 = vcombine.high %v7406_v25, %v7406_v25  ;;  %v7426_v32 = vrot.slane %v879_v28, %v7334_v22  ;;  %v970_v33 = vcombine.low %v7402_v21, %v7409_v26 }
 0x20a   : > { %705 = vrot.lane.b32.xlu1 %v7352_v55, %s6921_s21  ;;  %v7372_v9 = vrot.slane %v608_v4, %v619_v30  ;;  %v7374_v10 = vrot.slane %v612_v5, %v619_v30  ;;  %v614_v11 = vpack.i.b16 %v598_v6, %v598_v6  ;;  %v5804_v12 = vpack.i.b16 %v584_v7, %v584_v7 }
 0x20b   : > { %v600_v13 = vunpack.i.h.s16 %v584_v7  ;;  %9314 = vst [vmem:[#allocation29_spill] sm:$0xff] %v7423_v31  ;;  %v971_v34 = vcombine.low %v7413_v27, %v7406_v25  ;;  %v973_v36 = vcombine.low %v7416_v29, %v7426_v32  ;;  %v980_v37 = vrot.slane %v970_v33, %v7334_v22 }
 0x20c   : > { %707 = vrot.lane.b32.xlu0 %v7360_v63, %s6921_s21  ;;  %v7378_v14 = vrot.slane %v614_v11, %v619_v30  ;;  %v7380_v15 = vrot.slane %v5804_v12, %v619_v30  ;;  %v902_v46 = vcombine.high %v5808_v40, %v5808_v40  ;;  %v7447_v47 = vrot.slane %v5808_v40, %v7334_v22 }
 0x20d   : > { %v616_v16 = vpack.i.b16 %v600_v13, %v600_v13  ;;  %v987_v38 = vrot.slane %v971_v34, %v7334_v22  ;;  %v7443_v42 = vrot.slane %v973_v36, %v7334_v22  ;;  %v925_v53 = vcombine.high %v5809_v45, %v5809_v45 }
 0x20e   : > { %709 = vrot.lane.b32.xlu1 %v7356_v59, %s6921_s21  ;;  %9317 = vst [vmem:[#allocation32_spill] sm:$0xff] %v7447_v47  ;;  %v7457_v54 = vrot.slane %v5809_v45, %v7334_v22  ;;  %v7464_v58 = vcombine.high %v7416_v29, %v7416_v29  ;;  %v7467_v61 = vrot.slane %v902_v46, %v7334_v22 }
 0x20f   : > { %v7384_v17 = vrot.slane %v616_v16, %v619_v30  ;;  %v7419_v30 = vrot.slane %v856_v24, %v7334_v22  ;;  %9316 = vst [vmem:[#allocation31_spill] sm:$0xff] %v7443_v42  ;;  %v1002_v44 = vcombine.low %v980_v37, %v987_v38  ;;  %v7478_v3 = vcombine.high %v7447_v47, %v7447_v47  ;;  %v6554_v24 = vld [vmem:[#allocation8] sm:$0xff]   ;;  %v6555_v38 = vld [vmem:[#allocation8 + $0x8] sm:$0xff]  }
 0x210   : > { %713 = vrot.lane.b32.xlu0 %v7344_v49, %s6921_s21  ;;  %9320 = vst [vmem:[#allocation33_spill] sm:$0xff] %v7457_v54  ;;  %9321 = vst [vmem:[#allocation34_spill] sm:$0xff] %v7467_v61  ;;  %v7481_v4 = vrot.slane %v925_v53, %v7334_v22  ;;  %v7485_v5 = vcombine.high %v7457_v54, %v7457_v54  ;;  %v7489_v6 = vrot.slane %v7454_v50, %v7334_v22 }
 0x211   : > { %9313 = vst [vmem:[#allocation28_spill] sm:$0xff] %v7419_v30  ;;  %v972_v35 = vcombine.low %v7419_v30, %v7423_v31  ;;  %v1010_v57 = vrot.slane %v1002_v44, %v7334_v22  ;;  %9324 = vst [vmem:[#allocation35_spill] sm:$0xff] %v7478_v3  ;;  %v1019_v11 = vcombine.low %v7464_v58, %v7447_v47  ;;  %6118 = vmatpush3.bf16.msra.mxu0 %v6554_v24 }
 0x212   : > { %703 = vrot.lane.b32.xlu1 %v7362_v0, %s6921_s21  ;;  %9325 = vst [vmem:[#allocation36_spill] sm:$0xff] %v7481_v4  ;;  %9326 = vst [vmem:[#allocation37_spill] sm:$0xff] %v7489_v6  ;;  %v1020_v13 = vcombine.low %v7467_v61, %v7478_v3  ;;  %v1021_v16 = vcombine.low %v7457_v54, %v7481_v4  ;;  %v1022_v18 = vcombine.low %v7485_v5, %v7489_v6 }
 0x213   : > { %v7439_v39 = vrot.slane %v972_v35, %v7334_v22  ;;  %v7510_v23 = vcombine.high %v7419_v30, %v7419_v30  ;;  %v7519_v34 = vrot.slane %v1019_v11, %v7334_v22  ;;  %6119 = vmatprep.subr.bf16.mxu0 %v9202_v1 }
 0x214   : > { %715 = vrot.lane.b32.xlu0 %v7358_v60, %s6921_s21  ;;  %v7525_v35 = vrot.slane %v1021_v16, %v7334_v22  ;;  %v7536_v40 = vrot.slane %v1022_v18, %v7334_v22 }
 0x215   : > { %9315 = vst [vmem:[#allocation30_spill] sm:$0xff] %v7439_v39  ;;  %v1003_v56 = vcombine.low %v7439_v39, %v7443_v42  ;;  %9329 = vst [vmem:[#allocation38_spill] sm:$0xff] %v7519_v34  ;;  %v3455_v37 = vcombine.low %v7510_v23, %v7426_v32  ;;  %6120 = vmatpush3.bf16.msra.mxu0 %v6555_v38 }
 0x216   : > { %717 = vrot.lane.b32.xlu1 %v7364_v2, %s6921_s21  ;;  %9331 = vst [vmem:[#allocation40_spill] sm:$0xff] %v7525_v35  ;;  %9333 = vst [vmem:[#allocation42_spill] sm:$0xff] %v7536_v40  ;;  %6149 = vmatprep.subr.bf16.mxu0 %v9202_v1 }
 0x217   : > { %v1017_v7 = vrot.slane %v1003_v56, %v7334_v22  ;;  %v7555_v46 = vrot.slane %v3455_v37, %v7334_v22  ;;  %v1557_v56 = vshrl.u32 %v7423_v31, 16 }
 0x218   : > { %711 = vrot.lane.b32.xlu0 %v7372_v9, %s6921_s21 }
 0x219   : > { %v1018_v20 = vcombine.low %v1010_v57, %v1017_v7  ;;  %9337 = vst [vmem:[#allocation44_spill] sm:$0xff] %v7555_v46 }
 0x21a   : > { %719 = vrot.lane.b32.xlu1 %v7374_v10, %s6921_s21 }
 0x21b   : > { %6106 = vmatmul.mubr.msk.bf16.vlgmr.msra.gmra.mrb[0].mxu1 %vm1089_vm2, %v1018_v20 }
 0x21c   : > { %6109 = vmatprep.mubr.msk.bf16.mxu1 %vm6918_vm0, %v9202_v1 }
 0x276   : > { %v698_v12 = vpop.permute.xlu0 %697 }
 0x277   : > { %v7506_v19 = vsel %vm7471_vm13, %v7342_v43, %v698_v12  ;;  %v7522_v43 = vrot.slane %v1020_v13, %v7334_v22  ;;  %v1052_v12 = vcombine.low %v7525_v35, %v7536_v40  ;;  %v1566_v40 = vshrl.u32 %v7416_v29, 16 }
 0x278   : > { %v702_v33 = vpop.permute.xlu1 %701  ;;  %780 = vrot.lane.b32.xlu0 %v7506_v19, %s6922_s19  ;;  %v1360_v44 = vshrl.u32 %v7506_v19, 16 }
 0x279   : > { %9330 = vst [vmem:[#allocation39_spill] sm:$0xff] %v7522_v43  ;;  %v7530_v36 = vsel %vm7471_vm13, %v7348_v51, %v702_v33  ;;  %v1051_v48 = vcombine.low %v7519_v34, %v7522_v43  ;;  %v6556_v33 = vld [vmem:[#allocation8 + $0x10] sm:$0xff]   ;;  %v1616_v34 = vshrl.u32 %v7457_v54, 16 }
 0x27a   : > { %9332 = vst [vmem:[#allocation41_spill] sm:$0xff] %v7530_v36  ;;  %v700_v41 = vpop.permute.xlu0 %699  ;;  %v1373_v53 = vshll.u32 %v7530_v36, 16  ;;  %6134 = vmatpush3.bf16.msra.mxu1 %v6556_v33 }
 0x27b   : > { %v7552_v45 = vsel %vm7471_vm13, %v7350_v52, %v700_v41  ;;  %v1059_v37 = vrot.slane %v1051_v48, %v7334_v22  ;;  %v1066_v41 = vrot.slane %v1052_v12, %v7334_v22  ;;  %6135 = vmatprep.subr.bf16.mxu1 %v9202_v1 }
 0x27c   : > { %9336 = vst [vmem:[#allocation43_spill] sm:$0xff] %v7552_v45  ;;  %v1365_v57 = vshll.u32 %v7552_v45, 16  ;;  %v1368_v7 = vshrl.u32 %v7552_v45, 16  ;;  %v706_v11 = vpop.permute.xlu1 %705  ;;  %782 = vrot.lane.b32.xlu1 %v7552_v45, %s6922_s19  ;;  %784 = vrot.lane.b32.xlu0 %v7530_v36, %s6922_s19 }
 0x27d   : > { %v7586_v24 = vsel %vm7471_vm13, %v7352_v55, %v706_v11  ;;  %v948_v55 = vcombine.high %v7454_v50, %v7454_v50 }
 0x27e   : > { %v7574_v13 = vsel %vm7544_vm5, %v1360_v44, %v1365_v57  ;;  %v7578_v16 = vsel %vm7544_vm5, %v1368_v7, %v1373_v53  ;;  %v708_v18 = vpop.permute.xlu0 %707  ;;  %v1067_v53 = vcombine.low %v1059_v37, %v1066_v41  ;;  %v1546_v57 = vshll.u32 %v7419_v30, 16 }
 0x27f   : > { %v7591_v28 = vsel %vm7471_vm13, %v7360_v63, %v708_v18  ;;  %v7621_v7 = vrot.slane %v948_v55, %v7334_v22  ;;  %v7638_v18 = vcombine.high %v7489_v6, %v7489_v6 }
 0x280   : > { %788 = vrot.lane.b32.xlu1 %v7586_v24, %s6922_s19  ;;  %v710_v38 = vpop.permute.xlu1 %709  ;;  %790 = vrot.lane.b32.xlu0 %v7591_v28, %s6922_s19 }
 0x281   : > { %v7605_v63 = vsel %vm7471_vm13, %v7356_v59, %v710_v38  ;;  %9338 = vst [vmem:[#allocation45_spill] sm:$0xff] %v7621_v7  ;;  %6110 = vmatmul.mubr.msk.bf16.gmra.mrb[4].mxu1 %vm1089_vm2, %v1067_v53  ;;  %9340 = vst [vmem:[#allocation47_spill] sm:$0xff] %v7638_v18  ;;  %v1541_v59 = vshrl.u32 %v7406_v25, 16 }
 0x282   : > { %v714_v44 = vpop.permute.xlu0 %713  ;;  %6113 = vmatprep.mubr.msk.bf16.mxu1 %vm6918_vm0, %v9202_v1  ;;  %v1423_v37 = vshll.u32 %v7605_v63, 16  ;;  %v1426_v53 = vshrl.u32 %v7605_v63, 16 }
 0x283   : > { %v7610_v48 = vsel %vm7471_vm13, %v7344_v49, %v714_v44  ;;  %v1418_v44 = vshrl.u32 %v7591_v28, 16  ;;  %v7719_v20 = vsel %vm7544_vm5, %v1541_v59, %v1546_v57 }
 0x284   : > { %792 = vrot.lane.b32.xlu1 %v7605_v63, %s6922_s19  ;;  %v704_v50 = vpop.permute.xlu1 %703  ;;  %796 = vrot.lane.b32.xlu0 %v7610_v48, %s6922_s19  ;;  %9343 = vst [vmem:[#allocation50_spill] sm:$0xff] %v7719_v20 }
 0x285   : > { %v7634_v12 = vsel %vm7471_vm13, %v7362_v0, %v704_v50 }
 0x286   : > { %v716_v49 = vpop.permute.xlu0 %715  ;;  %9339 = vst [vmem:[#allocation46_spill] sm:$0xff] %v7634_v12 }
 0x287   : > { %v7629_v11 = vsel %vm7471_vm13, %v7358_v60, %v716_v49  ;;  %v1068_v60 = vcombine.low %v7621_v7, %v7638_v18 }
 0x288   : > { %786 = vrot.lane.b32.xlu1 %v7634_v12, %s6922_s19  ;;  %v718_v33 = vpop.permute.xlu1 %717  ;;  %798 = vrot.lane.b32.xlu0 %v7629_v11, %s6922_s19 }
 0x289   : > { %v7650_v0 = vsel %vm7471_vm13, %v7364_v2, %v718_v33  ;;  %v7658_v41 = vrot.slane %v1068_v60, %v7334_v22  ;;  %v1554_v60 = vshll.u32 %v7423_v31, 16 }
 0x28a   : > { %v712_v38 = vpop.permute.xlu0 %711  ;;  %v1476_v42 = vshrl.u32 %v7650_v0, 16 }
 0x28b   : > { %v7655_v55 = vsel %vm7471_vm13, %v7372_v9, %v712_v38  ;;  %9341 = vst [vmem:[#allocation48_spill] sm:$0xff] %v7658_v41  ;;  %v1082_v2 = vrot.slane %v7658_v41, %v7334_v22  ;;  %v7671_v9 = vsel %vm7544_vm5, %v1418_v44, %v1423_v37  ;;  %v6558_v37 = vld [vmem:[#allocation8 + $0x18] sm:$0xff]   ;;  %v1562_v44 = vshll.u32 %v7510_v23, 16 }
 0x28c   : > { %v1431_v50 = vshll.u32 %v7655_v55, 16  ;;  %800 = vrot.lane.b32.xlu1 %v7650_v0, %s6922_s19  ;;  %v720_v49 = vpop.permute.xlu1 %719  ;;  %794 = vrot.lane.b32.xlu0 %v7655_v55, %s6922_s19  ;;  %v1571_v41 = vshll.u32 %v7426_v32, 16 }
 0x28d   : > { %v7682_v38 = vsel %vm7471_vm13, %v7374_v10, %v720_v49  ;;  %6114 = vmatmul.mubr.msk.bf16.gmra.mrb[8].mxu1 %vm1089_vm2, %v1082_v2  ;;  %v1516_v10 = vshrl.u32 %v7402_v21, 16  ;;  %v1524_v49 = vshrl.u32 %v7409_v26, 16  ;;  %v1529_v2 = vshll.u32 %v7413_v27, 16 }
 0x28e   : > { %v7675_v33 = vsel %vm7544_vm5, %v1426_v53, %v1431_v50  ;;  %6137 = vmatprep.mubr.msk.bf16.mxu1 %vm6918_vm0, %v9202_v1  ;;  %6136 = vmatpush3.bf16.msra.mxu1 %v6558_v37  ;;  %v7702_v53 = vcombine.high %v7409_v26, %v7409_v26  ;;  %v1521_v50 = vshll.u32 %v7409_v26, 16  ;;  %v1532_v37 = vshrl.u32 %v7413_v27, 16 }
 0x28f   : > { %6163 = vmatprep.subr.bf16.mxu1 %v9202_v1  ;;  %v1549_v21 = vshrl.u32 %v7419_v30, 16  ;;  %v1531_v52 = vsel %vm7544_vm5, %v1524_v49, %v1529_v2  ;;  %v1574_v49 = vshrl.u32 %v7426_v32, 16  ;;  %v1579_v2 = vshll.u32 %v7464_v58, 16 }
 0x290   : > { %802 = vrot.lane.b32.xlu1 %v7682_v38, %s6922_s19  ;;  %721 = vrot.lane.b32.xlu0 %v7368_v8, %s6921_s21  ;;  %9342 = vst [vmem:[#allocation49_spill] sm:$0xff] %v7702_v53  ;;  %v1523_v23 = vsel %vm7544_vm5, %v1516_v10, %v1521_v50  ;;  %v1537_v1 = vshll.u32 %v7702_v53, 16  ;;  %v7734_v57 = vsel %vm7544_vm5, %v1557_v56, %v1562_v44  ;;  %v1649_v30 = vshrl.u32 %v7621_v7, 16 }
 0x291   : > { %v7728_v50 = vsel %vm7544_vm5, %v1549_v21, %v1554_v60  ;;  %9345 = vst [vmem:[#allocation52_spill] sm:$0xff] %v7734_v57  ;;  %v7738_v59 = vsel %vm7544_vm5, %v1566_v40, %v1571_v41  ;;  %v1868_v31 = vcombine.low %v1523_v23, %v1531_v52  ;;  %v1511_v40 = vcombine.high %v7426_v32, %v7426_v32 }
 0x292   : > { %v1539_v10 = vsel %vm7544_vm5, %v1532_v37, %v1537_v1  ;;  %9344 = vst [vmem:[#allocation51_spill] sm:$0xff] %v7728_v50  ;;  %9346 = vst [vmem:[#allocation53_spill] sm:$0xff] %v7738_v59  ;;  %v1581_v1 = vsel %vm7544_vm5, %v1574_v49, %v1579_v2  ;;  %v1870_v60 = vcombine.low %v7728_v50, %v7734_v57  ;;  %v1591_v49 = vshrl.u32 %v7447_v47, 16 }
 0x293   : > { %v1869_v35 = vcombine.low %v1539_v10, %v7719_v20  ;;  %v1871_v37 = vcombine.low %v7738_v59, %v1581_v1  ;;  %v1878_v21 = vrot.slane %v1868_v31, %v7334_v22  ;;  %v7753_v52 = vcombine.high %v7467_v61, %v7467_v61 }
 0x294   : > { %723 = vrot.lane.b32.xlu1 %v7378_v14, %s6921_s21  ;;  %725 = vrot.lane.b32.xlu0 %v7380_v15, %s6921_s21  ;;  %v1892_v44 = vrot.slane %v1870_v60, %v7334_v22  ;;  %v1582_v10 = vshrl.u32 %v7464_v58, 16  ;;  %v1587_v31 = vshll.u32 %v1511_v40, 16  ;;  %v1599_v2 = vshrl.u32 %v7467_v61, 16 }
 0x295   : > { %v1885_v56 = vrot.slane %v1869_v35, %v7334_v22  ;;  %9347 = vst [vmem:[#allocation54_spill] sm:$0xff] %v7753_v52  ;;  %v7756_v41 = vrot.slane %v1871_v37, %v7334_v22  ;;  %v1596_v35 = vshll.u32 %v7467_v61, 16  ;;  %v1604_v60 = vshll.u32 %v7478_v3, 16 }
 0x296   : > { %v1607_v37 = vshrl.u32 %v7478_v3, 16  ;;  %v1624_v3 = vshrl.u32 %v7481_v4, 16 }
 0x297   : > { %9348 = vst [vmem:[#allocation55_spill] sm:$0xff] %v7756_v41  ;;  %v1900_v23 = vcombine.low %v1878_v21, %v1885_v56  ;;  %v1901_v57 = vcombine.low %v1892_v44, %v7756_v41  ;;  %v1612_v21 = vshll.u32 %v7753_v52, 16  ;;  %v1589_v56 = vsel %vm7544_vm5, %v1582_v10, %v1587_v31 }
 0x298   : > { %727 = vrot.lane.b32.xlu1 %v7384_v17, %s6921_s21  ;;  %v1598_v20 = vsel %vm7544_vm5, %v1591_v49, %v1596_v35  ;;  %v1606_v50 = vsel %vm7544_vm5, %v1599_v2, %v1604_v60  ;;  %v1621_v52 = vshll.u32 %v7481_v4, 16  ;;  %v1629_v10 = vshll.u32 %v7485_v5, 16 }
 0x299   : > { %v7765_v59 = vrot.slane %v1900_v23, %v7334_v22  ;;  %v7777_v44 = vrot.slane %v1901_v57, %v7334_v22  ;;  %v7781_v23 = vsel %vm7544_vm5, %v1607_v37, %v1612_v21  ;;  %v1917_v35 = vcombine.low %v1589_v56, %v1598_v20 }
 0x29a   : > { %v7790_v31 = vsel %vm7544_vm5, %v1616_v34, %v1621_v52  ;;  %v7794_v57 = vsel %vm7544_vm5, %v1624_v3, %v1629_v10  ;;  %v1918_v2 = vcombine.low %v1606_v50, %v7781_v23  ;;  %v3089_v60 = vcombine.low %v1581_v1, %v1589_v56 }
 0x29b   : > { %9349 = vst [vmem:[#allocation56_spill] sm:$0xff] %v7765_v59  ;;  %9350 = vst [vmem:[#allocation57_spill] sm:$0xff] %v7777_v44  ;;  %v1919_v37 = vcombine.low %v7790_v31, %v7794_v57  ;;  %v7800_v21 = vrot.slane %v1917_v35, %v7334_v22  ;;  %v3090_v54 = vcombine.low %v1598_v20, %v1606_v50  ;;  %v1410_v3 = vshrl.u32 %v7586_v24, 16 }
 0x29c   : > { %v7803_v49 = vrot.slane %v1918_v2, %v7334_v22  ;;  %v2263_v1 = vcombine.low %v7426_v32, %v7464_v58  ;;  %v2309_v56 = vcombine.low %v1511_v40, %v7467_v61  ;;  %v5871_v20 = vcombine.high %v7447_v47, %v7467_v61 }
 0x29d   : > { %9351 = vst [vmem:[#allocation58_spill] sm:$0xff] %v7800_v21  ;;  %v7806_v34 = vrot.slane %v1919_v37, %v7334_v22  ;;  %v2311_v50 = vcombine.low %v7481_v4, %v7485_v5  ;;  %v7837_v52 = vcombine.high %v7481_v4, %v7481_v4  ;;  %v1376_v58 = vshrl.u32 %v7530_v36, 16 }
 0x29e   : > { %9352 = vst [vmem:[#allocation59_spill] sm:$0xff] %v7803_v49  ;;  %v7820_v10 = vrot.slane %v2263_v1, %v7334_v22  ;;  %v7823_v35 = vrot.slane %v2309_v56, %v7334_v22  ;;  %v7826_v2 = vrot.slane %v5871_v20, %v7334_v22  ;;  %v7840_v1 = vrot.slane %v3089_v60, %v7334_v22 }
 0x29f   : > { %9353 = vst [vmem:[#allocation60_spill] sm:$0xff] %v7806_v34  ;;  %v7829_v37 = vrot.slane %v2311_v50, %v7334_v22  ;;  %9358 = vst [vmem:[#allocation65_spill] sm:$0xff] %v7837_v52  ;;  %v7843_v56 = vrot.slane %v3090_v54, %v7334_v22  ;;  %v1415_v20 = vshll.u32 %v7591_v28, 16  ;;  %v5907_v50 = vcombine.high %v7416_v29, %v7426_v32 }
 0x2a0   : > { %9354 = vst [vmem:[#allocation61_spill] sm:$0xff] %v7820_v10  ;;  %9355 = vst [vmem:[#allocation62_spill] sm:$0xff] %v7823_v35  ;;  %v1158_v40 = vcombine.low %v7586_v24, %v7591_v28  ;;  %v1632_v4 = vshrl.u32 %v7485_v5, 16  ;;  %v1637_v60 = vshll.u32 %v7837_v52, 16  ;;  %v1641_v47 = vshrl.u32 %v7489_v6, 16 }
 0x2a1   : > { %9356 = vst [vmem:[#allocation63_spill] sm:$0xff] %v7826_v2  ;;  %9357 = vst [vmem:[#allocation64_spill] sm:$0xff] %v7829_v37  ;;  %v1646_v54 = vshll.u32 %v7621_v7, 16  ;;  %v2065_v29 = vcombine.low %v7591_v28, %v7605_v63  ;;  %v7863_v37 = vrot.slane %v5907_v50, %v7334_v22  ;;  %v7867_v5 = vsel %vm7544_vm5, %v1410_v3, %v1415_v20 }
 0x2a2   : > { %9359 = vst [vmem:[#allocation66_spill] sm:$0xff] %v7840_v1  ;;  %9360 = vst [vmem:[#allocation67_spill] sm:$0xff] %v7843_v56  ;;  %v1381_v6 = vshll.u32 %v7634_v12, 16  ;;  %v1473_v35 = vshll.u32 %v7650_v0, 16  ;;  %v9362_v61 = vcombine.low %v7506_v19, %v7552_v45  ;;  %v1673_v32 = vcombine.low %v7867_v5, %v7671_v9 }
 0x2a3   : > { %9361 = vst [vmem:[#allocation68_spill] sm:$0xff] %v7863_v37  ;;  %v9363_v50 = vcombine.low %v7574_v13, %v7578_v16  ;;  %v1460_v3 = vshrl.u32 %v7610_v48, 16  ;;  %v1206_v20 = vcombine.low %v7610_v48, %v7629_v11  ;;  %v7889_v2 = vrot.slane %v1158_v40, %v7334_v22 }
 0x2a4   : > { %v7875_v56 = vrot.slane %v9362_v61, %v7334_v22  ;;  %v1465_v61 = vshll.u32 %v7629_v11, 16  ;;  %v1468_v19 = vshrl.u32 %v7629_v11, 16  ;;  %v7895_v52 = vsel %vm7544_vm5, %v1632_v4, %v1637_v60 }
 0x2a5   : > { %v7883_v1 = vrot.slane %v9363_v50, %v7334_v22  ;;  %v7899_v13 = vsel %vm7544_vm5, %v1641_v47, %v1646_v54  ;;  %v2113_v16 = vcombine.low %v7629_v11, %v7650_v0  ;;  %v3282_v40 = vcombine.low %v7605_v63, %v7655_v55 }
 0x2a6   : > { %v7908_v10 = vrot.slane %v2065_v29, %v7334_v22  ;;  %v7912_v4 = vsel %vm7544_vm5, %v1376_v58, %v1381_v6  ;;  %v7916_v47 = vsel %vm7544_vm5, %v1468_v19, %v1473_v35  ;;  %v1481_v60 = vshll.u32 %v7682_v38, 16  ;;  %v5877_v58 = vld.sshfl [vmem:[%s7297_s18 + $0x18] sm:$0x33 pattern:$0x75316420] }
 0x2a7   : > { %v7920_v41 = vrot.slane %v1673_v32, %v7334_v22  ;;  %v7925_v29 = vrot.slane %v1206_v20, %v7334_v22  ;;  %v1920_v6 = vcombine.low %v7895_v52, %v7899_v13  ;;  %v7932_v35 = vsel %vm7544_vm5, %v1460_v3, %v1465_v61 }
 0x2a8   : > { %v2457_v19 = vcombine.high %v5877_v58, %v5877_v58  ;;  %v7939_v37 = vrot.slane %v3282_v40, %v7334_v22  ;;  %v3315_v20 = vcombine.low %v7650_v0, %v7682_v38  ;;  %v1721_v25 = vcombine.low %v7932_v35, %v7916_v47 }
 0x2a9   : > { %v7946_v53 = vrot.slane %v2113_v16, %v7334_v22  ;;  %v7950_v3 = vsel %vm7544_vm5, %v1476_v42, %v1481_v60  ;;  %v7959_v40 = vcombine.high %v7621_v7, %v7621_v7  ;;  %v7965_v27 = vrot.slane %v1920_v6, %v7334_v22 }
 0x2aa   : > { %v7968_v42 = vrot.slane %v5877_v58, %v7334_v22  ;;  %v7975_v39 = vrot.slane %v2457_v19, %v7334_v22  ;;  %v1654_v6 = vshll.u32 %v7638_v18, 16 }
 0x2ab   : > { %9365 = vst [vmem:[#allocation70_spill] sm:$0xff] %v7959_v40  ;;  %9366 = vst [vmem:[#allocation71_spill] sm:$0xff] %v7965_v27 }
 0x2ac   : > { %9367 = vst [vmem:[#allocation72_spill] sm:$0xff] %v7968_v42  ;;  %9368 = vst [vmem:[#allocation73_spill] sm:$0xff] %v7975_v39  ;;  %v2860_v45 = vshrl.u32 %v7968_v42, 16 }
 0x2ea   : > { %v781_v54 = vpop.permute.xlu0 %780 }
 0x2eb   : > { %v1156_v50 = vcombine.low %v7530_v36, %v781_v54  ;;  %v1385_v7 = vshrl.u32 %v781_v54, 16 }
 0x2ed   : > { %v1172_v61 = vrot.slane %v1156_v50, %v7334_v22 }
 0x2ee   : > { %v7953_v32 = vpop.permute.xlu1 %782  ;;  %v7955_v43 = vpop.permute.xlu0 %784 }
 0x2ef   : > { %9364 = vst [vmem:[#allocation69_spill] sm:$0xff] %v7953_v32  ;;  %v1390_v26 = vshll.u32 %v7953_v32, 16  ;;  %v1393_v16 = vshrl.u32 %v7953_v32, 16  ;;  %v2478_v50 = vcombine.low %v781_v54, %v7953_v32  ;;  %v1157_v60 = vcombine.low %v7953_v32, %v7955_v43 }
 0x2f0   : > { %v1398_v46 = vshll.u32 %v7955_v43, 16  ;;  %v2479_v36 = vcombine.low %v7955_v43, %v7586_v24  ;;  %v1187_v58 = vcombine.low %v7875_v56, %v1172_v61  ;;  %v2865_v54 = vshll.u32 %v7975_v39, 16 }
 0x2f1   : > { %v7983_v44 = vrot.slane %v2478_v50, %v7334_v22  ;;  %v7986_v59 = vrot.slane %v1157_v60, %v7334_v22  ;;  %v8000_v56 = vsel %vm7544_vm5, %v1385_v7, %v1390_v26  ;;  %v2939_v50 = vcombine.low %v7916_v47, %v7950_v3 }
 0x2f2   : > { %v7988_v12 = vpop.permute.xlu1 %788  ;;  %v7990_v19 = vpop.permute.xlu0 %790  ;;  %v7994_v24 = vrot.slane %v2479_v36, %v7334_v22  ;;  %v1400_v61 = vsel %vm7544_vm5, %v1393_v16, %v1398_v46  ;;  %v1949_v36 = vcombine.low %v7800_v21, %v7803_v49  ;;  %v1657_v39 = vshrl.u32 %v7638_v18, 16 }
 0x2f3   : > { %v1204_v42 = vcombine.low %v7605_v63, %v7988_v12  ;;  %v1188_v60 = vcombine.low %v7986_v59, %v7889_v2  ;;  %v8018_v46 = vsel %vm7544_vm5, %v1649_v30, %v1654_v6  ;;  %v1662_v7 = vshll.u32 %v7959_v40, 16 }
 0x2f4   : > { %9369 = vst [vmem:[#allocation74_spill] sm:$0xff] %v8018_v46  ;;  %v2889_v18 = vcombine.low %v8000_v56, %v1400_v61  ;;  %v1950_v63 = vcombine.low %v7806_v34, %v7965_v27  ;;  %v1195_v49 = vrot.slane %v1187_v58, %v7334_v22  ;;  %v9371_v40 = vcombine.low %v7671_v9, %v7675_v33  ;;  %v6557_v58 = vld [vmem:[#allocation10 + $0x8] sm:$0xff]  }
 0x2f5   : > { %v8014_v26 = vrot.slane %v1204_v42, %v7334_v22  ;;  %v1202_v47 = vrot.slane %v1188_v60, %v7334_v22  ;;  %v3138_v42 = vcombine.low %v7899_v13, %v8018_v46  ;;  %v8038_v60 = vsel %vm7544_vm5, %v2860_v45, %v2865_v54 }
 0x2f6   : > { %v8022_v16 = vpop.permute.xlu1 %792  ;;  %v8024_v32 = vpop.permute.xlu0 %796  ;;  %9370 = vst [vmem:[#allocation75_spill] sm:$0xff] %v8038_v60  ;;  %v8044_v27 = vrot.slane %v9371_v40, %v7334_v22  ;;  %v8047_v13 = vrot.slane %v3315_v20, %v7334_v22  ;;  %v8052_v34 = vrot.slane %v1721_v25, %v7334_v22  ;;  %v8055_v21 = vrot.slane %v2939_v50, %v7334_v22 }
 0x2f7   : > { %v3649_v30 = vcombine.low %v7889_v2, %v8014_v26  ;;  %v1205_v6 = vcombine.low %v7990_v19, %v8022_v16  ;;  %v1671_v2 = vcombine.low %v7912_v4, %v8000_v56  ;;  %v1203_v54 = vcombine.low %v1195_v49, %v1202_v47 }
 0x2f8   : > { %v8062_v9 = vsel %vm7544_vm5, %v1657_v39, %v1662_v7  ;;  %v8067_v40 = vrot.slane %v1949_v36, %v7334_v22  ;;  %v8070_v4 = vrot.slane %v1950_v63, %v7334_v22  ;;  %v8075_v56 = vrot.slane %v3138_v42, %v7334_v22 }
 0x2f9   : > { %v8058_v45 = vrot.slane %v1205_v6, %v7334_v22  ;;  %9372 = vst [vmem:[#allocation76_spill] sm:$0xff] %v8062_v9  ;;  %v3139_v25 = vcombine.low %v8062_v9, %v8038_v60  ;;  %v1401_v49 = vshrl.u32 %v7955_v43, 16  ;;  %v1207_v50 = vcombine.low %v7650_v0, %v8024_v32  ;;  %6122 = vmatmul.mubr.msk.bf16.vlgmr.msra.gmra.mrb[4].mxu0 %vm489_vm1, %v1203_v54 }
 0x2fa   : > { %v8064_v20 = vpop.permute.xlu1 %786  ;;  %9373 = vst [vmem:[#allocation77_spill] sm:$0xff] %v8067_v40  ;;  %9374 = vst [vmem:[#allocation78_spill] sm:$0xff] %v8070_v4  ;;  %v1435_v63 = vshrl.u32 %v7988_v12, 16  ;;  %v1440_v7 = vshll.u32 %v7990_v19, 16  ;;  %v2111_v47 = vcombine.low %v7655_v55, %v7990_v19  ;;  %6150 = vmatpush3.bf16.msra.mxu0 %v6557_v58  ;;  %v1687_v42 = vrot.slane %v1671_v2, %v7334_v22  ;;  %v8089_v6 = vpop.permute.xlu0 %798 }
 0x2fb   : > { %v3650_v39 = vcombine.low %v8058_v45, %v7925_v29  ;;  %v1406_v36 = vshll.u32 %v8064_v20, 16  ;;  %v8092_v60 = vrot.slane %v3649_v30, %v7334_v22  ;;  %v3281_v40 = vcombine.low %v8064_v20, %v7591_v28 }
 0x2fc   : > { %v9377_v4 = vmov 0.0   ;;  %v2480_v55 = vcombine.low %v7988_v12, %v7990_v19  ;;  %v1448_v58 = vshll.u32 %v8022_v16, 16  ;;  %v8159_v28 = vrot.slane %v2111_v47, %v7334_v22 }
 0x2fd   : > { %9375 = vst [vmem:[#allocation79_spill] sm:$0xff] %v8092_v60  ;;  %v8095_v0 = vrot.slane %v3650_v39, %v7334_v22  ;;  %v1408_v54 = vsel %vm7544_vm5, %v1401_v49, %v1406_v36  ;;  %6125 = vmatprep.mubr.msk.bf16.mxu0 %vm6918_vm0, %v9377_v4  ;;  %6179 = vmatprep.subr.bf16.mxu0 %v9377_v4 }
 0x2fe   : > { %v1672_v2 = vcombine.low %v1400_v61, %v1408_v54  ;;  %v2890_v30 = vcombine.low %v1408_v54, %v7867_v5  ;;  %v8107_v46 = vpop.permute.xlu1 %800  ;;  %v3298_v49 = vcombine.low %v7939_v37, %v8058_v45  ;;  %v8115_v39 = vrot.slane %v1207_v50, %v7334_v22 }
 0x2ff   : > { %9376 = vst [vmem:[#allocation80_spill] sm:$0xff] %v8095_v0  ;;  %v3289_v12 = vrot.slane %v3281_v40, %v7334_v22  ;;  %v1702_v61 = vcombine.low %v7883_v1, %v1687_v42  ;;  %v8121_v5 = vrot.slane %v2889_v18, %v7334_v22  ;;  %v1443_v37 = vshrl.u32 %v7990_v19, 16 }
 0x300   : > { %v1694_v36 = vrot.slane %v1672_v2, %v7334_v22  ;;  %v8124_v54 = vrot.slane %v2890_v30, %v7334_v22  ;;  %v8130_v50 = vsel %vm7544_vm5, %v1435_v63, %v1440_v7  ;;  %v8133_v40 = vrot.slane %v3139_v25, %v7334_v22  ;;  %v8140_v30 = vpop.permute.xlu0 %794 }
 0x301   : > { %v3297_v9 = vcombine.low %v7986_v59, %v3289_v12  ;;  %v2501_v2 = vrot.slane %v2480_v55, %v7334_v22  ;;  %v1451_v1 = vshrl.u32 %v8022_v16, 16  ;;  %v1237_v59 = vcombine.low %v7925_v29, %v8115_v39 }
 0x302   : > { %v1703_v18 = vcombine.low %v1694_v36, %v7920_v41  ;;  %v8142_v19 = vpop.permute.xlu1 %802  ;;  %v8150_v25 = vrot.slane %v3298_v49, %v7334_v22  ;;  %v1450_v7 = vsel %vm7544_vm5, %v1443_v37, %v1448_v58  ;;  %v2519_v55 = vcombine.low %v8022_v16, %v7610_v48 }
 0x303   : > { %v8147_v63 = vrot.slane %v3297_v9, %v7334_v22  ;;  %v1710_v12 = vrot.slane %v1702_v61, %v7334_v22  ;;  %v2892_v9 = vcombine.low %v8130_v50, %v1450_v7  ;;  %v1456_v49 = vshll.u32 %v8140_v30, 16 }
 0x304   : > { %9378 = vst [vmem:[#allocation81_spill] sm:$0xff] %v8150_v25  ;;  %v1717_v36 = vrot.slane %v1703_v18, %v7334_v22  ;;  %v2112_v58 = vcombine.low %v8022_v16, %v8140_v30  ;;  %v2503_v48 = vcombine.low %v7908_v10, %v2501_v2  ;;  %v4292_v61 = vcombine.low %v7908_v10, %v8159_v28  ;;  %v6559_v18 = vld [vmem:[#allocation8 + $0x20] sm:$0xff]  }
 0x305   : > { %v1236_v47 = vcombine.low %v8014_v26, %v8058_v45  ;;  %v8173_v42 = vrot.slane %v2892_v9, %v7334_v22  ;;  %v8177_v29 = vsel %vm7544_vm5, %v1451_v1, %v1456_v49  ;;  %v1251_v16 = vrot.slane %v1237_v59, %v7334_v22  ;;  %v722_v9 = vpop.permute.xlu0 %721 }
 0x306   : > { %v1718_v37 = vcombine.low %v1710_v12, %v1717_v36  ;;  %v8180_v0 = vrot.slane %v2112_v58, %v7334_v22  ;;  %v9379_v2 = vcombine.low %v7983_v44, %v7994_v24  ;;  %v1485_v26 = vshrl.u32 %v8024_v32, 16  ;;  %v724_v1 = vpop.permute.xlu1 %723 }
 0x307   : > { %v1490_v45 = vshll.u32 %v8089_v6, 16  ;;  %v1720_v36 = vcombine.low %v1450_v7, %v8177_v29  ;;  %v1253_v49 = vcombine.low %v8089_v6, %v8107_v46  ;;  %v1244_v24 = vrot.slane %v1236_v47, %v7334_v22 }
 0x308   : > { %v8187_v12 = vrot.slane %v9379_v2, %v7334_v22  ;;  %6138 = vmatmul.mubr.msk.bf16.vlgmr.msra.gmra.mrb[12].mxu1 %vm489_vm1, %v1718_v37  ;;  %v4293_v44 = vcombine.low %v8180_v0, %v7946_v53  ;;  %v8203_v7 = vrot.slane %v2519_v55, %v7334_v22  ;;  %v8206_v58 = vrot.slane %v2503_v48, %v7334_v22  ;;  %v6561_v48 = vld [vmem:[#allocation8 + $0x28] sm:$0xff]  }
 0x309   : > { %6141 = vmatprep.mubr.msk.bf16.mxu1 %vm6918_vm0, %v9377_v4  ;;  %v1493_v37 = vshrl.u32 %v8089_v6, 16  ;;  %v8210_v2 = vrot.slane %v1720_v36, %v7334_v22  ;;  %6164 = vmatpush3.bf16.msra.mxu1 %v6559_v18  ;;  %v2114_v59 = vcombine.low %v7682_v38, %v8089_v6  ;;  %v8215_v47 = vrot.slane %v4292_v61, %v7334_v22 }
 0x30a   : > { %v8218_v60 = vrot.slane %v4293_v44, %v7334_v22  ;;  %v1252_v55 = vcombine.low %v1244_v24, %v1251_v16  ;;  %6165 = vmatprep.subr.bf16.mxu1 %v9377_v4  ;;  %v2520_v25 = vcombine.low %v8024_v32, %v8089_v6  ;;  %v1498_v36 = vshll.u32 %v8107_v46, 16  ;;  %v726_v24 = vpop.permute.xlu0 %725 }
 0x30b   : > { %v8228_v38 = vsel %vm7544_vm5, %v1485_v26, %v1490_v45  ;;  %v8231_v61 = vrot.slane %v1253_v49, %v7334_v22  ;;  %v2160_v32 = vcombine.low %v8107_v46, %v8142_v19  ;;  %v8241_v6 = vsel %vm7471_vm13, %v7368_v8, %v722_v9  ;;  %v728_v8 = vpop.permute.xlu1 %727 }
 0x30c   : > { %6126 = vmatmul.mubr.msk.bf16.gmra.mrb[8].mxu0 %vm489_vm1, %v1252_v55  ;;  %v1719_v26 = vcombine.low %v7675_v33, %v8130_v50  ;;  %v2938_v45 = vcombine.low %v8177_v29, %v7932_v35  ;;  %v1506_v49 = vshll.u32 %v8142_v19, 16  ;;  %v2521_v44 = vcombine.low %v8107_v46, %v8241_v6  ;;  %804 = vrot.lane.b32.xlu0 %v8241_v6, %s6922_s19 }
 0x30d   : > { %6129 = vmatprep.mubr.msk.bf16.mxu0 %vm6918_vm0, %v9377_v4  ;;  %v1722_v9 = vcombine.low %v7950_v3, %v8228_v38  ;;  %v8257_v33 = vrot.slane %v2114_v59, %v7334_v22  ;;  %v8260_v35 = vrot.slane %v2160_v32, %v7334_v22  ;;  %v8265_v50 = vsel %vm7471_vm13, %v7378_v14, %v724_v1 }
 0x30e   : > { %6166 = vmatpush3.bf16.msra.mxu1 %v6561_v48  ;;  %v2834_v29 = vshrl.u32 %v8241_v6, 16  ;;  %v2839_v55 = vshll.u32 %v8265_v50, 16  ;;  %v2842_v16 = vshrl.u32 %v8265_v50, 16  ;;  %v3316_v3 = vcombine.low %v8142_v19, %v8265_v50  ;;  %806 = vrot.lane.b32.xlu1 %v8265_v50, %s6922_s19 }
 0x30f   : > { %6193 = vmatprep.subr.bf16.mxu1 %v9377_v4  ;;  %v2542_v14 = vrot.slane %v2521_v44, %v7334_v22  ;;  %v8281_v1 = vsel %vm7471_vm13, %v7380_v15, %v726_v24  ;;  %v8286_v48 = vsel %vm7471_vm13, %v7384_v17, %v728_v8  ;;  %v2535_v19 = vrot.slane %v2520_v25, %v7334_v22 }
 0x310   : > { %v1501_v32 = vshrl.u32 %v8107_v46, 16  ;;  %v1500_v18 = vsel %vm7544_vm5, %v1493_v37, %v1498_v36  ;;  %v2847_v59 = vshll.u32 %v8281_v1, 16  ;;  %808 = vrot.lane.b32.xlu0 %v8281_v1, %s6922_s19  ;;  %v9380_v15 = vcombine.low %v8121_v5, %v8124_v54 }
 0x311   : > { %v3314_v17 = vcombine.low %v8140_v30, %v7629_v11  ;;  %v1267_v62 = vrot.slane %v8231_v61, %v7334_v22  ;;  %v8307_v46 = vsel %vm7544_vm5, %v2834_v29, %v2839_v55  ;;  %v2948_v25 = vrot.slane %v2938_v45, %v7334_v22 }
 0x312   : > { %v8299_v44 = vrot.slane %v9380_v15, %v7334_v22  ;;  %v8312_v37 = vsel %vm7544_vm5, %v2842_v16, %v2847_v59  ;;  %810 = vrot.lane.b32.xlu1 %v8286_v48, %s6922_s19  ;;  %v8317_v5 = vrot.slane %v1719_v26, %v7334_v22  ;;  %v8320_v11 = vrot.slane %v1722_v9, %v7334_v22 }
 0x313   : > { %v1508_v54 = vsel %vm7544_vm5, %v1501_v32, %v1506_v49  ;;  %v2940_v30 = vcombine.low %v8228_v38, %v1500_v18  ;;  %v2544_v36 = vcombine.low %v2535_v19, %v2542_v14  ;;  %v2064_v38 = vcombine.low %v7955_v43, %v8064_v20 }
 0x314   : > { %6130 = vmatmul.mubr.msk.bf16.gmra.mrb[12].mxu0 %vm489_vm1, %v1267_v62  ;;  %v2941_v45 = vcombine.low %v1508_v54, %v8307_v46  ;;  %v1751_v26 = vcombine.low %v8317_v5, %v8210_v2  ;;  %v1752_v24 = vcombine.low %v8052_v34, %v8320_v11  ;;  %v3996_v8 = vcombine.low %v7920_v41, %v8317_v5 }
 0x315   : > { %6151 = vmatprep.mubr.msk.bf16.mxu0 %vm6918_vm0, %v9377_v4  ;;  %v3323_v49 = vrot.slane %v3314_v17, %v7334_v22  ;;  %v9381_v9 = vcombine.low %v7781_v23, %v7790_v31  ;;  %v9382_v55 = vcombine.low %v7794_v57, %v7895_v52  ;;  %v9383_v14 = vcombine.low %v8044_v27, %v8173_v42  ;;  %v6560_v27 = vld [vmem:[#allocation10 + $0x10] sm:$0xff]  }
 0x316   : > { %v1759_v43 = vrot.slane %v1751_v26, %v7334_v22  ;;  %v1766_v20 = vrot.slane %v1752_v24, %v7334_v22  ;;  %v2518_v32 = vcombine.low %v8187_v12, %v8206_v58  ;;  %v1768_v23 = vcombine.low %v1500_v18, %v1508_v54  ;;  %v9384_v26 = vld [vmem:[#allocation69_spill] sm:$0xff]  ;;  %v9385_v24 = vld [vmem:[#allocation46_spill] sm:$0xff] }
 0x317   : > { %v3146_v29 = vrot.slane %v9381_v9, %v7334_v22  ;;  %v3153_v59 = vrot.slane %v9382_v55, %v7334_v22  ;;  %v8352_v19 = vrot.slane %v9383_v14, %v7334_v22  ;;  %v2962_v31 = vrot.slane %v2940_v30, %v7334_v22  ;;  %v6567_v58 = vld [vmem:[#allocation8 + $0x48] sm:$0xff]  }
 0x318   : > { %v2543_v57 = vcombine.low %v8203_v7, %v7946_v53  ;;  %v8362_v52 = vrot.slane %v2544_v36, %v7334_v22  ;;  %v1767_v15 = vcombine.low %v1759_v43, %v1766_v20  ;;  %v2969_v17 = vrot.slane %v2941_v45, %v7334_v22 }
 0x319   : > { %v2970_v62 = vcombine.low %v2948_v25, %v8055_v21  ;;  %v2063_v18 = vcombine.low %v9385_v24, %v9384_v26  ;;  %v2086_v54 = vrot.slane %v2064_v38, %v7334_v22  ;;  %v3338_v30 = vcombine.low %v3323_v49, %v8047_v13  ;;  %v9386_v21 = vld [vmem:[#allocation56_spill] sm:$0xff]  ;;  %v9387_v25 = vld [vmem:[#allocation57_spill] sm:$0xff]  ;;  %v9397_v26 = vld [vmem:[#allocation26_spill] sm:$0xff] }
 0x31a   : > { %v8373_v7 = vrot.slane %v2543_v57, %v7334_v22  ;;  %v3337_v36 = vrot.slane %v3316_v3, %v7334_v22  ;;  %6142 = vmatmul.mubr.msk.bf16.gmra.mrb[16].mxu1 %vm489_vm1, %v1767_v15  ;;  %v2971_v9 = vcombine.low %v2962_v31, %v2969_v17  ;;  %v3168_v55 = vcombine.low %v3146_v29, %v3153_v59  ;;  %v9389_v29 = vld [vmem:[#allocation43_spill] sm:$0xff]  ;;  %v9390_v59 = vld [vmem:[#allocation41_spill] sm:$0xff]  ;;  %v9393_v31 = vld [vmem:[#allocation44_spill] sm:$0xff] }
 0x31b   : > { %v3169_v45 = vcombine.low %v8075_v56, %v8133_v40  ;;  %v9388_v14 = vcombine.low %v9386_v21, %v9387_v25  ;;  %6145 = vmatprep.mubr.msk.bf16.mxu1 %vm6918_vm0, %v9377_v4  ;;  %v8386_v13 = vrot.slane %v1768_v23, %v7334_v22  ;;  %v8391_v38 = vrot.slane %v2970_v62, %v7334_v22  ;;  %v9392_v23 = vld [vmem:[#allocation30_spill] sm:$0xff]  ;;  %v9398_v24 = vld [vmem:[#allocation25_spill] sm:$0xff] }
 0x31c   : > { %v8396_v56 = vrot.slane %v2971_v9, %v7334_v22  ;;  %v8399_v40 = vrot.slane %v3168_v55, %v7334_v22  ;;  %v9391_v43 = vcombine.low %v9389_v29, %v9390_v59  ;;  %v9394_v57 = vcombine.low %v9392_v23, %v9393_v31  ;;  %v9396_v17 = vld [vmem:[#allocation74_spill] sm:$0xff]  ;;  %v9400_v59 = vld [vmem:[#allocation77_spill] sm:$0xff]  ;;  %v9401_v23 = vld [vmem:[#allocation28_spill] sm:$0xff] }
 0x31d   : > { %6152 = vmatmul.mubr.msk.bf16.vlgmr.msra.gmra.mrb[16].mxu0 %vm1089_vm2, %v9388_v14  ;;  %v8402_v49 = vrot.slane %v3169_v45, %v7334_v22  ;;  %v2260_v9 = vcombine.low %v9398_v24, %v9397_v26  ;;  %v2079_v55 = vrot.slane %v2063_v18, %v7334_v22  ;;  %v3339_v25 = vcombine.low %v8231_v61, %v3337_v36  ;;  %v9399_v29 = vld [vmem:[#allocation78_spill] sm:$0xff]  ;;  %v9402_v31 = vld [vmem:[#allocation49_spill] sm:$0xff]  ;;  %v9410_v45 = vld [vmem:[#allocation40_spill] sm:$0xff] }
 0x31e   : > { %6180 = vmatpush3.bf16.msra.mxu0 %v6560_v27  ;;  %6155 = vmatprep.mubr.msk.bf16.mxu0 %vm6918_vm0, %v9377_v4  ;;  %v2072_v20 = vrot.slane %v9391_v43, %v7334_v22  ;;  %v8412_v15 = vrot.slane %v9394_v57, %v7334_v22  ;;  %v9395_v27 = vld [vmem:[#allocation76_spill] sm:$0xff]  ;;  %v2095_v14 = vcombine.low %v2086_v54, %v7908_v10  ;;  %v9405_v54 = vld [vmem:[#allocation39_spill] sm:$0xff] }
 0x31f   : > { %v1966_v62 = vcombine.low %v9396_v17, %v9395_v27  ;;  %6209 = vmatprep.subr.bf16.mxu0 %v9377_v4  ;;  %v1965_v43 = vcombine.low %v9400_v59, %v9399_v29  ;;  %v2261_v57 = vcombine.low %v9402_v31, %v9401_v23  ;;  %v9403_v27 = vld [vmem:[#allocation24_spill] sm:$0xff]  ;;  %v1782_v18 = vrot.slane %v8386_v13, %v7334_v22  ;;  %v9407_v59 = vld [vmem:[#allocation31_spill] sm:$0xff]  ;;  %v9408_v31 = vld [vmem:[#allocation38_spill] sm:$0xff] }
 0x320   : > { %v5870_v17 = vcombine.high %v9403_v27, %v9401_v23  ;;  %v8435_v26 = vrot.slane %v3338_v30, %v7334_v22  ;;  %v8438_v24 = vrot.slane %v3339_v25, %v7334_v22  ;;  %v9404_v10 = vld [vmem:[#allocation68_spill] sm:$0xff]  ;;  %v9409_v16 = vcombine.low %v9407_v59, %v9408_v31  ;;  %v9416_v31 = vld [vmem:[#allocation59_spill] sm:$0xff] }
 0x321   : > { %v9406_v36 = vcombine.low %v9404_v10, %v9405_v54  ;;  %v9411_v30 = vcombine.low %v9405_v54, %v9410_v45  ;;  %v8459_v25 = vrot.slane %v1966_v62, %v7334_v22  ;;  %v2270_v3 = vrot.slane %v2260_v9, %v7334_v22  ;;  %v9420_v10 = vld [vmem:[#allocation45_spill] sm:$0xff] }
 0x322   : > { %v8450_v21 = vrot.slane %v9409_v16, %v7334_v22  ;;  %6146 = vmatmul.mubr.msk.bf16.gmra.mrb[20].mxu1 %vm489_vm1, %v1782_v18  ;;  %v9412_v45 = vcombine.low %v8210_v2, %v8052_v34  ;;  %v2284_v9 = vrot.slane %v5870_v17, %v7334_v22  ;;  %v8487_v34 = vrot.slane %v3996_v8, %v7334_v22  ;;  %v9413_v17 = vld [vmem:[#allocation55_spill] sm:$0xff]  ;;  %v9419_v2 = vld [vmem:[#allocation61_spill] sm:$0xff] }
 0x323   : > { %v8444_v29 = vrot.slane %v9406_v36, %v7334_v22  ;;  %v8456_v42 = vrot.slane %v9411_v30, %v7334_v22  ;;  %v2094_v36 = vcombine.low %v2072_v20, %v2079_v55  ;;  %6167 = vmatprep.mubr.msk.bf16.mxu1 %vm6918_vm0, %v9377_v4  ;;  %v2277_v20 = vrot.slane %v2261_v57, %v7334_v22  ;;  %v9417_v30 = vld [vmem:[#allocation60_spill] sm:$0xff] }
 0x324   : > { %v8473_v62 = vrot.slane %v9412_v45, %v7334_v22  ;;  %v2109_v55 = vrot.slane %v2095_v14, %v7334_v22  ;;  %v9414_v14 = vld [vmem:[#allocation58_spill] sm:$0xff]  ;;  %v9418_v41 = vcombine.low %v9416_v31, %v9417_v30  ;;  %v1980_v8 = vrot.slane %v8459_v25, %v7334_v22  ;;  %v6562_v16 = vld [vmem:[#allocation8 + $0x30] sm:$0xff]  }
 0x325   : > { %6156 = vmatmul.mubr.msk.bf16.gmra.mrb[20].mxu0 %vm1089_vm2, %v1965_v43  ;;  %v2102_v57 = vrot.slane %v2094_v36, %v7334_v22  ;;  %v9415_v18 = vcombine.low %v9413_v17, %v9414_v14  ;;  %v2292_v45 = vcombine.low %v2270_v3, %v2277_v20  ;;  %v2293_v43 = vcombine.low %v2284_v9, %v9419_v2  ;;  %v9421_v36 = vld [vmem:[#allocation65_spill] sm:$0xff] }
 0x326   : > { %6159 = vmatprep.mubr.msk.bf16.mxu0 %vm6918_vm0, %v9377_v4  ;;  %v8504_v5 = vrot.slane %v9418_v41, %v7334_v22  ;;  %v2312_v59 = vcombine.low %v9421_v36, %v9420_v10  ;;  %v2144_v31 = vcombine.low %v7946_v53, %v8257_v33  ;;  %v9422_v41 = vld [vmem:[#allocation63_spill] sm:$0xff]  ;;  %v6565_v3 = vld [vmem:[#allocation8 + $0x40] sm:$0xff]  }
 0x327   : > { %v8498_v54 = vrot.slane %v9415_v18, %v7334_v22  ;;  %v2110_v14 = vcombine.low %v2102_v57, %v2109_v55  ;;  %v2143_v18 = vcombine.low %v8159_v28, %v8180_v0  ;;  %v2300_v9 = vrot.slane %v2292_v45, %v7334_v22  ;;  %v6564_v55 = vld [vmem:[#allocation8 + $0x38] sm:$0xff]  }
 0x328   : > { %v2307_v0 = vrot.slane %v2293_v43, %v7334_v22  ;;  %v8528_v28 = vrot.slane %v2312_v59, %v7334_v22  ;;  %v2158_v57 = vrot.slane %v2144_v31, %v7334_v22  ;;  %v9424_v43 = vld [vmem:[#allocation64_spill] sm:$0xff]  ;;  %v2660_v31 = vcombine.low %v9403_v27, %v9401_v23 }
 0x329   : > { %v2151_v53 = vrot.slane %v2143_v18, %v7334_v22 }
 0x32a   : > { %6168 = vmatmul.mubr.msk.bf16.vlgmr.msra.gmra.mrb[24].mxu1 %vm489_vm1, %v2110_v14  ;;  %v2308_v30 = vcombine.low %v2300_v9, %v2307_v0  ;;  %v2342_v36 = vcombine.low %v9424_v43, %v8528_v28  ;;  %v6563_v14 = vld [vmem:[#allocation10 + $0x18] sm:$0xff]   ;;  %v9426_v0 = vld [vmem:[#allocation29_spill] sm:$0xff] }
 0x32b   : > { %6171 = vmatprep.mubr.msk.bf16.mxu1 %vm6918_vm0, %v9377_v4  ;;  %6194 = vmatpush3.bf16.msra.mxu1 %v6562_v16  ;;  %v2159_v59 = vcombine.low %v2151_v53, %v2158_v57  ;;  %v9425_v9 = vld [vmem:[#allocation27_spill] sm:$0xff]  ;;  %v9428_v57 = vld [vmem:[#allocation32_spill] sm:$0xff] }
 0x32c   : > { %6195 = vmatprep.subr.bf16.mxu1 %v9377_v4  ;;  %v2356_v18 = vrot.slane %v2342_v36, %v7334_v22  ;;  %v2661_v53 = vcombine.low %v9426_v0, %v9425_v9  ;;  %v2174_v36 = vrot.slane %v8260_v35, %v7334_v22 }
 0x32d   : > { %6160 = vmatmul.mubr.msk.bf16.gmra.mrb[24].mxu0 %vm1089_vm2, %v1980_v8  ;;  %v9423_v8 = vld [vmem:[#allocation62_spill] sm:$0xff] }
 0x32e   : > { %6181 = vmatprep.mubr.msk.bf16.mxu0 %vm6918_vm0, %v9377_v4  ;;  %v2341_v45 = vcombine.low %v9423_v8, %v9422_v41  ;;  %v2676_v17 = vrot.slane %v2661_v53, %v7334_v22 }
 0x32f   : > { %6196 = vmatpush3.bf16.msra.mxu1 %v6564_v55  ;;  %v9427_v55 = vld [vmem:[#allocation34_spill] sm:$0xff] }
 0x330   : > { %6223 = vmatprep.subr.bf16.mxu1 %v9377_v4  ;;  %v2349_v16 = vrot.slane %v2341_v45, %v7334_v22  ;;  %v9429_v45 = vld [vmem:[#allocation37_spill] sm:$0xff] }
 0x331   : > { %v5872_v20 = vcombine.high %v9429_v45, %v9420_v10 }
 0x332   : > { %6172 = vmatmul.mubr.msk.bf16.gmra.mrb[28].mxu1 %vm489_vm1, %v2159_v59  ;;  %v2357_v59 = vcombine.low %v2349_v16, %v2356_v18  ;;  %v9430_v16 = vcombine.low %v9419_v2, %v9423_v8  ;;  %v2702_v8 = vcombine.low %v9429_v45, %v9420_v10 }
 0x333   : > { %6175 = vmatprep.mubr.msk.bf16.mxu1 %vm6918_vm0, %v9377_v4  ;;  %v8567_v27 = vrot.slane %v5872_v20, %v7334_v22 }
 0x334   : > { %v8575_v18 = vrot.slane %v9430_v16, %v7334_v22  ;;  %v2717_v45 = vrot.slane %v2702_v8, %v7334_v22 }
 0x335   : > { %6182 = vmatmul.mubr.msk.bf16.vlgmr.msra.gmra.mrb[28].mxu0 %vm1089_vm2, %v2308_v30  ;;  %v2662_v30 = vcombine.low %v9428_v57, %v9427_v55  ;;  %v2372_v20 = vrot.slane %v8567_v27, %v7334_v22  ;;  %v9432_v55 = vld [vmem:[#allocation33_spill] sm:$0xff]  ;;  %v9433_v57 = vld [vmem:[#allocation35_spill] sm:$0xff] }
 0x336   : > { %6210 = vmatpush3.bf16.msra.mxu0 %v6563_v14  ;;  %6185 = vmatprep.mubr.msk.bf16.mxu0 %vm6918_vm0, %v9377_v4  ;;  %v2669_v14 = vrot.slane %v2660_v31, %v7334_v22  ;;  %v9431_v31 = vcombine.low %v9422_v41, %v9424_v43 }
 0x337   : > { %6239 = vmatprep.subr.bf16.mxu0 %v9377_v4  ;;  %v2683_v23 = vrot.slane %v2662_v30, %v7334_v22  ;;  %v2701_v30 = vcombine.low %v9433_v57, %v9432_v55  ;;  %v8626_v57 = vpop.f32.mrb[0].mxu1 }
 0x338   : > { %v8581_v9 = vrot.slane %v9431_v31, %v7334_v22  ;;  %v2684_v0 = vcombine.low %v2669_v14, %v2676_v17  ;;  %v2560_v31 = vcombine.low %v8265_v50, %v8281_v1 }
 0x339   : > { %v2685_v53 = vcombine.low %v9419_v2, %v2683_v23  ;;  %v2710_v10 = vrot.slane %v2701_v30, %v7334_v22 }
 0x33a   : > { %6176 = vmatmul.mubr.msk.bf16.gmra.mrb[32].mxu1 %vm489_vm1, %v2174_v36  ;;  %v9435_v36 = vld [vmem:[#allocation47_spill] sm:$0xff]  ;;  %v2692_v2 = vrot.slane %v2684_v0, %v7334_v22  ;;  %v4450_v41 = vcombine.low %v8575_v18, %v8581_v9 }
 0x33b   : > { %6197 = vmatprep.mubr.msk.bf16.mxu1 %vm6918_vm0, %v9377_v4  ;;  %v2699_v17 = vrot.slane %v2685_v53, %v7334_v22  ;;  %v2725_v14 = vcombine.low %v2710_v10, %v9424_v43  ;;  %v6566_v0 = vld [vmem:[#allocation10 + $0x20] sm:$0xff]   ;;  %v9439_v10 = vld [vmem:[#allocation50_spill] sm:$0xff] }
 0x33d   : > { %6186 = vmatmul.mubr.msk.bf16.gmra.mrb[32].mxu0 %vm1089_vm2, %v2357_v59  ;;  %v9434_v59 = vld [vmem:[#allocation72_spill] sm:$0xff]  ;;  %v2733_v43 = vrot.slane %v2725_v14, %v7334_v22 }
 0x33e   : > { %6189 = vmatprep.mubr.msk.bf16.mxu0 %vm6918_vm0, %v9377_v4  ;;  %v2703_v16 = vcombine.low %v9435_v36, %v9434_v59 }
 0x340   : > { %v2724_v12 = vrot.slane %v2703_v16, %v7334_v22  ;;  %v9437_v16 = vld [vmem:[#allocation73_spill] sm:$0xff] }
 0x342   : > { %6198 = vmatmul.mubr.msk.bf16.vlgmr.msra.gmra.mrb[36].mxu1 %vm489_vm1, %v2518_v32  ;;  %v2700_v32 = vcombine.low %v2692_v2, %v2699_v17  ;;  %v2726_v23 = vcombine.low %v2717_v45, %v2724_v12  ;;  %v9438_v17 = vld [vmem:[#allocation51_spill] sm:$0xff]  ;;  %v9440_v12 = vld [vmem:[#allocation53_spill] sm:$0xff] }
 0x343   : > { %6201 = vmatprep.mubr.msk.bf16.mxu1 %vm6918_vm0, %v9377_v4  ;;  %6224 = vmatpush3.bf16.msra.mxu1 %v6565_v3  ;;  %v9436_v3 = vcombine.low %v8373_v7, %v8362_v52  ;;  %v8629_v52 = vrot.slane %v2560_v31, %v7334_v22  ;;  %v6107_v7 = vpop.f32.mrb[1].mxu1  ;;  %v3087_v45 = vcombine.low %v9439_v10, %v9438_v17  ;;  %v2850_v10 = vshrl.u32 %v8281_v1, 16 }
 0x344   : > { %6225 = vmatprep.subr.bf16.mxu1 %v9377_v4  ;;  %v2740_v53 = vrot.slane %v2726_v23, %v7334_v22  ;;  %v8634_v30 = vpop.f32.mrb[2].mxu1 }
 0x345   : > { %6190 = vmatmul.mubr.msk.bf16.gmra.mrb[36].mxu0 %vm1089_vm2, %v2372_v20  ;;  %v8624_v20 = vcombine.high %v9434_v59, %v9434_v59  ;;  %v6108_v8 = vpop.f32.mrb[3].mxu1  ;;  %v2574_v14 = vrot.slane %v8629_v52, %v7334_v22  ;;  %v3097_v31 = vrot.slane %v3087_v45, %v7334_v22  ;;  %v9442_v45 = vcombine.low %v8299_v44, %v8352_v19  ;;  %v6570_v44 = vld [vmem:[#allocation8 + $0x58] sm:$0xff]  }
 0x346   : > { %6211 = vmatprep.mubr.msk.bf16.mxu0 %vm6918_vm0, %v9377_v4  ;;  %v2741_v36 = vcombine.low %v2733_v43, %v2740_v53  ;;  %v2855_v8 = vshll.u32 %v8286_v48, 16  ;;  %v8683_v19 = vcombine.high %v9437_v16, %v9437_v16 }
 0x347   : > { %6226 = vmatpush3.bf16.msra.mxu1 %v6567_v58  ;;  %v2742_v2 = vcombine.low %v9437_v16, %v8624_v20  ;;  %v9441_v58 = vld [vmem:[#allocation52_spill] sm:$0xff] }
 0x348   : > { %6253 = vmatprep.subr.bf16.mxu1 %v9377_v4 }
 0x349   : > { %v8649_v23 = vrot.slane %v2742_v2, %v7334_v22 }
 0x34a   : > { %6202 = vmatmul.mubr.msk.bf16.gmra.mrb[40].mxu1 %vm489_vm1, %v9436_v3 }
 0x34b   : > { %6205 = vmatprep.mubr.msk.bf16.mxu1 %vm6918_vm0, %v9377_v4  ;;  %v2756_v43 = vrot.slane %v8649_v23, %v7334_v22 }
 0x34d   : > { %6212 = vmatmul.mubr.msk.bf16.vlgmr.msra.gmra.mrb[40].mxu0 %vm1089_vm2, %v2700_v32  ;;  %v3088_v32 = vcombine.low %v9441_v58, %v9440_v12  ;;  %v9443_v58 = vld [vmem:[#allocation66_spill] sm:$0xff] }
 0x34e   : > { %6240 = vmatpush3.bf16.msra.mxu0 %v6566_v0  ;;  %6215 = vmatprep.mubr.msk.bf16.mxu0 %vm6918_vm0, %v9377_v4 }
 0x34f   : > { %6269 = vmatprep.subr.bf16.mxu0 %v9377_v4  ;;  %v3104_v0 = vrot.slane %v3088_v32, %v7334_v22  ;;  %v9444_v32 = vld [vmem:[#allocation67_spill] sm:$0xff] }
 0x351   : > { %v3119_v53 = vcombine.low %v3097_v31, %v3104_v0  ;;  %v8677_v0 = vsel %vm7544_vm5, %v2850_v10, %v2855_v8  ;;  %v2868_v8 = vshrl.u32 %v9437_v16, 16  ;;  %v2881_v10 = vshll.u32 %v8683_v19, 16 }
 0x352   : > { %6206 = vmatmul.mubr.msk.bf16.gmra.mrb[44].mxu1 %vm489_vm1, %v2574_v14  ;;  %v9445_v14 = vcombine.low %v9443_v58, %v9444_v32  ;;  %v9446_v58 = vcombine.low %v8391_v38, %v8396_v56 }
 0x353   : > { %6227 = vmatprep.mubr.msk.bf16.mxu1 %vm6918_vm0, %v9377_v4  ;;  %v3127_v12 = vrot.slane %v3119_v53, %v7334_v22 }
 0x354   : > { %v8655_v3 = vpop.f32.mrb[4].mxu1  ;;  %v3134_v31 = vrot.slane %v9445_v14, %v7334_v22 }
 0x355   : > { %6216 = vmatmul.mubr.msk.bf16.gmra.mrb[44].mxu0 %vm1089_vm2, %v2741_v36  ;;  %v6111_v7 = vpop.f32.mrb[5].mxu1  ;;  %v6568_v36 = vld [vmem:[#allocation8 + $0x50] sm:$0xff]  }
 0x356   : > { %6219 = vmatprep.mubr.msk.bf16.mxu0 %vm6918_vm0, %v9377_v4  ;;  %v8660_v17 = vpop.f32.mrb[6].mxu1  ;;  %v3135_v53 = vcombine.low %v3127_v12, %v3134_v31  ;;  %v6569_v7 = vld [vmem:[#allocation10 + $0x28] sm:$0xff]  }
 0x357   : > { %v6112_v2 = vpop.f32.mrb[7].mxu1 }
 0x358   : > { %v2876_v2 = vshrl.u32 %v8624_v20, 16 }
 0x35a   : > { %6228 = vmatmul.mubr.msk.bf16.vlgmr.msra.gmra.mrb[48].mxu1 %vm489_vm1, %v9442_v45  ;;  %v8711_v38 = vsel %vm7544_vm5, %v2876_v2, %v2881_v10  ;;  %v9449_v2 = vld [vmem:[#allocation54_spill] sm:$0xff] }
 0x35b   : > { %6231 = vmatprep.mubr.msk.bf16.mxu1 %vm6918_vm0, %v9377_v4  ;;  %6254 = vmatpush3.bf16.msra.mxu1 %v6568_v36  ;;  %v2873_v36 = vshll.u32 %v8624_v20, 16 }
 0x35c   : > { %6255 = vmatprep.subr.bf16.mxu1 %v9377_v4 }
 0x35d   : > { %6220 = vmatmul.mubr.msk.bf16.gmra.mrb[48].mxu0 %vm1089_vm2, %v2756_v43  ;;  %v2987_v43 = vcombine.low %v8312_v37, %v8677_v0  ;;  %v8707_v31 = vsel %vm7544_vm5, %v2868_v8, %v2873_v36  ;;  %v9448_v36 = vld [vmem:[#allocation36_spill] sm:$0xff] }
 0x35e   : > { %6241 = vmatprep.mubr.msk.bf16.mxu0 %vm6918_vm0, %v9377_v4  ;;  %v3488_v10 = vcombine.low %v9449_v2, %v9448_v36  ;;  %v9454_v2 = vcombine.low %v8435_v26, %v8438_v24 }
 0x35f   : > { %6256 = vmatpush3.bf16.msra.mxu1 %v6570_v44  ;;  %v2994_v14 = vrot.slane %v2987_v43, %v7334_v22  ;;  %v3185_v44 = vcombine.low %v8707_v31, %v8711_v38  ;;  %v9447_v43 = vcombine.low %v8399_v40, %v8402_v49  ;;  %v9450_v40 = vld [vmem:[#allocation70_spill] sm:$0xff] }
 0x360   : > { %6283 = vmatprep.subr.bf16.mxu1 %v9377_v4  ;;  %v8693_v45 = vpop.f32.mrb[8].mxu1  ;;  %v3490_v49 = vcombine.low %v9450_v40, %v9437_v16 }
 0x361   : > { %v6115_v12 = vpop.f32.mrb[9].mxu1 }
 0x362   : > { %6232 = vmatmul.mubr.msk.bf16.gmra.mrb[52].mxu1 %vm489_vm1, %v9446_v58  ;;  %v1152_v32 = vpop.f32.mrb[10].mxu1  ;;  %v5908_v58 = vcombine.high %v9432_v55, %v9448_v36  ;;  %v6571_v12 = vld [vmem:[#allocation8 + $0x60] sm:$0xff]   ;;  %v3511_v55 = vrot.slane %v3490_v49, %v7334_v22 }
 0x363   : > { %6235 = vmatprep.mubr.msk.bf16.mxu1 %vm6918_vm0, %v9377_v4  ;;  %v6116_v56 = vpop.f32.mrb[11].mxu1  ;;  %v9451_v32 = vld [vmem:[#allocation81_spill] sm:$0xff] }
 0x364   : > { %v3497_v56 = vrot.slane %v3488_v10, %v7334_v22  ;;  %v6572_v36 = vld [vmem:[#allocation10 + $0x30] sm:$0xff]   ;;  %v9455_v10 = vcombine.low %v8412_v15, %v8444_v29  ;;  %v5909_v29 = vcombine.high %v9434_v59, %v9437_v16 }
 0x365   : > { %6242 = vmatmul.mubr.msk.bf16.vlgmr.msra.gmra.mrb[52].mxu0 %vm1089_vm2, %v3135_v53  ;;  %v3001_v53 = vrot.slane %v2994_v14, %v7334_v22  ;;  %v9452_v14 = vcombine.low %v8147_v63, %v9451_v32 }
 0x366   : > { %6270 = vmatpush3.bf16.msra.mxu0 %v6569_v7  ;;  %6245 = vmatprep.mubr.msk.bf16.mxu0 %vm6918_vm0, %v9377_v4  ;;  %v3192_v7 = vrot.slane %v3185_v44, %v7334_v22  ;;  %v3504_v44 = vrot.slane %v5908_v58, %v7334_v22 }
 0x367   : > { %6299 = vmatprep.subr.bf16.mxu0 %v9377_v4 }
 0x368   : > { %v3199_v8 = vrot.slane %v3192_v7, %v7334_v22  ;;  %v3512_v63 = vcombine.low %v3497_v56, %v3504_v44  ;;  %v9456_v56 = vcombine.low %v8241_v6, %v8265_v50 }
 0x36a   : > { %6236 = vmatmul.mubr.msk.bf16.gmra.mrb[56].mxu1 %vm489_vm1, %v3001_v53  ;;  %v6573_v53 = vld [vmem:[#allocation8 + $0x68] sm:$0xff]   ;;  %v3520_v58 = vrot.slane %v3512_v63, %v7334_v22  ;;  %v3674_v44 = vrot.slane %v9456_v56, %v7334_v22 }
 0x36b   : > { %6257 = vmatprep.mubr.msk.bf16.mxu1 %vm6918_vm0, %v9377_v4 }
 0x36d   : > { %6246 = vmatmul.mubr.msk.bf16.gmra.mrb[56].mxu0 %vm1089_vm2, %v9447_v43  ;;  %v9453_v43 = vld [vmem:[#allocation48_spill] sm:$0xff] }
 0x36e   : > { %6249 = vmatprep.mubr.msk.bf16.mxu0 %vm6918_vm0, %v9377_v4  ;;  %v3513_v7 = vcombine.low %v9453_v43, %v3511_v55 }
 0x370   : > { %v3527_v40 = vrot.slane %v3513_v7, %v7334_v22 }
 0x372   : > { %6258 = vmatmul.mubr.msk.bf16.vlgmr.msra.gmra.mrb[60].mxu1 %vm489_vm1, %v9452_v14  ;;  %v3528_v24 = vcombine.low %v3520_v58, %v3527_v40  ;;  %v9458_v40 = vcombine.low %v8307_v46, %v8312_v37  ;;  %v9462_v46 = vcombine.low %v8320_v11, %v8386_v13 }
 0x373   : > { %6261 = vmatprep.mubr.msk.bf16.mxu1 %vm6918_vm0, %v9377_v4  ;;  %6284 = vmatpush3.bf16.msra.mxu1 %v6571_v12  ;;  %v5914_v12 = vld.sshfl [vmem:[%s7297_s18 + $0x1c] sm:$0x33 pattern:$0x75316420] }
 0x374   : > { %6285 = vmatprep.subr.bf16.mxu1 %v9377_v4  ;;  %v8816_v37 = vrot.slane %v9462_v46, %v7334_v22  ;;  %v9466_v46 = vcombine.low %v8487_v34, %v8473_v62  ;;  %v6579_v62 = vld [vmem:[#allocation8 + $0x88] sm:$0xff]  }
 0x375   : > { %6250 = vmatmul.mubr.msk.bf16.gmra.mrb[60].mxu0 %vm1089_vm2, %v3199_v8  ;;  %v3355_v8 = vcombine.low %v8281_v1, %v8286_v48 }
 0x376   : > { %6271 = vmatprep.mubr.msk.bf16.mxu0 %vm6918_vm0, %v9377_v4 }
 0x377   : > { %6286 = vmatpush3.bf16.msra.mxu1 %v6573_v53  ;;  %v3362_v49 = vrot.slane %v3355_v8, %v7334_v22 }
 0x378   : > { %6313 = vmatprep.subr.bf16.mxu1 %v9377_v4 }
 0x379   : > { %v3369_v32 = vrot.slane %v3362_v49, %v7334_v22 }
 0x37a   : > { %6262 = vmatmul.mubr.msk.bf16.gmra.mrb[64].mxu1 %vm489_vm1, %v9454_v2  ;;  %v9457_v2 = vcombine.low %v8115_v39, %v8231_v61  ;;  %v9459_v39 = vld [vmem:[#allocation79_spill] sm:$0xff]  ;;  %v9460_v61 = vld [vmem:[#allocation80_spill] sm:$0xff] }
 0x37b   : > { %6265 = vmatprep.mubr.msk.bf16.mxu1 %vm6918_vm0, %v9377_v4  ;;  %v9461_v56 = vcombine.low %v9459_v39, %v9460_v61  ;;  %v6577_v61 = vld [vmem:[#allocation8 + $0x80] sm:$0xff]  }
 0x37d   : > { %6272 = vmatmul.mubr.msk.bf16.vlgmr.msra.gmra.mrb[64].mxu0 %vm1089_vm2, %v9455_v10  ;;  %v3690_v10 = vrot.slane %v9457_v2, %v7334_v22 }
 0x37e   : > { %6300 = vmatpush3.bf16.msra.mxu0 %v6572_v36  ;;  %6275 = vmatprep.mubr.msk.bf16.mxu0 %vm6918_vm0, %v9377_v4  ;;  %v805_v26 = vpop.permute.xlu0 %804  ;;  %v3536_v36 = vrot.slane %v5909_v29, %v7334_v22  ;;  %v6574_v29 = vld [vmem:[#allocation8 + $0x70] sm:$0xff]  }
 0x37f   : > { %6329 = vmatprep.subr.bf16.mxu0 %v9377_v4  ;;  %v3667_v15 = vcombine.low %v8281_v1, %v805_v26  ;;  %v3941_v53 = vshrl.u32 %v805_v26, 16  ;;  %v8782_v1 = vrot.slane %v5914_v12, %v7334_v22 }
 0x380   : > { %v8772_v14 = vpop.permute.xlu1 %806  ;;  %v3543_v49 = vrot.slane %v3536_v36, %v7334_v22  ;;  %v6575_v36 = vld [vmem:[#allocation10 + $0x38] sm:$0xff]  }
 0x381   : > { %v3681_v55 = vrot.slane %v3667_v15, %v7334_v22  ;;  %v3946_v63 = vshll.u32 %v8772_v14, 16  ;;  %v3816_v15 = vcombine.low %v9434_v59, %v9437_v16  ;;  %v6576_v16 = vld [vmem:[#allocation8 + $0x78] sm:$0xff]   ;;  %v3643_v2 = vcombine.high %v8782_v1, %v8782_v1 }
 0x382   : > { %6266 = vmatmul.mubr.msk.bf16.gmra.mrb[68].mxu1 %vm489_vm1, %v3369_v32  ;;  %v8830_v13 = vpop.permute.xlu0 %808 }
 0x383   : > { %v3683_v7 = vcombine.low %v3674_v44, %v3681_v55  ;;  %v3948_v8 = vsel %vm7544_vm5, %v3941_v53, %v3946_v63  ;;  %6287 = vmatprep.mubr.msk.bf16.mxu1 %vm6918_vm0, %v9377_v4  ;;  %v3824_v59 = vrot.slane %v3816_v15, %v7334_v22  ;;  %v3628_v55 = vcombine.high %v5914_v12, %v5914_v12  ;;  %v9463_v53 = vld [vmem:[#allocation42_spill] sm:$0xff]  ;;  %v9465_v15 = vld [vmem:[#allocation75_spill] sm:$0xff] }
 0x384   : > { %v4014_v6 = vcombine.low %v8677_v0, %v3948_v8  ;;  %v4021_v0 = vrot.slane %v9458_v40, %v7334_v22  ;;  %v3832_v63 = vcombine.low %v9463_v53, %v9453_v43  ;;  %v3699_v8 = vcombine.low %v8772_v14, %v8830_v13 }
 0x385   : > { %6276 = vmatmul.mubr.msk.bf16.gmra.mrb[68].mxu0 %vm1089_vm2, %v3528_v24  ;;  %v3697_v50 = vrot.slane %v3683_v7, %v7334_v22  ;;  %v3817_v24 = vcombine.low %v8624_v20, %v8782_v1 }
 0x386   : > { %6279 = vmatprep.mubr.msk.bf16.mxu0 %vm6918_vm0, %v9377_v4  ;;  %v4028_v58 = vrot.slane %v4014_v6, %v7334_v22  ;;  %v8839_v6 = vrot.slane %v3628_v55, %v7334_v22  ;;  %v3840_v43 = vrot.slane %v3832_v63, %v7334_v22  ;;  %v9467_v63 = vld [vmem:[#allocation71_spill] sm:$0xff] }
 0x387   : > { %v3698_v26 = vcombine.low %v3690_v10, %v3697_v50  ;;  %v3831_v20 = vrot.slane %v3817_v24, %v7334_v22  ;;  %v9464_v50 = vcombine.low %v8450_v21, %v8456_v42  ;;  %v3706_v10 = vrot.slane %v3699_v8, %v7334_v22 }
 0x388   : > { %v4030_v32 = vcombine.low %v4021_v0, %v4028_v58  ;;  %v3849_v21 = vcombine.low %v8839_v6, %v3643_v2  ;;  %v3967_v58 = vshrl.u32 %v8782_v1, 16  ;;  %v3972_v40 = vshll.u32 %v8839_v6, 16 }
 0x389   : > { %v3833_v7 = vcombine.low %v3824_v59, %v3831_v20  ;;  %v3713_v0 = vrot.slane %v3706_v10, %v7334_v22  ;;  %v4163_v24 = vcombine.low %v9465_v15, %v8707_v31  ;;  %v3949_v20 = vshrl.u32 %v8772_v14, 16 }
 0x38a   : > { %6288 = vmatmul.mubr.msk.bf16.vlgmr.msra.gmra.mrb[72].mxu1 %vm489_vm1, %v9461_v56  ;;  %v8819_v44 = vrot.slane %v4030_v32, %v7334_v22  ;;  %v3954_v31 = vshll.u32 %v8830_v13, 16  ;;  %v3965_v34 = vcombine.high %v8839_v6, %v8839_v6  ;;  %v3983_v10 = vshrl.u32 %v3643_v2, 16 }
 0x38b   : > { %6291 = vmatprep.mubr.msk.bf16.mxu1 %vm6918_vm0, %v9377_v4  ;;  %6314 = vmatpush3.bf16.msra.mxu1 %v6574_v29  ;;  %v3847_v12 = vrot.slane %v3833_v7, %v7334_v22  ;;  %v8871_v29 = vpop.permute.xlu1 %810  ;;  %v4171_v59 = vrot.slane %v4163_v24, %v7334_v22  ;;  %v4179_v7 = vcombine.low %v9467_v63, %v8459_v25 }
 0x38c   : > { %v4045_v11 = vcombine.low %v8816_v37, %v8819_v44  ;;  %6315 = vmatprep.subr.bf16.mxu1 %v9377_v4  ;;  %v3962_v56 = vshll.u32 %v8871_v29, 16  ;;  %v3956_v53 = vsel %vm7544_vm5, %v3949_v20, %v3954_v31  ;;  %v9469_v15 = vcombine.low %v8215_v47, %v8218_v60 }
 0x38d   : > { %6280 = vmatmul.mubr.msk.bf16.gmra.mrb[72].mxu0 %vm1089_vm2, %v3543_v49  ;;  %v3848_v42 = vcombine.low %v3840_v43, %v3847_v12  ;;  %v3856_v49 = vrot.slane %v3849_v21, %v7334_v22  ;;  %v6578_v43 = vld [vmem:[#allocation10 + $0x40] sm:$0xff]   ;;  %v3980_v12 = vshll.u32 %v3643_v2, 16  ;;  %v9468_v21 = vcombine.low %v8498_v54, %v8504_v5 }
 0x38e   : > { %6301 = vmatprep.mubr.msk.bf16.mxu0 %vm6918_vm0, %v9377_v4  ;;  %v4187_v25 = vrot.slane %v4179_v7, %v7334_v22  ;;  %v4459_v60 = vcombine.low %v8528_v28, %v8567_v27 }
 0x38f   : > { %6316 = vmatpush3.bf16.msra.mxu1 %v6576_v16  ;;  %v3863_v39 = vrot.slane %v3856_v49, %v7334_v22  ;;  %v3957_v16 = vshrl.u32 %v8830_v13, 16 }
 0x390   : > { %6343 = vmatprep.subr.bf16.mxu1 %v9377_v4 }
 0x391   : > { %v3964_v55 = vsel %vm7544_vm5, %v3957_v16, %v3962_v56 }
 0x392   : > { %6292 = vmatmul.mubr.msk.bf16.gmra.mrb[76].mxu1 %vm489_vm1, %v3698_v26  ;;  %v3974_v26 = vsel %vm7544_vm5, %v3967_v58, %v3972_v40 }
 0x393   : > { %6295 = vmatprep.mubr.msk.bf16.mxu1 %vm6918_vm0, %v9377_v4  ;;  %v4164_v32 = vcombine.low %v8711_v38, %v3974_v26 }
 0x395   : > { %6302 = vmatmul.mubr.msk.bf16.vlgmr.msra.gmra.mrb[76].mxu0 %vm1089_vm2, %v9464_v50  ;;  %v4178_v38 = vrot.slane %v4164_v32, %v7334_v22  ;;  %v4046_v50 = vcombine.low %v3956_v53, %v3964_v55 }
 0x396   : > { %6330 = vmatpush3.bf16.msra.mxu0 %v6575_v36  ;;  %6305 = vmatprep.mubr.msk.bf16.mxu0 %vm6918_vm0, %v9377_v4  ;;  %v3975_v36 = vshrl.u32 %v8839_v6, 16 }
 0x397   : > { %6359 = vmatprep.subr.bf16.mxu0 %v9377_v4  ;;  %v4180_v8 = vcombine.low %v4171_v59, %v4178_v38  ;;  %v4053_v58 = vrot.slane %v4046_v50, %v7334_v22 }
 0x398   : > { %v3982_v37 = vsel %vm7544_vm5, %v3975_v36, %v3980_v12 }
 0x399   : > { %v4194_v2 = vrot.slane %v4180_v8, %v7334_v22  ;;  %v4060_v40 = vrot.slane %v4053_v58, %v7334_v22 }
 0x39a   : > { %6296 = vmatmul.mubr.msk.bf16.gmra.mrb[80].mxu1 %vm489_vm1, %v3713_v0 }
 0x39b   : > { %6317 = vmatprep.mubr.msk.bf16.mxu1 %vm6918_vm0, %v9377_v4  ;;  %v4195_v5 = vcombine.low %v4187_v25, %v4194_v2 }
 0x39d   : > { %6306 = vmatmul.mubr.msk.bf16.gmra.mrb[80].mxu0 %vm1089_vm2, %v3848_v42  ;;  %v3988_v42 = vshll.u32 %v3965_v34, 16 }
 0x39e   : > { %6309 = vmatprep.mubr.msk.bf16.mxu0 %vm6918_vm0, %v9377_v4 }
 0x39f   : > { %v3990_v54 = vsel %vm7544_vm5, %v3983_v10, %v3988_v42 }
 0x3a0   : > { %v4196_v44 = vcombine.low %v3982_v37, %v3990_v54 }
 0x3a2   : > { %6318 = vmatmul.mubr.msk.bf16.vlgmr.msra.gmra.mrb[84].mxu1 %vm489_vm1, %v9466_v46  ;;  %v4203_v0 = vrot.slane %v4196_v44, %v7334_v22 }
 0x3a3   : > { %6321 = vmatprep.mubr.msk.bf16.mxu1 %vm6918_vm0, %v9377_v4  ;;  %6344 = vmatpush3.bf16.msra.mxu1 %v6577_v61 }
 0x3a4   : > { %6345 = vmatprep.subr.bf16.mxu1 %v9377_v4  ;;  %v4210_v26 = vrot.slane %v4203_v0, %v7334_v22 }
 0x3a5   : > { %6310 = vmatmul.mubr.msk.bf16.gmra.mrb[84].mxu0 %vm1089_vm2, %v3863_v39  ;;  %v4334_v39 = vcombine.low %v8830_v13, %v8871_v29 }
 0x3a6   : > { %6331 = vmatprep.mubr.msk.bf16.mxu0 %vm6918_vm0, %v9377_v4 }
 0x3a7   : > { %6346 = vmatpush3.bf16.msra.mxu1 %v6579_v62  ;;  %v4341_v28 = vrot.slane %v4334_v39, %v7334_v22 }
 0x3a8   : > { %6373 = vmatprep.subr.bf16.mxu1 %v9377_v4 }
 0x3a9   : > { %v4348_v18 = vrot.slane %v4341_v28, %v7334_v22 }
 0x3aa   : > { %6322 = vmatmul.mubr.msk.bf16.gmra.mrb[88].mxu1 %vm489_vm1, %v4045_v11  ;;  %v4309_v11 = vcombine.low %v8286_v48, %v8772_v14  ;;  %v4451_v48 = vcombine.low %v8683_v19, %v8839_v6 }
 0x3ab   : > { %6325 = vmatprep.mubr.msk.bf16.mxu1 %vm6918_vm0, %v9377_v4 }
 0x3ac   : > { %v4316_v49 = vrot.slane %v4309_v11, %v7334_v22  ;;  %v4458_v24 = vrot.slane %v4451_v48, %v7334_v22 }
 0x3ad   : > { %6332 = vmatmul.mubr.msk.bf16.vlgmr.msra.gmra.mrb[88].mxu0 %vm1089_vm2, %v9468_v21 }
 0x3ae   : > { %6360 = vmatpush3.bf16.msra.mxu0 %v6578_v43  ;;  %6335 = vmatprep.mubr.msk.bf16.mxu0 %vm6918_vm0, %v9377_v4  ;;  %v4318_v14 = vcombine.low %v8629_v52, %v4316_v49  ;;  %v9470_v52 = vcombine.low %v8257_v33, %v8260_v35  ;;  %v4460_v47 = vcombine.low %v8649_v23, %v4458_v24 }
 0x3af   : > { %6385 = vmatprep.subr.bf16.mxu0 %v9377_v4  ;;  %v4467_v33 = vrot.slane %v4459_v60, %v7334_v22  ;;  %v5944_v23 = vcombine.high %v8782_v1, %v8839_v6 }
 0x3b0   : > { %v4332_v32 = vrot.slane %v4318_v14, %v7334_v22  ;;  %v4325_v19 = vrot.slane %v9470_v52, %v7334_v22  ;;  %v4474_v35 = vrot.slane %v4460_v47, %v7334_v22 }
 0x3b1   : > { %v4483_v9 = vrot.slane %v5944_v23, %v7334_v22 }
 0x3b2   : > { %6326 = vmatmul.mubr.msk.bf16.gmra.mrb[92].mxu1 %vm489_vm1, %v4060_v40  ;;  %v4333_v61 = vcombine.low %v4325_v19, %v4332_v32  ;;  %v4475_v27 = vcombine.low %v4467_v33, %v4474_v35 }
 0x3b3   : > { %6347 = vmatprep.mubr.msk.bf16.mxu1 %vm6918_vm0, %v9377_v4  ;;  %v4490_v1 = vrot.slane %v4483_v9, %v7334_v22 }
 0x3b5   : > { %6336 = vmatmul.mubr.msk.bf16.gmra.mrb[92].mxu0 %vm1089_vm2, %v4195_v5 }
 0x3b6   : > { %6339 = vmatprep.mubr.msk.bf16.mxu0 %vm6918_vm0, %v9377_v4 }
 0x3ba   : > { %6348 = vmatmul.mubr.msk.bf16.vlgmr.msra.gmra.mrb[96].mxu1 %vm489_vm1, %v9469_v15 }
 0x3bb   : > { %6351 = vmatprep.mubr.msk.bf16.mxu1 %vm6918_vm0, %v9377_v4 }
 0x3bd   : > { %6340 = vmatmul.mubr.msk.bf16.gmra.mrb[96].mxu0 %vm1089_vm2, %v4210_v26 }
 0x3be   : > { %6361 = vmatprep.mubr.msk.bf16.mxu0 %vm6918_vm0, %v9377_v4 }
 0x3c2   : > { %6352 = vmatmul.mubr.msk.bf16.gmra.mrb[100].mxu1 %vm489_vm1, %v4333_v61 }
 0x3c3   : > { %6355 = vmatprep.mubr.msk.bf16.mxu1 %vm6918_vm0, %v9377_v4 }
 0x3c5   : > { %6362 = vmatmul.mubr.msk.bf16.vlgmr.msra.gmra.mrb[100].mxu0 %vm1089_vm2, %v4450_v41 }
 0x3c6   : > { %6365 = vmatprep.mubr.msk.bf16.mxu0 %vm6918_vm0, %v9377_v4 }
 0x3ca   : > { %6356 = vmatmul.mubr.msk.bf16.gmra.mrb[104].mxu1 %vm489_vm1, %v4348_v18 }
 0x3cb   : > { %6375 = vmatprep.mubr.msk.bf16.mxu1 %vm6918_vm0, %v9377_v4 }
 0x3cc   : > { %v1323_v41 = vpop.f32.mrb[4].mxu0 }
 0x3cd   : > { %6366 = vmatmul.mubr.msk.bf16.gmra.mrb[104].mxu0 %vm1089_vm2, %v4475_v27  ;;  %v1324_v13 = vadd.f32 %v1323_v41, %v8626_v57  ;;  %v6123_v29 = vpop.f32.mrb[5].mxu0 }
 0x3ce   : > { %6369 = vmatprep.mubr.msk.bf16.mxu0 %vm6918_vm0, %v9377_v4  ;;  %v1326_v56 = vpop.f32.mrb[6].mxu0 }
 0x3cf   : > { %v1327_v6 = vadd.f32 %v1326_v56, %v8634_v30  ;;  %v6124_v46 = vpop.f32.mrb[7].mxu0 }
 0x3d5   : > { %6370 = vmatmul.mubr.msk.bf16.gmra.mrb[108].mxu0 %vm1089_vm2, %v4490_v1 }
 0x3d6   : > { %6387 = vmatprep.mubr.msk.bf16.mxu0 %vm6918_vm0, %v9377_v4 }
 0x3db   : > { %v1838_v59 = vpop.f32.mrb[12].mxu1 }
 0x3dc   : > { %v1860_v20 = vadd.f32 %v1838_v59, %v1324_v13  ;;  %v6139_v31 = vpop.f32.mrb[13].mxu1 }
 0x3dd   : > { %v1841_v16 = vpop.f32.mrb[14].mxu1 }
 0x3de   : > { %v1861_v38 = vadd.f32 %v1841_v16, %v1327_v6  ;;  %v6140_v62 = vpop.f32.mrb[15].mxu1 }
 0x3df   : > { %v1331_v34 = vpop.f32.mrb[8].mxu0 }
 0x3e0   : > { %v1332_v57 = vadd.f32 %v1331_v34, %v8655_v3  ;;  %v6127_v55 = vpop.f32.mrb[9].mxu0 }
 0x3e1   : > { %v1334_v53 = vpop.f32.mrb[10].mxu0 }
 0x3e2   : > { %v1335_v63 = vadd.f32 %v1334_v53, %v8660_v17  ;;  %v6128_v30 = vpop.f32.mrb[11].mxu0 }
 0x3e7   : > { %v1339_v7 = vpop.f32.mrb[12].mxu0 }
 0x3e8   : > { %v1340_v8 = vadd.f32 %v1339_v7, %v8693_v45  ;;  %v6131_v36 = vpop.f32.mrb[13].mxu0 }
 0x3e9   : > { %v1342_v50 = vpop.f32.mrb[14].mxu0 }
 0x3ea   : > { %v6132_v43 = vpop.f32.mrb[15].mxu0 }
 0x3ed   : > { %v1846_v12 = vpop.f32.mrb[16].mxu1 }
 0x3ee   : > { %v1862_v10 = vadd.f32 %v1846_v12, %v1332_v57  ;;  %v6143_v42 = vpop.f32.mrb[17].mxu1 }
 0x3ef   : > { %v1849_v2 = vpop.f32.mrb[18].mxu1 }
 0x3f0   : > { %v2030_v21 = vpop.f32.mrb[16].mxu0  ;;  %v1863_v37 = vadd.f32 %v1849_v2, %v1335_v63  ;;  %v6144_v3 = vpop.f32.mrb[19].mxu1 }
 0x3f1   : > { %v2052_v25 = vadd.f32 %v2030_v21, %v1860_v20  ;;  %v6153_v58 = vpop.f32.mrb[17].mxu0 }
 0x3f2   : > { %v2033_v54 = vpop.f32.mrb[18].mxu0 }
 0x3f3   : > { %v2053_v5 = vadd.f32 %v2033_v54, %v1861_v38  ;;  %v6154_v44 = vpop.f32.mrb[19].mxu0 }
 0x3f5   : > { %v1854_v17 = vpop.f32.mrb[20].mxu1 }
 0x3f6   : > { %v1864_v11 = vadd.f32 %v1854_v17, %v1340_v8  ;;  %v6147_v40 = vpop.f32.mrb[21].mxu1 }
 0x3f7   : > { %v1857_v49 = vpop.f32.mrb[22].mxu1 }
 0x3f8   : > { %v2038_v0 = vpop.f32.mrb[20].mxu0  ;;  %v6148_v48 = vpop.f32.mrb[23].mxu1 }
 0x3f9   : > { %v2054_v45 = vadd.f32 %v2038_v0, %v1862_v10  ;;  %v6157_v26 = vpop.f32.mrb[21].mxu0 }
 0x3fa   : > { %v2041_v14 = vpop.f32.mrb[22].mxu0 }
 0x3fb   : > { %v2055_v15 = vadd.f32 %v2041_v14, %v1863_v37  ;;  %v6158_v24 = vpop.f32.mrb[23].mxu0 }
 0x3fd   : > { %v2230_v32 = vpop.f32.mrb[24].mxu1 }
 0x3fe   : > { %v2252_v52 = vadd.f32 %v2230_v32, %v2052_v25  ;;  %v6169_v60 = vpop.f32.mrb[25].mxu1 }
 0x3ff   : > { %v2233_v61 = vpop.f32.mrb[26].mxu1 }
 0x400   : > { %v2046_v19 = vpop.f32.mrb[24].mxu0  ;;  %v2253_v33 = vadd.f32 %v2233_v61, %v2053_v5  ;;  %v6170_v28 = vpop.f32.mrb[27].mxu1 }
 0x401   : > { %v2056_v47 = vadd.f32 %v2046_v19, %v1864_v11  ;;  %v6161_v39 = vpop.f32.mrb[25].mxu0 }
 0x402   : > { %v2049_v35 = vpop.f32.mrb[26].mxu0 }
 0x403   : > { %v6162_v27 = vpop.f32.mrb[27].mxu0 }
 0x405   : > { %v2238_v23 = vpop.f32.mrb[28].mxu1 }
 0x406   : > { %v2254_v18 = vadd.f32 %v2238_v23, %v2054_v45  ;;  %v6173_v9 = vpop.f32.mrb[29].mxu1 }
 0x407   : > { %v2241_v29 = vpop.f32.mrb[30].mxu1 }
 0x408   : > { %v2422_v41 = vpop.f32.mrb[28].mxu0  ;;  %v2255_v1 = vadd.f32 %v2241_v29, %v2055_v15  ;;  %v6174_v6 = vpop.f32.mrb[31].mxu1 }
 0x409   : > { %v2444_v13 = vadd.f32 %v2422_v41, %v2252_v52  ;;  %v6183_v56 = vpop.f32.mrb[29].mxu0 }
 0x40a   : > { %v2425_v46 = vpop.f32.mrb[30].mxu0 }
 0x40b   : > { %v2445_v59 = vadd.f32 %v2425_v46, %v2253_v33  ;;  %v6184_v20 = vpop.f32.mrb[31].mxu0 }
 0x40d   : > { %v2246_v31 = vpop.f32.mrb[32].mxu1 }
 0x40e   : > { %v2256_v16 = vadd.f32 %v2246_v31, %v2056_v47  ;;  %v6177_v38 = vpop.f32.mrb[33].mxu1 }
 0x40f   : > { %v2249_v57 = vpop.f32.mrb[34].mxu1 }
 0x410   : > { %v2430_v62 = vpop.f32.mrb[32].mxu0  ;;  %v6178_v53 = vpop.f32.mrb[35].mxu1 }
 0x411   : > { %v2446_v34 = vadd.f32 %v2430_v62, %v2254_v18  ;;  %v6187_v55 = vpop.f32.mrb[33].mxu0 }
 0x412   : > { %v2433_v63 = vpop.f32.mrb[34].mxu0 }
 0x413   : > { %v2447_v30 = vadd.f32 %v2433_v63, %v2255_v1  ;;  %v6188_v7 = vpop.f32.mrb[35].mxu0 }
 0x415   : > { %v2630_v8 = vpop.f32.mrb[36].mxu1 }
 0x416   : > { %v2652_v36 = vadd.f32 %v2630_v8, %v2444_v13  ;;  %v6199_v43 = vpop.f32.mrb[37].mxu1 }
 0x417   : > { %v2633_v42 = vpop.f32.mrb[38].mxu1 }
 0x418   : > { %v2438_v50 = vpop.f32.mrb[36].mxu0  ;;  %v2653_v21 = vadd.f32 %v2633_v42, %v2445_v59  ;;  %v6200_v2 = vpop.f32.mrb[39].mxu1 }
 0x419   : > { %v2448_v12 = vadd.f32 %v2438_v50, %v2256_v16  ;;  %v6191_v10 = vpop.f32.mrb[37].mxu0 }
 0x41a   : > { %v2441_v25 = vpop.f32.mrb[38].mxu0 }
 0x41b   : > { %v6192_v58 = vpop.f32.mrb[39].mxu0  ;;  %v6581_v25 = vld [vmem:[#allocation13 + $0x10] sm:$0xff]  }
 0x41c   : > { %6386 = vmatpush3.bf16.msra.mxu0 %v6581_v25 }
 0x41d   : > { %v2638_v37 = vpop.f32.mrb[40].mxu1  ;;  %6397 = vmatprep.subr.bf16.mxu0 %v9377_v4 }
 0x41e   : > { %v2654_v3 = vadd.f32 %v2638_v37, %v2446_v34  ;;  %v6203_v54 = vpop.f32.mrb[41].mxu1 }
 0x41f   : > { %v2641_v17 = vpop.f32.mrb[42].mxu1 }
 0x420   : > { %v2806_v5 = vpop.f32.mrb[40].mxu0  ;;  %v2655_v40 = vadd.f32 %v2641_v17, %v2447_v30  ;;  %v6204_v0 = vpop.f32.mrb[43].mxu1 }
 0x421   : > { %v2828_v44 = vadd.f32 %v2806_v5, %v2652_v36  ;;  %v6213_v11 = vpop.f32.mrb[41].mxu0 }
 0x422   : > { %v2809_v45 = vpop.f32.mrb[42].mxu0 }
 0x423   : > { %v2829_v49 = vadd.f32 %v2809_v45, %v2653_v21  ;;  %v6214_v26 = vpop.f32.mrb[43].mxu0  ;;  %v6580_v21 = vld [vmem:[#allocation13 + $0x8] sm:$0xff]  }
 0x424   : > { %6374 = vmatpush3.bf16.msra.mxu1 %v6580_v21 }
 0x425   : > { %v2646_v48 = vpop.f32.mrb[44].mxu1  ;;  %6379 = vmatprep.subr.bf16.mxu1 %v9377_v4 }
 0x426   : > { %v2656_v14 = vadd.f32 %v2646_v48, %v2448_v12  ;;  %v6207_v15 = vpop.f32.mrb[45].mxu1 }
 0x427   : > { %v2649_v52 = vpop.f32.mrb[46].mxu1 }
 0x428   : > { %v2814_v24 = vpop.f32.mrb[44].mxu0  ;;  %v6208_v60 = vpop.f32.mrb[47].mxu1 }
 0x429   : > { %v2830_v32 = vadd.f32 %v2814_v24, %v2654_v3  ;;  %v6217_v19 = vpop.f32.mrb[45].mxu0 }
 0x42a   : > { %v2817_v47 = vpop.f32.mrb[46].mxu0 }
 0x42b   : > { %v2831_v39 = vadd.f32 %v2817_v47, %v2655_v40  ;;  %v6218_v61 = vpop.f32.mrb[47].mxu0 }
 0x42d   : > { %v3057_v33 = vpop.f32.mrb[48].mxu1 }
 0x42e   : > { %v3079_v35 = vadd.f32 %v3057_v33, %v2828_v44  ;;  %v6229_v27 = vpop.f32.mrb[49].mxu1 }
 0x42f   : > { %v3060_v9 = vpop.f32.mrb[50].mxu1 }
 0x430   : > { %v2822_v28 = vpop.f32.mrb[48].mxu0  ;;  %v3080_v41 = vadd.f32 %v3060_v9, %v2829_v49  ;;  %v6230_v29 = vpop.f32.mrb[51].mxu1 }
 0x431   : > { %v2832_v23 = vadd.f32 %v2822_v28, %v2656_v14  ;;  %v6221_v18 = vpop.f32.mrb[49].mxu0 }
 0x432   : > { %v2825_v13 = vpop.f32.mrb[50].mxu0 }
 0x433   : > { %v6222_v56 = vpop.f32.mrb[51].mxu0 }
 0x435   : > { %v3065_v1 = vpop.f32.mrb[52].mxu1 }
 0x436   : > { %v3081_v6 = vadd.f32 %v3065_v1, %v2830_v32  ;;  %v6233_v46 = vpop.f32.mrb[53].mxu1 }
 0x437   : > { %v3068_v31 = vpop.f32.mrb[54].mxu1 }
 0x438   : > { %v3249_v59 = vpop.f32.mrb[52].mxu0  ;;  %v3082_v38 = vadd.f32 %v3068_v31, %v2831_v39  ;;  %v6234_v62 = vpop.f32.mrb[55].mxu1 }
 0x439   : > { %v3271_v20 = vadd.f32 %v3249_v59, %v3079_v35  ;;  %v6243_v16 = vpop.f32.mrb[53].mxu0 }
 0x43a   : > { %v3252_v34 = vpop.f32.mrb[54].mxu0 }
 0x43b   : > { %v3272_v57 = vadd.f32 %v3252_v34, %v3080_v41  ;;  %v6244_v55 = vpop.f32.mrb[55].mxu0 }
 0x43d   : > { %v3073_v53 = vpop.f32.mrb[56].mxu1 }
 0x43e   : > { %v3083_v63 = vadd.f32 %v3073_v53, %v2832_v23  ;;  %v6237_v30 = vpop.f32.mrb[57].mxu1 }
 0x43f   : > { %v3076_v36 = vpop.f32.mrb[58].mxu1 }
 0x440   : > { %v3257_v7 = vpop.f32.mrb[56].mxu0  ;;  %v6238_v43 = vpop.f32.mrb[59].mxu1 }
 0x441   : > { %v3273_v8 = vadd.f32 %v3257_v7, %v3081_v6  ;;  %v6247_v50 = vpop.f32.mrb[57].mxu0 }
 0x442   : > { %v3260_v12 = vpop.f32.mrb[58].mxu0 }
 0x443   : > { %v3274_v10 = vadd.f32 %v3260_v12, %v3082_v38  ;;  %v6248_v42 = vpop.f32.mrb[59].mxu0 }
 0x445   : > { %v3425_v2 = vpop.f32.mrb[60].mxu1 }
 0x446   : > { %v3447_v58 = vadd.f32 %v3425_v2, %v3271_v20  ;;  %v6259_v3 = vpop.f32.mrb[61].mxu1 }
 0x447   : > { %v3428_v44 = vpop.f32.mrb[62].mxu1 }
 0x448   : > { %v3265_v37 = vpop.f32.mrb[60].mxu0  ;;  %v3448_v17 = vadd.f32 %v3428_v44, %v3272_v57  ;;  %v6260_v40 = vpop.f32.mrb[63].mxu1 }
 0x449   : > { %v3275_v54 = vadd.f32 %v3265_v37, %v3083_v63  ;;  %v6251_v5 = vpop.f32.mrb[61].mxu0 }
 0x44a   : > { %v3268_v11 = vpop.f32.mrb[62].mxu0 }
 0x44b   : > { %v6252_v0 = vpop.f32.mrb[63].mxu0 }
 0x44d   : > { %v3433_v45 = vpop.f32.mrb[64].mxu1 }
 0x44e   : > { %v3449_v49 = vadd.f32 %v3433_v45, %v3273_v8  ;;  %v6263_v26 = vpop.f32.mrb[65].mxu1 }
 0x44f   : > { %v3436_v15 = vpop.f32.mrb[66].mxu1 }
 0x450   : > { %v3593_v48 = vpop.f32.mrb[64].mxu0  ;;  %v3450_v32 = vadd.f32 %v3436_v15, %v3274_v10  ;;  %v6264_v52 = vpop.f32.mrb[67].mxu1 }
 0x451   : > { %v3615_v14 = vadd.f32 %v3593_v48, %v3447_v58  ;;  %v6273_v24 = vpop.f32.mrb[65].mxu0 }
 0x452   : > { %v3596_v19 = vpop.f32.mrb[66].mxu0 }
 0x453   : > { %v3616_v60 = vadd.f32 %v3596_v19, %v3448_v17  ;;  %v6274_v47 = vpop.f32.mrb[67].mxu0 }
 0x455   : > { %v3441_v39 = vpop.f32.mrb[68].mxu1 }
 0x456   : > { %v3451_v61 = vadd.f32 %v3441_v39, %v3275_v54  ;;  %v6267_v33 = vpop.f32.mrb[69].mxu1 }
 0x457   : > { %v3444_v27 = vpop.f32.mrb[70].mxu1 }
 0x458   : > { %v3601_v35 = vpop.f32.mrb[68].mxu0  ;;  %v6268_v18 = vpop.f32.mrb[71].mxu1 }
 0x459   : > { %v3617_v28 = vadd.f32 %v3601_v35, %v3449_v49  ;;  %v6277_v23 = vpop.f32.mrb[69].mxu0 }
 0x45a   : > { %v3604_v9 = vpop.f32.mrb[70].mxu0 }
 0x45b   : > { %v3618_v41 = vadd.f32 %v3604_v9, %v3450_v32  ;;  %v6278_v13 = vpop.f32.mrb[71].mxu0 }
 0x45d   : > { %v3769_v29 = vpop.f32.mrb[72].mxu1 }
 0x45e   : > { %v3791_v56 = vadd.f32 %v3769_v29, %v3615_v14  ;;  %v6289_v6 = vpop.f32.mrb[73].mxu1 }
 0x45f   : > { %v3772_v20 = vpop.f32.mrb[74].mxu1 }
 0x460   : > { %v3609_v1 = vpop.f32.mrb[72].mxu0  ;;  %v3792_v31 = vadd.f32 %v3772_v20, %v3616_v60  ;;  %v6290_v38 = vpop.f32.mrb[75].mxu1 }
 0x461   : > { %v3619_v46 = vadd.f32 %v3609_v1, %v3451_v61  ;;  %v6281_v59 = vpop.f32.mrb[73].mxu0 }
 0x462   : > { %v3612_v16 = vpop.f32.mrb[74].mxu0 }
 0x463   : > { %v6282_v62 = vpop.f32.mrb[75].mxu0 }
 0x465   : > { %v3777_v34 = vpop.f32.mrb[76].mxu1 }
 0x466   : > { %v3793_v57 = vadd.f32 %v3777_v34, %v3617_v28  ;;  %v6293_v55 = vpop.f32.mrb[77].mxu1 }
 0x467   : > { %v3780_v30 = vpop.f32.mrb[78].mxu1 }
 0x468   : > { %v3913_v53 = vpop.f32.mrb[76].mxu0  ;;  %v3794_v8 = vadd.f32 %v3780_v30, %v3618_v41  ;;  %v6294_v36 = vpop.f32.mrb[79].mxu1 }
 0x469   : > { %v3935_v63 = vadd.f32 %v3913_v53, %v3791_v56  ;;  %v6303_v7 = vpop.f32.mrb[77].mxu0 }
 0x46a   : > { %v3916_v50 = vpop.f32.mrb[78].mxu0 }
 0x46b   : > { %v3936_v43 = vadd.f32 %v3916_v50, %v3792_v31  ;;  %v6304_v12 = vpop.f32.mrb[79].mxu0 }
 0x46c   : > { %v8989_v12 = vld [vmem:[#allocation11] ss:$0 sm:$0xff] }
 0x46d   : > { %v3785_v10 = vpop.f32.mrb[80].mxu1 }
 0x46e   : > { %v3795_v42 = vadd.f32 %v3785_v10, %v3619_v46  ;;  %v6297_v21 = vpop.f32.mrb[81].mxu1 }
 0x46f   : > { %v3788_v58 = vpop.f32.mrb[82].mxu1 }
 0x470   : > { %v3921_v25 = vpop.f32.mrb[80].mxu0  ;;  %v6298_v3 = vpop.f32.mrb[83].mxu1 }
 0x471   : > { %v3937_v2 = vadd.f32 %v3921_v25, %v3793_v57  ;;  %v6307_v37 = vpop.f32.mrb[81].mxu0 }
 0x472   : > { %v3924_v54 = vpop.f32.mrb[82].mxu0 }
 0x473   : > { %v3938_v5 = vadd.f32 %v3924_v54, %v3794_v8  ;;  %v6308_v44 = vpop.f32.mrb[83].mxu0 }
 0x475   : > { %v4116_v17 = vpop.f32.mrb[84].mxu1 }
 0x476   : > { %v4138_v11 = vadd.f32 %v4116_v17, %v3935_v63  ;;  %v6319_v0 = vpop.f32.mrb[85].mxu1 }
 0x477   : > { %v4119_v26 = vpop.f32.mrb[86].mxu1 }
 0x478   : > { %v3929_v40 = vpop.f32.mrb[84].mxu0  ;;  %v4139_v48 = vadd.f32 %v4119_v26, %v3936_v43  ;;  %v6320_v15 = vpop.f32.mrb[87].mxu1 }
 0x479   : > { %v3939_v45 = vadd.f32 %v3929_v40, %v3795_v42  ;;  %v6311_v49 = vpop.f32.mrb[85].mxu0 }
 0x47a   : > { %v3932_v14 = vpop.f32.mrb[86].mxu0 }
 0x47b   : > { %v6312_v24 = vpop.f32.mrb[87].mxu0 }
 0x47d   : > { %v4124_v32 = vpop.f32.mrb[88].mxu1 }
 0x47e   : > { %v4140_v52 = vadd.f32 %v4124_v32, %v3937_v2  ;;  %v6323_v19 = vpop.f32.mrb[89].mxu1 }
 0x47f   : > { %v4127_v39 = vpop.f32.mrb[90].mxu1 }
 0x480   : > { %v4260_v60 = vpop.f32.mrb[88].mxu0  ;;  %v4141_v33 = vadd.f32 %v4127_v39, %v3938_v5  ;;  %v6324_v35 = vpop.f32.mrb[91].mxu1 }
 0x481   : > { %v4282_v47 = vadd.f32 %v4260_v60, %v4138_v11  ;;  %v6333_v61 = vpop.f32.mrb[89].mxu0 }
 0x482   : > { %v4263_v28 = vpop.f32.mrb[90].mxu0 }
 0x483   : > { %v4283_v27 = vadd.f32 %v4263_v28, %v4139_v48  ;;  %v6334_v23 = vpop.f32.mrb[91].mxu0 }
 0x485   : > { %v4132_v18 = vpop.f32.mrb[92].mxu1 }
 0x486   : > { %v4142_v9 = vadd.f32 %v4132_v18, %v3939_v45  ;;  %v6327_v41 = vpop.f32.mrb[93].mxu1 }
 0x487   : > { %v4135_v56 = vpop.f32.mrb[94].mxu1 }
 0x488   : > { %v4268_v13 = vpop.f32.mrb[92].mxu0  ;;  %v6328_v6 = vpop.f32.mrb[95].mxu1 }
 0x489   : > { %v4284_v29 = vadd.f32 %v4268_v13, %v4140_v52  ;;  %v6337_v1 = vpop.f32.mrb[93].mxu0 }
 0x48a   : > { %v4271_v46 = vpop.f32.mrb[94].mxu0 }
 0x48b   : > { %v4285_v59 = vadd.f32 %v4271_v46, %v4141_v33  ;;  %v6338_v20 = vpop.f32.mrb[95].mxu0 }
 0x48d   : > { %v4404_v31 = vpop.f32.mrb[96].mxu1 }
 0x48e   : > { %v4426_v16 = vadd.f32 %v4404_v31, %v4282_v47  ;;  %v6349_v62 = vpop.f32.mrb[97].mxu1 }
 0x48f   : > { %v4407_v55 = vpop.f32.mrb[98].mxu1 }
 0x490   : > { %v4276_v38 = vpop.f32.mrb[96].mxu0  ;;  %v4427_v53 = vadd.f32 %v4407_v55, %v4283_v27  ;;  %v6350_v30 = vpop.f32.mrb[99].mxu1 }
 0x491   : > { %v4286_v34 = vadd.f32 %v4276_v38, %v4142_v9  ;;  %v6341_v57 = vpop.f32.mrb[97].mxu0 }
 0x492   : > { %v4279_v63 = vpop.f32.mrb[98].mxu0 }
 0x493   : > { %v6342_v7 = vpop.f32.mrb[99].mxu0 }
 0x495   : > { %v4412_v8 = vpop.f32.mrb[100].mxu1 }
 0x496   : > { %v4428_v36 = vadd.f32 %v4412_v8, %v4284_v29  ;;  %v6353_v50 = vpop.f32.mrb[101].mxu1 }
 0x497   : > { %v4415_v42 = vpop.f32.mrb[102].mxu1 }
 0x498   : > { %v4540_v43 = vpop.f32.mrb[100].mxu0  ;;  %v4429_v25 = vadd.f32 %v4415_v42, %v4285_v59  ;;  %v6354_v2 = vpop.f32.mrb[103].mxu1 }
 0x499   : > { %v4562_v10 = vadd.f32 %v4540_v43, %v4426_v16  ;;  %v6363_v21 = vpop.f32.mrb[101].mxu0 }
 0x49a   : > { %v4543_v58 = vpop.f32.mrb[102].mxu0 }
 0x49b   : > { %v4574_v37 = vadd.f32 %v8989_v12, %v4562_v10  ;;  %v4563_v3 = vadd.f32 %v4543_v58, %v4427_v53  ;;  %v6364_v54 = vpop.f32.mrb[103].mxu0 }
 0x49d   : > { %v4575_v5 = vadd.f32 %v8989_v12, %v4563_v3  ;;  %v4579_v44 = vmax.f32 %v4574_v37, 0.0  ;;  %v4420_v11 = vpop.f32.mrb[104].mxu1 }
 0x49e   : > { %v4430_v40 = vadd.f32 %v4420_v11, %v4286_v34  ;;  %v6357_v0 = vpop.f32.mrb[105].mxu1 }
 0x49f   : > { %v4580_v17 = vmax.f32 %v4575_v5, 0.0  ;;  %v4423_v14 = vpop.f32.mrb[106].mxu1 }
 0x4a0   : > { %v4548_v45 = vpop.f32.mrb[104].mxu0  ;;  %v6358_v24 = vpop.f32.mrb[107].mxu1 }
 0x4a1   : > { %v4584_v49 = vpack.c.bf16 %v4580_v17, %v4579_v44  ;;  %v5950_v26 = vpack.c.bf16 %v4580_v17, %v4580_v17  ;;  %v4564_v48 = vadd.f32 %v4548_v45, %v4428_v36  ;;  %v6367_v15 = vpop.f32.mrb[105].mxu0 }
 0x4a2   : > { %v4551_v32 = vpop.f32.mrb[106].mxu0 }
 0x4a3   : > { %v4597_v52 = vrot.slane %v4584_v49, %v7334_v22  ;;  %v4604_v19 = vrot.slane %v5950_v26, %v7334_v22  ;;  %v4565_v60 = vadd.f32 %v4551_v32, %v4429_v25  ;;  %v6368_v47 = vpop.f32.mrb[107].mxu0  ;;  %v4576_v39 = vadd.f32 %v8989_v12, %v4564_v48 }
 0x4a5   : > { %v4605_v61 = vcombine.high %v4597_v52, %v4597_v52  ;;  %v4606_v33 = vcombine.high %v4604_v19, %v4604_v19  ;;  %v4613_v35 = vrot.slane %v4597_v52, %v7334_v22  ;;  %v4620_v28 = vrot.slane %v4604_v19, %v7334_v22 }
 0x4a6   : > { %v4577_v27 = vadd.f32 %v8989_v12, %v4565_v60  ;;  %v4581_v1 = vmax.f32 %v4576_v39, 0.0 }
 0x4a7   : > { %v4627_v23 = vrot.slane %v4605_v61, %v7334_v22  ;;  %v4634_v18 = vrot.slane %v4606_v33, %v7334_v22  ;;  %v4635_v9 = vcombine.high %v4613_v35, %v4613_v35  ;;  %v4636_v41 = vcombine.high %v4620_v28, %v4620_v28 }
 0x4a8   : > { %v4713_v13 = vshrl.u32 %v4613_v35, 16  ;;  %v4735_v29 = vshll.u32 %v4620_v28, 16  ;;  %v4738_v56 = vshrl.u32 %v4620_v28, 16  ;;  %v4556_v6 = vpop.f32.mrb[108].mxu0  ;;  %v4582_v57 = vmax.f32 %v4577_v27, 0.0 }
 0x4a9   : > { %v4637_v46 = vcombine.high %v4627_v23, %v4627_v23  ;;  %v4638_v59 = vcombine.high %v4634_v18, %v4634_v18  ;;  %v4718_v20 = vshll.u32 %v4627_v23, 16  ;;  %v4721_v31 = vshrl.u32 %v4627_v23, 16  ;;  %v6371_v16 = vpop.f32.mrb[109].mxu0 }
 0x4aa   : > { %v4726_v38 = vshll.u32 %v4635_v9, 16  ;;  %v4743_v62 = vshll.u32 %v4634_v18, 16  ;;  %v4882_v34 = vcombine.low %v4613_v35, %v4627_v23  ;;  %v4559_v55 = vpop.f32.mrb[110].mxu0  ;;  %v4747_v30 = vshrl.u32 %v4636_v41, 16 }
 0x4ab   : > { %v4720_v53 = vsel %vm7544_vm5, %v4713_v13, %v4718_v20  ;;  %v4730_v63 = vshrl.u32 %v4637_v46, 16  ;;  %v4752_v7 = vshll.u32 %v4638_v59, 16  ;;  %v6372_v8 = vpop.f32.mrb[111].mxu0  ;;  %v4755_v43 = vshrl.u32 %v4638_v59, 16 }
 0x4ac   : > { %v4728_v36 = vsel %vm7544_vm5, %v4721_v31, %v4726_v38  ;;  %v4745_v50 = vsel %vm7544_vm5, %v4738_v56, %v4743_v62  ;;  %v5962_v10 = vcombine.high %v4620_v28, %v4634_v18  ;;  %v4984_v25 = vcombine.low %v4627_v23, %v4635_v9 }
 0x4ad   : > { %v4737_v42 = vsel %vm7544_vm5, %v4730_v63, %v4735_v29  ;;  %v4783_v21 = vcombine.low %v4720_v53, %v4728_v36  ;;  %v4985_v2 = vcombine.low %v4620_v28, %v4634_v18  ;;  %v9010_v37 = vrot.slane %v4882_v34, %v7334_v22 }
 0x4ae   : > { %v4784_v58 = vcombine.low %v4737_v42, %v4745_v50  ;;  %v4585_v3 = vpack.c.bf16 %v4582_v57, %v4581_v1  ;;  %v5951_v54 = vpack.c.bf16 %v4582_v57, %v4582_v57  ;;  %v4994_v5 = vrot.slane %v4984_v25, %v7334_v22 }
 0x4af   : > { %v9014_v44 = vrot.slane %v4985_v2, %v7334_v22  ;;  %v4754_v17 = vsel %vm7544_vm5, %v4747_v30, %v4752_v7  ;;  %v4566_v11 = vadd.f32 %v4556_v6, %v4430_v40  ;;  %v4883_v26 = vcombine.low %v4637_v46, %v4620_v28 }
 0x4b0   : > { %v4646_v0 = vrot.slane %v4585_v3, %v7334_v22  ;;  %v4653_v45 = vrot.slane %v5951_v54, %v7334_v22  ;;  %v9021_v49 = vrot.slane %v4784_v58, %v7334_v22  ;;  %v4793_v48 = vrot.slane %v4783_v21, %v7334_v22 }
 0x4b1   : > { %v5016_v14 = vcombine.low %v4994_v5, %v9014_v44  ;;  %v4578_v15 = vadd.f32 %v8989_v12, %v4566_v11  ;;  %v9027_v24 = vrot.slane %v5962_v10, %v7334_v22  ;;  %v9034_v61 = vrot.slane %v4883_v26, %v7334_v22  ;;  %v6583_v11 = vld [vmem:[#allocation13 + $0x20] sm:$0xff]  }
 0x4b2   : > { %v4654_v32 = vcombine.high %v4646_v0, %v4646_v0  ;;  %v4655_v52 = vcombine.high %v4653_v45, %v4653_v45  ;;  %v4662_v40 = vrot.slane %v4646_v0, %v7334_v22  ;;  %v4669_v19 = vrot.slane %v4653_v45, %v7334_v22 }
 0x4b3   : > { %v4583_v60 = vmax.f32 %v4578_v15, 0.0  ;;  %v5024_v47 = vrot.slane %v5016_v14, %v7334_v22  ;;  %v4815_v39 = vcombine.low %v4793_v48, %v9021_v49  ;;  %v4914_v15 = vcombine.low %v9010_v37, %v9034_v61 }
 0x4b4   : > { %v4676_v33 = vrot.slane %v4654_v32, %v7334_v22  ;;  %v4683_v12 = vrot.slane %v4655_v52, %v7334_v22  ;;  %v4684_v35 = vcombine.high %v4662_v40, %v4662_v40  ;;  %v4685_v28 = vcombine.high %v4669_v19, %v4669_v19 }
 0x4b5   : > { %v4760_v27 = vshll.u32 %v4662_v40, 16  ;;  %v4986_v23 = vcombine.low %v4638_v59, %v4662_v40  ;;  %v5166_v18 = vshrl.u32 %v4669_v19, 16  ;;  %v4586_v9 = vpack.c.bf16 %v4583_v60, %v4583_v60 }
 0x4b6   : > { %v4686_v41 = vcombine.high %v4676_v33, %v4676_v33  ;;  %v4764_v13 = vshrl.u32 %v4676_v33, 16  ;;  %v4769_v29 = vshll.u32 %v4684_v35, 16  ;;  %v4772_v56 = vshrl.u32 %v4684_v35, 16 }
 0x4b7   : > { %v4762_v1 = vsel %vm7544_vm5, %v4755_v43, %v4760_v27  ;;  %v4885_v6 = vcombine.low %v4676_v33, %v4684_v35  ;;  %v5965_v46 = vcombine.high %v4662_v40, %v4676_v33  ;;  %v9041_v20 = vrot.slane %v4986_v23, %v7334_v22 }
 0x4b8   : > { %v4771_v31 = vsel %vm7544_vm5, %v4764_v13, %v4769_v29  ;;  %v4777_v16 = vshll.u32 %v4686_v41, 16  ;;  %v4785_v38 = vcombine.low %v4754_v17, %v4762_v1  ;;  %v5088_v59 = vcombine.low %v4669_v19, %v4683_v12 }
 0x4b9   : > { %v9046_v62 = vrot.slane %v5965_v46, %v7334_v22  ;;  %v5171_v34 = vshll.u32 %v4683_v12, 16  ;;  %v5174_v57 = vshrl.u32 %v4683_v12, 16  ;;  %v5179_v55 = vshll.u32 %v4685_v28, 16 }
 0x4ba   : > { %v4779_v53 = vsel %vm7544_vm5, %v4772_v56, %v4777_v16  ;;  %v5095_v63 = vrot.slane %v5088_v59, %v7334_v22  ;;  %v5265_v30 = vcombine.low %v4683_v12, %v4685_v28  ;;  %v4687_v7 = vcombine.high %v4683_v12, %v4683_v12  ;;  %v6582_v28 = vld [vmem:[#allocation13] sm:$0xff]  }
 0x4bb   : > { %v4786_v8 = vcombine.low %v4771_v31, %v4779_v53  ;;  %v5017_v36 = vcombine.low %v9041_v20, %v9046_v62  ;;  %v5173_v50 = vsel %vm7544_vm5, %v5166_v18, %v5171_v34  ;;  %v5181_v43 = vsel %vm7544_vm5, %v5174_v57, %v5179_v55 }
 0x4bc   : > { %v5185_v10 = vcombine.low %v5173_v50, %v5181_v43  ;;  %v4694_v42 = vrot.slane %v4586_v9, %v7334_v22  ;;  %v5272_v21 = vrot.slane %v5265_v30, %v7334_v22  ;;  %v5415_v25 = vshrl.u32 %v4687_v7, 16  ;;  %v6587_v43 = vld [vmem:[#allocation13 + $0x40] sm:$0xff]  }
 0x4bd   : > { %v9060_v2 = vrot.slane %v5017_v36, %v7334_v22  ;;  %v4807_v58 = vrot.slane %v4785_v38, %v7334_v22  ;;  %v4814_v3 = vrot.slane %v4786_v8, %v7334_v22  ;;  %v4823_v54 = vrot.slane %v4815_v39, %v7334_v22  ;;  %v6585_v38 = vld [vmem:[#allocation13 + $0x30] sm:$0xff]   ;;  %v6584_v36 = vld [vmem:[#allocation13 + $0x18] sm:$0xff]  }
 0x4be   : > { %v4695_v5 = vcombine.high %v4694_v42, %v4694_v42  ;;  %v4702_v17 = vrot.slane %v4694_v42, %v7334_v22  ;;  %v5192_v0 = vrot.slane %v5185_v10, %v7334_v22  ;;  %v4913_v45 = vrot.slane %v4885_v6, %v7334_v22  ;;  %v6586_v10 = vld [vmem:[#allocation13 + $0x28] sm:$0xff]  }
 0x4bf   : > { %v5032_v26 = vcombine.low %v5024_v47, %v9060_v2  ;;  %v4816_v48 = vcombine.low %v4807_v58, %v4814_v3  ;;  %v5193_v14 = vcombine.low %v9021_v49, %v4807_v58  ;;  %v4922_v18 = vrot.slane %v4914_v15, %v7334_v22 }
 0x4c0   : > { %v4709_v32 = vrot.slane %v4695_v5, %v7334_v22  ;;  %v5345_v52 = vcombine.low %v4687_v7, %v4702_v17  ;;  %v5420_v40 = vshll.u32 %v4702_v17, 16  ;;  %v5423_v19 = vshrl.u32 %v4702_v17, 16 }
 0x4c1   : > { %6388 = vmatmul.mubr.msk.bf16.vlgmr.msra.gmra.mrb[112].mxu0 %vm1089_vm2, %v5032_v26  ;;  %v9075_v60 = vrot.slane %v4816_v48, %v7334_v22  ;;  %v5194_v39 = vcombine.low %v4814_v3, %v5192_v0  ;;  %v5201_v33 = vrot.slane %v5193_v14, %v7334_v22  ;;  %v4915_v47 = vcombine.low %v9027_v24, %v4913_v45 }
 0x4c2   : > { %v5352_v49 = vrot.slane %v5345_v52, %v7334_v22  ;;  %v5422_v37 = vsel %vm7544_vm5, %v5415_v25, %v5420_v40  ;;  %v5428_v12 = vshll.u32 %v4709_v32, 16  ;;  %v5506_v35 = vcombine.low %v4702_v17, %v4709_v32  ;;  %6398 = vmatpush3.bf16.msra.mxu0 %v6583_v11  ;;  %6399 = vmatprep.mubr.msk.bf16.mxu0 %vm6918_vm0, %v9377_v4 }
 0x4c3   : > { %v4831_v27 = vcombine.low %v4823_v54, %v9075_v60  ;;  %v5208_v23 = vrot.slane %v5194_v39, %v7334_v22  ;;  %6409 = vmatprep.subr.bf16.mxu0 %v9377_v4  ;;  %v4929_v9 = vrot.slane %v4915_v47, %v7334_v22  ;;  %v5096_v56 = vcombine.low %v9034_v61, %v9027_v24 }
 0x4c4   : > { %v5430_v41 = vsel %vm7544_vm5, %v5423_v19, %v5428_v12  ;;  %v5513_v13 = vrot.slane %v5506_v35, %v7334_v22  ;;  %v5353_v29 = vcombine.low %v5095_v63, %v5352_v49  ;;  %v5097_v31 = vcombine.low %v4913_v45, %v5095_v63 }
 0x4c5   : > { %v5434_v1 = vcombine.low %v5422_v37, %v5430_v41  ;;  %6376 = vmatmul.mubr.msk.bf16.vlgmr.msra.gmra.mrb[108].mxu1 %vm1089_vm2, %v4831_v27  ;;  %v5209_v6 = vcombine.low %v5201_v33, %v5208_v23  ;;  %v4930_v46 = vcombine.low %v4922_v18, %v4929_v9  ;;  %v5104_v59 = vrot.slane %v5096_v56, %v7334_v22 }
 0x4c6   : > { %v5514_v16 = vcombine.low %v5272_v21, %v5513_v13  ;;  %6380 = vmatpush3.bf16.msra.mxu1 %v6582_v28  ;;  %6381 = vmatprep.mubr.msk.bf16.mxu1 %vm6918_vm0, %v9377_v4  ;;  %v5360_v51 = vrot.slane %v5353_v29, %v7334_v22  ;;  %v5111_v24 = vrot.slane %v5097_v31, %v7334_v22 }
 0x4c7   : > { %6391 = vmatprep.subr.bf16.mxu1 %v9377_v4  ;;  %v5273_v61 = vcombine.low %v9014_v44, %v9041_v20  ;;  %v5274_v34 = vcombine.low %v9046_v62, %v5272_v21  ;;  %v5441_v57 = vrot.slane %v5434_v1, %v7334_v22 }
 0x4c8   : > { %v5361_v55 = vcombine.low %v4929_v9, %v5360_v51  ;;  %v5521_v53 = vrot.slane %v5514_v16, %v7334_v22  ;;  %v5112_v63 = vcombine.low %v5104_v59, %v5111_v24 }
 0x4c9   : > { %6400 = vmatmul.mubr.msk.bf16.vlgmr.msra.gmra.mrb[116].mxu0 %vm1089_vm2, %v5209_v6  ;;  %v5281_v30 = vrot.slane %v5273_v61, %v7334_v22  ;;  %v5288_v7 = vrot.slane %v5274_v34, %v7334_v22  ;;  %v5442_v8 = vcombine.low %v5192_v0, %v5441_v57  ;;  %v5984_v61 = vld [vmem:[#allocation14] ss:$0 sm:$0xff] }
 0x4ca   : > { %6410 = vmatpush3.bf16.msra.mxu0 %v6585_v38  ;;  %6411 = vmatprep.mubr.msk.bf16.mxu0 %vm6918_vm0, %v9377_v4  ;;  %v5522_v44 = vcombine.low %v9060_v2, %v5521_v53 }
 0x4cb   : > { %6421 = vmatprep.subr.bf16.mxu0 %v9377_v4  ;;  %v5289_v20 = vcombine.low %v5281_v30, %v5288_v7  ;;  %v5449_v62 = vrot.slane %v5442_v8, %v7334_v22  ;;  %v6588_v22 = vld [vmem:[#allocation13 + $0x38] sm:$0xff]  }
 0x4cd   : > { %6382 = vmatmul.mubr.msk.bf16.vlgmr.msra.gmra.mrb[112].mxu1 %vm1089_vm2, %v4930_v46  ;;  %v5450_v50 = vcombine.low %v9075_v60, %v5449_v62 }
 0x4ce   : > { %6392 = vmatpush3.bf16.msra.mxu1 %v6584_v36  ;;  %6393 = vmatprep.mubr.msk.bf16.mxu1 %vm6918_vm0, %v9377_v4 }
 0x4cf   : > { %6403 = vmatprep.subr.bf16.mxu1 %v9377_v4 }
 0x4d1   : > { %6412 = vmatmul.mubr.msk.bf16.vlgmr.msra.gmra.mrb[120].mxu0 %vm1089_vm2, %v5361_v55 }
 0x4d2   : > { %6422 = vmatpush3.bf16.msra.mxu0 %v6587_v43  ;;  %6423 = vmatprep.mubr.msk.bf16.mxu0 %vm6918_vm0, %v9377_v4 }
 0x4d5   : > { %6394 = vmatmul.mubr.msk.bf16.vlgmr.msra.gmra.mrb[116].mxu1 %vm1089_vm2, %v5112_v63 }
 0x4d6   : > { %6404 = vmatpush3.bf16.msra.mxu1 %v6586_v10  ;;  %6405 = vmatprep.mubr.msk.bf16.mxu1 %vm6918_vm0, %v9377_v4 }
 0x4d7   : > { %6415 = vmatprep.subr.bf16.mxu1 %v9377_v4 }
 0x4d9   : > { %6424 = vmatmul.mubr.msk.bf16.vlgmr.msra.gmra.mrb[124].mxu0 %vm1089_vm2, %v5522_v44 }
 0x4dd   : > { %6406 = vmatmul.mubr.msk.bf16.vlgmr.msra.gmra.mrb[120].mxu1 %vm1089_vm2, %v5289_v20 }
 0x4de   : > { %6416 = vmatpush3.bf16.msra.mxu1 %v6588_v22  ;;  %6417 = vmatprep.mubr.msk.bf16.mxu1 %vm6918_vm0, %v9377_v4  ;;  %vm5596_vm0 = vcmask 123904  }
 0x4e5   : > { %6418 = vmatmul.mubr.msk.bf16.vlgmr.msra.gmra.mrb[124].mxu1 %vm1089_vm2, %v5450_v50 }
 0x594   : > { %v5076_v42 = vpop.f32.mrb[112].mxu0 }
 0x595   : > { %v6389_v21 = vpop.f32.mrb[113].mxu0 }
 0x596   : > { %v5079_v25 = vpop.f32.mrb[114].mxu0 }
 0x597   : > { %v6390_v2 = vpop.f32.mrb[115].mxu0 }
 0x598   : > { %v4875_v58 = vpop.f32.mrb[108].mxu1 }
 0x599   : > { %v6377_v3 = vpop.f32.mrb[109].mxu1 }
 0x59a   : > { %v4878_v54 = vpop.f32.mrb[110].mxu1 }
 0x59b   : > { %v6378_v5 = vpop.f32.mrb[111].mxu1 }
 0x59c   : > { %v5253_v17 = vpop.f32.mrb[116].mxu0 }
 0x59d   : > { %v6401_v11 = vpop.f32.mrb[117].mxu0 }
 0x59e   : > { %v5256_v0 = vpop.f32.mrb[118].mxu0 }
 0x59f   : > { %v6402_v45 = vpop.f32.mrb[119].mxu0 }
 0x5a0   : > { %v4974_v26 = vpop.f32.mrb[112].mxu1 }
 0x5a1   : > { %v4975_v48 = vadd.f32 %v4974_v26, %v4875_v58  ;;  %v6383_v14 = vpop.f32.mrb[113].mxu1 }
 0x5a2   : > { %v4977_v15 = vpop.f32.mrb[114].mxu1 }
 0x5a3   : > { %v4978_v32 = vadd.f32 %v4977_v15, %v4878_v54  ;;  %v6384_v4 = vpop.f32.mrb[115].mxu1  ;;  %v5083_v52 = vadd.f32 %v5076_v42, %v4975_v48 }
 0x5a4   : > { %v5405_v40 = vpop.f32.mrb[120].mxu0 }
 0x5a5   : > { %v6413_v19 = vpop.f32.mrb[121].mxu0  ;;  %v5084_v60 = vadd.f32 %v5079_v25, %v4978_v32 }
 0x5a6   : > { %v5408_v39 = vpop.f32.mrb[122].mxu0 }
 0x5a7   : > { %v6414_v33 = vpop.f32.mrb[123].mxu0 }
 0x5a8   : > { %v5156_v47 = vpop.f32.mrb[116].mxu1 }
 0x5a9   : > { %v5163_v49 = vadd.f32 %v5156_v47, %v5083_v52  ;;  %v6395_v37 = vpop.f32.mrb[117].mxu1 }
 0x5aa   : > { %v5159_v12 = vpop.f32.mrb[118].mxu1 }
 0x5ab   : > { %v5164_v35 = vadd.f32 %v5159_v12, %v5084_v60  ;;  %v6396_v28 = vpop.f32.mrb[119].mxu1  ;;  %v5260_v27 = vadd.f32 %v5253_v17, %v5163_v49 }
 0x5ac   : > { %v5566_v23 = vpop.f32.mrb[124].mxu0 }
 0x5ad   : > { %v6425_v18 = vpop.f32.mrb[125].mxu0  ;;  %v5261_v9 = vadd.f32 %v5256_v0, %v5164_v35 }
 0x5ae   : > { %v5569_v41 = vpop.f32.mrb[126].mxu0 }
 0x5af   : > { %v6426_v13 = vpop.f32.mrb[127].mxu0 }
 0x5b0   : > { %v5333_v29 = vpop.f32.mrb[120].mxu1 }
 0x5b1   : > { %v5340_v56 = vadd.f32 %v5333_v29, %v5260_v27  ;;  %v6407_v1 = vpop.f32.mrb[121].mxu1 }
 0x5b2   : > { %v5336_v6 = vpop.f32.mrb[122].mxu1 }
 0x5b3   : > { %v5341_v46 = vadd.f32 %v5336_v6, %v5261_v9  ;;  %v6408_v31 = vpop.f32.mrb[123].mxu1  ;;  %v5412_v16 = vadd.f32 %v5405_v40, %v5340_v56 }
 0x5b5   : > { %v5413_v38 = vadd.f32 %v5408_v39, %v5341_v46 }
 0x5b8   : > { %v5494_v51 = vpop.f32.mrb[124].mxu1 }
 0x5b9   : > { %v5501_v59 = vadd.f32 %v5494_v51, %v5412_v16  ;;  %v6419_v24 = vpop.f32.mrb[125].mxu1 }
 0x5ba   : > { %v5497_v34 = vpop.f32.mrb[126].mxu1 }
 0x5bb   : > { %v5573_v57 = vadd.f32 %v5566_v23, %v5501_v59  ;;  %v5502_v55 = vadd.f32 %v5497_v34, %v5413_v38  ;;  %v6420_v53 = vpop.f32.mrb[127].mxu1 }
 0x5bd   : > { %v5582_v63 = vadd.f32 %v5984_v61, %v5573_v57  ;;  %v5574_v30 = vadd.f32 %v5569_v41, %v5502_v55 }
 0x5bf   : > { %v5584_v7 = vmax.f32 %v5582_v63, 0.0  ;;  %v5583_v8 = vadd.f32 %v5984_v61, %v5574_v30 }
 0x5c1   : > { %v5588_v36 = vcombine.high %v5584_v7, %v5584_v7  ;;  %v5592_v44 = vpack.c.bf16 %v5584_v7, %v5584_v7  ;;  %v5585_v20 = vmax.f32 %v5583_v8, 0.0 }
 0x5c3   : > { %v5593_v62 = vpack.c.bf16 %v5588_v36, %v5588_v36  ;;  %5597 = vst.msk [vmem:[%s446_s10] sm:$0x3] %vm5596_vm0, %v5592_v44  ;;  %v5589_v50 = vcombine.high %v5585_v20, %v5585_v20  ;;  %v5594_v43 = vpack.c.bf16 %v5585_v20, %v5585_v20 }
 0x5c5   : > { %5598 = vst.msk [vmem:[%s446_s10 + $0x2] sm:$0x3] %vm5596_vm0, %v5593_v62  ;;  %v5595_v10 = vpack.c.bf16 %v5589_v50, %v5589_v50  ;;  %5599 = vst.msk [vmem:[%s446_s10 + $0x4] sm:$0x3] %vm5596_vm0, %v5594_v43 }
 0x5c7   : > { %5600 = vst.msk [vmem:[%s446_s10 + $0x6] sm:$0x3] %vm5596_vm0, %v5595_v10 }
 0x5c8   : > { %6830 = shalt.err (!%p6827_p3)
}
 0x5c9   : > { %s6831_s20 = scalar_lea.hbm %s9138_s0, 128  ;;  %s6835_s4 = scalar_lea.hbm %s9195_s8, 256 }
 0x5ca   : > { %p6832_p12 = scmp.ne.s32.totalorder %s9138_s0, %s6831_s20  ;;  %p6836_p0 = scmp.lt.u32.totalorder %s9138_s0, %s9195_s8 }
 0x5cb   : > { %p6837_p6 = scmp.lt.u32.totalorder %s6835_s4, %s6831_s20  ;;  %p6839_p4 = scmp.lt.u32.totalorder %s6831_s20, %s9138_s0 }
 0x5cc   : > { %p6833_p1 = pnand %p6832_p12, %p9471_p10 }
 0x5cd   : > { %p6838_p2 = por %p6837_p6, %p6836_p0 }
 0x5ce   : > { %p6834_p13 = pneg %p6833_p1 }
 0x5cf   : > { %p6840_p5 = por %p6839_p4, %p6838_p2 }
 0x5d1   : > { %p6841_p7 = pnand %p6840_p5, %p6834_p13 }
 0x5d3   : > { %6844 = shalt.err (!%p6841_p7)
}
 0x5d4   : > { %s6924_s18 = smov 32   ;;  %s6925_s21 = smov 2  }
 0x5d5   : > { %6455 = dma.vmem_to_hbm [thread:$0]  (%p9471_p10), %s9140_s24, 128, %s9138_s0, %s5602_s11, %s6924_s18, %s6924_s18, %s6925_s21  }
 0x5d6 PF: > { %s5630_s19 = sand.u32 1, %s6891_s27   ;;  %p9472_p9 = scmp.ne.s32.totalorder %s9295_s17, 0 }
 0x5d7   : > { %p9473_p8 = scmp.ge.s32.totalorder %s6903_s30, 2  ;;  %s5631_s3 = scalar_lea.sflag [#allocation4], %s5630_s19 }
 0x5d9   : > { %p6484_p11 = pnand %p9473_p8, %p9472_p9 }
 0x5db   : > { %6886 = dma.done.wait (!%p6484_p11), %s5631_s3, 128  }
 0x5dc   : > { %6888 = vsyncadd (!%p6484_p11), %s5631_s3, 4294967168  ;;  %p27_p3 = scmp.ge.s32.totalorder %s7160_s15, 4   ;;  %s9474_s27 = smov %s6895_s28 }
 0x5dd   : > { %s9475_s28 = smov %s6899_s29  ;;  %s9476_s29 = smov %s7171_s26 }
 0x5de   : > { %s9477_s30 = smov %s7160_s15  ;;  %29 = sbr.rel (!%p27_p3) target bundleno = 18 (0x12), region = 158 }
 0x5e5   :  { %5636 = vsyncpa [#allocation3], 1 }
 0x5e6   :  { %5638 = vsyncpa [#allocation3 + $0x1], 1 }
 0x5e7   :  { %5639 = vsyncpa [#allocation6], 1 }
 0x5e8   :  { %5641 = vsyncpa [#allocation6 + $0x1], 1 }
 0x5e9   :  { %5642 = vsyncpa [#allocation9], 1 }
 0x5ea   :  { %5643 = vsyncpa [#allocation12], 1 }
 0x5eb   :  { %5644 = vsyncpa [#allocation15], 1 }
 0x5ec   :  { %5645 = vsyncpa [#allocation4], 1 }
 0x5ed   :  { %5647 = vsyncpa [#allocation4 + $0x1], 1 }

// kernel: unet_upsample_forward.3
= control target key start
LH: loop header
LB: loop body
LE: loop exit
PB: predicated region body
PF: predicated region fallthrough
CT: control target
= control target key end

     0   :  { %s8965_s0 = inlined_call_operand.hbm [shape: bf16[2,4,4,16], index: 0, kind: input, shape index: {}]   ;;  %s8966_s1 = inlined_call_operand.hbm [shape: bf16[2,8,8,8], index: 1, kind: input, shape index: {}]   ;;  %s8967_s2 = inlined_call_operand.hbm [shape: bf16[16,64], index: 2, kind: input, shape index: {}]   ;;  %s8968_s3 = inlined_call_operand.hbm [shape: bf16[3,3,16,8], index: 3, kind: input, shape index: {}]   ;;  %s8969_s4 = inlined_call_operand.hbm [shape: bf16[3,3,8,8], index: 4, kind: input, shape index: {}]   ;;  %s8970_s5 = inlined_call_operand.hbm [shape: f32[1,8], index: 5, kind: input, shape index: {}]   ;;  %s8971_s6 = inlined_call_operand.hbm [shape: bf16[3,3,8,8], index: 6, kind: input, shape index: {}]   ;;  %s8972_s7 = inlined_call_operand.hbm [shape: f32[1,8], index: 7, kind: input, shape index: {}]   ;;  %s8973_s8 = inlined_call_operand.hbm [shape: bf16[2,4,4,8], index: 8, kind: output, shape index: {}]  }
   0x1   :  { %9053 = sst [smem:[#allocation83_spill]] %s8965_s0 }
   0x2   :  { %9054 = sst [smem:[#allocation84_spill]] %s8967_s2 }
   0x3   :  { %9055 = sst [smem:[#allocation85_spill]] %s8968_s3 }
   0x4   :  { %9056 = sst [smem:[#allocation86_spill]] %s8969_s4 }
   0x5   :  { %9057 = sst [smem:[#allocation87_spill]] %s8970_s5 }
   0x6   :  { %9058 = sst [smem:[#allocation88_spill]] %s8971_s6 }
   0x7   :  { %9059 = sst [smem:[#allocation89_spill]] %s8972_s7 }
   0x8   :  { %13 = vsyncpa [#allocation3], 0 }
   0x9   :  { %15 = vsyncpa [#allocation3 + $0x1], 0 }
   0xa   :  { %16 = vsyncpa [#allocation6], 0 }
   0xb   :  { %18 = vsyncpa [#allocation6 + $0x1], 0 }
   0xc   :  { %19 = vsyncpa [#allocation9], 0 }
   0xd   :  { %20 = vsyncpa [#allocation12], 0 }
   0xe   :  { %21 = vsyncpa [#allocation15], 0 }
   0xf   :  { %22 = vsyncpa [#allocation4], 0 }
  0x10   :  { %24 = vsyncpa [#allocation4 + $0x1], 0  ;;  %s6734_s27 = smov 0   ;;  %s6736_s28 = smov 0  }
  0x11   :  { %s6738_s29 = smov 0   ;;  %s6740_s30 = smov 0  }
  0x12 LB: > { %s6668_s9 = smov [#allocation7]   ;;  %s6755_s11 = sadd.s32 4294967295, %s6666_s30   ;;  %s6666_s30 = sphi %s6740_s30, %s9258_s30   ;;  %s6662_s29 = sphi %s6738_s29, %s9257_s29   ;;  %s6658_s28 = sphi %s6736_s28, %s9256_s28   ;;  %s6654_s27 = sphi %s6734_s27, %s9255_s27  }
  0x13   : > { %s251_s10 = sshll.u32 %s6668_s9, 4  ;;  %p5618_p0 = scmp.ge.s32.totalorder %s6666_s30, 1  ;;  %s6760_s10 = int_to_ptr.vmem [resolvable:$true] %s251_s10 }
  0x14   : > { %p8976_p1 = scmp.eq.s32.totalorder %s6755_s11, 0  ;;  %p239_p2 = scmp.lt.s32.totalorder %s6666_s30, 3 }
  0x15   : > { %s6669_s13 = smov [#allocation8]   ;;  %s6670_s16 = smov [#allocation11]  }
  0x16   : > { %p6762_p3 = pnand %p5618_p0, %p239_p2  ;;  %s264_s14 = sshll.u32 %s6669_s13, 4  ;;  %s6775_s14 = int_to_ptr.vmem [resolvable:$true] %s264_s14 }
  0x17   : > { %s291_s17 = sshll.u32 %s6670_s16, 4  ;;  %s9062_s2 = sld [smem:[#allocation84_spill]]  ;;  %s6777_s17 = int_to_ptr.vmem [resolvable:$true] %s291_s17 }
  0x18   : > { %s9060_s12 = scalar_select %p6762_p3, 1, 0 }
  0x19   : > { %p6248_p5 = pneg %p6762_p3 }
  0x1b   : > { %p6771_p6 = pnand %p6248_p5, %p8976_p1 }
  0x1d   : > { %s6352_s20 = scalar_lea.hbm %s9062_s2, 128  ;;  %p6787_p8 = pneg %p6771_p6 }
  0x1e   : > { %p6353_p7 = scmp.ne.s32.totalorder %s9062_s2, %s6352_s20  ;;  %p6359_p11 = scmp.lt.u32.totalorder %s6352_s20, %s9062_s2 }
  0x20   : > { %p6355_p9 = pnand %p6787_p8, %p6353_p7 }
  0x22   : > { %p6356_p10 = pneg %p6355_p9 }
  0x24   : > { %p6361_p12 = pnand %p6359_p11, %p6356_p10 }
  0x26   : > { %6364 = shalt.err (!%p6361_p12)
}
  0x27   : > { %s6365_s26 = scalar_lea.vmem %s6760_s10, 128  ;;  %p6373_p5 = scmp.lt.s32.totalorder %s6760_s10, %s6760_s10 }
  0x28   : > { %p6366_p13 = scmp.ne.s32.totalorder %s6760_s10, %s6365_s26  ;;  %p6374_p4 = scmp.lt.s32.totalorder %s6365_s26, %s6365_s26 }
  0x2a   : > { %p6368_p0 = pnand %p6366_p13, %p6787_p8  ;;  %p6375_p7 = por %p6374_p4, %p6373_p5 }
  0x2c   : > { %p6369_p2 = pneg %p6368_p0 }
  0x2e   : > { %p6376_p9 = pnand %p6375_p7, %p6369_p2 }
  0x30   : > { %6379 = shalt.err (!%p6376_p9)
}
  0x31   : > { %s8974_s9 = smov 64   ;;  %s8978_s13 = smov 4  }
  0x32   : > { %6251 = dma.hbm_to_vmem [thread:$0]  (!%p6771_p6), %s9062_s2, 128, %s6760_s10, [#allocation6], %s8974_s9, %s8974_s9, %s8978_s13  }
  0x33   : > { %s9064_s3 = sld [smem:[#allocation85_spill]] }
  0x39   : > { %s6380_s21 = scalar_lea.hbm %s9064_s3, 1152 }
  0x3a   : > { %p6381_p4 = scmp.ne.s32.totalorder %s9064_s3, %s6380_s21  ;;  %p6387_p12 = scmp.lt.u32.totalorder %s6380_s21, %s9064_s3 }
  0x3c   : > { %p6383_p10 = pnand %p6381_p4, %p6787_p8 }
  0x3e   : > { %p6384_p11 = pneg %p6383_p10 }
  0x40   : > { %p6389_p13 = pnand %p6387_p12, %p6384_p11 }
  0x42   : > { %6392 = shalt.err (!%p6389_p13)
}
  0x43   : > { %s6393_s10 = scalar_lea.vmem %s6775_s14, 1152  ;;  %p6401_p7 = scmp.lt.s32.totalorder %s6775_s14, %s6775_s14 }
  0x44   : > { %p6394_p0 = scmp.ne.s32.totalorder %s6775_s14, %s6393_s10  ;;  %p6402_p9 = scmp.lt.s32.totalorder %s6393_s10, %s6393_s10 }
  0x46   : > { %p6396_p2 = pnand %p6394_p0, %p6787_p8  ;;  %p6403_p4 = por %p6402_p9, %p6401_p7 }
  0x48   : > { %p6397_p5 = pneg %p6396_p2 }
  0x4a   : > { %p6404_p10 = pnand %p6403_p4, %p6397_p5 }
  0x4c   : > { %6407 = shalt.err (!%p6404_p10)
}
  0x4d   : > { %6254 = dma.hbm_to_vmem [thread:$0]  (!%p6771_p6), %s9064_s3, 1152, %s6775_s14, [#allocation9], %s8974_s9, %s8974_s9, %s8978_s13  }
  0x4e   : > { %s9065_s5 = sld [smem:[#allocation87_spill]] }
  0x54   : > { %s6408_s21 = scalar_lea.hbm %s9065_s5, 16 }
  0x55   : > { %p6409_p11 = scmp.ne.s32.totalorder %s9065_s5, %s6408_s21  ;;  %p6415_p0 = scmp.lt.u32.totalorder %s6408_s21, %s9065_s5 }
  0x57   : > { %p6411_p12 = pnand %p6409_p11, %p6787_p8 }
  0x59   : > { %p6412_p13 = pneg %p6411_p12 }
  0x5b   : > { %p6417_p2 = pnand %p6415_p0, %p6412_p13 }
  0x5d   : > { %6420 = shalt.err (!%p6417_p2)
}
  0x5e   : > { %s6421_s14 = scalar_lea.vmem %s6777_s17, 16  ;;  %s6428_s10 = scalar_lea.vmem %s6777_s17, 32 }
  0x5f   : > { %p6422_p5 = scmp.ne.s32.totalorder %s6777_s17, %s6421_s14  ;;  %p6429_p4 = scmp.lt.s32.totalorder %s6777_s17, %s6777_s17 }
  0x60   : > { %p6430_p10 = scmp.lt.s32.totalorder %s6428_s10, %s6421_s14 }
  0x61   : > { %p6424_p7 = pnand %p6422_p5, %p6787_p8 }
  0x62   : > { %p6431_p11 = por %p6430_p10, %p6429_p4 }
  0x63   : > { %p6425_p9 = pneg %p6424_p7 }
  0x65   : > { %p6432_p12 = pnand %p6431_p11, %p6425_p9 }
  0x67   : > { %6435 = shalt.err (!%p6432_p12)
}
  0x68   : > { %6260 = dma.hbm_to_vmem [thread:$0]  (!%p6771_p6), %s9065_s5, 16, %s6777_s17, [#allocation12]  }
  0x69   : > { %s6673_s19 = smov [#allocation10]   ;;  %s6674_s21 = smov [#allocation13]  }
  0x6a   : > { %s277_s20 = sshll.u32 %s6673_s19, 4  ;;  %s301_s22 = sshll.u32 %s6674_s21, 4  ;;  %s278_s20 = int_to_ptr.vmem [resolvable:$true] %s277_s20  ;;  %s302_s22 = int_to_ptr.vmem [resolvable:$true] %s301_s22 }
  0x6b   : > { %s9066_s4 = sld [smem:[#allocation86_spill]] }
  0x71   : > { %s6436_s26 = scalar_lea.hbm %s9066_s4, 576 }
  0x72   : > { %p6437_p13 = scmp.ne.s32.totalorder %s9066_s4, %s6436_s26  ;;  %p6443_p5 = scmp.lt.u32.totalorder %s6436_s26, %s9066_s4 }
  0x74   : > { %p6439_p0 = pnand %p6437_p13, %p6787_p8 }
  0x76   : > { %p6440_p2 = pneg %p6439_p0 }
  0x78   : > { %p6445_p7 = pnand %p6443_p5, %p6440_p2 }
  0x7a   : > { %6448 = shalt.err (!%p6445_p7)
}
  0x7b   : > { %s6449_s17 = scalar_lea.vmem %s278_s20, 576  ;;  %p6457_p11 = scmp.lt.s32.totalorder %s278_s20, %s278_s20 }
  0x7c   : > { %p6450_p9 = scmp.ne.s32.totalorder %s278_s20, %s6449_s17  ;;  %p6458_p12 = scmp.lt.s32.totalorder %s6449_s17, %s6449_s17 }
  0x7e   : > { %p6452_p4 = pnand %p6450_p9, %p6787_p8  ;;  %p6459_p1 = por %p6458_p12, %p6457_p11 }
  0x80   : > { %p6453_p10 = pneg %p6452_p4 }
  0x82   : > { %p6460_p3 = pnand %p6459_p1, %p6453_p10 }
  0x84   : > { %6463 = shalt.err (!%p6460_p3)
}
  0x85   : > { %s9067_s18 = smov 64   ;;  %s9068_s6 = sld [smem:[#allocation88_spill]] }
  0x86   : > { %6257 = dma.hbm_to_vmem [thread:$0]  (!%p6771_p6), %s9066_s4, 576, %s278_s20, [#allocation9], %s9067_s18, %s9067_s18, %s8978_s13  }
  0x8b   : > { %s6464_s25 = scalar_lea.hbm %s9068_s6, 576 }
  0x8c   : > { %p6465_p1 = scmp.ne.s32.totalorder %s9068_s6, %s6464_s25  ;;  %p6471_p0 = scmp.lt.u32.totalorder %s6464_s25, %s9068_s6 }
  0x8e   : > { %p6467_p3 = pnand %p6465_p1, %p6787_p8 }
  0x90   : > { %p6468_p13 = pneg %p6467_p3 }
  0x92   : > { %p6473_p2 = pnand %p6471_p0, %p6468_p13 }
  0x94   : > { %6476 = shalt.err (!%p6473_p2)
}
  0x95   : > { %s6477_s17 = scalar_lea.vmem %s302_s22, 576  ;;  %p6485_p4 = scmp.lt.s32.totalorder %s302_s22, %s302_s22 }
  0x96   : > { %p6478_p5 = scmp.ne.s32.totalorder %s302_s22, %s6477_s17  ;;  %p6486_p10 = scmp.lt.s32.totalorder %s6477_s17, %s6477_s17 }
  0x98   : > { %p6480_p7 = pnand %p6478_p5, %p6787_p8  ;;  %p6487_p11 = por %p6486_p10, %p6485_p4 }
  0x9a   : > { %p6481_p9 = pneg %p6480_p7 }
  0x9c   : > { %p6488_p12 = pnand %p6487_p11, %p6481_p9 }
  0x9e   : > { %6491 = shalt.err (!%p6488_p12)
}
  0x9f   : > { %6263 = dma.hbm_to_vmem [thread:$0]  (!%p6771_p6), %s9068_s6, 576, %s302_s22, [#allocation12], %s9067_s18, %s9067_s18, %s8978_s13  }
  0xa0   : > { %s6675_s19 = smov [#allocation14]   ;;  %s9069_s7 = sld [smem:[#allocation89_spill]] }
  0xa1   : > { %s315_s21 = sshll.u32 %s6675_s19, 4  ;;  %s316_s21 = int_to_ptr.vmem [resolvable:$true] %s315_s21 }
  0xa6   : > { %s6492_s26 = scalar_lea.hbm %s9069_s7, 16 }
  0xa7   : > { %p6493_p1 = scmp.ne.s32.totalorder %s9069_s7, %s6492_s26  ;;  %p6499_p0 = scmp.lt.u32.totalorder %s6492_s26, %s9069_s7 }
  0xa9   : > { %p6495_p3 = pnand %p6493_p1, %p6787_p8 }
  0xab   : > { %p6496_p13 = pneg %p6495_p3 }
  0xad   : > { %p6501_p2 = pnand %p6499_p0, %p6496_p13 }
  0xaf   : > { %6504 = shalt.err (!%p6501_p2)
}
  0xb0   : > { %s6505_s22 = scalar_lea.vmem %s316_s21, 16  ;;  %s6512_s20 = scalar_lea.vmem %s316_s21, 32 }
  0xb1   : > { %p6506_p5 = scmp.ne.s32.totalorder %s316_s21, %s6505_s22  ;;  %p6513_p4 = scmp.lt.s32.totalorder %s316_s21, %s316_s21 }
  0xb2   : > { %p6514_p10 = scmp.lt.s32.totalorder %s6512_s20, %s6505_s22 }
  0xb3   : > { %p6508_p7 = pnand %p6506_p5, %p6787_p8 }
  0xb4   : > { %p6515_p11 = por %p6514_p10, %p6513_p4 }
  0xb5   : > { %p6509_p9 = pneg %p6508_p7 }
  0xb7   : > { %p6516_p12 = pnand %p6515_p11, %p6509_p9 }
  0xb9   : > { %6519 = shalt.err (!%p6516_p12)
}
  0xba   : > { %6266 = dma.hbm_to_vmem [thread:$0]  (!%p6771_p6), %s9069_s7, 16, %s316_s21, [#allocation15]  }
  0xbb   : > { %s5617_s23 = sadd.s32 4294967294, %s6666_s30   ;;  %s6923_s15 = sadd.s32 1, %s6666_s30  }
  0xbc   : > { %s34_s24 = ssub.s32 %s6666_s30, %s6923_s15  ;;  %s37_s25 = sadd.s32 1, %s6662_s29 }
  0xbd   : > { %p35_p8 = scmp.eq.s32.totalorder %s34_s24, 0  ;;  %p44_p1 = scmp.ne.s32.totalorder %s6662_s29, %s6658_s28 }
  0xbe   : > { %p45_p3 = scmp.eq.s32.totalorder %s6666_s30, 0  ;;  %p50_p13 = scmp.ne.s32.totalorder %s6658_s28, %s6654_s27 }
  0xbf   : > { %s6934_s26 = scalar_select %p35_p8, %s6662_s29, %s37_s25  }
  0xc0   : > { %p6936_p0 = por %p45_p3, %p44_p1  ;;  %p9071_p2 = scmp.eq.s32.totalorder %s6755_s11, 0 }
  0xc1   : > { %p226_p5 = scmp.eq.s32.totalorder %s6755_s11, 1  ;;  %p232_p7 = scmp.eq.s32.totalorder %s5617_s23, 1 }
  0xc2   : > { %p6942_p6 = por %p9071_p2, %p50_p13  ;;  %p6284_p9 = scmp.lt.s32.totalorder %s6666_s30, 2 }
  0xc3   : > { %s6949_s10 = sand.u32 1, %s6662_s29   ;;  %p6951_p4 = por %p226_p5, %p44_p1 }
  0xc4   : > { %p6955_p10 = por %p232_p7, %p50_p13  ;;  %s5626_s22 = sshll.u32 %s6949_s10, 3 }
  0xc5   : > { %s9073_s16 = scalar_select %p6951_p4, 1, 0 }
  0xc6   : > { %s9074_s17 = scalar_select %p6955_p10, 1, 0 }
  0xc7   : > { %s5811_s20 = sshll.u32 %s6666_s30, 7  ;;  %s9075_s0 = sld [smem:[#allocation83_spill]] }
  0xc8   : > { %s330_s23 = scalar_lea.vmem [#allocation2], %s5626_s22  ;;  %p6970_p11 = pnand %p6284_p9, %p6936_p0 }
  0xc9   : > { %s337_s25 = sshll.u32 %s330_s23, 4  ;;  %s327_s3 = scalar_lea.sflag [#allocation3], %s6949_s10  ;;  %s6966_s25 = int_to_ptr.vmem [resolvable:$true] %s337_s25 }
  0xca   : > { %p6522_p8 = pneg %p6970_p11 }
  0xcd   : > { %s6964_s24 = scalar_lea.hbm %s9075_s0, %s5811_s20  ;;  %s6525_s14 = scalar_lea.hbm %s9075_s0, 256 }
  0xce   : > { %s6520_s9 = scalar_lea.hbm %s6964_s24, 128  ;;  %p6526_p13 = scmp.lt.u32.totalorder %s6964_s24, %s9075_s0 }
  0xcf   : > { %p6521_p12 = scmp.ne.s32.totalorder %s6964_s24, %s6520_s9  ;;  %p6527_p0 = scmp.lt.u32.totalorder %s6525_s14, %s6520_s9 }
  0xd0   : > { %p6529_p5 = scmp.lt.u32.totalorder %s6520_s9, %s6964_s24 }
  0xd1   : > { %p6523_p1 = pnand %p6522_p8, %p6521_p12  ;;  %p6528_p2 = por %p6527_p0, %p6526_p13 }
  0xd3   : > { %p6524_p3 = pneg %p6523_p1  ;;  %p6530_p7 = por %p6529_p5, %p6528_p2 }
  0xd5   : > { %p6531_p9 = pnand %p6530_p7, %p6524_p3 }
  0xd7   : > { %6534 = shalt.err (!%p6531_p9)
}
  0xd8   : > { %s6535_s2 = scalar_lea.vmem %s6966_s25, 128  ;;  %s6676_s22 = smov [#allocation2]  }
  0xd9   : > { %p6536_p12 = scmp.ne.s32.totalorder %s6966_s25, %s6535_s2  ;;  %s6540_s20 = sshll.u32 %s6676_s22, 4  ;;  %s6541_s20 = int_to_ptr.vmem [resolvable:$false] %s6540_s20 }
  0xda   : > { %s6542_s19 = scalar_lea.vmem %s6541_s20, 256  ;;  %p6543_p4 = scmp.lt.s32.totalorder %s6966_s25, %s6541_s20 }
  0xdb   : > { %p6538_p1 = pnand %p6536_p12, %p6522_p8  ;;  %p6544_p13 = scmp.lt.s32.totalorder %s6542_s19, %s6535_s2 }
  0xdd   : > { %p6539_p10 = pneg %p6538_p1  ;;  %p6545_p0 = por %p6544_p13, %p6543_p4 }
  0xdf   : > { %p6546_p2 = pnand %p6545_p0, %p6539_p10 }
  0xe1   : > { %6549 = shalt.err (!%p6546_p2)
}
  0xe2   : > { %s6677_s9 = smov 32   ;;  %s6678_s14 = smov 2  }
  0xe3   : > { %6270 = dma.hbm_to_vmem [thread:$0]  (!%p6970_p11), %s6964_s24, 128, %s6966_s25, %s327_s3, %s6677_s9, %s6677_s9, %s6678_s14  }
  0xe4   : > { %s5629_s23 = sshll.u32 %s6949_s10, 5  ;;  %s5812_s22 = sshll.u32 %s6666_s30, 9 }
  0xe5   : > { %s7008_s19 = scalar_lea.hbm %s8966_s1, %s5812_s22  ;;  %s351_s0 = scalar_lea.vmem [#allocation5], %s5629_s23 }
  0xe6   : > { %s358_s4 = sshll.u32 %s351_s0, 4  ;;  %s9077_s5 = sand.u32 1, %s6666_s30   ;;  %s7010_s4 = int_to_ptr.vmem [resolvable:$true] %s358_s4 }
  0xe7   : > { %s7014_s6 = scalar_lea.sflag [#allocation6], %s9077_s5  ;;  %s6550_s7 = scalar_lea.hbm %s7008_s19, 512 }
  0xe8   : > { %p6551_p4 = scmp.ne.s32.totalorder %s7008_s19, %s6550_s7  ;;  %s6555_s24 = scalar_lea.hbm %s8966_s1, 1024 }
  0xe9   : > { %p6556_p5 = scmp.lt.u32.totalorder %s7008_s19, %s8966_s1  ;;  %p6557_p7 = scmp.lt.u32.totalorder %s6555_s24, %s6550_s7 }
  0xea   : > { %p6553_p10 = pnand %p6551_p4, %p6522_p8  ;;  %p6559_p12 = scmp.lt.u32.totalorder %s6550_s7, %s7008_s19 }
  0xeb   : > { %p6558_p9 = por %p6557_p7, %p6556_p5 }
  0xec   : > { %p6554_p3 = pneg %p6553_p10 }
  0xed   : > { %p6560_p1 = por %p6559_p12, %p6558_p9 }
  0xef   : > { %p6561_p13 = pnand %p6560_p1, %p6554_p3 }
  0xf1   : > { %6564 = shalt.err (!%p6561_p13)
}
  0xf2   : > { %s6565_s0 = scalar_lea.vmem %s7010_s4, 512  ;;  %s6679_s5 = smov [#allocation5]  }
  0xf3   : > { %p6566_p0 = scmp.ne.s32.totalorder %s7010_s4, %s6565_s0  ;;  %s6570_s14 = sshll.u32 %s6679_s5, 4  ;;  %s6571_s14 = int_to_ptr.vmem [resolvable:$false] %s6570_s14 }
  0xf4   : > { %s6572_s23 = scalar_lea.vmem %s6571_s14, 1024  ;;  %p6573_p10 = scmp.lt.s32.totalorder %s7010_s4, %s6571_s14 }
  0xf5   : > { %p6568_p2 = pnand %p6566_p0, %p6522_p8  ;;  %p6574_p5 = scmp.lt.s32.totalorder %s6572_s23, %s6565_s0 }
  0xf7   : > { %p6569_p4 = pneg %p6568_p2  ;;  %p6575_p7 = por %p6574_p5, %p6573_p10 }
  0xf9   : > { %p6576_p9 = pnand %p6575_p7, %p6569_p4 }
  0xfb   : > { %6579 = shalt.err (!%p6576_p9)
}
  0xfc   : > { %s9078_s7 = smov 4   ;;  %p9079_p8 = scmp.ne.s32.totalorder %s9060_s12, 0 }
  0xfd   : > { %6273 = dma.hbm_to_vmem [thread:$0]  (!%p6970_p11), %s7008_s19, 512, %s7010_s4, %s7014_s6, %s9067_s18, %s9067_s18, %s9078_s7  }
  0xfe   : > { %370 = sbr.rel (%p9079_p8) target bundleno = 1494 (0x5d6), region = 52 }
 0x105   : > { %s7046_s22 = sand.u32 1, %s6658_s28  }
 0x106   : > { %s5633_s20 = sshll.u32 %s7046_s22, 3  ;;  %s373_s2 = scalar_lea.sflag [#allocation3], %s7046_s22 }
 0x107   : > { %s7052_s13 = scalar_lea.vmem [#allocation2], %s5633_s20 }
 0x108   : > { %6625 = dma.done.wait (%p6942_p6), %s373_s2, 128  }
 0x109   : > { %6627 = vsyncadd (%p6942_p6), %s373_s2, 4294967168  ;;  %s381_s4 = sand.u32 1, %s6755_s11   ;;  %s5634_s6 = sshll.u32 %s7046_s22, 5 }
 0x10a   : > { %s382_s12 = scalar_lea.sflag [#allocation6], %s381_s4  ;;  %s7060_s18 = scalar_lea.vmem [#allocation5], %s5634_s6 }
 0x10b   : > { %6629 = dma.done.wait (%p6942_p6), %s382_s12, 512  }
 0x10c   : > { %6631 = vsyncadd (%p6942_p6), %s382_s12, 4294966784  ;;  %p9080_p11 = scmp.eq.s32.totalorder %s6755_s11, 0 }
 0x10e   : > { %6633 = dma.done.wait (%p9080_p11), [#allocation6], 128   ;;  %p9081_p3 = pmov %p9080_p11 }
 0x110   : > { %6635 = vsyncadd (%p9081_p3), [#allocation6], 4294967168  ;;  %p9082_p12 = pmov %p9081_p3 }
 0x111   : > { %p9083_p1 = pmov %p9081_p3 }
 0x112   : > { %6637 = dma.done.wait (%p9082_p12), [#allocation9], 1728  }
 0x113   : > { %6639 = vsyncadd (%p9083_p1), [#allocation9], 4294965568  ;;  %p9084_p13 = pmov %p9083_p1 }
 0x114   : > { %p9085_p0 = pmov %p9083_p1 }
 0x115   : > { %6641 = dma.done.wait (%p9084_p13), [#allocation12], 592  }
 0x116   : > { %6643 = vsyncadd (%p9085_p0), [#allocation12], 4294966704  ;;  %p9086_p6 = pmov %p9085_p0 }
 0x117   : > { %p9087_p2 = pmov %p9085_p0 }
 0x118   : > { %6645 = dma.done.wait (%p9086_p6), [#allocation15], 16  }
 0x119   : > { %6647 = vsyncadd (%p9087_p2), [#allocation15], 4294967280  ;;  %v463_v0 = vlaneseq  ;;  %v8980_v1 = vmov 0.0   ;;  %vm6681_vm0 = vmmov 0   ;;  %v6682_v2 = vmov 1983009808  }
 0x11a   : > { %5906 = vmatprep.subr.bf16.mxu0 %v8980_v1  ;;  %5908 = vmatprep.mubr.msk.bf16.mxu0 %vm6681_vm0, %v8980_v1  ;;  %v461_v3 = vunpack.c.l.s4 %v6682_v2  ;;  %v6342_v6 = vld [vmem:[#allocation7] sm:$0xff]   ;;  %vm481_vm1 = vcmask 130048   ;;  %v448_v8 = vld [vmem:[%s7052_s13] sm:$0x3]  ;;  %v449_v9 = vld [vmem:[%s7052_s13 + $0x2] sm:$0x3] }
 0x11b   : > { %5912 = vmatprep.subr.bf16.mxu1 %v8980_v1  ;;  %5914 = vmatprep.mubr.msk.bf16.mxu1 %vm6681_vm0, %v8980_v1  ;;  %v464_v5 = vshrl.u32 %v463_v0, 7  ;;  %v450_v10 = vld [vmem:[%s7052_s13 + $0x4] sm:$0x3]  ;;  %v451_v11 = vld [vmem:[%s7052_s13 + $0x6] sm:$0x3]  ;;  %v458_v12 = vcombine.low %v448_v8, %v449_v9  ;;  %s6684_s21 = smov 112  }
 0x11c   : > { %v462_v4 = vunpack.c.0.s8 %v461_v3  ;;  %5907 = vmatpush3.bf16.msra.mxu0 %v6342_v6  ;;  %v459_v13 = vcombine.low %v450_v10, %v451_v11  ;;  %v6683_v17 = vmov 1966171168   ;;  %vm738_vm2 = vsmask.f32 256  ;;  %s6685_s19 = smov 96   ;;  %s5813_s3 = sshll.u32 %s6755_s11, 7 }
 0x11d   : > { %5926 = vmatprep.subr.bf16.mxu0 %v8980_v1  ;;  %v530_v18 = vunpack.c.l.s4 %v6683_v17  ;;  %v611_v29 = vsub.s32 0, %v464_v5  ;;  %vm1326_vm3 = vsmask.f32 1284  ;;  %vm1328_vm5 = vsmask.f32 2312  ;;  %s446_s10 = scalar_lea.vmem [#allocation16], %s5633_s20  ;;  %s8916_s0 = scalar_lea.hbm %s8973_s8, %s5813_s3 }
 0x11e   : > { %v465_v7 = vsub.s32 %v462_v4, %v464_v5  ;;  %v5653_v17 = vld.sshfl [vmem:[%s7060_s18] sm:$0x33 pattern:$0x75316420]  ;;  %vm1327_vm4 = vmor %vm738_vm2, %vm1326_vm3  ;;  %vm1330_vm7 = vsmask.f32 3340 }
 0x11f   : > { %v531_v19 = vunpack.c.0.s8 %v530_v18  ;;  %v5654_v18 = vld.sshfl [vmem:[%s7060_s18 + $0x4] sm:$0x33 pattern:$0x75316420]  ;;  %vm1329_vm6 = vmor %vm1327_vm4, %vm1328_vm5  ;;  %vm737_vm8 = vcmask 1040384   ;;  %vm1082_vm12 = vcmask 1043456  }
 0x120   : > { %v466_v14 = vrot.slane %v458_v12, %v465_v7  ;;  %v473_v15 = vrot.slane %v459_v13, %v465_v7  ;;  %vm1331_vm9 = vmor %vm1329_vm6, %vm1330_vm7  ;;  %vm1332_vm10 = vsmask.f32 4368  ;;  %vm1334_vm11 = vsmask.f32 5396  ;;  %s5464_s24 = sshll.u32 %s446_s10, 4  ;;  %s5451_s11 = scalar_lea.sflag [#allocation4], %s7046_s22  ;;  %s8918_s24 = int_to_ptr.vmem [resolvable:$true] %s5464_s24 }
 0x121   : > { %v7096_v21 = vsub.s32 %v531_v19, %v464_v5  ;;  %v825_v19 = vcombine.high %v5653_v17, %v5653_v17  ;;  %vm7207_vm13 = vmor %vm1331_vm9, %vm1332_vm10  ;;  %vm1072_vm3 = vcmask 64512   ;;  %vm1338_vm5 = vsmask.f32 7452  ;;  %s6580_s5 = scalar_lea.vmem %s8918_s24, 128  ;;  %p9252_p10 = scmp.ne.s32.totalorder %s9073_s16, 0 }
 0x122   : > { %v474_v16 = vcombine.low %v466_v14, %v473_v15  ;;  %vm7231_vm14 = vmand %vm737_vm8, %vm738_vm2  ;;  %vm1336_vm2 = vsmask.f32 6424  ;;  %p6581_p4 = scmp.ne.s32.totalorder %s8918_s24, %s6580_s5  ;;  %s6686_s14 = smov [#allocation16]  }
 0x123   : > { %vm1335_vm15 = vmor %vm7207_vm13, %vm1334_vm11  ;;  %s6584_s23 = sshll.u32 %s6686_s14, 4  ;;  %s6585_s23 = int_to_ptr.vmem [resolvable:$false] %s6584_s23 }
 0x124   : > { %5909 = vmatmul.mubr.msk.bf16.vlgmr.msra.gmra.mrb[0].mxu0 %vm481_vm1, %v474_v16  ;;  %vm7271_vm4 = vmor %vm1335_vm15, %vm1336_vm2  ;;  %p6582_p5 = pnand %p6581_p4, %p9252_p10  ;;  %s6586_s7 = scalar_lea.vmem %s6585_s23, 256 }
 0x125   : > { %5928 = vmatprep.mubr.msk.bf16.mxu0 %vm6681_vm0, %v8980_v1  ;;  %vm7307_vm6 = vmor %vm7271_vm4, %vm1338_vm5  ;;  %p6587_p9 = scmp.lt.s32.totalorder %s8918_s24, %s6585_s23  ;;  %p6588_p8 = scmp.lt.s32.totalorder %s6586_s7, %s6580_s5 }
 0x126   : > { %p6583_p7 = pneg %p6582_p5 }
 0x127   : > { %p6589_p11 = por %p6588_p8, %p6587_p9 }
 0x129   : > { %p6590_p3 = pnand %p6589_p11, %p6583_p7 }
 0x1f7   : > { %v519_v20 = vpop.f32.mrb[0].mxu0 }
 0x1f8   : > { %v5910_v22 = vpop.f32.mrb[1].mxu0 }
 0x1f9   : > { %v522_v23 = vpop.f32.mrb[2].mxu0  ;;  %v5655_v22 = vld.sshfl [vmem:[%s7060_s18 + $0x8] sm:$0x33 pattern:$0x75316420] }
 0x1fa   : > { %v526_v24 = vpack.c.bf16 %v522_v23, %v519_v20  ;;  %v5644_v25 = vpack.c.bf16 %v522_v23, %v522_v23  ;;  %v5911_v26 = vpop.f32.mrb[3].mxu0  ;;  %v7164_v20 = vrot.slane %v5653_v17, %v7096_v21  ;;  %v848_v23 = vcombine.high %v5654_v18, %v5654_v18 }
 0x1fc   : > { %v535_v27 = vrot.slane %v526_v24, %v7096_v21  ;;  %v542_v28 = vrot.slane %v5644_v25, %v7096_v21  ;;  %v7168_v24 = vrot.slane %v5654_v18, %v7096_v21  ;;  %v7171_v25 = vrot.slane %v825_v19, %v7096_v21 }
 0x1fd   : > { %v7175_v26 = vcombine.high %v7164_v20, %v7164_v20 }
 0x1fe   : > { %v543_v30 = vcombine.high %v535_v27, %v535_v27  ;;  %v544_v31 = vcombine.high %v542_v28, %v542_v28  ;;  %v551_v32 = vrot.slane %v535_v27, %v7096_v21  ;;  %v558_v33 = vrot.slane %v542_v28, %v7096_v21  ;;  %9088 = vst [vmem:[#allocation24_spill] sm:$0xff] %v7168_v24 }
 0x1ff   : > { %9089 = vst [vmem:[#allocation25_spill] sm:$0xff] %v7171_v25  ;;  %9090 = vst [vmem:[#allocation26_spill] sm:$0xff] %v7175_v26  ;;  %v871_v27 = vcombine.high %v5655_v22, %v5655_v22  ;;  %v7178_v28 = vrot.slane %v5655_v22, %v7096_v21  ;;  %v6343_v22 = vld [vmem:[#allocation8] sm:$0xff]  }
 0x200   : > { %v565_v34 = vrot.slane %v543_v30, %v7096_v21  ;;  %v572_v35 = vrot.slane %v544_v31, %v7096_v21  ;;  %v5645_v36 = vpack.i.b16 %v551_v32, %v551_v32  ;;  %v578_v37 = vunpack.i.h.s16 %v551_v32  ;;  %5927 = vmatpush3.bf16.msra.mxu0 %v6343_v22 }
 0x201   : > { %v573_v38 = vcombine.high %v551_v32, %v551_v32  ;;  %v5649_v39 = vpack.i.b16 %v558_v33, %v558_v33  ;;  %v586_v40 = vunpack.i.h.s16 %v558_v33  ;;  %v574_v41 = vcombine.high %v558_v33, %v558_v33  ;;  %9091 = vst [vmem:[#allocation27_spill] sm:$0xff] %v7178_v28  ;;  %5954 = vmatprep.subr.bf16.mxu0 %v8980_v1 }
 0x202   : > { %v7104_v42 = vrot.slane %v5645_v36, %v611_v29  ;;  %v5646_v43 = vpack.i.b16 %v565_v34, %v565_v34  ;;  %v594_v44 = vpack.i.b16 %v578_v37, %v578_v37  ;;  %v575_v45 = vcombine.high %v565_v34, %v565_v34 }
 0x203   : > { %v5647_v46 = vpack.i.b16 %v573_v38, %v573_v38  ;;  %v582_v47 = vunpack.i.h.s16 %v573_v38  ;;  %v7106_v48 = vrot.slane %v5649_v39, %v611_v29  ;;  %v580_v49 = vunpack.i.h.s16 %v565_v34  ;;  %v5656_v39 = vld.sshfl [vmem:[%s7060_s18 + $0xc] sm:$0x33 pattern:$0x75316420] }
 0x204   : > { %689 = vrot.lane.b32.xlu0 %v7104_v42, %s6684_s21  ;;  %v7110_v50 = vrot.slane %v5646_v43, %v611_v29  ;;  %v7112_v51 = vrot.slane %v594_v44, %v611_v29  ;;  %v5648_v52 = vpack.i.b16 %v575_v45, %v575_v45  ;;  %v602_v53 = vpack.i.b16 %v586_v40, %v586_v40  ;;  %v958_v40 = vld [vmem:[#allocation10] sm:$0xf] }
 0x205   : > { %v7114_v54 = vrot.slane %v5647_v46, %v611_v29  ;;  %v598_v55 = vpack.i.b16 %v582_v47, %v582_v47  ;;  %v596_v56 = vpack.i.b16 %v580_v49, %v580_v49  ;;  %v5650_v57 = vpack.i.b16 %v572_v35, %v572_v35  ;;  %v5657_v47 = vld.sshfl [vmem:[%s7060_s18 + $0x10] sm:$0x33 pattern:$0x75316420] }
 0x206   : > { %693 = vrot.lane.b32.xlu1 %v7110_v50, %s6684_s21  ;;  %v7118_v58 = vrot.slane %v5648_v52, %v611_v29  ;;  %v7120_v59 = vrot.slane %v602_v53, %v611_v29  ;;  %v584_v60 = vunpack.i.h.s16 %v575_v45  ;;  %v588_v61 = vunpack.i.h.s16 %v572_v35 }
 0x207   : > { %v7122_v62 = vrot.slane %v598_v55, %v611_v29  ;;  %v7124_v63 = vrot.slane %v596_v56, %v611_v29  ;;  %v7126_v0 = vrot.slane %v5650_v57, %v611_v29  ;;  %v5651_v2 = vpack.i.b16 %v574_v41, %v574_v41  ;;  %v7220_v55 = vld.sshfl [vmem:[%s7060_s18 + $0x14] sm:$0x33 pattern:$0x75316420] }
 0x208   : > { %691 = vrot.lane.b32.xlu0 %v7112_v51, %s6684_s21  ;;  %v600_v3 = vpack.i.b16 %v584_v60, %v584_v60  ;;  %v604_v4 = vpack.i.b16 %v588_v61, %v588_v61  ;;  %v590_v5 = vunpack.i.h.s16 %v574_v41  ;;  %v576_v6 = vcombine.high %v572_v35, %v572_v35 }
 0x209   : > { %v7130_v7 = vrot.slane %v5651_v2, %v611_v29  ;;  %v7185_v30 = vcombine.high %v7168_v24, %v7168_v24  ;;  %v7188_v31 = vrot.slane %v871_v27, %v7096_v21  ;;  %v959_v32 = vcombine.low %v7164_v20, %v7171_v25 }
 0x20a   : > { %697 = vrot.lane.b32.xlu1 %v7114_v54, %s6684_s21  ;;  %v7134_v8 = vrot.slane %v600_v3, %v611_v29  ;;  %v7136_v9 = vrot.slane %v604_v4, %v611_v29  ;;  %v606_v10 = vpack.i.b16 %v590_v5, %v590_v5  ;;  %v5652_v11 = vpack.i.b16 %v576_v6, %v576_v6 }
 0x20b   : > { %v592_v12 = vunpack.i.h.s16 %v576_v6  ;;  %9093 = vst [vmem:[#allocation29_spill] sm:$0xff] %v7185_v30  ;;  %v960_v33 = vcombine.low %v7175_v26, %v7168_v24  ;;  %v962_v35 = vcombine.low %v7178_v28, %v7188_v31  ;;  %v969_v36 = vrot.slane %v959_v32, %v7096_v21 }
 0x20c   : > { %699 = vrot.lane.b32.xlu0 %v7122_v62, %s6684_s21  ;;  %v7140_v13 = vrot.slane %v606_v10, %v611_v29  ;;  %v7142_v14 = vrot.slane %v5652_v11, %v611_v29  ;;  %v894_v44 = vcombine.high %v5656_v39, %v5656_v39  ;;  %v1084_v46 = vsel %vm1082_vm12, %v958_v40, 0 }
 0x20d   : > { %v608_v15 = vpack.i.b16 %v592_v12, %v592_v12  ;;  %v976_v37 = vrot.slane %v960_v33, %v7096_v21  ;;  %v7205_v41 = vrot.slane %v962_v35, %v7096_v21  ;;  %v7214_v49 = vrot.slane %v5656_v39, %v7096_v21  ;;  %5913 = vmatpush3.bf16.msra.mxu1 %v1084_v46 }
 0x20e   : > { %701 = vrot.lane.b32.xlu1 %v7118_v58, %s6684_s21  ;;  %v7224_v56 = vcombine.high %v7178_v28, %v7178_v28  ;;  %v7227_v57 = vrot.slane %v894_v44, %v7096_v21  ;;  %5940 = vmatprep.subr.bf16.mxu1 %v8980_v1  ;;  %v917_v2 = vcombine.high %v5657_v47, %v5657_v47  ;;  %v1538_v22 = vshrl.u32 %v7185_v30, 16 }
 0x20f   : > { %v7146_v16 = vrot.slane %v608_v15, %v611_v29  ;;  %v7181_v29 = vrot.slane %v848_v23, %v7096_v21  ;;  %9095 = vst [vmem:[#allocation31_spill] sm:$0xff] %v7205_v41  ;;  %v991_v43 = vcombine.low %v969_v36, %v976_v37  ;;  %9098 = vst [vmem:[#allocation32_spill] sm:$0xff] %v7214_v49 }
 0x210   : > { %705 = vrot.lane.b32.xlu0 %v7106_v48, %s6684_s21  ;;  %9099 = vst [vmem:[#allocation33_spill] sm:$0xff] %v7227_v57  ;;  %v7238_v61 = vcombine.high %v7214_v49, %v7214_v49  ;;  %v7241_v3 = vrot.slane %v5657_v47, %v7096_v21  ;;  %v7245_v4 = vrot.slane %v7220_v55, %v7096_v21 }
 0x211   : > { %9092 = vst [vmem:[#allocation28_spill] sm:$0xff] %v7181_v29  ;;  %v961_v34 = vcombine.low %v7181_v29, %v7185_v30  ;;  %v999_v53 = vrot.slane %v991_v43, %v7096_v21  ;;  %v1008_v6 = vcombine.low %v7224_v56, %v7214_v49  ;;  %v7254_v11 = vrot.slane %v917_v2, %v7096_v21 }
 0x212   : > { %695 = vrot.lane.b32.xlu1 %v7124_v63, %s6684_s21  ;;  %9102 = vst [vmem:[#allocation34_spill] sm:$0xff] %v7238_v61  ;;  %9103 = vst [vmem:[#allocation35_spill] sm:$0xff] %v7241_v3  ;;  %v7258_v12 = vcombine.high %v7241_v3, %v7241_v3  ;;  %v1009_v15 = vcombine.low %v7227_v57, %v7238_v61  ;;  %v7269_v19 = vcombine.high %v7181_v29, %v7181_v29 }
 0x213   : > { %v7201_v38 = vrot.slane %v961_v34, %v7096_v21  ;;  %9104 = vst [vmem:[#allocation36_spill] sm:$0xff] %v7245_v4  ;;  %9105 = vst [vmem:[#allocation37_spill] sm:$0xff] %v7254_v11  ;;  %v7282_v33 = vrot.slane %v1008_v6, %v7096_v21 }
 0x214   : > { %707 = vrot.lane.b32.xlu0 %v7120_v59, %s6684_s21  ;;  %v1011_v32 = vcombine.low %v7258_v12, %v7245_v4  ;;  %v3379_v35 = vcombine.low %v7269_v19, %v7188_v31  ;;  %v7293_v36 = vrot.slane %v1009_v15, %v7096_v21 }
 0x215   : > { %9094 = vst [vmem:[#allocation30_spill] sm:$0xff] %v7201_v38  ;;  %v992_v52 = vcombine.low %v7201_v38, %v7205_v41  ;;  %9108 = vst [vmem:[#allocation38_spill] sm:$0xff] %v7282_v33 }
 0x216   : > { %709 = vrot.lane.b32.xlu1 %v7126_v0, %s6684_s21  ;;  %9110 = vst [vmem:[#allocation40_spill] sm:$0xff] %v7293_v36  ;;  %v7301_v40 = vrot.slane %v1011_v32, %v7096_v21  ;;  %v7318_v45 = vrot.slane %v3379_v35, %v7096_v21  ;;  %v940_v35 = vcombine.high %v7220_v55, %v7220_v55  ;;  %v1527_v55 = vshll.u32 %v7181_v29, 16 }
 0x217   : > { %v1006_v5 = vrot.slane %v992_v52, %v7096_v21 }
 0x218   : > { %703 = vrot.lane.b32.xlu0 %v7134_v8, %s6684_s21  ;;  %9112 = vst [vmem:[#allocation42_spill] sm:$0xff] %v7301_v40  ;;  %9116 = vst [vmem:[#allocation44_spill] sm:$0xff] %v7318_v45 }
 0x219   : > { %v1007_v18 = vcombine.low %v999_v53, %v1006_v5  ;;  %v1040_v5 = vcombine.low %v7282_v33, %v7293_v36  ;;  %v1597_v33 = vshrl.u32 %v7241_v3, 16 }
 0x21a   : > { %711 = vrot.lane.b32.xlu1 %v7136_v9, %s6684_s21 }
 0x21b   : > { %5915 = vmatmul.mubr.msk.bf16.vlgmr.msra.gmra.mrb[0].mxu1 %vm1072_vm3, %v1007_v18 }
 0x21c   : > { %5918 = vmatprep.mubr.msk.bf16.mxu1 %vm6681_vm0, %v8980_v1 }
 0x276   : > { %v690_v10 = vpop.permute.xlu0 %689 }
 0x277   : > { %v7265_v17 = vsel %vm7231_vm14, %v7104_v42, %v690_v10  ;;  %v1010_v42 = vcombine.low %v7241_v3, %v7254_v11 }
 0x278   : > { %v694_v27 = vpop.permute.xlu1 %693  ;;  %772 = vrot.lane.b32.xlu0 %v7265_v17, %s6685_s19  ;;  %v1341_v43 = vshrl.u32 %v7265_v17, 16 }
 0x279   : > { %v7287_v34 = vsel %vm7231_vm14, %v7110_v50, %v694_v27  ;;  %v7298_v39 = vrot.slane %v1010_v42, %v7096_v21  ;;  %v6344_v42 = vld [vmem:[#allocation8 + $0x8] sm:$0xff]  }
 0x27a   : > { %9109 = vst [vmem:[#allocation39_spill] sm:$0xff] %v7287_v34  ;;  %v692_v37 = vpop.permute.xlu0 %691  ;;  %v1354_v46 = vshll.u32 %v7287_v34, 16  ;;  %5941 = vmatpush3.bf16.msra.mxu1 %v6344_v42 }
 0x27b   : > { %9111 = vst [vmem:[#allocation41_spill] sm:$0xff] %v7298_v39  ;;  %v7315_v44 = vsel %vm7231_vm14, %v7112_v51, %v692_v37  ;;  %v1041_v6 = vcombine.low %v7298_v39, %v7301_v40  ;;  %5968 = vmatprep.subr.bf16.mxu1 %v8980_v1  ;;  %v1547_v40 = vshrl.u32 %v7178_v28, 16 }
 0x27c   : > { %9115 = vst [vmem:[#allocation43_spill] sm:$0xff] %v7315_v44  ;;  %v1346_v52 = vshll.u32 %v7315_v44, 16  ;;  %v1349_v53 = vshrl.u32 %v7315_v44, 16  ;;  %v698_v2 = vpop.permute.xlu1 %697  ;;  %774 = vrot.lane.b32.xlu1 %v7315_v44, %s6685_s19  ;;  %776 = vrot.lane.b32.xlu0 %v7287_v34, %s6685_s19 }
 0x27d   : > { %v7348_v23 = vsel %vm7231_vm14, %v7114_v54, %v698_v2  ;;  %v1048_v54 = vrot.slane %v1040_v5, %v7096_v21  ;;  %v1055_v37 = vrot.slane %v1041_v6, %v7096_v21  ;;  %v7383_v2 = vrot.slane %v940_v35, %v7096_v21 }
 0x27e   : > { %v7337_v10 = vsel %vm7307_vm6, %v1341_v43, %v1346_v52  ;;  %v7341_v15 = vsel %vm7307_vm6, %v1349_v53, %v1354_v46  ;;  %v700_v18 = vpop.permute.xlu0 %699 }
 0x27f   : > { %v7353_v27 = vsel %vm7231_vm14, %v7122_v62, %v700_v18  ;;  %v1056_v52 = vcombine.low %v1048_v54, %v1055_v37  ;;  %9117 = vst [vmem:[#allocation45_spill] sm:$0xff] %v7383_v2  ;;  %v7400_v18 = vcombine.high %v7245_v4, %v7245_v4 }
 0x280   : > { %780 = vrot.lane.b32.xlu1 %v7348_v23, %s6685_s19  ;;  %v702_v32 = vpop.permute.xlu1 %701  ;;  %782 = vrot.lane.b32.xlu0 %v7353_v27, %s6685_s19 }
 0x281   : > { %v7367_v62 = vsel %vm7231_vm14, %v7118_v58, %v702_v32  ;;  %5919 = vmatmul.mubr.msk.bf16.gmra.mrb[4].mxu1 %vm1072_vm3, %v1056_v52  ;;  %9119 = vst [vmem:[#allocation47_spill] sm:$0xff] %v7400_v18  ;;  %v1522_v58 = vshrl.u32 %v7168_v24, 16 }
 0x282   : > { %v706_v43 = vpop.permute.xlu0 %705  ;;  %5922 = vmatprep.mubr.msk.bf16.mxu1 %vm6681_vm0, %v8980_v1  ;;  %v1404_v32 = vshll.u32 %v7367_v62, 16  ;;  %v1407_v52 = vshrl.u32 %v7367_v62, 16 }
 0x283   : > { %v7372_v46 = vsel %vm7231_vm14, %v7106_v48, %v706_v43  ;;  %v1399_v43 = vshrl.u32 %v7353_v27, 16  ;;  %v7480_v47 = vsel %vm7307_vm6, %v1522_v58, %v1527_v55 }
 0x284   : > { %784 = vrot.lane.b32.xlu1 %v7367_v62, %s6685_s19  ;;  %v696_v53 = vpop.permute.xlu1 %695  ;;  %788 = vrot.lane.b32.xlu0 %v7372_v46, %s6685_s19  ;;  %9122 = vst [vmem:[#allocation50_spill] sm:$0xff] %v7480_v47 }
 0x285   : > { %v7396_v6 = vsel %vm7231_vm14, %v7124_v63, %v696_v53 }
 0x286   : > { %v708_v48 = vpop.permute.xlu0 %707  ;;  %9118 = vst [vmem:[#allocation46_spill] sm:$0xff] %v7396_v6 }
 0x287   : > { %v7391_v5 = vsel %vm7231_vm14, %v7120_v59, %v708_v48  ;;  %v1057_v59 = vcombine.low %v7383_v2, %v7400_v18 }
 0x288   : > { %778 = vrot.lane.b32.xlu1 %v7396_v6, %s6685_s19  ;;  %v710_v42 = vpop.permute.xlu1 %709  ;;  %790 = vrot.lane.b32.xlu0 %v7391_v5, %s6685_s19 }
 0x289   : > { %v7412_v63 = vsel %vm7231_vm14, %v7126_v0, %v710_v42  ;;  %v7420_v37 = vrot.slane %v1057_v59, %v7096_v21  ;;  %v1535_v59 = vshll.u32 %v7185_v30, 16 }
 0x28a   : > { %v704_v35 = vpop.permute.xlu0 %703 }
 0x28b   : > { %v7417_v54 = vsel %vm7231_vm14, %v7134_v8, %v704_v35  ;;  %9120 = vst [vmem:[#allocation48_spill] sm:$0xff] %v7420_v37  ;;  %v1071_v0 = vrot.slane %v7420_v37, %v7096_v21  ;;  %v7433_v8 = vsel %vm7307_vm6, %v1399_v43, %v1404_v32  ;;  %v1543_v32 = vshll.u32 %v7269_v19, 16 }
 0x28c   : > { %v1412_v53 = vshll.u32 %v7417_v54, 16  ;;  %792 = vrot.lane.b32.xlu1 %v7412_v63, %s6685_s19  ;;  %v712_v48 = vpop.permute.xlu1 %711  ;;  %786 = vrot.lane.b32.xlu0 %v7417_v54, %s6685_s19  ;;  %v7463_v43 = vcombine.high %v7171_v25, %v7171_v25  ;;  %v1552_v37 = vshll.u32 %v7188_v31, 16 }
 0x28d   : > { %v7444_v35 = vsel %vm7231_vm14, %v7136_v9, %v712_v48  ;;  %5923 = vmatmul.mubr.msk.bf16.gmra.mrb[8].mxu1 %vm1072_vm3, %v1071_v0  ;;  %v1497_v9 = vshrl.u32 %v7164_v20, 16  ;;  %v1510_v48 = vshll.u32 %v7175_v26, 16  ;;  %v1513_v0 = vshrl.u32 %v7175_v26, 16 }
 0x28e   : > { %v7437_v42 = vsel %vm7307_vm6, %v1407_v52, %v1412_v53  ;;  %5942 = vmatprep.mubr.msk.bf16.mxu1 %vm6681_vm0, %v8980_v1  ;;  %9121 = vst [vmem:[#allocation49_spill] sm:$0xff] %v7463_v43  ;;  %v1502_v52 = vshll.u32 %v7171_v25, 16  ;;  %v1505_v53 = vshrl.u32 %v7171_v25, 16  ;;  %v1530_v20 = vshrl.u32 %v7181_v29, 16 }
 0x28f   : > { %v1518_v1 = vshll.u32 %v7463_v43, 16  ;;  %v7495_v55 = vsel %vm7307_vm6, %v1538_v22, %v1543_v32  ;;  %v7499_v58 = vsel %vm7307_vm6, %v1547_v40, %v1552_v37  ;;  %v1492_v40 = vcombine.high %v7188_v31, %v7188_v31 }
 0x290   : > { %794 = vrot.lane.b32.xlu1 %v7444_v35, %s6685_s19  ;;  %713 = vrot.lane.b32.xlu0 %v7130_v7, %s6684_s21  ;;  %v1504_v19 = vsel %vm7307_vm6, %v1497_v9, %v1502_v52  ;;  %v1512_v51 = vsel %vm7307_vm6, %v1505_v53, %v1510_v48  ;;  %v7489_v52 = vsel %vm7307_vm6, %v1530_v20, %v1535_v59  ;;  %v1555_v53 = vshrl.u32 %v7188_v31, 16 }
 0x291   : > { %v1520_v9 = vsel %vm7307_vm6, %v1513_v0, %v1518_v1  ;;  %9123 = vst [vmem:[#allocation51_spill] sm:$0xff] %v7489_v52  ;;  %v1560_v48 = vshll.u32 %v7224_v56, 16  ;;  %9124 = vst [vmem:[#allocation52_spill] sm:$0xff] %v7495_v55  ;;  %v1840_v30 = vcombine.low %v1504_v19, %v1512_v51  ;;  %v1842_v59 = vcombine.low %v7489_v52, %v7495_v55 }
 0x292   : > { %9125 = vst [vmem:[#allocation53_spill] sm:$0xff] %v7499_v58  ;;  %v1841_v39 = vcombine.low %v1520_v9, %v7480_v47  ;;  %v7514_v51 = vcombine.high %v7227_v57, %v7227_v57  ;;  %v1563_v9 = vshrl.u32 %v7224_v56, 16 }
 0x293   : > { %v1562_v1 = vsel %vm7307_vm6, %v1555_v53, %v1560_v48  ;;  %v1850_v20 = vrot.slane %v1840_v30, %v7096_v21  ;;  %v1864_v32 = vrot.slane %v1842_v59, %v7096_v21  ;;  %v1572_v53 = vshrl.u32 %v7214_v49, 16 }
 0x294   : > { %715 = vrot.lane.b32.xlu1 %v7140_v13, %s6684_s21  ;;  %717 = vrot.lane.b32.xlu0 %v7142_v14, %s6684_s21  ;;  %v1843_v0 = vcombine.low %v7499_v58, %v1562_v1  ;;  %v1857_v22 = vrot.slane %v1841_v39, %v7096_v21  ;;  %9126 = vst [vmem:[#allocation54_spill] sm:$0xff] %v7514_v51  ;;  %v1568_v30 = vshll.u32 %v1492_v40, 16  ;;  %v1577_v39 = vshll.u32 %v7227_v57, 16 }
 0x295   : > { %v1580_v48 = vshrl.u32 %v7227_v57, 16  ;;  %v1585_v59 = vshll.u32 %v7238_v61, 16 }
 0x296   : > { %v7517_v37 = vrot.slane %v1843_v0, %v7096_v21  ;;  %v1872_v19 = vcombine.low %v1850_v20, %v1857_v22  ;;  %v1588_v0 = vshrl.u32 %v7238_v61, 16  ;;  %v1593_v20 = vshll.u32 %v7514_v51, 16 }
 0x297   : > { %v1570_v22 = vsel %vm7307_vm6, %v1563_v9, %v1568_v30  ;;  %v1579_v47 = vsel %vm7307_vm6, %v1572_v53, %v1577_v39  ;;  %v1587_v52 = vsel %vm7307_vm6, %v1580_v48, %v1585_v59  ;;  %v1602_v51 = vshll.u32 %v7254_v11, 16 }
 0x298   : > { %719 = vrot.lane.b32.xlu1 %v7146_v16, %s6684_s21  ;;  %9127 = vst [vmem:[#allocation55_spill] sm:$0xff] %v7517_v37  ;;  %v1873_v55 = vcombine.low %v1864_v32, %v7517_v37  ;;  %v7526_v58 = vrot.slane %v1872_v19, %v7096_v21  ;;  %v7542_v19 = vsel %vm7307_vm6, %v1588_v0, %v1593_v20  ;;  %v1605_v61 = vshrl.u32 %v7254_v11, 16 }
 0x299   : > { %v1610_v9 = vshll.u32 %v7258_v12, 16  ;;  %v7551_v30 = vsel %vm7307_vm6, %v1597_v33, %v1602_v51  ;;  %v1889_v39 = vcombine.low %v1570_v22, %v1579_v47  ;;  %v1890_v48 = vcombine.low %v1587_v52, %v7542_v19 }
 0x29a   : > { %9128 = vst [vmem:[#allocation56_spill] sm:$0xff] %v7526_v58  ;;  %v7538_v32 = vrot.slane %v1873_v55, %v7096_v21  ;;  %v3025_v59 = vcombine.low %v1562_v1, %v1570_v22  ;;  %v3026_v3 = vcombine.low %v1579_v47, %v1587_v52  ;;  %v2223_v1 = vcombine.low %v7188_v31, %v7224_v56 }
 0x29b   : > { %v7555_v55 = vsel %vm7307_vm6, %v1605_v61, %v1610_v9  ;;  %v7561_v20 = vrot.slane %v1889_v39, %v7096_v21  ;;  %v7564_v53 = vrot.slane %v1890_v48, %v7096_v21  ;;  %v2269_v22 = vcombine.low %v1492_v40, %v7227_v57 }
 0x29c   : > { %9129 = vst [vmem:[#allocation57_spill] sm:$0xff] %v7538_v32  ;;  %v1891_v0 = vcombine.low %v7551_v30, %v7555_v55  ;;  %v5714_v47 = vcombine.high %v7214_v49, %v7227_v57  ;;  %v2271_v52 = vcombine.low %v7254_v11, %v7258_v12  ;;  %v7581_v9 = vrot.slane %v2223_v1, %v7096_v21 }
 0x29d   : > { %9130 = vst [vmem:[#allocation58_spill] sm:$0xff] %v7561_v20  ;;  %9131 = vst [vmem:[#allocation59_spill] sm:$0xff] %v7564_v53  ;;  %v7584_v39 = vrot.slane %v2269_v22, %v7096_v21  ;;  %v7598_v51 = vcombine.high %v7254_v11, %v7254_v11  ;;  %v7601_v1 = vrot.slane %v3025_v59, %v7096_v21  ;;  %v1454_v61 = vshll.u32 %v7412_v63, 16 }
 0x29e   : > { %v7567_v33 = vrot.slane %v1891_v0, %v7096_v21  ;;  %9133 = vst [vmem:[#allocation61_spill] sm:$0xff] %v7581_v9  ;;  %v7587_v48 = vrot.slane %v5714_v47, %v7096_v21  ;;  %v7590_v0 = vrot.slane %v2271_v52, %v7096_v21  ;;  %v7604_v22 = vrot.slane %v3026_v3, %v7096_v21 }
 0x29f   : > { %9134 = vst [vmem:[#allocation62_spill] sm:$0xff] %v7584_v39  ;;  %9137 = vst [vmem:[#allocation65_spill] sm:$0xff] %v7598_v51  ;;  %v1391_v47 = vshrl.u32 %v7348_v23, 16  ;;  %v1396_v52 = vshll.u32 %v7353_v27, 16  ;;  %v5744_v56 = vcombine.high %v7178_v28, %v7188_v31  ;;  %v1145_v40 = vcombine.low %v7348_v23, %v7353_v27  ;;  %v1839_v39 = vld [vmem:[#allocation10 + $0x4] sm:$0xf] }
 0x2a0   : > { %9132 = vst [vmem:[#allocation60_spill] sm:$0xff] %v7567_v33  ;;  %9135 = vst [vmem:[#allocation63_spill] sm:$0xff] %v7587_v48  ;;  %v1446_v11 = vshll.u32 %v7391_v5, 16  ;;  %v1449_v59 = vshrl.u32 %v7391_v5, 16  ;;  %v1613_v49 = vshrl.u32 %v7258_v12, 16  ;;  %v1618_v3 = vshll.u32 %v7598_v51, 16 }
 0x2a1   : > { %9136 = vst [vmem:[#allocation64_spill] sm:$0xff] %v7590_v0  ;;  %9138 = vst [vmem:[#allocation66_spill] sm:$0xff] %v7601_v1  ;;  %v1622_v57 = vshrl.u32 %v7245_v4, 16  ;;  %v1627_v0 = vshll.u32 %v7383_v2, 16  ;;  %v1357_v31 = vshrl.u32 %v7287_v34, 16  ;;  %v2032_v48 = vcombine.low %v7353_v27, %v7367_v62 }
 0x2a2   : > { %9139 = vst [vmem:[#allocation67_spill] sm:$0xff] %v7604_v22  ;;  %v1441_v9 = vshrl.u32 %v7372_v46, 16  ;;  %v1362_v12 = vshll.u32 %v7396_v6, 16  ;;  %v7630_v4 = vsel %vm7307_vm6, %v1449_v59, %v1454_v61  ;;  %v7633_v51 = vrot.slane %v5744_v56, %v7096_v21 }
 0x2a3   : > { %v7637_v22 = vsel %vm7307_vm6, %v1391_v47, %v1396_v52  ;;  %v9141_v28 = vcombine.low %v7337_v10, %v7341_v15  ;;  %v9142_v37 = vcombine.low %v7265_v17, %v7315_v44  ;;  %v7652_v56 = vrot.slane %v1145_v40, %v7096_v21 }
 0x2a4   : > { %9140 = vst [vmem:[#allocation68_spill] sm:$0xff] %v7633_v51  ;;  %v1652_v59 = vcombine.low %v7637_v22, %v7433_v8  ;;  %v1193_v47 = vcombine.low %v7372_v46, %v7391_v5  ;;  %v7660_v10 = vsel %vm7307_vm6, %v1441_v9, %v1446_v11  ;;  %v7668_v17 = vsel %vm7307_vm6, %v1622_v57, %v1627_v0 }
 0x2a5   : > { %v7643_v1 = vrot.slane %v9141_v28, %v7096_v21  ;;  %v7649_v61 = vrot.slane %v9142_v37, %v7096_v21  ;;  %v7664_v28 = vsel %vm7307_vm6, %v1613_v49, %v1618_v3  ;;  %v2080_v15 = vcombine.low %v7391_v5, %v7412_v63 }
 0x2a6   : > { %9143 = vst [vmem:[#allocation69_spill] sm:$0xff] %v7664_v28  ;;  %v3213_v37 = vcombine.low %v7367_v62, %v7417_v54  ;;  %v7675_v40 = vsel %vm1082_vm12, %v1839_v39, 0  ;;  %v1700_v11 = vcombine.low %v7660_v10, %v7630_v4  ;;  %v7681_v49 = vsel %vm7307_vm6, %v1357_v31, %v1362_v12  ;;  %v5719_v12 = vld.sshfl [vmem:[%s7060_s18 + $0x18] sm:$0x33 pattern:$0x75316420] }
 0x2a7   : > { %v1462_v9 = vshll.u32 %v7444_v35, 16  ;;  %v7687_v52 = vrot.slane %v2032_v48, %v7096_v21  ;;  %v1457_v3 = vshrl.u32 %v7412_v63, 16  ;;  %v7692_v41 = vrot.slane %v1652_v59, %v7096_v21 }
 0x2a8   : > { %v1892_v31 = vcombine.low %v7664_v28, %v7668_v17  ;;  %v7698_v24 = vrot.slane %v1193_v47, %v7096_v21  ;;  %v2414_v43 = vcombine.high %v5719_v12, %v5719_v12  ;;  %v7705_v36 = vrot.slane %v3213_v37, %v7096_v21 }
 0x2a9   : > { %v3246_v59 = vcombine.low %v7412_v63, %v7444_v35  ;;  %v7710_v51 = vrot.slane %v1700_v11, %v7096_v21  ;;  %v7713_v29 = vrot.slane %v2080_v15, %v7096_v21  ;;  %v7717_v47 = vsel %vm7307_vm6, %v1457_v3, %v1462_v9 }
 0x2aa   : > { %v7726_v37 = vcombine.high %v7383_v2, %v7383_v2  ;;  %v1630_v11 = vshrl.u32 %v7383_v2, 16  ;;  %v7732_v45 = vrot.slane %v1892_v31, %v7096_v21  ;;  %v7735_v9 = vrot.slane %v5719_v12, %v7096_v21 }
 0x2ab   : > { %v1635_v31 = vshll.u32 %v7400_v18, 16 }
 0x2ac   : > { %9145 = vst [vmem:[#allocation71_spill] sm:$0xff] %v7726_v37  ;;  %9146 = vst [vmem:[#allocation72_spill] sm:$0xff] %v7732_v45  ;;  %v2805_v32 = vshrl.u32 %v7735_v9, 16 }
 0x2ad   : > { %9147 = vst [vmem:[#allocation73_spill] sm:$0xff] %v7735_v9 }
 0x2ea   : > { %v773_v57 = vpop.permute.xlu0 %772 }
 0x2eb   : > { %v1143_v39 = vcombine.low %v7287_v34, %v773_v57  ;;  %v7742_v34 = vrot.slane %v2414_v43, %v7096_v21  ;;  %v1366_v2 = vshrl.u32 %v773_v57, 16 }
 0x2ed   : > { %v1159_v0 = vrot.slane %v1143_v39, %v7096_v21  ;;  %9148 = vst [vmem:[#allocation74_spill] sm:$0xff] %v7742_v34 }
 0x2ee   : > { %v7720_v25 = vpop.permute.xlu1 %774  ;;  %v7722_v48 = vpop.permute.xlu0 %776 }
 0x2ef   : > { %9144 = vst [vmem:[#allocation70_spill] sm:$0xff] %v7720_v25  ;;  %v1371_v26 = vshll.u32 %v7720_v25, 16  ;;  %v1374_v15 = vshrl.u32 %v7720_v25, 16  ;;  %v2433_v3 = vcombine.low %v773_v57, %v7720_v25  ;;  %v1144_v39 = vcombine.low %v7720_v25, %v7722_v48 }
 0x2f0   : > { %v1379_v38 = vshll.u32 %v7722_v48, 16  ;;  %v2434_v44 = vcombine.low %v7722_v48, %v7348_v23  ;;  %v1174_v12 = vcombine.low %v7649_v61, %v1159_v0  ;;  %v2810_v57 = vshll.u32 %v7742_v34, 16 }
 0x2f1   : > { %v7750_v58 = vrot.slane %v2433_v3, %v7096_v21  ;;  %v7753_v6 = vrot.slane %v1144_v39, %v7096_v21  ;;  %v7767_v61 = vsel %vm7307_vm6, %v1366_v2, %v1371_v26  ;;  %v2882_v3 = vcombine.low %v7630_v4, %v7717_v47 }
 0x2f2   : > { %v7755_v25 = vpop.permute.xlu1 %780  ;;  %v7757_v43 = vpop.permute.xlu0 %782  ;;  %v7761_v23 = vrot.slane %v2434_v44, %v7096_v21  ;;  %v1381_v0 = vsel %vm7307_vm6, %v1374_v15, %v1379_v38  ;;  %v1921_v44 = vcombine.low %v7561_v20, %v7564_v53  ;;  %v1638_v34 = vshrl.u32 %v7400_v18, 16  ;;  %v2219_v53 = vld [vmem:[#allocation10 + $0x8] sm:$0xf] }
 0x2f3   : > { %v1191_v9 = vcombine.low %v7367_v62, %v7755_v25  ;;  %v1175_v39 = vcombine.low %v7753_v6, %v7652_v56  ;;  %v7785_v38 = vsel %vm7307_vm6, %v1630_v11, %v1635_v31  ;;  %v1643_v4 = vshll.u32 %v7726_v37, 16 }
 0x2f4   : > { %9149 = vst [vmem:[#allocation75_spill] sm:$0xff] %v7785_v38  ;;  %v2832_v18 = vcombine.low %v7767_v61, %v1381_v0  ;;  %v1922_v62 = vcombine.low %v7567_v33, %v7732_v45  ;;  %v1182_v11 = vrot.slane %v1174_v12, %v7096_v21  ;;  %v7805_v37 = vsel %vm7307_vm6, %v2805_v32, %v2810_v57 }
 0x2f5   : > { %v7781_v26 = vrot.slane %v1191_v9, %v7096_v21  ;;  %v1189_v2 = vrot.slane %v1175_v39, %v7096_v21  ;;  %v3074_v9 = vcombine.low %v7668_v17, %v7785_v38  ;;  %9150 = vst [vmem:[#allocation76_spill] sm:$0xff] %v7805_v37  ;;  %v9151_v20 = vcombine.low %v7433_v8, %v7437_v42 }
 0x2f6   : > { %v7789_v15 = vpop.permute.xlu1 %784  ;;  %v7791_v28 = vpop.permute.xlu0 %788  ;;  %v7814_v17 = vrot.slane %v2882_v3, %v7096_v21  ;;  %v7817_v12 = vrot.slane %v3246_v59, %v7096_v21  ;;  %v7825_v57 = vsel %vm1082_vm12, %v2219_v53, 0  ;;  %v7829_v8 = vsel %vm7307_vm6, %v1638_v34, %v1643_v4 }
 0x2f7   : > { %v3568_v31 = vcombine.low %v7652_v56, %v7781_v26  ;;  %v1192_v39 = vcombine.low %v7757_v43, %v7789_v15  ;;  %v7811_v45 = vrot.slane %v9151_v20, %v7096_v21  ;;  %v1650_v56 = vcombine.low %v7681_v49, %v7767_v61  ;;  %9152 = vst [vmem:[#allocation77_spill] sm:$0xff] %v7829_v8 }
 0x2f8   : > { %v1190_v32 = vcombine.low %v1182_v11, %v1189_v2  ;;  %v7834_v3 = vrot.slane %v1921_v44, %v7096_v21  ;;  %v7837_v59 = vrot.slane %v1922_v62, %v7096_v21  ;;  %v3075_v49 = vcombine.low %v7829_v8, %v7805_v37 }
 0x2f9   : > { %v7822_v33 = vrot.slane %v1192_v39, %v7096_v21  ;;  %v7842_v61 = vrot.slane %v3074_v9, %v7096_v21  ;;  %v1382_v53 = vshrl.u32 %v7722_v48, 16  ;;  %v1194_v4 = vcombine.low %v7412_v63, %v7791_v28 }
 0x2fa   : > { %v7831_v20 = vpop.permute.xlu1 %778  ;;  %9153 = vst [vmem:[#allocation78_spill] sm:$0xff] %v7834_v3  ;;  %9154 = vst [vmem:[#allocation79_spill] sm:$0xff] %v7837_v59  ;;  %5929 = vmatmul.mubr.msk.bf16.vlgmr.msra.gmra.mrb[4].mxu0 %vm481_vm1, %v1190_v32  ;;  %v1416_v62 = vshrl.u32 %v7755_v25, 16  ;;  %v1421_v2 = vshll.u32 %v7757_v43, 16  ;;  %v2078_v9 = vcombine.low %v7417_v54, %v7757_v43  ;;  %v1666_v11 = vrot.slane %v1650_v56, %v7096_v21  ;;  %v7857_v39 = vpop.permute.xlu0 %790 }
 0x2fb   : > { %v3569_v34 = vcombine.low %v7822_v33, %v7698_v24  ;;  %v1387_v44 = vshll.u32 %v7831_v20, 16  ;;  %5955 = vmatpush3.bf16.msra.mxu0 %v7675_v40  ;;  %v7860_v37 = vrot.slane %v3568_v31, %v7096_v21  ;;  %v3212_v3 = vcombine.low %v7831_v20, %v7353_v27 }
 0x2fc   : > { %v9157_v59 = vmov 0.0   ;;  %v2435_v54 = vcombine.low %v7755_v25, %v7757_v43  ;;  %v1429_v40 = vshll.u32 %v7789_v15, 16  ;;  %v7927_v27 = vrot.slane %v2078_v9, %v7096_v21 }
 0x2fd   : > { %9155 = vst [vmem:[#allocation80_spill] sm:$0xff] %v7860_v37  ;;  %v7863_v63 = vrot.slane %v3569_v34, %v7096_v21  ;;  %v1389_v32 = vsel %vm7307_vm6, %v1382_v53, %v1387_v44  ;;  %5932 = vmatprep.mubr.msk.bf16.mxu0 %vm6681_vm0, %v9157_v59  ;;  %5982 = vmatprep.subr.bf16.mxu0 %v9157_v59 }
 0x2fe   : > { %v1651_v56 = vcombine.low %v1381_v0, %v1389_v32  ;;  %v2833_v31 = vcombine.low %v1389_v32, %v7637_v22  ;;  %v7875_v38 = vpop.permute.xlu1 %792  ;;  %v3229_v53 = vcombine.low %v7705_v36, %v7822_v33  ;;  %v7883_v34 = vrot.slane %v1194_v4, %v7096_v21 }
 0x2ff   : > { %9156 = vst [vmem:[#allocation81_spill] sm:$0xff] %v7863_v63  ;;  %v3220_v25 = vrot.slane %v3212_v3, %v7096_v21  ;;  %v1681_v0 = vcombine.low %v7643_v1, %v1666_v11  ;;  %v7889_v22 = vrot.slane %v2832_v18, %v7096_v21  ;;  %v1424_v36 = vshrl.u32 %v7757_v43, 16 }
 0x300   : > { %v1673_v44 = vrot.slane %v1651_v56, %v7096_v21  ;;  %v7892_v32 = vrot.slane %v2833_v31, %v7096_v21  ;;  %v7898_v4 = vsel %vm7307_vm6, %v1416_v62, %v1421_v2  ;;  %v7901_v3 = vrot.slane %v3075_v49, %v7096_v21  ;;  %v7908_v31 = vpop.permute.xlu0 %786 }
 0x301   : > { %v3228_v8 = vcombine.low %v7753_v6, %v3220_v25  ;;  %v2456_v56 = vrot.slane %v2435_v54, %v7096_v21  ;;  %v1432_v1 = vshrl.u32 %v7789_v15, 16  ;;  %v1224_v6 = vcombine.low %v7698_v24, %v7883_v34 }
 0x302   : > { %v1682_v18 = vcombine.low %v1673_v44, %v7692_v41  ;;  %v7910_v43 = vpop.permute.xlu1 %794  ;;  %v7918_v49 = vrot.slane %v3229_v53, %v7096_v21  ;;  %v1431_v2 = vsel %vm7307_vm6, %v1424_v36, %v1429_v40  ;;  %v2474_v54 = vcombine.low %v7789_v15, %v7372_v46 }
 0x303   : > { %v7915_v62 = vrot.slane %v3228_v8, %v7096_v21  ;;  %v1689_v25 = vrot.slane %v1681_v0, %v7096_v21  ;;  %v2835_v8 = vcombine.low %v7898_v4, %v1431_v2  ;;  %v1437_v53 = vshll.u32 %v7908_v31, 16 }
 0x304   : > { %9158 = vst [vmem:[#allocation82_spill] sm:$0xff] %v7918_v49  ;;  %v1696_v44 = vrot.slane %v1682_v18, %v7096_v21  ;;  %v2079_v40 = vcombine.low %v7789_v15, %v7908_v31  ;;  %v2458_v46 = vcombine.low %v7687_v52, %v2456_v56  ;;  %v4187_v0 = vcombine.low %v7687_v52, %v7927_v27  ;;  %v6345_v18 = vld [vmem:[#allocation8 + $0x10] sm:$0xff]  }
 0x305   : > { %v1223_v9 = vcombine.low %v7781_v26, %v7822_v33  ;;  %v7941_v11 = vrot.slane %v2835_v8, %v7096_v21  ;;  %v7945_v24 = vsel %vm7307_vm6, %v1432_v1, %v1437_v53  ;;  %v1238_v15 = vrot.slane %v1224_v6, %v7096_v21  ;;  %v714_v8 = vpop.permute.xlu0 %713 }
 0x306   : > { %v1697_v36 = vcombine.low %v1689_v25, %v1696_v44  ;;  %v7948_v63 = vrot.slane %v2079_v40, %v7096_v21  ;;  %v9159_v56 = vcombine.low %v7750_v58, %v7761_v23  ;;  %v1466_v33 = vshrl.u32 %v7791_v28, 16  ;;  %v716_v1 = vpop.permute.xlu1 %715 }
 0x307   : > { %v1471_v26 = vshll.u32 %v7857_v39, 16  ;;  %v1699_v44 = vcombine.low %v1431_v2, %v7945_v24  ;;  %v1240_v53 = vcombine.low %v7857_v39, %v7875_v38  ;;  %v1231_v23 = vrot.slane %v1223_v9, %v7096_v21 }
 0x308   : > { %v7955_v25 = vrot.slane %v9159_v56, %v7096_v21  ;;  %5943 = vmatmul.mubr.msk.bf16.vlgmr.msra.gmra.mrb[12].mxu1 %vm481_vm1, %v1697_v36  ;;  %v4188_v58 = vcombine.low %v7948_v63, %v7713_v29  ;;  %v7971_v2 = vrot.slane %v2474_v54, %v7096_v21  ;;  %v7974_v40 = vrot.slane %v2458_v46, %v7096_v21 }
 0x309   : > { %5946 = vmatprep.mubr.msk.bf16.mxu1 %vm6681_vm0, %v9157_v59  ;;  %v1474_v36 = vshrl.u32 %v7857_v39, 16  ;;  %v7978_v56 = vrot.slane %v1699_v44, %v7096_v21  ;;  %5969 = vmatpush3.bf16.msra.mxu1 %v6345_v18  ;;  %v2081_v6 = vcombine.low %v7444_v35, %v7857_v39  ;;  %v7983_v9 = vrot.slane %v4187_v0, %v7096_v21 }
 0x30a   : > { %v7986_v37 = vrot.slane %v4188_v58, %v7096_v21  ;;  %v1239_v54 = vcombine.low %v1231_v23, %v1238_v15  ;;  %5996 = vmatprep.subr.bf16.mxu1 %v9157_v59  ;;  %v2475_v46 = vcombine.low %v7791_v28, %v7857_v39  ;;  %v1479_v49 = vshll.u32 %v7875_v38, 16  ;;  %v718_v58 = vpop.permute.xlu0 %717 }
 0x30b   : > { %v1473_v35 = vsel %vm7307_vm6, %v1466_v33, %v1471_v26  ;;  %v7997_v0 = vrot.slane %v1240_v53, %v7096_v21  ;;  %v2127_v15 = vcombine.low %v7875_v38, %v7910_v43  ;;  %v8007_v28 = vsel %vm7231_vm14, %v7130_v7, %v714_v8  ;;  %v720_v7 = vpop.permute.xlu1 %719 }
 0x30c   : > { %5933 = vmatmul.mubr.msk.bf16.gmra.mrb[8].mxu0 %vm481_vm1, %v1239_v54  ;;  %v1698_v39 = vcombine.low %v7437_v42, %v7898_v4  ;;  %v2881_v33 = vcombine.low %v7945_v24, %v7660_v10  ;;  %v1487_v26 = vshll.u32 %v7910_v43, 16  ;;  %v2476_v53 = vcombine.low %v7875_v38, %v8007_v28  ;;  %796 = vrot.lane.b32.xlu0 %v8007_v28, %s6685_s19 }
 0x30d   : > { %5936 = vmatprep.mubr.msk.bf16.mxu0 %vm6681_vm0, %v9157_v59  ;;  %v1701_v8 = vcombine.low %v7717_v47, %v1473_v35  ;;  %v8022_v42 = vrot.slane %v2081_v6, %v7096_v21  ;;  %v8025_v10 = vrot.slane %v2127_v15, %v7096_v21  ;;  %v8030_v4 = vsel %vm7231_vm14, %v7140_v13, %v716_v1 }
 0x30e   : > { %v2779_v24 = vshrl.u32 %v8007_v28, 16  ;;  %v2784_v23 = vshll.u32 %v8030_v4, 16  ;;  %v2787_v54 = vshrl.u32 %v8030_v4, 16  ;;  %v3247_v47 = vcombine.low %v7910_v43, %v8030_v4  ;;  %798 = vrot.lane.b32.xlu1 %v8030_v4, %s6685_s19 }
 0x30f   : > { %v2497_v15 = vrot.slane %v2476_v53, %v7096_v21  ;;  %v8045_v13 = vsel %vm7231_vm14, %v7142_v14, %v718_v58  ;;  %v8050_v1 = vsel %vm7231_vm14, %v7146_v16, %v720_v7  ;;  %v2490_v43 = vrot.slane %v2475_v46, %v7096_v21 }
 0x310   : > { %v1482_v44 = vshrl.u32 %v7875_v38, 16  ;;  %v1481_v18 = vsel %vm7307_vm6, %v1474_v36, %v1479_v49  ;;  %v2792_v6 = vshll.u32 %v8045_v13, 16  ;;  %800 = vrot.lane.b32.xlu0 %v8045_v13, %s6685_s19  ;;  %v9160_v14 = vcombine.low %v7889_v22, %v7892_v32 }
 0x311   : > { %v3245_v16 = vcombine.low %v7908_v31, %v7391_v5  ;;  %v1254_v60 = vrot.slane %v7997_v0, %v7096_v21  ;;  %v8071_v38 = vsel %vm7307_vm6, %v2779_v24, %v2784_v23  ;;  %v2891_v49 = vrot.slane %v2881_v33, %v7096_v21  ;;  %v9162_v23 = vld [vmem:[#allocation69_spill] sm:$0xff] }
 0x312   : > { %v8063_v53 = vrot.slane %v9160_v14, %v7096_v21  ;;  %v8076_v36 = vsel %vm7307_vm6, %v2787_v54, %v2792_v6  ;;  %802 = vrot.lane.b32.xlu1 %v8050_v1, %s6685_s19  ;;  %v8081_v22 = vrot.slane %v1698_v39, %v7096_v21  ;;  %v8084_v5 = vrot.slane %v1701_v8, %v7096_v21 }
 0x313   : > { %v1489_v32 = vsel %vm7307_vm6, %v1482_v44, %v1487_v26  ;;  %v2883_v31 = vcombine.low %v1473_v35, %v1481_v18  ;;  %v2499_v46 = vcombine.low %v2490_v43, %v2497_v15  ;;  %v2031_v35 = vcombine.low %v7722_v48, %v7831_v20 }
 0x314   : > { %5937 = vmatmul.mubr.msk.bf16.gmra.mrb[12].mxu0 %vm481_vm1, %v1254_v60  ;;  %v2884_v58 = vcombine.low %v1489_v32, %v8071_v38  ;;  %v1730_v7 = vcombine.low %v8081_v22, %v7978_v56  ;;  %v1731_v39 = vcombine.low %v7710_v51, %v8084_v5  ;;  %v3903_v8 = vcombine.low %v7692_v41, %v8081_v22 }
 0x315   : > { %5956 = vmatprep.mubr.msk.bf16.mxu0 %vm6681_vm0, %v9157_v59  ;;  %v3254_v44 = vrot.slane %v3245_v16, %v7096_v21  ;;  %v9161_v26 = vcombine.low %v7542_v19, %v7551_v30  ;;  %v9163_v54 = vcombine.low %v7555_v55, %v9162_v23  ;;  %v9164_v15 = vcombine.low %v7811_v45, %v7941_v11 }
 0x316   : > { %v1738_v48 = vrot.slane %v1730_v7, %v7096_v21  ;;  %v1745_v20 = vrot.slane %v1731_v39, %v7096_v21  ;;  %v2473_v14 = vcombine.low %v7955_v25, %v7974_v40  ;;  %v1747_v19 = vcombine.low %v1481_v18, %v1489_v32  ;;  %v9165_v39 = vld [vmem:[#allocation70_spill] sm:$0xff] }
 0x317   : > { %v3082_v24 = vrot.slane %v9161_v26, %v7096_v21  ;;  %v3089_v6 = vrot.slane %v9163_v54, %v7096_v21  ;;  %v8115_v43 = vrot.slane %v9164_v15, %v7096_v21  ;;  %v2905_v30 = vrot.slane %v2883_v31, %v7096_v21  ;;  %v9166_v26 = vld [vmem:[#allocation46_spill] sm:$0xff] }
 0x318   : > { %v2498_v55 = vcombine.low %v7971_v2, %v7713_v29  ;;  %v8125_v16 = vrot.slane %v2499_v46, %v7096_v21  ;;  %v1746_v60 = vcombine.low %v1738_v48, %v1745_v20  ;;  %v2912_v11 = vrot.slane %v2884_v58, %v7096_v21  ;;  %v3022_v40 = vld [vmem:[#allocation10 + $0x10] sm:$0xf] }
 0x319   : > { %v2913_v7 = vcombine.low %v2891_v49, %v7814_v17  ;;  %v2030_v23 = vcombine.low %v9166_v26, %v9165_v39  ;;  %v2053_v18 = vrot.slane %v2031_v35, %v7096_v21  ;;  %v3269_v32 = vcombine.low %v3254_v44, %v7817_v12  ;;  %v9167_v17 = vld [vmem:[#allocation56_spill] sm:$0xff]  ;;  %v9168_v49 = vld [vmem:[#allocation57_spill] sm:$0xff]  ;;  %v9178_v39 = vld [vmem:[#allocation26_spill] sm:$0xff] }
 0x31a   : > { %v8136_v2 = vrot.slane %v2498_v55, %v7096_v21  ;;  %v3268_v31 = vrot.slane %v3247_v47, %v7096_v21  ;;  %5947 = vmatmul.mubr.msk.bf16.gmra.mrb[16].mxu1 %vm481_vm1, %v1746_v60  ;;  %v2914_v46 = vcombine.low %v2905_v30, %v2912_v11  ;;  %v3104_v54 = vcombine.low %v3082_v24, %v3089_v6  ;;  %v9170_v24 = vld [vmem:[#allocation43_spill] sm:$0xff]  ;;  %v9176_v60 = vld [vmem:[#allocation77_spill] sm:$0xff] }
 0x31b   : > { %v3105_v58 = vcombine.low %v7842_v61, %v7901_v3  ;;  %v9169_v15 = vcombine.low %v9167_v17, %v9168_v49  ;;  %5950 = vmatprep.mubr.msk.bf16.mxu1 %vm6681_vm0, %v9157_v59  ;;  %v8149_v12 = vrot.slane %v1747_v19, %v7096_v21  ;;  %v8154_v35 = vrot.slane %v2913_v7, %v7096_v21  ;;  %v9171_v6 = vld [vmem:[#allocation39_spill] sm:$0xff]  ;;  %v9173_v19 = vld [vmem:[#allocation30_spill] sm:$0xff]  ;;  %v9179_v26 = vld [vmem:[#allocation25_spill] sm:$0xff] }
 0x31c   : > { %v8160_v61 = vrot.slane %v2914_v46, %v7096_v21  ;;  %v8163_v3 = vrot.slane %v3104_v54, %v7096_v21  ;;  %v9172_v48 = vcombine.low %v9170_v24, %v9171_v6  ;;  %v9177_v11 = vld [vmem:[#allocation75_spill] sm:$0xff]  ;;  %v2220_v46 = vcombine.low %v9179_v26, %v9178_v39  ;;  %v9181_v6 = vld [vmem:[#allocation78_spill] sm:$0xff] }
 0x31d   : > { %5957 = vmatmul.mubr.msk.bf16.vlgmr.msra.gmra.mrb[16].mxu0 %vm1072_vm3, %v9169_v15  ;;  %v8166_v44 = vrot.slane %v3105_v58, %v7096_v21  ;;  %v1938_v7 = vcombine.low %v9177_v11, %v9176_v60  ;;  %v2046_v54 = vrot.slane %v2030_v23, %v7096_v21  ;;  %v3270_v49 = vcombine.low %v7997_v0, %v3268_v31  ;;  %v9180_v24 = vld [vmem:[#allocation79_spill] sm:$0xff]  ;;  %v9184_v60 = vld [vmem:[#allocation24_spill] sm:$0xff]  ;;  %v9191_v58 = vld [vmem:[#allocation41_spill] sm:$0xff] }
 0x31e   : > { %5983 = vmatpush3.bf16.msra.mxu0 %v7825_v57  ;;  %5960 = vmatprep.mubr.msk.bf16.mxu0 %vm6681_vm0, %v9157_v59  ;;  %v2039_v20 = vrot.slane %v9172_v48, %v7096_v21  ;;  %v9174_v57 = vld [vmem:[#allocation44_spill] sm:$0xff]  ;;  %v2062_v15 = vcombine.low %v2053_v18, %v7687_v52  ;;  %v1937_v48 = vcombine.low %v9181_v6, %v9180_v24  ;;  %v9188_v6 = vld [vmem:[#allocation31_spill] sm:$0xff] }
 0x31f   : > { %v9175_v30 = vcombine.low %v9173_v19, %v9174_v57  ;;  %6010 = vmatprep.subr.bf16.mxu0 %v9157_v59  ;;  %v9182_v19 = vld [vmem:[#allocation28_spill] sm:$0xff]  ;;  %v9183_v57 = vld [vmem:[#allocation49_spill] sm:$0xff]  ;;  %v1761_v23 = vrot.slane %v8149_v12, %v7096_v21  ;;  %v8199_v39 = vrot.slane %v3269_v32, %v7096_v21  ;;  %v8202_v26 = vrot.slane %v3270_v49, %v7096_v21 }
 0x320   : > { %v5713_v11 = vcombine.high %v9184_v60, %v9182_v19  ;;  %v9185_v52 = vld [vmem:[#allocation68_spill] sm:$0xff]  ;;  %v8223_v49 = vrot.slane %v1938_v7, %v7096_v21  ;;  %v2230_v47 = vrot.slane %v2220_v46, %v7096_v21 }
 0x321   : > { %v8176_v55 = vrot.slane %v9175_v30, %v7096_v21  ;;  %v2221_v30 = vcombine.low %v9183_v57, %v9182_v19  ;;  %v9186_v18 = vld [vmem:[#allocation40_spill] sm:$0xff]  ;;  %v9189_v57 = vld [vmem:[#allocation38_spill] sm:$0xff] }
 0x322   : > { %v9187_v31 = vcombine.low %v9185_v52, %v9186_v18  ;;  %v9190_v33 = vcombine.low %v9188_v6, %v9189_v57  ;;  %v9192_v32 = vcombine.low %v9186_v18, %v9191_v58  ;;  %5951 = vmatmul.mubr.msk.bf16.gmra.mrb[20].mxu1 %vm481_vm1, %v1761_v23  ;;  %v9193_v58 = vcombine.low %v7978_v56, %v7710_v51  ;;  %v9197_v57 = vld [vmem:[#allocation59_spill] sm:$0xff]  ;;  %v9200_v56 = vld [vmem:[#allocation61_spill] sm:$0xff] }
 0x323   : > { %5970 = vmatprep.mubr.msk.bf16.mxu1 %vm6681_vm0, %v9157_v59  ;;  %v2244_v46 = vrot.slane %v5713_v11, %v7096_v21  ;;  %v8251_v51 = vrot.slane %v3903_v8, %v7096_v21  ;;  %v9194_v11 = vld [vmem:[#allocation55_spill] sm:$0xff]  ;;  %v1952_v8 = vrot.slane %v8223_v49, %v7096_v21  ;;  %v9201_v52 = vld [vmem:[#allocation45_spill] sm:$0xff] }
 0x324   : > { %v8208_v24 = vrot.slane %v9187_v31, %v7096_v21  ;;  %v8214_v17 = vrot.slane %v9190_v33, %v7096_v21  ;;  %v8220_v45 = vrot.slane %v9192_v32, %v7096_v21  ;;  %v2061_v31 = vcombine.low %v2039_v20, %v2046_v54  ;;  %v9198_v32 = vld [vmem:[#allocation60_spill] sm:$0xff]  ;;  %v6346_v33 = vld [vmem:[#allocation8 + $0x18] sm:$0xff]  }
 0x325   : > { %v8237_v7 = vrot.slane %v9193_v58, %v7096_v21  ;;  %5961 = vmatmul.mubr.msk.bf16.gmra.mrb[20].mxu0 %vm1072_vm3, %v1937_v48  ;;  %v2237_v20 = vrot.slane %v2221_v30, %v7096_v21  ;;  %v2076_v54 = vrot.slane %v2062_v15, %v7096_v21  ;;  %v9195_v15 = vld [vmem:[#allocation58_spill] sm:$0xff]  ;;  %v9199_v41 = vcombine.low %v9197_v57, %v9198_v32 }
 0x326   : > { %5964 = vmatprep.mubr.msk.bf16.mxu0 %vm6681_vm0, %v9157_v59  ;;  %v2069_v30 = vrot.slane %v2061_v31, %v7096_v21  ;;  %v9196_v23 = vcombine.low %v9194_v11, %v9195_v15  ;;  %v2253_v48 = vcombine.low %v2244_v46, %v9200_v56  ;;  %v9202_v31 = vld [vmem:[#allocation65_spill] sm:$0xff]  ;;  %v2111_v57 = vcombine.low %v7713_v29, %v8022_v42 }
 0x327   : > { %v8268_v22 = vrot.slane %v9199_v41, %v7096_v21  ;;  %v2252_v58 = vcombine.low %v2230_v47, %v2237_v20  ;;  %v2272_v6 = vcombine.low %v9202_v31, %v9201_v52  ;;  %v9203_v41 = vld [vmem:[#allocation63_spill] sm:$0xff] }
 0x328   : > { %v8262_v18 = vrot.slane %v9196_v23, %v7096_v21  ;;  %v2077_v15 = vcombine.low %v2069_v30, %v2076_v54  ;;  %v2110_v23 = vcombine.low %v7927_v27, %v7948_v63  ;;  %v2267_v63 = vrot.slane %v2253_v48, %v7096_v21  ;;  %v2607_v30 = vld [vmem:[#allocation10 + $0xc] sm:$0xf]  ;;  %v9205_v48 = vld [vmem:[#allocation64_spill] sm:$0xff] }
 0x329   : > { %v2260_v46 = vrot.slane %v2252_v58, %v7096_v21  ;;  %v8292_v27 = vrot.slane %v2272_v6, %v7096_v21  ;;  %v2125_v54 = vrot.slane %v2111_v57, %v7096_v21  ;;  %v2608_v57 = vcombine.low %v9184_v60, %v9182_v19  ;;  %v6347_v47 = vld [vmem:[#allocation8 + $0x20] sm:$0xff]  }
 0x32a   : > { %5971 = vmatmul.mubr.msk.bf16.vlgmr.msra.gmra.mrb[24].mxu1 %vm481_vm1, %v2077_v15  ;;  %v2118_v29 = vrot.slane %v2110_v23, %v7096_v21 }
 0x32b   : > { %5974 = vmatprep.mubr.msk.bf16.mxu1 %vm6681_vm0, %v9157_v59  ;;  %5997 = vmatpush3.bf16.msra.mxu1 %v6346_v33  ;;  %v2268_v32 = vcombine.low %v2260_v46, %v2267_v63  ;;  %v2302_v31 = vcombine.low %v9205_v48, %v8292_v27  ;;  %v2715_v33 = vsel %vm1082_vm12, %v2607_v30, 0  ;;  %v9206_v46 = vld [vmem:[#allocation27_spill] sm:$0xff]  ;;  %v9207_v63 = vld [vmem:[#allocation29_spill] sm:$0xff]  ;;  %v9209_v30 = vld [vmem:[#allocation32_spill] sm:$0xff] }
 0x32c   : > { %6024 = vmatprep.subr.bf16.mxu1 %v9157_v59  ;;  %v2126_v6 = vcombine.low %v2118_v29, %v2125_v54  ;;  %v2609_v29 = vcombine.low %v9207_v63, %v9206_v46  ;;  %v9208_v54 = vld [vmem:[#allocation33_spill] sm:$0xff] }
 0x32d   : > { %5965 = vmatmul.mubr.msk.bf16.gmra.mrb[24].mxu0 %vm1072_vm3, %v1952_v8  ;;  %v9204_v8 = vld [vmem:[#allocation62_spill] sm:$0xff]  ;;  %v2316_v23 = vrot.slane %v2302_v31, %v7096_v21  ;;  %v2141_v31 = vrot.slane %v8025_v10, %v7096_v21 }
 0x32e   : > { %5984 = vmatprep.mubr.msk.bf16.mxu0 %vm6681_vm0, %v9157_v59  ;;  %v2301_v58 = vcombine.low %v9204_v8, %v9203_v41  ;;  %v2624_v11 = vrot.slane %v2609_v29, %v7096_v21 }
 0x330   : > { %v2309_v15 = vrot.slane %v2301_v58, %v7096_v21  ;;  %v9210_v58 = vld [vmem:[#allocation36_spill] sm:$0xff] }
 0x331   : > { %v5715_v20 = vcombine.high %v9210_v58, %v9201_v52 }
 0x332   : > { %5975 = vmatmul.mubr.msk.bf16.gmra.mrb[28].mxu1 %vm481_vm1, %v2126_v6  ;;  %v2317_v6 = vcombine.low %v2309_v15, %v2316_v23  ;;  %v9211_v15 = vcombine.low %v9200_v56, %v9204_v8  ;;  %v2650_v8 = vcombine.low %v9210_v58, %v9201_v52 }
 0x333   : > { %5978 = vmatprep.mubr.msk.bf16.mxu1 %vm6681_vm0, %v9157_v59  ;;  %v8331_v60 = vrot.slane %v5715_v20, %v7096_v21 }
 0x334   : > { %v8339_v23 = vrot.slane %v9211_v15, %v7096_v21  ;;  %v2665_v58 = vrot.slane %v2650_v8, %v7096_v21 }
 0x335   : > { %5985 = vmatmul.mubr.msk.bf16.vlgmr.msra.gmra.mrb[28].mxu0 %vm1072_vm3, %v2268_v32  ;;  %v2610_v32 = vcombine.low %v9209_v30, %v9208_v54  ;;  %v2332_v20 = vrot.slane %v8331_v60, %v7096_v21  ;;  %v9213_v54 = vld [vmem:[#allocation35_spill] sm:$0xff]  ;;  %v9214_v30 = vld [vmem:[#allocation34_spill] sm:$0xff] }
 0x336   : > { %6011 = vmatpush3.bf16.msra.mxu0 %v2715_v33  ;;  %5988 = vmatprep.mubr.msk.bf16.mxu0 %vm6681_vm0, %v9157_v59  ;;  %v2617_v33 = vrot.slane %v2608_v57, %v7096_v21  ;;  %v9212_v57 = vcombine.low %v9203_v41, %v9205_v48 }
 0x337   : > { %6038 = vmatprep.subr.bf16.mxu0 %v9157_v59  ;;  %v2631_v19 = vrot.slane %v2610_v32, %v7096_v21  ;;  %v2649_v32 = vcombine.low %v9214_v30, %v9213_v54  ;;  %v8390_v30 = vpop.f32.mrb[0].mxu1 }
 0x338   : > { %v8345_v46 = vrot.slane %v9212_v57, %v7096_v21  ;;  %v2632_v63 = vcombine.low %v2617_v33, %v2624_v11  ;;  %v2515_v57 = vcombine.low %v8030_v4, %v8045_v13 }
 0x339   : > { %v2633_v29 = vcombine.low %v9200_v56, %v2631_v19  ;;  %v2658_v52 = vrot.slane %v2649_v32, %v7096_v21 }
 0x33a   : > { %5979 = vmatmul.mubr.msk.bf16.gmra.mrb[32].mxu1 %vm481_vm1, %v2141_v31  ;;  %v9216_v31 = vld [vmem:[#allocation47_spill] sm:$0xff]  ;;  %v2640_v56 = vrot.slane %v2632_v63, %v7096_v21  ;;  %v4338_v41 = vcombine.low %v8339_v23, %v8345_v46  ;;  %v3146_v63 = vsel %vm1082_vm12, %v3022_v40, 0  ;;  %v9222_v40 = vld [vmem:[#allocation52_spill] sm:$0xff] }
 0x33b   : > { %5998 = vmatprep.mubr.msk.bf16.mxu1 %vm6681_vm0, %v9157_v59  ;;  %v2647_v11 = vrot.slane %v2633_v29, %v7096_v21  ;;  %v2673_v33 = vcombine.low %v2658_v52, %v9205_v48  ;;  %v9217_v29 = vcombine.low %v8136_v2, %v8125_v16  ;;  %v8393_v16 = vrot.slane %v2515_v57, %v7096_v21  ;;  %v5916_v2 = vpop.f32.mrb[1].mxu1  ;;  %v9220_v52 = vld [vmem:[#allocation50_spill] sm:$0xff] }
 0x33c   : > { %v8398_v32 = vpop.f32.mrb[2].mxu1 }
 0x33d   : > { %5989 = vmatmul.mubr.msk.bf16.gmra.mrb[32].mxu0 %vm1072_vm3, %v2317_v6  ;;  %v9215_v6 = vld [vmem:[#allocation73_spill] sm:$0xff]  ;;  %v5917_v8 = vpop.f32.mrb[3].mxu1 }
 0x33e   : > { %5992 = vmatprep.mubr.msk.bf16.mxu0 %vm6681_vm0, %v9157_v59  ;;  %v2651_v15 = vcombine.low %v9216_v31, %v9215_v6  ;;  %v2800_v8 = vshll.u32 %v8050_v1, 16 }
 0x340   : > { %v2672_v25 = vrot.slane %v2651_v15, %v7096_v21  ;;  %v9218_v15 = vld [vmem:[#allocation74_spill] sm:$0xff] }
 0x342   : > { %5999 = vmatmul.mubr.msk.bf16.vlgmr.msra.gmra.mrb[36].mxu1 %vm481_vm1, %v2473_v14  ;;  %v2648_v14 = vcombine.low %v2640_v56, %v2647_v11  ;;  %v2674_v19 = vcombine.low %v2665_v58, %v2672_v25  ;;  %v9219_v11 = vld [vmem:[#allocation51_spill] sm:$0xff]  ;;  %v9221_v25 = vld [vmem:[#allocation53_spill] sm:$0xff] }
 0x343   : > { %6002 = vmatprep.mubr.msk.bf16.mxu1 %vm6681_vm0, %v9157_v59  ;;  %6025 = vmatpush3.bf16.msra.mxu1 %v6347_v47  ;;  %v2681_v47 = vrot.slane %v2673_v33, %v7096_v21  ;;  %v3023_v58 = vcombine.low %v9220_v52, %v9219_v11  ;;  %v2529_v33 = vrot.slane %v8393_v16, %v7096_v21  ;;  %v2795_v52 = vshrl.u32 %v8045_v13, 16 }
 0x344   : > { %6052 = vmatprep.subr.bf16.mxu1 %v9157_v59  ;;  %v2688_v48 = vrot.slane %v2674_v19, %v7096_v21 }
 0x345   : > { %5993 = vmatmul.mubr.msk.bf16.gmra.mrb[36].mxu0 %vm1072_vm3, %v2332_v20  ;;  %v8388_v20 = vcombine.high %v9215_v6, %v9215_v6  ;;  %v3033_v57 = vrot.slane %v3023_v58, %v7096_v21  ;;  %v9223_v58 = vcombine.low %v8063_v53, %v8115_v43  ;;  %v8447_v53 = vcombine.high %v9218_v15, %v9218_v15  ;;  %v3378_v43 = vld [vmem:[#allocation10 + $0x14] sm:$0xf] }
 0x346   : > { %6012 = vmatprep.mubr.msk.bf16.mxu0 %vm6681_vm0, %v9157_v59  ;;  %v2689_v31 = vcombine.low %v2681_v47, %v2688_v48 }
 0x347   : > { %v2690_v56 = vcombine.low %v9218_v15, %v8388_v20 }
 0x349   : > { %v8413_v19 = vrot.slane %v2690_v56, %v7096_v21 }
 0x34a   : > { %6003 = vmatmul.mubr.msk.bf16.gmra.mrb[40].mxu1 %vm481_vm1, %v9217_v29 }
 0x34b   : > { %6006 = vmatprep.mubr.msk.bf16.mxu1 %vm6681_vm0, %v9157_v59  ;;  %v2704_v47 = vrot.slane %v8413_v19, %v7096_v21 }
 0x34d   : > { %6013 = vmatmul.mubr.msk.bf16.vlgmr.msra.gmra.mrb[40].mxu0 %vm1072_vm3, %v2648_v14  ;;  %v3024_v14 = vcombine.low %v9222_v40, %v9221_v25  ;;  %v9224_v40 = vld [vmem:[#allocation66_spill] sm:$0xff] }
 0x34e   : > { %6039 = vmatpush3.bf16.msra.mxu0 %v3146_v63  ;;  %6016 = vmatprep.mubr.msk.bf16.mxu0 %vm6681_vm0, %v9157_v59 }
 0x34f   : > { %6066 = vmatprep.subr.bf16.mxu0 %v9157_v59  ;;  %v3040_v63 = vrot.slane %v3024_v14, %v7096_v21  ;;  %v9225_v14 = vld [vmem:[#allocation67_spill] sm:$0xff] }
 0x351   : > { %v3055_v48 = vcombine.low %v3033_v57, %v3040_v63  ;;  %v8441_v63 = vsel %vm7307_vm6, %v2795_v52, %v2800_v8  ;;  %v2818_v8 = vshll.u32 %v8388_v20, 16  ;;  %v3478_v52 = vsel %vm1082_vm12, %v3378_v43, 0 }
 0x352   : > { %6007 = vmatmul.mubr.msk.bf16.gmra.mrb[44].mxu1 %vm481_vm1, %v2529_v33  ;;  %v9226_v33 = vcombine.low %v9224_v40, %v9225_v14  ;;  %v9227_v40 = vcombine.low %v8154_v35, %v8160_v61 }
 0x353   : > { %6026 = vmatprep.mubr.msk.bf16.mxu1 %vm6681_vm0, %v9157_v59  ;;  %v3063_v25 = vrot.slane %v3055_v48, %v7096_v21 }
 0x354   : > { %v8419_v29 = vpop.f32.mrb[4].mxu1  ;;  %v3070_v57 = vrot.slane %v9226_v33, %v7096_v21 }
 0x355   : > { %6017 = vmatmul.mubr.msk.bf16.gmra.mrb[44].mxu0 %vm1072_vm3, %v2689_v31  ;;  %v5920_v2 = vpop.f32.mrb[5].mxu1  ;;  %v6348_v31 = vld [vmem:[#allocation8 + $0x28] sm:$0xff]  }
 0x356   : > { %6020 = vmatprep.mubr.msk.bf16.mxu0 %vm6681_vm0, %v9157_v59  ;;  %v8424_v11 = vpop.f32.mrb[6].mxu1  ;;  %v3071_v48 = vcombine.low %v3063_v25, %v3070_v57  ;;  %v2813_v2 = vshrl.u32 %v9218_v15, 16 }
 0x357   : > { %v5921_v56 = vpop.f32.mrb[7].mxu1 }
 0x358   : > { %v2826_v56 = vshll.u32 %v8447_v53, 16  ;;  %v8471_v57 = vsel %vm7307_vm6, %v2813_v2, %v2818_v8 }
 0x35a   : > { %6027 = vmatmul.mubr.msk.bf16.vlgmr.msra.gmra.mrb[48].mxu1 %vm481_vm1, %v9223_v58 }
 0x35b   : > { %6030 = vmatprep.mubr.msk.bf16.mxu1 %vm6681_vm0, %v9157_v59  ;;  %6053 = vmatpush3.bf16.msra.mxu1 %v6348_v31  ;;  %v2821_v31 = vshrl.u32 %v8388_v20, 16 }
 0x35c   : > { %6080 = vmatprep.subr.bf16.mxu1 %v9157_v59 }
 0x35d   : > { %6021 = vmatmul.mubr.msk.bf16.gmra.mrb[48].mxu0 %vm1072_vm3, %v2704_v47  ;;  %v2930_v47 = vcombine.low %v8076_v36, %v8441_v63  ;;  %v8475_v35 = vsel %vm7307_vm6, %v2821_v31, %v2826_v56  ;;  %v9229_v31 = vld [vmem:[#allocation37_spill] sm:$0xff]  ;;  %v9230_v56 = vld [vmem:[#allocation54_spill] sm:$0xff] }
 0x35e   : > { %6040 = vmatprep.mubr.msk.bf16.mxu0 %vm6681_vm0, %v9157_v59  ;;  %v3121_v43 = vcombine.low %v8471_v57, %v8475_v35 }
 0x35f   : > { %v2937_v33 = vrot.slane %v2930_v47, %v7096_v21  ;;  %v9228_v47 = vcombine.low %v8163_v3, %v8166_v44  ;;  %v9231_v3 = vld [vmem:[#allocation71_spill] sm:$0xff] }
 0x360   : > { %v8457_v58 = vpop.f32.mrb[8].mxu1  ;;  %v3128_v2 = vrot.slane %v3121_v43, %v7096_v21  ;;  %v3414_v44 = vcombine.low %v9231_v3, %v9218_v15 }
 0x361   : > { %v5924_v14 = vpop.f32.mrb[9].mxu1 }
 0x362   : > { %6031 = vmatmul.mubr.msk.bf16.gmra.mrb[52].mxu1 %vm481_vm1, %v9227_v40  ;;  %v1139_v25 = vpop.f32.mrb[10].mxu1  ;;  %v3135_v8 = vrot.slane %v3128_v2, %v7096_v21  ;;  %v5745_v40 = vcombine.high %v9213_v54, %v9229_v31  ;;  %v6349_v14 = vld [vmem:[#allocation8 + $0x30] sm:$0xff]   ;;  %v3435_v54 = vrot.slane %v3414_v44, %v7096_v21 }
 0x363   : > { %6034 = vmatprep.mubr.msk.bf16.mxu1 %vm6681_vm0, %v9157_v59  ;;  %v5925_v61 = vpop.f32.mrb[11].mxu1  ;;  %v9232_v25 = vld [vmem:[#allocation82_spill] sm:$0xff] }
 0x364   : > { %v3428_v43 = vrot.slane %v5745_v40, %v7096_v21 }
 0x365   : > { %6041 = vmatmul.mubr.msk.bf16.vlgmr.msra.gmra.mrb[52].mxu0 %vm1072_vm3, %v3071_v48  ;;  %v2944_v48 = vrot.slane %v2937_v33, %v7096_v21  ;;  %v9233_v33 = vcombine.low %v7915_v62, %v9232_v25  ;;  %v3710_v62 = vld [vmem:[#allocation10 + $0x18] sm:$0xf] }
 0x366   : > { %6067 = vmatpush3.bf16.msra.mxu0 %v3478_v52  ;;  %6044 = vmatprep.mubr.msk.bf16.mxu0 %vm6681_vm0, %v9157_v59  ;;  %v3412_v52 = vcombine.low %v9230_v56, %v9229_v31  ;;  %v3786_v31 = vsel %vm1082_vm12, %v3710_v62, 0  ;;  %v9235_v56 = vcombine.low %v8199_v39, %v8202_v26 }
 0x367   : > { %6094 = vmatprep.subr.bf16.mxu0 %v9157_v59 }
 0x368   : > { %v3421_v61 = vrot.slane %v3412_v52, %v7096_v21  ;;  %v9236_v52 = vcombine.low %v8176_v55, %v8208_v24  ;;  %v5746_v24 = vcombine.high %v9215_v6, %v9218_v15 }
 0x36a   : > { %6035 = vmatmul.mubr.msk.bf16.gmra.mrb[56].mxu1 %vm481_vm1, %v2944_v48  ;;  %v3436_v48 = vcombine.low %v3421_v61, %v3428_v43  ;;  %v9237_v61 = vcombine.low %v8007_v28, %v8030_v4 }
 0x36b   : > { %6054 = vmatprep.mubr.msk.bf16.mxu1 %vm6681_vm0, %v9157_v59 }
 0x36c   : > { %v3444_v40 = vrot.slane %v3436_v48, %v7096_v21  ;;  %v3593_v43 = vrot.slane %v9237_v61, %v7096_v21 }
 0x36d   : > { %6045 = vmatmul.mubr.msk.bf16.gmra.mrb[56].mxu0 %vm1072_vm3, %v9228_v47  ;;  %v9234_v47 = vld [vmem:[#allocation48_spill] sm:$0xff] }
 0x36e   : > { %6048 = vmatprep.mubr.msk.bf16.mxu0 %vm6681_vm0, %v9157_v59  ;;  %v3437_v2 = vcombine.low %v9234_v47, %v3435_v54 }
 0x370   : > { %v3451_v3 = vrot.slane %v3437_v2, %v7096_v21 }
 0x372   : > { %6055 = vmatmul.mubr.msk.bf16.vlgmr.msra.gmra.mrb[60].mxu1 %vm481_vm1, %v9233_v33  ;;  %v3452_v26 = vcombine.low %v3444_v40, %v3451_v3  ;;  %v9239_v3 = vcombine.low %v8071_v38, %v8076_v36  ;;  %v9243_v38 = vcombine.low %v8084_v5, %v8149_v12 }
 0x373   : > { %6058 = vmatprep.mubr.msk.bf16.mxu1 %vm6681_vm0, %v9157_v59  ;;  %6081 = vmatpush3.bf16.msra.mxu1 %v6349_v14  ;;  %v5750_v14 = vld.sshfl [vmem:[%s7060_s18 + $0x1c] sm:$0x33 pattern:$0x75316420] }
 0x374   : > { %6108 = vmatprep.subr.bf16.mxu1 %v9157_v59  ;;  %v8580_v36 = vrot.slane %v9243_v38, %v7096_v21  ;;  %v9247_v38 = vcombine.low %v8251_v51, %v8237_v7 }
 0x375   : > { %6049 = vmatmul.mubr.msk.bf16.gmra.mrb[60].mxu0 %vm1072_vm3, %v3135_v8  ;;  %v3286_v8 = vcombine.low %v8045_v13, %v8050_v1 }
 0x376   : > { %6068 = vmatprep.mubr.msk.bf16.mxu0 %vm6681_vm0, %v9157_v59 }
 0x377   : > { %v3293_v44 = vrot.slane %v3286_v8, %v7096_v21 }
 0x379   : > { %v3300_v25 = vrot.slane %v3293_v44, %v7096_v21 }
 0x37a   : > { %6059 = vmatmul.mubr.msk.bf16.gmra.mrb[64].mxu1 %vm481_vm1, %v9235_v56  ;;  %v9238_v56 = vcombine.low %v7883_v34, %v7997_v0  ;;  %v9240_v34 = vld [vmem:[#allocation80_spill] sm:$0xff]  ;;  %v9241_v0 = vld [vmem:[#allocation81_spill] sm:$0xff] }
 0x37b   : > { %6062 = vmatprep.mubr.msk.bf16.mxu1 %vm6681_vm0, %v9157_v59  ;;  %v9242_v61 = vcombine.low %v9240_v34, %v9241_v0  ;;  %v6351_v0 = vld [vmem:[#allocation8 + $0x40] sm:$0xff]  }
 0x37d   : > { %6069 = vmatmul.mubr.msk.bf16.vlgmr.msra.gmra.mrb[64].mxu0 %vm1072_vm3, %v9236_v52  ;;  %v3609_v52 = vrot.slane %v9238_v56, %v7096_v21 }
 0x37e   : > { %6095 = vmatpush3.bf16.msra.mxu0 %v3786_v31  ;;  %6072 = vmatprep.mubr.msk.bf16.mxu0 %vm6681_vm0, %v9157_v59  ;;  %v797_v39 = vpop.permute.xlu0 %796  ;;  %v3460_v31 = vrot.slane %v5746_v24, %v7096_v21  ;;  %v6350_v24 = vld [vmem:[#allocation8 + $0x38] sm:$0xff]  }
 0x37f   : > { %6122 = vmatprep.subr.bf16.mxu0 %v9157_v59  ;;  %v3586_v55 = vcombine.low %v8045_v13, %v797_v39  ;;  %v3850_v62 = vshrl.u32 %v797_v39, 16  ;;  %v8546_v13 = vrot.slane %v5750_v14, %v7096_v21 }
 0x380   : > { %v8536_v33 = vpop.permute.xlu1 %798  ;;  %v3467_v44 = vrot.slane %v3460_v31, %v7096_v21 }
 0x381   : > { %v3600_v54 = vrot.slane %v3586_v55, %v7096_v21  ;;  %v3855_v48 = vshll.u32 %v8536_v33, 16  ;;  %v3728_v55 = vcombine.low %v9215_v6, %v9218_v15  ;;  %v3549_v15 = vcombine.high %v5750_v14, %v5750_v14 }
 0x382   : > { %6063 = vmatmul.mubr.msk.bf16.gmra.mrb[68].mxu1 %vm481_vm1, %v3300_v25  ;;  %v8594_v12 = vpop.permute.xlu0 %800  ;;  %v3564_v56 = vcombine.high %v8546_v13, %v8546_v13 }
 0x383   : > { %v3602_v2 = vcombine.low %v3593_v43, %v3600_v54  ;;  %v3857_v8 = vsel %vm7307_vm6, %v3850_v62, %v3855_v48  ;;  %6082 = vmatprep.mubr.msk.bf16.mxu1 %vm6681_vm0, %v9157_v59  ;;  %v3736_v6 = vrot.slane %v3728_v55, %v7096_v21  ;;  %v4045_v54 = vld [vmem:[#allocation10 + $0x1c] sm:$0xf]  ;;  %v9244_v62 = vld [vmem:[#allocation42_spill] sm:$0xff] }
 0x384   : > { %v3921_v28 = vcombine.low %v8441_v63, %v3857_v8  ;;  %v3928_v63 = vrot.slane %v9239_v3, %v7096_v21  ;;  %v3744_v48 = vcombine.low %v9244_v62, %v9234_v47  ;;  %v3618_v8 = vcombine.low %v8536_v33, %v8594_v12  ;;  %v9246_v55 = vld [vmem:[#allocation76_spill] sm:$0xff] }
 0x385   : > { %6073 = vmatmul.mubr.msk.bf16.gmra.mrb[68].mxu0 %vm1072_vm3, %v3452_v26  ;;  %v3616_v4 = vrot.slane %v3602_v2, %v7096_v21  ;;  %v3729_v26 = vcombine.low %v8388_v20, %v8546_v13  ;;  %v4121_v31 = vsel %vm1082_vm12, %v4045_v54, 0  ;;  %v9248_v54 = vld [vmem:[#allocation72_spill] sm:$0xff] }
 0x386   : > { %6076 = vmatprep.mubr.msk.bf16.mxu0 %vm6681_vm0, %v9157_v59  ;;  %v3935_v40 = vrot.slane %v3921_v28, %v7096_v21  ;;  %v8603_v28 = vrot.slane %v3549_v15, %v7096_v21  ;;  %v3752_v47 = vrot.slane %v3744_v48, %v7096_v21  ;;  %v4079_v62 = vcombine.low %v9248_v54, %v8223_v49 }
 0x387   : > { %v3617_v39 = vcombine.low %v3609_v52, %v3616_v4  ;;  %v3743_v20 = vrot.slane %v3729_v26, %v7096_v21  ;;  %v9245_v4 = vcombine.low %v8214_v17, %v8220_v45  ;;  %v3625_v52 = vrot.slane %v3618_v8, %v7096_v21 }
 0x388   : > { %v3937_v25 = vcombine.low %v3928_v63, %v3935_v40  ;;  %v3761_v17 = vcombine.low %v8603_v28, %v3564_v56  ;;  %v3876_v40 = vshrl.u32 %v8546_v13, 16  ;;  %v3881_v3 = vshll.u32 %v8603_v28, 16 }
 0x389   : > { %v3745_v2 = vcombine.low %v3736_v6, %v3743_v20  ;;  %v3632_v63 = vrot.slane %v3625_v52, %v7096_v21  ;;  %v4063_v26 = vcombine.low %v9246_v55, %v8471_v57  ;;  %v3863_v57 = vshll.u32 %v8594_v12, 16  ;;  %v4321_v20 = vld [vmem:[#allocation10 + $0x20] sm:$0xf] }
 0x38a   : > { %6083 = vmatmul.mubr.msk.bf16.vlgmr.msra.gmra.mrb[72].mxu1 %vm481_vm1, %v9242_v61  ;;  %v8583_v43 = vrot.slane %v3937_v25, %v7096_v21  ;;  %v3866_v6 = vshrl.u32 %v8594_v12, 16  ;;  %v3874_v7 = vcombine.high %v8603_v28, %v8603_v28  ;;  %v9249_v52 = vcombine.low %v8262_v18, %v8268_v22 }
 0x38b   : > { %6086 = vmatprep.mubr.msk.bf16.mxu1 %vm6681_vm0, %v9157_v59  ;;  %6109 = vmatpush3.bf16.msra.mxu1 %v6350_v24  ;;  %v3759_v14 = vrot.slane %v3745_v2, %v7096_v21  ;;  %v8635_v24 = vpop.permute.xlu1 %802  ;;  %v3884_v2 = vshrl.u32 %v8603_v28, 16  ;;  %v4087_v49 = vrot.slane %v4079_v62, %v7096_v21  ;;  %v9250_v55 = vcombine.low %v7983_v9, %v7986_v37 }
 0x38c   : > { %v3952_v5 = vcombine.low %v8580_v36, %v8583_v43  ;;  %6136 = vmatprep.subr.bf16.mxu1 %v9157_v59  ;;  %v3871_v61 = vshll.u32 %v8635_v24, 16  ;;  %v4071_v36 = vrot.slane %v4063_v26, %v7096_v21  ;;  %v3858_v43 = vshrl.u32 %v8536_v33, 16 }
 0x38d   : > { %6077 = vmatmul.mubr.msk.bf16.gmra.mrb[72].mxu0 %vm1072_vm3, %v3467_v44  ;;  %v3760_v45 = vcombine.low %v3752_v47, %v3759_v14  ;;  %v3768_v44 = vrot.slane %v3761_v17, %v7096_v21  ;;  %v3897_v47 = vshll.u32 %v3874_v7, 16  ;;  %v4389_v14 = vsel %vm1082_vm12, %v4321_v20, 0 }
 0x38e   : > { %6096 = vmatprep.mubr.msk.bf16.mxu0 %vm6681_vm0, %v9157_v59  ;;  %v3873_v51 = vsel %vm7307_vm6, %v3866_v6, %v3871_v61  ;;  %v3865_v15 = vsel %vm7307_vm6, %v3858_v43, %v3863_v57  ;;  %v4347_v37 = vcombine.low %v8292_v27, %v8331_v60 }
 0x38f   : > { %v3775_v34 = vrot.slane %v3768_v44, %v7096_v21  ;;  %v3953_v8 = vcombine.low %v3865_v15, %v3873_v51 }
 0x391   : > { %v3960_v17 = vrot.slane %v3953_v8, %v7096_v21 }
 0x392   : > { %6087 = vmatmul.mubr.msk.bf16.gmra.mrb[76].mxu1 %vm481_vm1, %v3617_v39  ;;  %v3883_v39 = vsel %vm7307_vm6, %v3876_v40, %v3881_v3  ;;  %v4204_v40 = vcombine.low %v8050_v1, %v8536_v33  ;;  %v4339_v1 = vcombine.low %v8447_v53, %v8603_v28 }
 0x393   : > { %6090 = vmatprep.mubr.msk.bf16.mxu1 %vm6681_vm0, %v9157_v59  ;;  %v4064_v25 = vcombine.low %v8475_v35, %v3883_v39  ;;  %v3967_v3 = vrot.slane %v3960_v17, %v7096_v21 }
 0x394   : > { %v4211_v44 = vrot.slane %v4204_v40, %v7096_v21  ;;  %v4346_v26 = vrot.slane %v4339_v1, %v7096_v21 }
 0x395   : > { %6097 = vmatmul.mubr.msk.bf16.vlgmr.msra.gmra.mrb[76].mxu0 %vm1072_vm3, %v9245_v4  ;;  %v4078_v35 = vrot.slane %v4064_v25, %v7096_v21  ;;  %v3892_v4 = vshrl.u32 %v3564_v56, 16 }
 0x396   : > { %6123 = vmatpush3.bf16.msra.mxu0 %v4121_v31  ;;  %6100 = vmatprep.mubr.msk.bf16.mxu0 %vm6681_vm0, %v9157_v59  ;;  %v3889_v31 = vshll.u32 %v3564_v56, 16  ;;  %v4213_v33 = vcombine.low %v8393_v16, %v4211_v44  ;;  %v9251_v16 = vcombine.low %v8022_v42, %v8025_v10  ;;  %v4348_v9 = vcombine.low %v8413_v19, %v4346_v26 }
 0x397   : > { %6150 = vmatprep.subr.bf16.mxu0 %v9157_v59  ;;  %v4080_v48 = vcombine.low %v4071_v36, %v4078_v35  ;;  %v3899_v18 = vsel %vm7307_vm6, %v3892_v4, %v3897_v47  ;;  %v4355_v42 = vrot.slane %v4347_v37, %v7096_v21  ;;  %v5775_v19 = vcombine.high %v8546_v13, %v8603_v28 }
 0x398   : > { %v4227_v25 = vrot.slane %v4213_v33, %v7096_v21  ;;  %v4220_v53 = vrot.slane %v9251_v16, %v7096_v21  ;;  %v4362_v10 = vrot.slane %v4348_v9, %v7096_v21 }
 0x399   : > { %v4371_v46 = vrot.slane %v5775_v19, %v7096_v21 }
 0x39a   : > { %6091 = vmatmul.mubr.msk.bf16.gmra.mrb[80].mxu1 %vm481_vm1, %v3632_v63  ;;  %v4363_v60 = vcombine.low %v4355_v42, %v4362_v10 }
 0x39b   : > { %6110 = vmatprep.mubr.msk.bf16.mxu1 %vm6681_vm0, %v9157_v59  ;;  %v4378_v13 = vrot.slane %v4371_v46, %v7096_v21 }
 0x39d   : > { %6101 = vmatmul.mubr.msk.bf16.gmra.mrb[80].mxu0 %vm1072_vm3, %v3760_v45  ;;  %v4094_v45 = vrot.slane %v4080_v48, %v7096_v21 }
 0x39e   : > { %6104 = vmatprep.mubr.msk.bf16.mxu0 %vm6681_vm0, %v9157_v59 }
 0x39f   : > { %v4095_v22 = vcombine.low %v4087_v49, %v4094_v45 }
 0x3a2   : > { %6111 = vmatmul.mubr.msk.bf16.vlgmr.msra.gmra.mrb[84].mxu1 %vm481_vm1, %v9247_v38 }
 0x3a3   : > { %6114 = vmatprep.mubr.msk.bf16.mxu1 %vm6681_vm0, %v9157_v59  ;;  %6137 = vmatpush3.bf16.msra.mxu1 %v6351_v0  ;;  %v4228_v0 = vcombine.low %v4220_v53, %v4227_v25 }
 0x3a4   : > { %6164 = vmatprep.subr.bf16.mxu1 %v9157_v59 }
 0x3a5   : > { %6105 = vmatmul.mubr.msk.bf16.gmra.mrb[84].mxu0 %vm1072_vm3, %v3775_v34  ;;  %v4229_v34 = vcombine.low %v8594_v12, %v8635_v24 }
 0x3a6   : > { %6124 = vmatprep.mubr.msk.bf16.mxu0 %vm6681_vm0, %v9157_v59 }
 0x3a7   : > { %v4236_v27 = vrot.slane %v4229_v34, %v7096_v21 }
 0x3a9   : > { %v4243_v23 = vrot.slane %v4236_v27, %v7096_v21 }
 0x3aa   : > { %6115 = vmatmul.mubr.msk.bf16.gmra.mrb[88].mxu1 %vm481_vm1, %v3952_v5  ;;  %v3891_v5 = vsel %vm7307_vm6, %v3884_v2, %v3889_v31 }
 0x3ab   : > { %6118 = vmatprep.mubr.msk.bf16.mxu1 %vm6681_vm0, %v9157_v59  ;;  %v4096_v56 = vcombine.low %v3891_v5, %v3899_v18 }
 0x3ad   : > { %6125 = vmatmul.mubr.msk.bf16.vlgmr.msra.gmra.mrb[88].mxu0 %vm1072_vm3, %v9249_v52  ;;  %v4103_v63 = vrot.slane %v4096_v56, %v7096_v21 }
 0x3ae   : > { %6151 = vmatpush3.bf16.msra.mxu0 %v4389_v14  ;;  %6128 = vmatprep.mubr.msk.bf16.mxu0 %vm6681_vm0, %v9157_v59 }
 0x3af   : > { %6170 = vmatprep.subr.bf16.mxu0 %v9157_v59  ;;  %v4110_v39 = vrot.slane %v4103_v63, %v7096_v21 }
 0x3b2   : > { %6119 = vmatmul.mubr.msk.bf16.gmra.mrb[92].mxu1 %vm481_vm1, %v3967_v3 }
 0x3b3   : > { %6138 = vmatprep.mubr.msk.bf16.mxu1 %vm6681_vm0, %v9157_v59 }
 0x3b5   : > { %6129 = vmatmul.mubr.msk.bf16.gmra.mrb[92].mxu0 %vm1072_vm3, %v4095_v22 }
 0x3b6   : > { %6132 = vmatprep.mubr.msk.bf16.mxu0 %vm6681_vm0, %v9157_v59 }
 0x3ba   : > { %6139 = vmatmul.mubr.msk.bf16.vlgmr.msra.gmra.mrb[96].mxu1 %vm481_vm1, %v9250_v55 }
 0x3bb   : > { %6142 = vmatprep.mubr.msk.bf16.mxu1 %vm6681_vm0, %v9157_v59 }
 0x3bd   : > { %6133 = vmatmul.mubr.msk.bf16.gmra.mrb[96].mxu0 %vm1072_vm3, %v4110_v39 }
 0x3be   : > { %6152 = vmatprep.mubr.msk.bf16.mxu0 %vm6681_vm0, %v9157_v59 }
 0x3c2   : > { %6143 = vmatmul.mubr.msk.bf16.gmra.mrb[100].mxu1 %vm481_vm1, %v4228_v0 }
 0x3c3   : > { %6146 = vmatprep.mubr.msk.bf16.mxu1 %vm6681_vm0, %v9157_v59 }
 0x3c5   : > { %6153 = vmatmul.mubr.msk.bf16.vlgmr.msra.gmra.mrb[100].mxu0 %vm1072_vm3, %v4338_v41 }
 0x3c6   : > { %6156 = vmatprep.mubr.msk.bf16.mxu0 %vm6681_vm0, %v9157_v59 }
 0x3ca   : > { %6147 = vmatmul.mubr.msk.bf16.gmra.mrb[104].mxu1 %vm481_vm1, %v4243_v23 }
 0x3cb   : > { %6166 = vmatprep.mubr.msk.bf16.mxu1 %vm6681_vm0, %v9157_v59 }
 0x3cd   : > { %6157 = vmatmul.mubr.msk.bf16.gmra.mrb[104].mxu0 %vm1072_vm3, %v4363_v60  ;;  %v1304_v41 = vpop.f32.mrb[4].mxu0 }
 0x3ce   : > { %6160 = vmatprep.mubr.msk.bf16.mxu0 %vm6681_vm0, %v9157_v59  ;;  %v1305_v12 = vadd.f32 %v1304_v41, %v8390_v30  ;;  %v5930_v24 = vpop.f32.mrb[5].mxu0 }
 0x3cf   : > { %v1307_v61 = vpop.f32.mrb[6].mxu0 }
 0x3d0   : > { %v1308_v28 = vadd.f32 %v1307_v61, %v8398_v32  ;;  %v5931_v38 = vpop.f32.mrb[7].mxu0 }
 0x3d5   : > { %6161 = vmatmul.mubr.msk.bf16.gmra.mrb[108].mxu0 %vm1072_vm3, %v4378_v13 }
 0x3d6   : > { %6172 = vmatprep.mubr.msk.bf16.mxu0 %vm6681_vm0, %v9157_v59 }
 0x3db   : > { %v1811_v36 = vpop.f32.mrb[12].mxu1 }
 0x3dc   : > { %v1833_v43 = vadd.f32 %v1811_v36, %v1305_v12  ;;  %v5944_v57 = vpop.f32.mrb[13].mxu1 }
 0x3dd   : > { %v1814_v6 = vpop.f32.mrb[14].mxu1 }
 0x3de   : > { %v1834_v35 = vadd.f32 %v1814_v6, %v1308_v28  ;;  %v5945_v7 = vpop.f32.mrb[15].mxu1 }
 0x3df   : > { %v1312_v51 = vpop.f32.mrb[8].mxu0 }
 0x3e0   : > { %v1313_v30 = vadd.f32 %v1312_v51, %v8419_v29  ;;  %v5934_v20 = vpop.f32.mrb[9].mxu0 }
 0x3e1   : > { %v1315_v15 = vpop.f32.mrb[10].mxu0 }
 0x3e2   : > { %v1316_v54 = vadd.f32 %v1315_v15, %v8424_v11  ;;  %v5935_v32 = vpop.f32.mrb[11].mxu0 }
 0x3e7   : > { %v1320_v62 = vpop.f32.mrb[12].mxu0 }
 0x3e8   : > { %v1321_v48 = vadd.f32 %v1320_v62, %v8457_v58  ;;  %v5938_v2 = vpop.f32.mrb[13].mxu0 }
 0x3e9   : > { %v1323_v8 = vpop.f32.mrb[14].mxu0 }
 0x3ea   : > { %v5939_v31 = vpop.f32.mrb[15].mxu0 }
 0x3ed   : > { %v1819_v4 = vpop.f32.mrb[16].mxu1 }
 0x3ee   : > { %v1835_v47 = vadd.f32 %v1819_v4, %v1313_v30  ;;  %v5948_v14 = vpop.f32.mrb[17].mxu1 }
 0x3ef   : > { %v1822_v45 = vpop.f32.mrb[18].mxu1 }
 0x3f0   : > { %v1999_v52 = vpop.f32.mrb[16].mxu0  ;;  %v1836_v5 = vadd.f32 %v1822_v45, %v1316_v54  ;;  %v5949_v29 = vpop.f32.mrb[19].mxu1 }
 0x3f1   : > { %v2021_v49 = vadd.f32 %v1999_v52, %v1833_v43  ;;  %v5958_v17 = vpop.f32.mrb[17].mxu0 }
 0x3f2   : > { %v2002_v18 = vpop.f32.mrb[18].mxu0 }
 0x3f3   : > { %v2022_v22 = vadd.f32 %v2002_v18, %v1834_v35  ;;  %v5959_v56 = vpop.f32.mrb[19].mxu0 }
 0x3f5   : > { %v1827_v11 = vpop.f32.mrb[20].mxu1 }
 0x3f6   : > { %v1837_v40 = vadd.f32 %v1827_v11, %v1321_v48  ;;  %v5952_v3 = vpop.f32.mrb[21].mxu1 }
 0x3f7   : > { %v1830_v44 = vpop.f32.mrb[22].mxu1 }
 0x3f8   : > { %v2007_v63 = vpop.f32.mrb[20].mxu0  ;;  %v5953_v1 = vpop.f32.mrb[23].mxu1 }
 0x3f9   : > { %v2023_v58 = vadd.f32 %v2007_v63, %v1835_v47  ;;  %v5962_v39 = vpop.f32.mrb[21].mxu0 }
 0x3fa   : > { %v2010_v33 = vpop.f32.mrb[22].mxu0 }
 0x3fb   : > { %v2024_v55 = vadd.f32 %v2010_v33, %v1836_v5  ;;  %v5963_v26 = vpop.f32.mrb[23].mxu0 }
 0x3fd   : > { %v2191_v25 = vpop.f32.mrb[24].mxu1 }
 0x3fe   : > { %v2213_v16 = vadd.f32 %v2191_v25, %v2021_v49  ;;  %v5972_v37 = vpop.f32.mrb[25].mxu1 }
 0x3ff   : > { %v2194_v0 = vpop.f32.mrb[26].mxu1 }
 0x400   : > { %v2015_v53 = vpop.f32.mrb[24].mxu0  ;;  %v2214_v42 = vadd.f32 %v2194_v0, %v2022_v22  ;;  %v5973_v27 = vpop.f32.mrb[27].mxu1 }
 0x401   : > { %v2025_v9 = vadd.f32 %v2015_v53, %v1837_v40  ;;  %v5966_v34 = vpop.f32.mrb[25].mxu0 }
 0x402   : > { %v2018_v10 = vpop.f32.mrb[26].mxu0 }
 0x403   : > { %v5967_v60 = vpop.f32.mrb[27].mxu0 }
 0x405   : > { %v2199_v19 = vpop.f32.mrb[28].mxu1 }
 0x406   : > { %v2215_v23 = vadd.f32 %v2199_v19, %v2023_v58  ;;  %v5976_v46 = vpop.f32.mrb[29].mxu1 }
 0x407   : > { %v2202_v24 = vpop.f32.mrb[30].mxu1 }
 0x408   : > { %v2379_v41 = vpop.f32.mrb[28].mxu0  ;;  %v2216_v13 = vadd.f32 %v2202_v24, %v2024_v55  ;;  %v5977_v28 = vpop.f32.mrb[31].mxu1 }
 0x409   : > { %v2401_v12 = vadd.f32 %v2379_v41, %v2213_v16  ;;  %v5986_v61 = vpop.f32.mrb[29].mxu0 }
 0x40a   : > { %v2382_v38 = vpop.f32.mrb[30].mxu0 }
 0x40b   : > { %v2402_v36 = vadd.f32 %v2382_v38, %v2214_v42  ;;  %v5987_v43 = vpop.f32.mrb[31].mxu0 }
 0x40d   : > { %v2207_v57 = vpop.f32.mrb[32].mxu1 }
 0x40e   : > { %v2217_v6 = vadd.f32 %v2207_v57, %v2025_v9  ;;  %v5980_v35 = vpop.f32.mrb[33].mxu1 }
 0x40f   : > { %v2210_v30 = vpop.f32.mrb[34].mxu1 }
 0x410   : > { %v2387_v7 = vpop.f32.mrb[32].mxu0  ;;  %v5981_v15 = vpop.f32.mrb[35].mxu1 }
 0x411   : > { %v2403_v51 = vadd.f32 %v2387_v7, %v2215_v23  ;;  %v5990_v20 = vpop.f32.mrb[33].mxu0 }
 0x412   : > { %v2390_v54 = vpop.f32.mrb[34].mxu0 }
 0x413   : > { %v2404_v32 = vadd.f32 %v2390_v54, %v2216_v13  ;;  %v5991_v62 = vpop.f32.mrb[35].mxu0 }
 0x415   : > { %v2579_v48 = vpop.f32.mrb[36].mxu1 }
 0x416   : > { %v2601_v2 = vadd.f32 %v2579_v48, %v2401_v12  ;;  %v6000_v31 = vpop.f32.mrb[37].mxu1 }
 0x417   : > { %v2582_v14 = vpop.f32.mrb[38].mxu1 }
 0x418   : > { %v2395_v8 = vpop.f32.mrb[36].mxu0  ;;  %v2602_v52 = vadd.f32 %v2582_v14, %v2402_v36  ;;  %v6001_v45 = vpop.f32.mrb[39].mxu1 }
 0x419   : > { %v2405_v4 = vadd.f32 %v2395_v8, %v2217_v6  ;;  %v5994_v47 = vpop.f32.mrb[37].mxu0 }
 0x41a   : > { %v2398_v49 = vpop.f32.mrb[38].mxu0 }
 0x41b   : > { %v5995_v17 = vpop.f32.mrb[39].mxu0  ;;  %v4595_v49 = vld [vmem:[#allocation13] sm:$0xf] }
 0x41d   : > { %v2587_v5 = vpop.f32.mrb[40].mxu1 }
 0x41e   : > { %v2603_v29 = vadd.f32 %v2587_v5, %v2403_v51  ;;  %v6004_v18 = vpop.f32.mrb[41].mxu1  ;;  %v4815_v5 = vsel %vm1082_vm12, %v4595_v49, 0 }
 0x41f   : > { %v2590_v11 = vpop.f32.mrb[42].mxu1  ;;  %6171 = vmatpush3.bf16.msra.mxu0 %v4815_v5 }
 0x420   : > { %v2751_v22 = vpop.f32.mrb[40].mxu0  ;;  %v2604_v3 = vadd.f32 %v2590_v11, %v2404_v32  ;;  %v6005_v63 = vpop.f32.mrb[43].mxu1  ;;  %6182 = vmatprep.subr.bf16.mxu0 %v9157_v59 }
 0x421   : > { %v2773_v56 = vadd.f32 %v2751_v22, %v2601_v2  ;;  %v6014_v40 = vpop.f32.mrb[41].mxu0 }
 0x422   : > { %v2754_v58 = vpop.f32.mrb[42].mxu0 }
 0x423   : > { %v2774_v44 = vadd.f32 %v2754_v58, %v2602_v52  ;;  %v6015_v39 = vpop.f32.mrb[43].mxu0  ;;  %v4665_v52 = vld [vmem:[#allocation13 + $0x4] sm:$0xf] }
 0x424   : > { %v4719_v17 = vsel %vm1082_vm12, %v4665_v52, 0 }
 0x425   : > { %v2595_v1 = vpop.f32.mrb[44].mxu1  ;;  %6165 = vmatpush3.bf16.msra.mxu1 %v4719_v17 }
 0x426   : > { %v2605_v33 = vadd.f32 %v2595_v1, %v2405_v4  ;;  %v6008_v55 = vpop.f32.mrb[45].mxu1  ;;  %6176 = vmatprep.subr.bf16.mxu1 %v9157_v59 }
 0x427   : > { %v2598_v16 = vpop.f32.mrb[46].mxu1 }
 0x428   : > { %v2759_v26 = vpop.f32.mrb[44].mxu0  ;;  %v6009_v37 = vpop.f32.mrb[47].mxu1 }
 0x429   : > { %v2775_v25 = vadd.f32 %v2759_v26, %v2603_v29  ;;  %v6018_v53 = vpop.f32.mrb[45].mxu0 }
 0x42a   : > { %v2762_v9 = vpop.f32.mrb[46].mxu0 }
 0x42b   : > { %v2776_v34 = vadd.f32 %v2762_v9, %v2604_v3  ;;  %v6019_v0 = vpop.f32.mrb[47].mxu0 }
 0x42d   : > { %v2994_v42 = vpop.f32.mrb[48].mxu1 }
 0x42e   : > { %v3016_v10 = vadd.f32 %v2994_v42, %v2773_v56  ;;  %v6028_v60 = vpop.f32.mrb[49].mxu1 }
 0x42f   : > { %v2997_v46 = vpop.f32.mrb[50].mxu1 }
 0x430   : > { %v2767_v27 = vpop.f32.mrb[48].mxu0  ;;  %v3017_v41 = vadd.f32 %v2997_v46, %v2774_v44  ;;  %v6029_v24 = vpop.f32.mrb[51].mxu1 }
 0x431   : > { %v2777_v19 = vadd.f32 %v2767_v27, %v2605_v33  ;;  %v6022_v23 = vpop.f32.mrb[49].mxu0 }
 0x432   : > { %v2770_v12 = vpop.f32.mrb[50].mxu0 }
 0x433   : > { %v6023_v61 = vpop.f32.mrb[51].mxu0 }
 0x435   : > { %v3002_v13 = vpop.f32.mrb[52].mxu1 }
 0x436   : > { %v3018_v28 = vadd.f32 %v3002_v13, %v2775_v25  ;;  %v6032_v38 = vpop.f32.mrb[53].mxu1 }
 0x437   : > { %v3005_v57 = vpop.f32.mrb[54].mxu1 }
 0x438   : > { %v3182_v36 = vpop.f32.mrb[52].mxu0  ;;  %v3019_v35 = vadd.f32 %v3005_v57, %v2776_v34  ;;  %v6033_v7 = vpop.f32.mrb[55].mxu1 }
 0x439   : > { %v3204_v43 = vadd.f32 %v3182_v36, %v3016_v10  ;;  %v6042_v6 = vpop.f32.mrb[53].mxu0 }
 0x43a   : > { %v3185_v51 = vpop.f32.mrb[54].mxu0 }
 0x43b   : > { %v3205_v30 = vadd.f32 %v3185_v51, %v3017_v41  ;;  %v6043_v20 = vpop.f32.mrb[55].mxu0 }
 0x43d   : > { %v3010_v15 = vpop.f32.mrb[56].mxu1 }
 0x43e   : > { %v3020_v54 = vadd.f32 %v3010_v15, %v2777_v19  ;;  %v6036_v32 = vpop.f32.mrb[57].mxu1 }
 0x43f   : > { %v3013_v2 = vpop.f32.mrb[58].mxu1 }
 0x440   : > { %v3190_v62 = vpop.f32.mrb[56].mxu0  ;;  %v6037_v31 = vpop.f32.mrb[59].mxu1 }
 0x441   : > { %v3206_v48 = vadd.f32 %v3190_v62, %v3018_v28  ;;  %v6046_v8 = vpop.f32.mrb[57].mxu0 }
 0x442   : > { %v3193_v4 = vpop.f32.mrb[58].mxu0 }
 0x443   : > { %v3207_v47 = vadd.f32 %v3193_v4, %v3019_v35  ;;  %v6047_v14 = vpop.f32.mrb[59].mxu0 }
 0x445   : > { %v3350_v45 = vpop.f32.mrb[60].mxu1 }
 0x446   : > { %v3372_v29 = vadd.f32 %v3350_v45, %v3204_v43  ;;  %v6056_v22 = vpop.f32.mrb[61].mxu1 }
 0x447   : > { %v3353_v40 = vpop.f32.mrb[62].mxu1 }
 0x448   : > { %v3198_v18 = vpop.f32.mrb[60].mxu0  ;;  %v3373_v3 = vadd.f32 %v3353_v40, %v3205_v30  ;;  %v6057_v58 = vpop.f32.mrb[63].mxu1 }
 0x449   : > { %v3208_v56 = vadd.f32 %v3198_v18, %v3020_v54  ;;  %v6050_v11 = vpop.f32.mrb[61].mxu0 }
 0x44a   : > { %v3201_v63 = vpop.f32.mrb[62].mxu0 }
 0x44b   : > { %v6051_v44 = vpop.f32.mrb[63].mxu0 }
 0x44d   : > { %v3358_v39 = vpop.f32.mrb[64].mxu1 }
 0x44e   : > { %v3374_v1 = vadd.f32 %v3358_v39, %v3206_v48  ;;  %v6060_v33 = vpop.f32.mrb[65].mxu1 }
 0x44f   : > { %v3361_v25 = vpop.f32.mrb[66].mxu1 }
 0x450   : > { %v3514_v55 = vpop.f32.mrb[64].mxu0  ;;  %v3375_v53 = vadd.f32 %v3361_v25, %v3207_v47  ;;  %v6061_v37 = vpop.f32.mrb[67].mxu1 }
 0x451   : > { %v3536_v26 = vadd.f32 %v3514_v55, %v3372_v29  ;;  %v6070_v16 = vpop.f32.mrb[65].mxu0 }
 0x452   : > { %v3517_v9 = vpop.f32.mrb[66].mxu0 }
 0x453   : > { %v3537_v34 = vadd.f32 %v3517_v9, %v3373_v3  ;;  %v6071_v0 = vpop.f32.mrb[67].mxu0 }
 0x455   : > { %v3366_v42 = vpop.f32.mrb[68].mxu1 }
 0x456   : > { %v3376_v10 = vadd.f32 %v3366_v42, %v3208_v56  ;;  %v6064_v27 = vpop.f32.mrb[69].mxu1 }
 0x457   : > { %v3369_v23 = vpop.f32.mrb[70].mxu1 }
 0x458   : > { %v3522_v60 = vpop.f32.mrb[68].mxu0  ;;  %v6065_v41 = vpop.f32.mrb[71].mxu1 }
 0x459   : > { %v3538_v19 = vadd.f32 %v3522_v60, %v3374_v1  ;;  %v6074_v46 = vpop.f32.mrb[69].mxu0 }
 0x45a   : > { %v3525_v12 = vpop.f32.mrb[70].mxu0 }
 0x45b   : > { %v3539_v24 = vadd.f32 %v3525_v12, %v3375_v53  ;;  %v6075_v61 = vpop.f32.mrb[71].mxu0 }
 0x45d   : > { %v3682_v13 = vpop.f32.mrb[72].mxu1 }
 0x45e   : > { %v3704_v28 = vadd.f32 %v3682_v13, %v3536_v26  ;;  %v6084_v36 = vpop.f32.mrb[73].mxu1 }
 0x45f   : > { %v3685_v6 = vpop.f32.mrb[74].mxu1 }
 0x460   : > { %v3530_v38 = vpop.f32.mrb[72].mxu0  ;;  %v3705_v35 = vadd.f32 %v3685_v6, %v3537_v34  ;;  %v6085_v51 = vpop.f32.mrb[75].mxu1 }
 0x461   : > { %v3540_v43 = vadd.f32 %v3530_v38, %v3376_v10  ;;  %v6078_v57 = vpop.f32.mrb[73].mxu0 }
 0x462   : > { %v3533_v7 = vpop.f32.mrb[74].mxu0 }
 0x463   : > { %v6079_v30 = vpop.f32.mrb[75].mxu0 }
 0x465   : > { %v3690_v20 = vpop.f32.mrb[76].mxu1 }
 0x466   : > { %v3706_v15 = vadd.f32 %v3690_v20, %v3538_v19  ;;  %v6088_v54 = vpop.f32.mrb[77].mxu1 }
 0x467   : > { %v3693_v48 = vpop.f32.mrb[78].mxu1 }
 0x468   : > { %v3822_v32 = vpop.f32.mrb[76].mxu0  ;;  %v3707_v8 = vadd.f32 %v3693_v48, %v3539_v24  ;;  %v6089_v31 = vpop.f32.mrb[79].mxu1 }
 0x469   : > { %v3844_v62 = vadd.f32 %v3822_v32, %v3704_v28  ;;  %v6098_v2 = vpop.f32.mrb[77].mxu0 }
 0x46a   : > { %v3825_v4 = vpop.f32.mrb[78].mxu0 }
 0x46b   : > { %v3845_v47 = vadd.f32 %v3825_v4, %v3705_v35  ;;  %v6099_v14 = vpop.f32.mrb[79].mxu0 }
 0x46c   : > { %v8752_v14 = vld [vmem:[#allocation11] ss:$0 sm:$0xff] }
 0x46d   : > { %v3698_v52 = vpop.f32.mrb[80].mxu1 }
 0x46e   : > { %v3708_v49 = vadd.f32 %v3698_v52, %v3540_v43  ;;  %v6092_v45 = vpop.f32.mrb[81].mxu1 }
 0x46f   : > { %v3701_v29 = vpop.f32.mrb[82].mxu1 }
 0x470   : > { %v3830_v17 = vpop.f32.mrb[80].mxu0  ;;  %v6093_v22 = vpop.f32.mrb[83].mxu1 }
 0x471   : > { %v3846_v5 = vadd.f32 %v3830_v17, %v3706_v15  ;;  %v6102_v18 = vpop.f32.mrb[81].mxu0 }
 0x472   : > { %v3833_v56 = vpop.f32.mrb[82].mxu0 }
 0x473   : > { %v3847_v11 = vadd.f32 %v3833_v56, %v3707_v8  ;;  %v6103_v40 = vpop.f32.mrb[83].mxu0 }
 0x475   : > { %v4017_v3 = vpop.f32.mrb[84].mxu1 }
 0x476   : > { %v4039_v63 = vadd.f32 %v4017_v3, %v3844_v62  ;;  %v6112_v44 = vpop.f32.mrb[85].mxu1 }
 0x477   : > { %v4020_v33 = vpop.f32.mrb[86].mxu1 }
 0x478   : > { %v3838_v58 = vpop.f32.mrb[84].mxu0  ;;  %v4040_v55 = vadd.f32 %v4020_v33, %v3845_v47  ;;  %v6113_v25 = vpop.f32.mrb[87].mxu1 }
 0x479   : > { %v3848_v39 = vadd.f32 %v3838_v58, %v3708_v49  ;;  %v6106_v1 = vpop.f32.mrb[85].mxu0 }
 0x47a   : > { %v3841_v26 = vpop.f32.mrb[86].mxu0 }
 0x47b   : > { %v6107_v16 = vpop.f32.mrb[87].mxu0 }
 0x47d   : > { %v4025_v53 = vpop.f32.mrb[88].mxu1 }
 0x47e   : > { %v4041_v37 = vadd.f32 %v4025_v53, %v3846_v5  ;;  %v6116_v9 = vpop.f32.mrb[89].mxu1 }
 0x47f   : > { %v4028_v42 = vpop.f32.mrb[90].mxu1 }
 0x480   : > { %v4157_v34 = vpop.f32.mrb[88].mxu0  ;;  %v4042_v27 = vadd.f32 %v4028_v42, %v3847_v11  ;;  %v6117_v60 = vpop.f32.mrb[91].mxu1  ;;  %v4959_v42 = vld [vmem:[#allocation13 + $0xc] sm:$0xf] }
 0x481   : > { %v4179_v0 = vadd.f32 %v4157_v34, %v4039_v63  ;;  %v6126_v10 = vpop.f32.mrb[89].mxu0 }
 0x482   : > { %v4160_v19 = vpop.f32.mrb[90].mxu0 }
 0x483   : > { %v4180_v23 = vadd.f32 %v4160_v19, %v4040_v55  ;;  %v6127_v46 = vpop.f32.mrb[91].mxu0 }
 0x485   : > { %v4033_v41 = vpop.f32.mrb[92].mxu1 }
 0x486   : > { %v4043_v12 = vadd.f32 %v4033_v41, %v3848_v39  ;;  %v6120_v24 = vpop.f32.mrb[93].mxu1  ;;  %v8765_v41 = vsel %vm1082_vm12, %v4959_v42, 0 }
 0x487   : > { %v4036_v28 = vpop.f32.mrb[94].mxu1 }
 0x488   : > { %v4165_v61 = vpop.f32.mrb[92].mxu0  ;;  %v6121_v36 = vpop.f32.mrb[95].mxu1 }
 0x489   : > { %v4181_v13 = vadd.f32 %v4165_v61, %v4041_v37  ;;  %v6130_v38 = vpop.f32.mrb[93].mxu0 }
 0x48a   : > { %v4168_v43 = vpop.f32.mrb[94].mxu0 }
 0x48b   : > { %v4182_v57 = vadd.f32 %v4168_v43, %v4042_v27  ;;  %v6131_v6 = vpop.f32.mrb[95].mxu0 }
 0x48d   : > { %v4293_v35 = vpop.f32.mrb[96].mxu1 }
 0x48e   : > { %v4315_v7 = vadd.f32 %v4293_v35, %v4179_v0  ;;  %v6140_v30 = vpop.f32.mrb[97].mxu1 }
 0x48f   : > { %v4296_v54 = vpop.f32.mrb[98].mxu1 }
 0x490   : > { %v4173_v51 = vpop.f32.mrb[96].mxu0  ;;  %v4316_v32 = vadd.f32 %v4296_v54, %v4180_v23  ;;  %v6141_v48 = vpop.f32.mrb[99].mxu1 }
 0x491   : > { %v4183_v20 = vadd.f32 %v4173_v51, %v4043_v12  ;;  %v6134_v15 = vpop.f32.mrb[97].mxu0 }
 0x492   : > { %v4176_v62 = vpop.f32.mrb[98].mxu0 }
 0x493   : > { %v6135_v2 = vpop.f32.mrb[99].mxu0 }
 0x495   : > { %v4301_v8 = vpop.f32.mrb[100].mxu1 }
 0x496   : > { %v4317_v31 = vadd.f32 %v4301_v8, %v4181_v13  ;;  %v6144_v4 = vpop.f32.mrb[101].mxu1 }
 0x497   : > { %v4304_v49 = vpop.f32.mrb[102].mxu1 }
 0x498   : > { %v4425_v47 = vpop.f32.mrb[100].mxu0  ;;  %v4318_v17 = vadd.f32 %v4304_v49, %v4182_v57  ;;  %v6145_v5 = vpop.f32.mrb[103].mxu1 }
 0x499   : > { %v4447_v52 = vadd.f32 %v4425_v47, %v4315_v7  ;;  %v6154_v45 = vpop.f32.mrb[101].mxu0 }
 0x49a   : > { %v4428_v29 = vpop.f32.mrb[102].mxu0 }
 0x49b   : > { %v4459_v18 = vadd.f32 %v8752_v14, %v4447_v52  ;;  %v4448_v22 = vadd.f32 %v4428_v29, %v4316_v32  ;;  %v6155_v56 = vpop.f32.mrb[103].mxu0 }
 0x49d   : > { %v4460_v11 = vadd.f32 %v8752_v14, %v4448_v22  ;;  %v4464_v40 = vmax.f32 %v4459_v18, 0.0  ;;  %v4309_v63 = vpop.f32.mrb[104].mxu1 }
 0x49e   : > { %v8756_v58 = vadd.f32 %v4309_v63, %v4183_v20  ;;  %v6148_v44 = vpop.f32.mrb[105].mxu1 }
 0x49f   : > { %v4465_v3 = vmax.f32 %v4460_v11, 0.0  ;;  %v4312_v26 = vpop.f32.mrb[106].mxu1 }
 0x4a0   : > { %v4433_v39 = vpop.f32.mrb[104].mxu0  ;;  %v6149_v16 = vpop.f32.mrb[107].mxu1 }
 0x4a1   : > { %v4469_v1 = vpack.c.bf16 %v4465_v3, %v4464_v40  ;;  %v5780_v33 = vpack.c.bf16 %v4465_v3, %v4465_v3  ;;  %v4449_v55 = vadd.f32 %v4433_v39, %v4317_v31  ;;  %v6158_v25 = vpop.f32.mrb[105].mxu0 }
 0x4a2   : > { %v4436_v53 = vpop.f32.mrb[106].mxu0 }
 0x4a3   : > { %v4482_v37 = vrot.slane %v4469_v1, %v7096_v21  ;;  %v4489_v9 = vrot.slane %v5780_v33, %v7096_v21  ;;  %v4450_v34 = vadd.f32 %v4436_v53, %v4318_v17  ;;  %v6159_v0 = vpop.f32.mrb[107].mxu0  ;;  %v4461_v10 = vadd.f32 %v8752_v14, %v4449_v55 }
 0x4a5   : > { %v4490_v27 = vcombine.high %v4482_v37, %v4482_v37  ;;  %v4491_v60 = vcombine.high %v4489_v9, %v4489_v9  ;;  %v4498_v19 = vrot.slane %v4482_v37, %v7096_v21  ;;  %v4505_v23 = vrot.slane %v4489_v9, %v7096_v21 }
 0x4a6   : > { %v4462_v46 = vadd.f32 %v8752_v14, %v4450_v34  ;;  %v4466_v43 = vmax.f32 %v4461_v10, 0.0 }
 0x4a7   : > { %v4512_v12 = vrot.slane %v4490_v27, %v7096_v21  ;;  %v4519_v24 = vrot.slane %v4491_v60, %v7096_v21  ;;  %v4520_v61 = vcombine.high %v4498_v19, %v4498_v19  ;;  %v4521_v13 = vcombine.high %v4505_v23, %v4505_v23 }
 0x4a8   : > { %v4597_v28 = vshrl.u32 %v4498_v19, 16  ;;  %v4619_v38 = vshll.u32 %v4505_v23, 16  ;;  %v4622_v36 = vshrl.u32 %v4505_v23, 16  ;;  %v4441_v57 = vpop.f32.mrb[108].mxu0  ;;  %v4467_v32 = vmax.f32 %v4462_v46, 0.0 }
 0x4a9   : > { %v4522_v6 = vcombine.high %v4512_v12, %v4512_v12  ;;  %v8769_v35 = vcombine.high %v4519_v24, %v4519_v24  ;;  %v4602_v7 = vshll.u32 %v4512_v12, 16  ;;  %v4605_v51 = vshrl.u32 %v4512_v12, 16  ;;  %v6162_v30 = vpop.f32.mrb[109].mxu0 }
 0x4aa   : > { %v4610_v20 = vshll.u32 %v4520_v61, 16  ;;  %v4627_v15 = vshll.u32 %v4519_v24, 16  ;;  %v4762_v54 = vcombine.low %v4498_v19, %v4512_v12  ;;  %v4444_v62 = vpop.f32.mrb[110].mxu0  ;;  %v4631_v8 = vshrl.u32 %v4521_v13, 16 }
 0x4ab   : > { %v4604_v48 = vsel %vm7307_vm6, %v4597_v28, %v4602_v7  ;;  %v4614_v2 = vshrl.u32 %v4522_v6, 16  ;;  %v4636_v31 = vshll.u32 %v8769_v35, 16  ;;  %v6163_v4 = vpop.f32.mrb[111].mxu0  ;;  %v4639_v52 = vshrl.u32 %v8769_v35, 16 }
 0x4ac   : > { %v4612_v47 = vsel %vm7307_vm6, %v4605_v51, %v4610_v20  ;;  %v4763_v49 = vcombine.low %v4522_v6, %v4505_v23  ;;  %v5791_v45 = vcombine.high %v4505_v23, %v4519_v24  ;;  %v4629_v5 = vsel %vm7307_vm6, %v4622_v36, %v4627_v15 }
 0x4ad   : > { %v4621_v17 = vsel %vm7307_vm6, %v4614_v2, %v4619_v38  ;;  %v4666_v29 = vcombine.low %v4604_v48, %v4612_v47  ;;  %v4860_v18 = vcombine.low %v4512_v12, %v4520_v61  ;;  %v4772_v56 = vrot.slane %v4762_v54, %v7096_v21 }
 0x4ae   : > { %v4667_v22 = vcombine.low %v4621_v17, %v4629_v5  ;;  %v4779_v11 = vrot.slane %v4763_v49, %v7096_v21  ;;  %v4861_v40 = vcombine.low %v4505_v23, %v4519_v24  ;;  %v4786_v63 = vrot.slane %v5791_v45, %v7096_v21 }
 0x4af   : > { %v4676_v3 = vrot.slane %v4666_v29, %v7096_v21  ;;  %v4470_v44 = vpack.c.bf16 %v4467_v32, %v4466_v43  ;;  %v5781_v39 = vpack.c.bf16 %v4467_v32, %v4467_v32  ;;  %v8786_v33 = vrot.slane %v4860_v18, %v7096_v21 }
 0x4b0   : > { %v4794_v1 = vcombine.low %v4772_v56, %v4779_v11  ;;  %v4451_v55 = vadd.f32 %v4441_v57, %v8756_v58  ;;  %v8790_v26 = vrot.slane %v4667_v22, %v7096_v21  ;;  %v4968_v53 = vcombine.low %v4779_v11, %v4786_v63 }
 0x4b1   : > { %v4531_v25 = vrot.slane %v4470_v44, %v7096_v21  ;;  %v4538_v16 = vrot.slane %v5781_v39, %v7096_v21  ;;  %v8795_v37 = vrot.slane %v4861_v40, %v7096_v21  ;;  %v4638_v9 = vsel %vm7307_vm6, %v4631_v8, %v4636_v31 }
 0x4b2   : > { %v4463_v34 = vadd.f32 %v8752_v14, %v4451_v55  ;;  %v8801_v0 = vrot.slane %v4794_v1, %v7096_v21  ;;  %v4698_v58 = vcombine.low %v4676_v3, %v8790_v26  ;;  %v8810_v46 = vrot.slane %v4968_v53, %v7096_v21 }
 0x4b3   : > { %v4539_v42 = vcombine.high %v4531_v25, %v4531_v25  ;;  %v4540_v10 = vcombine.high %v4538_v16, %v4538_v16  ;;  %v4547_v27 = vrot.slane %v4531_v25, %v7096_v21  ;;  %v4554_v60 = vrot.slane %v4538_v16, %v7096_v21 }
 0x4b4   : > { %v4468_v19 = vmax.f32 %v4463_v34, 0.0  ;;  %v8807_v23 = vrot.slane %v4698_v58, %v7096_v21  ;;  %v4892_v14 = vcombine.low %v8786_v33, %v8795_v37 }
 0x4b5   : > { %v4561_v12 = vrot.slane %v4539_v42, %v7096_v21  ;;  %v4568_v24 = vrot.slane %v4540_v10, %v7096_v21  ;;  %v4569_v61 = vcombine.high %v4547_v27, %v4547_v27  ;;  %v4570_v13 = vcombine.high %v4554_v60, %v4554_v60  ;;  %v4859_v10 = vld [vmem:[#allocation13 + $0x8] sm:$0xf] }
 0x4b6   : > { %v4644_v28 = vshll.u32 %v4547_v27, 16  ;;  %v4862_v38 = vcombine.low %v8769_v35, %v4547_v27  ;;  %v5035_v36 = vshrl.u32 %v4554_v60, 16  ;;  %v4471_v43 = vpack.c.bf16 %v4468_v19, %v4468_v19 }
 0x4b7   : > { %v4571_v57 = vcombine.high %v4561_v12, %v4561_v12  ;;  %v4648_v6 = vshrl.u32 %v4561_v12, 16  ;;  %v4653_v7 = vshll.u32 %v4569_v61, 16  ;;  %v4656_v51 = vshrl.u32 %v4569_v61, 16 }
 0x4b8   : > { %v4646_v30 = vsel %vm7307_vm6, %v4639_v52, %v4644_v28  ;;  %v4765_v20 = vcombine.low %v4561_v12, %v4569_v61  ;;  %v5793_v15 = vcombine.high %v4547_v27, %v4561_v12  ;;  %v4960_v54 = vcombine.low %v4554_v60, %v4568_v24 }
 0x4b9   : > { %v4655_v32 = vsel %vm7307_vm6, %v4648_v6, %v4653_v7  ;;  %v4661_v62 = vshll.u32 %v4571_v57, 16  ;;  %v4668_v48 = vcombine.low %v4638_v9, %v4646_v30  ;;  %v5040_v2 = vshll.u32 %v4568_v24, 16 }
 0x4ba   : > { %v4793_v35 = vrot.slane %v4765_v20, %v7096_v21  ;;  %v8823_v8 = vrot.slane %v4960_v54, %v7096_v21  ;;  %v5043_v31 = vshrl.u32 %v4568_v24, 16  ;;  %v5048_v4 = vshll.u32 %v4570_v13, 16 }
 0x4bb   : > { %v4663_v47 = vsel %vm7307_vm6, %v4656_v51, %v4661_v62  ;;  %v5042_v52 = vsel %vm7307_vm6, %v5035_v36, %v5040_v2  ;;  %v5129_v49 = vcombine.low %v4568_v24, %v4570_v13  ;;  %v4572_v45 = vcombine.high %v4568_v24, %v4568_v24  ;;  %v5128_v51 = vld [vmem:[#allocation13 + $0x14] sm:$0xf] }
 0x4bc   : > { %v4669_v17 = vcombine.low %v4655_v32, %v4663_v47  ;;  %v5050_v5 = vsel %vm7307_vm6, %v5043_v31, %v5048_v4  ;;  %v4579_v29 = vrot.slane %v4471_v43, %v7096_v21  ;;  %v4795_v18 = vcombine.low %v4786_v63, %v4793_v35 }
 0x4bd   : > { %v5053_v22 = vcombine.low %v5042_v52, %v5050_v5  ;;  %v5136_v56 = vrot.slane %v5129_v49, %v7096_v21  ;;  %v5272_v11 = vshrl.u32 %v4572_v45, 16  ;;  %v4690_v40 = vrot.slane %v4668_v48, %v7096_v21  ;;  %v5289_v5 = vld [vmem:[#allocation13 + $0x1c] sm:$0xf] }
 0x4be   : > { %v4580_v3 = vcombine.high %v4579_v29, %v4579_v29  ;;  %v4587_v44 = vrot.slane %v4579_v29, %v7096_v21  ;;  %v8836_v39 = vrot.slane %v4795_v18, %v7096_v21  ;;  %v4697_v1 = vrot.slane %v4669_v17, %v7096_v21  ;;  %v5204_v29 = vld [vmem:[#allocation13 + $0x18] sm:$0xf] }
 0x4bf   : > { %v4969_v33 = vcombine.low %v4793_v35, %v8823_v8  ;;  %v4884_v55 = vrot.slane %v4862_v38, %v7096_v21  ;;  %v4891_v63 = vrot.slane %v5793_v15, %v7096_v21  ;;  %v4900_v25 = vrot.slane %v4892_v14, %v7096_v21  ;;  %v5052_v35 = vld [vmem:[#allocation13 + $0x10] sm:$0xf] }
 0x4c0   : > { %v4594_v16 = vrot.slane %v4580_v3, %v7096_v21  ;;  %v5205_v53 = vcombine.low %v4572_v45, %v4587_v44  ;;  %v5277_v9 = vshll.u32 %v4587_v44, 16  ;;  %v5280_v34 = vshrl.u32 %v4587_v44, 16 }
 0x4c1   : > { %v4810_v58 = vcombine.low %v8801_v0, %v8836_v39  ;;  %v4699_v42 = vcombine.low %v4690_v40, %v4697_v1  ;;  %v4983_v27 = vrot.slane %v4969_v33, %v7096_v21  ;;  %v4893_v60 = vcombine.low %v4884_v55, %v4891_v63 }
 0x4c2   : > { %v5212_v19 = vrot.slane %v5205_v53, %v7096_v21  ;;  %v5279_v12 = vsel %vm7307_vm6, %v5272_v11, %v5277_v9  ;;  %v5285_v24 = vshll.u32 %v4594_v16, 16  ;;  %v5358_v14 = vcombine.low %v4587_v44, %v4594_v16 }
 0x4c3   : > { %6173 = vmatmul.mubr.msk.bf16.vlgmr.msra.gmra.mrb[112].mxu0 %vm1072_vm3, %v4810_v58  ;;  %v4713_v61 = vrot.slane %v4699_v42, %v7096_v21  ;;  %v4984_v13 = vcombine.low %v8810_v46, %v4983_v27  ;;  %v8854_v0 = vrot.slane %v4893_v60, %v7096_v21  ;;  %v5137_v28 = vcombine.low %v8795_v37, %v4884_v55 }
 0x4c4   : > { %v5287_v38 = vsel %vm7307_vm6, %v5280_v34, %v5285_v24  ;;  %v5365_v36 = vrot.slane %v5358_v14, %v7096_v21  ;;  %v4913_v43 = vsel %vm1082_vm12, %v4859_v10, 0  ;;  %6183 = vmatpush3.bf16.msra.mxu0 %v8765_v41  ;;  %6184 = vmatprep.mubr.msk.bf16.mxu0 %vm6681_vm0, %v9157_v59  ;;  %v5138_v57 = vcombine.low %v4891_v63, %v5136_v56 }
 0x4c5   : > { %v5290_v6 = vcombine.low %v5279_v12, %v5287_v38  ;;  %v4714_v46 = vcombine.low %v8807_v23, %v4713_v61  ;;  %6194 = vmatprep.subr.bf16.mxu0 %v9157_v59  ;;  %v4908_v37 = vcombine.low %v4900_v25, %v8854_v0  ;;  %v5145_v50 = vrot.slane %v5137_v28, %v7096_v21 }
 0x4c6   : > { %v5366_v7 = vcombine.low %v5136_v56, %v5365_v36  ;;  %v5152_v30 = vrot.slane %v5138_v57, %v7096_v21  ;;  %v5060_v20 = vrot.slane %v5053_v22, %v7096_v21  ;;  %v5061_v41 = vcombine.low %v8790_v26, %v4690_v40  ;;  %v5357_v22 = vld [vmem:[#allocation13 + $0x20] sm:$0xf] }
 0x4c7   : > { %6167 = vmatmul.mubr.msk.bf16.vlgmr.msra.gmra.mrb[108].mxu1 %vm1072_vm3, %v4714_v46  ;;  %v5297_v15 = vrot.slane %v5290_v6, %v7096_v21  ;;  %v5213_v23 = vcombine.low %v8823_v8, %v5212_v19  ;;  %v5158_v62 = vsel %vm1082_vm12, %v5128_v51, 0  ;;  %v5082_v45 = vsel %vm1082_vm12, %v5052_v35, 0 }
 0x4c8   : > { %6177 = vmatpush3.bf16.msra.mxu1 %v4913_v43  ;;  %6178 = vmatprep.mubr.msk.bf16.mxu1 %vm6681_vm0, %v9157_v59  ;;  %v5153_v54 = vcombine.low %v5145_v50, %v5152_v30  ;;  %v5062_v32 = vcombine.low %v4697_v1, %v5060_v20  ;;  %v5373_v26 = vrot.slane %v5366_v7, %v7096_v21  ;;  %v5226_v18 = vsel %vm1082_vm12, %v5204_v29, 0 }
 0x4c9   : > { %6188 = vmatprep.subr.bf16.mxu1 %v9157_v59  ;;  %v5298_v48 = vcombine.low %v5060_v20, %v5297_v15  ;;  %v5220_v2 = vrot.slane %v5213_v23, %v7096_v21  ;;  %v5069_v31 = vrot.slane %v5061_v41, %v7096_v21  ;;  %v5379_v56 = vsel %vm1082_vm12, %v5357_v22, 0 }
 0x4ca   : > { %v5076_v8 = vrot.slane %v5062_v32, %v7096_v21  ;;  %v5374_v52 = vcombine.low %v8854_v0, %v5373_v26 }
 0x4cb   : > { %6185 = vmatmul.mubr.msk.bf16.vlgmr.msra.gmra.mrb[116].mxu0 %vm1072_vm3, %v4984_v13  ;;  %v5305_v4 = vrot.slane %v5298_v48, %v7096_v21  ;;  %v5221_v47 = vcombine.low %v8836_v39, %v5220_v2  ;;  %v5311_v21 = vsel %vm1082_vm12, %v5289_v5, 0  ;;  %v5805_v2 = vld [vmem:[#allocation14] ss:$0 sm:$0xff] }
 0x4cc   : > { %6195 = vmatpush3.bf16.msra.mxu0 %v5158_v62  ;;  %6196 = vmatprep.mubr.msk.bf16.mxu0 %vm6681_vm0, %v9157_v59  ;;  %v5077_v49 = vcombine.low %v5069_v31, %v5076_v8 }
 0x4cd   : > { %6206 = vmatprep.subr.bf16.mxu0 %v9157_v59  ;;  %v5306_v17 = vcombine.low %v4713_v61, %v5305_v4 }
 0x4cf   : > { %6179 = vmatmul.mubr.msk.bf16.vlgmr.msra.gmra.mrb[112].mxu1 %vm1072_vm3, %v4908_v37 }
 0x4d0   : > { %6189 = vmatpush3.bf16.msra.mxu1 %v5082_v45  ;;  %6190 = vmatprep.mubr.msk.bf16.mxu1 %vm6681_vm0, %v9157_v59 }
 0x4d1   : > { %6200 = vmatprep.subr.bf16.mxu1 %v9157_v59 }
 0x4d3   : > { %6197 = vmatmul.mubr.msk.bf16.vlgmr.msra.gmra.mrb[120].mxu0 %vm1072_vm3, %v5153_v54 }
 0x4d4   : > { %6207 = vmatpush3.bf16.msra.mxu0 %v5311_v21  ;;  %6208 = vmatprep.mubr.msk.bf16.mxu0 %vm6681_vm0, %v9157_v59 }
 0x4d7   : > { %6191 = vmatmul.mubr.msk.bf16.vlgmr.msra.gmra.mrb[116].mxu1 %vm1072_vm3, %v5077_v49 }
 0x4d8   : > { %6201 = vmatpush3.bf16.msra.mxu1 %v5226_v18  ;;  %6202 = vmatprep.mubr.msk.bf16.mxu1 %vm6681_vm0, %v9157_v59 }
 0x4d9   : > { %6212 = vmatprep.subr.bf16.mxu1 %v9157_v59 }
 0x4db   : > { %6209 = vmatmul.mubr.msk.bf16.vlgmr.msra.gmra.mrb[124].mxu0 %vm1072_vm3, %v5306_v17 }
 0x4df   : > { %6203 = vmatmul.mubr.msk.bf16.vlgmr.msra.gmra.mrb[120].mxu1 %vm1072_vm3, %v5221_v47 }
 0x4e0   : > { %6213 = vmatpush3.bf16.msra.mxu1 %v5379_v56  ;;  %6214 = vmatprep.mubr.msk.bf16.mxu1 %vm6681_vm0, %v9157_v59  ;;  %vm5445_vm0 = vcmask 58368  }
 0x4e7   : > { %6215 = vmatmul.mubr.msk.bf16.vlgmr.msra.gmra.mrb[124].mxu1 %vm1072_vm3, %v5374_v52 }
 0x596   : > { %v4851_v11 = vpop.f32.mrb[112].mxu0 }
 0x597   : > { %v6174_v40 = vpop.f32.mrb[113].mxu0 }
 0x598   : > { %v4854_v3 = vpop.f32.mrb[114].mxu0 }
 0x599   : > { %v6175_v44 = vpop.f32.mrb[115].mxu0 }
 0x59a   : > { %v4755_v39 = vpop.f32.mrb[108].mxu1 }
 0x59b   : > { %v4852_v1 = vadd.f32 %v4851_v11, %v4755_v39  ;;  %v6168_v33 = vpop.f32.mrb[109].mxu1 }
 0x59c   : > { %v4758_v55 = vpop.f32.mrb[110].mxu1 }
 0x59d   : > { %v4855_v63 = vadd.f32 %v4854_v3, %v4758_v55  ;;  %v6169_v25 = vpop.f32.mrb[111].mxu1 }
 0x59e   : > { %v5025_v16 = vpop.f32.mrb[116].mxu0 }
 0x59f   : > { %v6186_v53 = vpop.f32.mrb[117].mxu0 }
 0x5a0   : > { %v5028_v9 = vpop.f32.mrb[118].mxu0 }
 0x5a1   : > { %v6187_v34 = vpop.f32.mrb[119].mxu0 }
 0x5a2   : > { %v4949_v58 = vpop.f32.mrb[112].mxu1 }
 0x5a3   : > { %v4956_v42 = vadd.f32 %v4949_v58, %v4852_v1  ;;  %v6180_v10 = vpop.f32.mrb[113].mxu1 }
 0x5a4   : > { %v4952_v59 = vpop.f32.mrb[114].mxu1 }
 0x5a5   : > { %v4957_v27 = vadd.f32 %v4952_v59, %v4855_v63  ;;  %v6181_v60 = vpop.f32.mrb[115].mxu1  ;;  %v5032_v19 = vadd.f32 %v5025_v16, %v4956_v42 }
 0x5a6   : > { %v5194_v12 = vpop.f32.mrb[120].mxu0 }
 0x5a7   : > { %v6198_v24 = vpop.f32.mrb[121].mxu0  ;;  %v5033_v14 = vadd.f32 %v5028_v9, %v4957_v27 }
 0x5a8   : > { %v5197_v61 = vpop.f32.mrb[122].mxu0 }
 0x5a9   : > { %v6199_v13 = vpop.f32.mrb[123].mxu0 }
 0x5aa   : > { %v5118_v0 = vpop.f32.mrb[116].mxu1 }
 0x5ab   : > { %v5125_v28 = vadd.f32 %v5118_v0, %v5032_v19  ;;  %v6192_v38 = vpop.f32.mrb[117].mxu1 }
 0x5ac   : > { %v5121_v36 = vpop.f32.mrb[118].mxu1 }
 0x5ad   : > { %v5126_v43 = vadd.f32 %v5121_v36, %v5033_v14  ;;  %v6193_v57 = vpop.f32.mrb[119].mxu1  ;;  %v5201_v6 = vadd.f32 %v5194_v12, %v5125_v28 }
 0x5ae   : > { %v5347_v46 = vpop.f32.mrb[124].mxu0 }
 0x5af   : > { %v6210_v37 = vpop.f32.mrb[125].mxu0  ;;  %v5202_v50 = vadd.f32 %v5197_v61, %v5126_v43 }
 0x5b0   : > { %v5350_v7 = vpop.f32.mrb[126].mxu0 }
 0x5b1   : > { %v6211_v51 = vpop.f32.mrb[127].mxu0 }
 0x5b2   : > { %v5262_v30 = vpop.f32.mrb[120].mxu1 }
 0x5b3   : > { %v5269_v20 = vadd.f32 %v5262_v30, %v5201_v6  ;;  %v6204_v41 = vpop.f32.mrb[121].mxu1 }
 0x5b4   : > { %v5265_v15 = vpop.f32.mrb[122].mxu1 }
 0x5b5   : > { %v5270_v23 = vadd.f32 %v5265_v15, %v5202_v50  ;;  %v6205_v54 = vpop.f32.mrb[123].mxu1  ;;  %v5354_v32 = vadd.f32 %v5347_v46, %v5269_v20 }
 0x5b7   : > { %v5355_v62 = vadd.f32 %v5350_v7, %v5270_v23 }
 0x5ba   : > { %v5415_v48 = vpop.f32.mrb[124].mxu1 }
 0x5bb   : > { %v5422_v26 = vadd.f32 %v5415_v48, %v5354_v32  ;;  %v6216_v35 = vpop.f32.mrb[125].mxu1 }
 0x5bc   : > { %v5418_v31 = vpop.f32.mrb[126].mxu1 }
 0x5bd   : > { %v5431_v8 = vadd.f32 %v5805_v2, %v5422_v26  ;;  %v5423_v4 = vadd.f32 %v5418_v31, %v5355_v62  ;;  %v6217_v47 = vpop.f32.mrb[127].mxu1 }
 0x5bf   : > { %v5433_v52 = vmax.f32 %v5431_v8, 0.0  ;;  %v5432_v49 = vadd.f32 %v5805_v2, %v5423_v4 }
 0x5c1   : > { %v5437_v45 = vcombine.high %v5433_v52, %v5433_v52  ;;  %v5441_v17 = vpack.c.bf16 %v5433_v52, %v5433_v52  ;;  %v5434_v5 = vmax.f32 %v5432_v49, 0.0 }
 0x5c3   : > { %v5442_v21 = vpack.c.bf16 %v5437_v45, %v5437_v45  ;;  %5446 = vst.msk [vmem:[%s446_s10] sm:$0x3] %vm5445_vm0, %v5441_v17  ;;  %v5438_v29 = vcombine.high %v5434_v5, %v5434_v5  ;;  %v5443_v18 = vpack.c.bf16 %v5434_v5, %v5434_v5 }
 0x5c5   : > { %5447 = vst.msk [vmem:[%s446_s10 + $0x2] sm:$0x3] %vm5445_vm0, %v5442_v21  ;;  %v5444_v22 = vpack.c.bf16 %v5438_v29, %v5438_v29  ;;  %5448 = vst.msk [vmem:[%s446_s10 + $0x4] sm:$0x3] %vm5445_vm0, %v5443_v18 }
 0x5c7   : > { %5449 = vst.msk [vmem:[%s446_s10 + $0x6] sm:$0x3] %vm5445_vm0, %v5444_v22 }
 0x5c8   : > { %6593 = shalt.err (!%p6590_p3)
}
 0x5c9   : > { %s6594_s20 = scalar_lea.hbm %s8916_s0, 128  ;;  %s6598_s4 = scalar_lea.hbm %s8973_s8, 256 }
 0x5ca   : > { %p6595_p12 = scmp.ne.s32.totalorder %s8916_s0, %s6594_s20  ;;  %p6599_p0 = scmp.lt.u32.totalorder %s8916_s0, %s8973_s8 }
 0x5cb   : > { %p6600_p6 = scmp.lt.u32.totalorder %s6598_s4, %s6594_s20  ;;  %p6602_p4 = scmp.lt.u32.totalorder %s6594_s20, %s8916_s0 }
 0x5cc   : > { %p6596_p1 = pnand %p6595_p12, %p9252_p10 }
 0x5cd   : > { %p6601_p2 = por %p6600_p6, %p6599_p0 }
 0x5ce   : > { %p6597_p13 = pneg %p6596_p1 }
 0x5cf   : > { %p6603_p5 = por %p6602_p4, %p6601_p2 }
 0x5d1   : > { %p6604_p7 = pnand %p6603_p5, %p6597_p13 }
 0x5d3   : > { %6607 = shalt.err (!%p6604_p7)
}
 0x5d4   : > { %s6687_s18 = smov 32   ;;  %s6688_s21 = smov 2  }
 0x5d5   : > { %6246 = dma.vmem_to_hbm [thread:$0]  (%p9252_p10), %s8918_s24, 128, %s8916_s0, %s5451_s11, %s6687_s18, %s6687_s18, %s6688_s21  }
 0x5d6 PF: > { %s5479_s19 = sand.u32 1, %s6654_s27   ;;  %p9253_p9 = scmp.ne.s32.totalorder %s9074_s17, 0 }
 0x5d7   : > { %p9254_p8 = scmp.ge.s32.totalorder %s6666_s30, 2  ;;  %s5480_s3 = scalar_lea.sflag [#allocation4], %s5479_s19 }
 0x5d9   : > { %p6275_p11 = pnand %p9254_p8, %p9253_p9 }
 0x5db   : > { %6649 = dma.done.wait (!%p6275_p11), %s5480_s3, 128  }
 0x5dc   : > { %6651 = vsyncadd (!%p6275_p11), %s5480_s3, 4294967168  ;;  %p27_p3 = scmp.ge.s32.totalorder %s6923_s15, 4   ;;  %s9255_s27 = smov %s6658_s28 }
 0x5dd   : > { %s9256_s28 = smov %s6662_s29  ;;  %s9257_s29 = smov %s6934_s26 }
 0x5de   : > { %s9258_s30 = smov %s6923_s15  ;;  %29 = sbr.rel (!%p27_p3) target bundleno = 18 (0x12), region = 158 }
 0x5e5   :  { %5485 = vsyncpa [#allocation3], 1 }
 0x5e6   :  { %5487 = vsyncpa [#allocation3 + $0x1], 1 }
 0x5e7   :  { %5488 = vsyncpa [#allocation6], 1 }
 0x5e8   :  { %5490 = vsyncpa [#allocation6 + $0x1], 1 }
 0x5e9   :  { %5491 = vsyncpa [#allocation9], 1 }
 0x5ea   :  { %5492 = vsyncpa [#allocation12], 1 }
 0x5eb   :  { %5493 = vsyncpa [#allocation15], 1 }
 0x5ec   :  { %5494 = vsyncpa [#allocation4], 1 }
 0x5ed   :  { %5496 = vsyncpa [#allocation4 + $0x1], 1 }

</bundles_post_ra>
